<compile_context>
chip_gen: v6e
topology: v6e:2x2x1
jax: 0.10.0
libtpu: 0.0.40
codegen_flags: <defaults>
</compile_context>

<pallas_src>
import numpy as np
import jax
import jax.numpy as jnp
from jax.experimental import pallas as pl
from jax.experimental.pallas import tpu as pltpu

LANES = 128
TB = 8                      # images per grid step (multiple of 8 -> dense stores)
R1 = (TB - 1) * 16 + 14     # compute rows, conv1/pool1 stage  (row = b*16 + p, p<14)
R2 = (TB - 1) * 16 + 10     # compute rows, conv2 stage        (row = b*16 + oh, oh<10)
R3 = (TB - 1) * 16 + 1      # compute rows, pool2+conv3 stage  (row = b*16 valid)


# ---------------------------------------------------------------------------
# One-time parameter packing (hoisted out of the per-call path).
# All convolutions are re-expressed as banded matrices so each stage is a
# small number of deep-K MXU matmuls over 8-sublane-aligned row slabs.
# ---------------------------------------------------------------------------
def _pack_params(params):
    w1, b1 = params["conv1"]     # (6,1,5,5), (6,)
    w2, b2 = params["conv2"]     # (16,6,5,5), (16,)
    w3, b3 = params["conv3"]     # (120,16,5,5), (120,)
    wf1, bf1 = params["fc1"]     # (120,84), (84,)
    wf2, bf2 = params["fc2"]     # (84,nc), (nc,)
    nc = wf2.shape[1]
    f32, bf16 = jnp.float32, jnp.bfloat16

    def banded(flat_w, idx, msk, scale=1.0):
        gathered = scale * flat_w[jnp.asarray(idx)]
        return jnp.where(jnp.asarray(msk), gathered, 0.0).astype(f32)

    # conv1: M1[dj*5+kh][w, q*8+c] = w1[c,0,kh, w-2q-dj]
    #   rows of the padded image (32 lanes) -> (pooled col q, channel c) lanes.
    idx = np.zeros((10, 32, LANES), np.int32)
    msk = np.zeros((10, 32, LANES), bool)
    for dj in range(2):
        for kh in range(5):
            m = dj * 5 + kh
            for q in range(14):
                for c in range(6):
                    for kw in range(5):
                        w_ = 2 * q + dj + kw
                        idx[m, w_, q * 8 + c] = (c * 5 + kh) * 5 + kw
                        msk[m, w_, q * 8 + c] = True
    m1 = banded(w1.reshape(-1).astype(f32), idx, msk).astype(bf16)

    idxb = np.zeros((1, LANES), np.int32)
    mskb = np.zeros((1, LANES), bool)
    for q in range(14):
        for c in range(6):
            idxb[0, q * 8 + c] = c
            mskb[0, q * 8 + c] = True
    b1r = banded(b1.astype(f32), idxb, mskb)

    # conv2: K2[kh][q*8+ci, ow*16+co] = w2[co,ci,kh, q-ow]   (K = 128 lanes deep)
    idx = np.zeros((5, LANES, 256), np.int32)
    msk = np.zeros((5, LANES, 256), bool)
    for kh in range(5):
        for ow in range(10):
            for co in range(16):
                for kw in range(5):
                    q = ow + kw
                    for ci in range(6):
                        idx[kh, q * 8 + ci, ow * 16 + co] = ((co * 6 + ci) * 5 + kh) * 5 + kw
                        msk[kh, q * 8 + ci, ow * 16 + co] = True
    k2 = banded(w2.reshape(-1).astype(f32), idx, msk).astype(bf16)

    idxb = np.zeros((1, 256), np.int32)
    mskb = np.zeros((1, 256), bool)
    for ow in range(10):
        for co in range(16):
            idxb[0, ow * 16 + co] = co
            mskb[0, ow * 16 + co] = True
    b2r = banded(b2.astype(f32), idxb, mskb)

    # pool2 + conv3 fused (both linear after tanh2):
    #   G[r][ow*16+ci, c3] = 0.25 * w3[c3, ci, r, ow//2]      (K = 256 lanes deep)
    idx = np.zeros((5, 256, LANES), np.int32)
    msk = np.zeros((5, 256, LANES), bool)
    for r in range(5):
        for ow in range(10):
            for ci in range(16):
                for c3 in range(120):
                    idx[r, ow * 16 + ci, c3] = ((c3 * 16 + ci) * 5 + r) * 5 + (ow // 2)
                    msk[r, ow * 16 + ci, c3] = True
    g = banded(w3.reshape(-1).astype(f32), idx, msk, scale=0.25)

    b3r = jnp.zeros((1, LANES), f32).at[0, :120].set(b3.astype(f32))
    wf1m = jnp.zeros((LANES, LANES), f32).at[:120, :84].set(wf1.astype(f32))
    bf1r = jnp.zeros((1, LANES), f32).at[0, :84].set(bf1.astype(f32))
    wf2m = jnp.zeros((LANES, LANES), f32).at[:84, :nc].set(wf2.astype(f32))
    bf2r = jnp.zeros((1, LANES), f32).at[0, :nc].set(bf2.astype(f32))
    return (m1, b1r, k2, b2r, g, b3r, wf1m, bf1r, wf2m, bf2r), nc


def _phase_images(x, b_pad):
    """(B,1,28,28) -> (2, b_pad*16, 32) bf16.

    xp = 2-padded 32x32 image; plane ra holds rows 2i+ra of xp, row-major in
    (b, i).  This is only 4 KiB/image of HBM (vs 98 KiB for host-side im2col);
    the im2col is done in-kernel via shifted slices of these planes.
    """
    B = x.shape[0]
    xp = jnp.pad(x[:, 0].astype(jnp.float32), ((0, b_pad - B), (2, 2), (2, 2)))
    xph = xp.reshape(b_pad, 16, 2, 32).transpose(2, 0, 1, 3)
    return xph.reshape(2, b_pad * 16, 32).astype(jnp.bfloat16)


# ---------------------------------------------------------------------------
# The fused per-batch-tile kernel (processes TB=8 images per grid step).
# ---------------------------------------------------------------------------
def _lenet_kernel(ximg_ref, m1_ref, b1_ref, k2_ref, b2_ref, g_ref, b3_ref,
                  wf1_ref, bf1_ref, wf2_ref, bf2_ref, out_ref,
                  pool1_ref, act2_ref):
    f32, bf16 = jnp.float32, jnp.bfloat16

    # ---- conv1 + tanh + pool1 (register accumulation, one store) ----------
    # Output layout: row = b*16 + p (pooled row, 14 valid of 16),
    #                lane = q*8 + c (pooled col q < 14, conv1 channel c < 6).
    planes = (ximg_ref[0], ximg_ref[1])            # each (TB*16, 32) bf16
    pool_acc = jnp.zeros((R1, LANES), f32)
    for di in range(2):
        for dj in range(2):                        # the four 2x2-pool phases
            acc = jnp.zeros((R1, LANES), f32)
            for kh in range(5):
                a = di + kh                        # padded-image row = 2p + a
                lhs = planes[a & 1][(a >> 1):(a >> 1) + R1, :]
                acc += jnp.dot(lhs, m1_ref[dj * 5 + kh],
                               preferred_element_type=f32)
            pool_acc += jnp.tanh(acc + b1_ref[...])
    pool1_ref[...] = 0.25 * pool_acc

    # ---- conv2 + tanh: 5 deep-K (128) banded matmuls, one store -----------
    # Output layout: row = b*16 + oh (oh < 10), lane = ow*16 + co (ow<10, co<16).
    acc2 = jnp.zeros((R2, 256), f32)
    for kh in range(5):
        lhs = pool1_ref[kh:kh + R2, :].astype(bf16)
        acc2 += jnp.dot(lhs, k2_ref[kh], preferred_element_type=f32)
    act2_ref[...] = jnp.tanh(acc2 + b2_ref[...])

    # ---- pool2 + conv3 fused into 10 deep-K (256) matmuls on the MXU ------
    acc3 = jnp.zeros((R3, LANES), f32)
    for oh in range(10):
        acc3 += jnp.dot(act2_ref[oh:oh + R3, :], g_ref[oh // 2],
                        preferred_element_type=f32)
    # one valid row per image (row b*16) -> (TB, 128) staging, then tanh3.
    a3 = jnp.concatenate([acc3[b * 16:b * 16 + 1, :] for b in range(TB)], axis=0)
    a3 = jnp.tanh(a3 + b3_ref[...])

    # ---- flatten + fc1 + fc2, batched; single dense (8,128) store ---------
    h = jnp.dot(a3, wf1_ref[...], preferred_element_type=f32) + bf1_ref[...]
    o = jnp.dot(h, wf2_ref[...], preferred_element_type=f32) + bf2_ref[...]
    out_ref[...] = o.astype(out_ref.dtype)


def _lenet_call(ximg, packed, b_pad):
    consts = packed
    grid = (b_pad // TB,)

    in_specs = [pl.BlockSpec((2, TB * 16, 32), lambda i: (0, i, 0))]
    for c in consts:  # constants: full blocks, never re-fetched across steps
        in_specs.append(pl.BlockSpec(c.shape, lambda i, _nd=c.ndim: (0,) * _nd))

    flops = grid[0] * 2 * (20 * R1 * 32 * LANES + 5 * R2 * LANES * 256
                           + 10 * R3 * 256 * LANES + 2 * TB * LANES * LANES)
    trans = grid[0] * (4 * R1 * LANES + R2 * 256 + TB * LANES)
    nbytes = int(ximg.size * ximg.dtype.itemsize
                 + sum(c.size * c.dtype.itemsize for c in consts)
                 + b_pad * LANES * 4)

    return pl.pallas_call(
        _lenet_kernel,
        out_shape=jax.ShapeDtypeStruct((b_pad, LANES), jnp.float32),
        grid=grid,
        in_specs=in_specs,
        out_specs=pl.BlockSpec((TB, LANES), lambda i: (i, 0)),
        scratch_shapes=[
            pltpu.VMEM((R1, LANES), jnp.float32),   # pooled conv1 activation
            pltpu.VMEM((R2, 256), jnp.float32),     # conv2 activation
        ],
        compiler_params=pltpu.CompilerParams(
            dimension_semantics=("parallel",)),
        cost_estimate=pl.CostEstimate(
            flops=int(flops), transcendentals=int(trans), bytes_accessed=nbytes),
    )(ximg, *consts)


def make_lenet_forward(params, num_classes=10):
    packed, nc = _pack_params(params)          # hoisted: runs once, not per call
    assert nc == num_classes

    @jax.jit
    def forward(x):
        B = x.shape[0]
        b_pad = ((B + TB - 1) // TB) * TB       # batch padded to the 8-image tile
        ximg = _phase_images(x, b_pad)
        out = _lenet_call(ximg, packed, b_pad)  # (b_pad, 128) lane-dense
        return out[:B, :nc]
    return forward


# ---------------------------------------------------------------------------
# Parameters (deterministic, PyTorch-style uniform fan-in init)
# ---------------------------------------------------------------------------
def init_lenet_params(key, num_classes=10):
    def conv_init(key, cout, cin, k):
        bound = 1.0 / (cin * k * k) ** 0.5
        k1, k2 = jax.random.split(key)
        w = jax.random.uniform(k1, (cout, cin, k, k), jnp.float32, -bound, bound)
        b = jax.random.uniform(k2, (cout,), jnp.float32, -bound, bound)
        return w, b

    def fc_init(key, nin, nout):
        bound = 1.0 / nin ** 0.5
        k1, k2 = jax.random.split(key)
        w = jax.random.uniform(k1, (nin, nout), jnp.float32, -bound, bound)
        b = jax.random.uniform(k2, (nout,), jnp.float32, -bound, bound)
        return w, b

    ks = jax.random.split(key, 5)
    return {
        "conv1": conv_init(ks[0], 6, 1, 5),
        "conv2": conv_init(ks[1], 16, 6, 5),
        "conv3": conv_init(ks[2], 120, 16, 5),
        "fc1": fc_init(ks[3], 120, 84),
        "fc2": fc_init(ks[4], 84, num_classes),
    }


# ---------------------------------------------------------------------------
# Pure-JAX reference (numerical self-check only)
# ---------------------------------------------------------------------------
def _lenet_reference(params, x):
    def conv(x, w, b, pad):
        y = jax.lax.conv_general_dilated(
            x, w, window_strides=(1, 1), padding=((pad, pad), (pad, pad)),
            dimension_numbers=("NCHW", "OIHW", "NCHW"))
        return y + b[None, :, None, None]

    def pool(x):
        B, C, H, W = x.shape
        return x.reshape(B, C, H // 2, 2, W // 2, 2).mean(axis=(3, 5))

    x = jnp.tanh(conv(x, *params["conv1"], 2))
    x = pool(x)
    x = jnp.tanh(conv(x, *params["conv2"], 0))
    x = pool(x)
    x = jnp.tanh(conv(x, *params["conv3"], 0))
    x = x.reshape(x.shape[0], -1)
    x = x @ params["fc1"][0] + params["fc1"][1]
    x = x @ params["fc2"][0] + params["fc2"][1]
    return x


if __name__ == "__main__":
    key = jax.random.PRNGKey(0)
    pkey, xkey = jax.random.split(key)
    params = init_lenet_params(pkey, num_classes=10)

    # Gray images: batch=2, 1 channel, 28x28 (implied by fc1 in_features=120).
    x = jax.random.normal(xkey, (2, 1, 28, 28), dtype=jnp.float32)

    forward = make_lenet_forward(params, num_classes=10)
    out = jax.block_until_ready(forward(x))
    assert out.shape == (2, 10), out.shape
    assert out.dtype == jnp.float32

    ref = _lenet_reference(params, x)
    err = float(jnp.max(jnp.abs(out - ref)))
    # conv1/conv2 MXU inputs run in bf16 (per review) -> tolerance loosened.
    assert err < 3e-2, f"max abs error vs reference: {err}"

    print("KERNEL_OK")
</pallas_src>

<mosaic_0001>
module attributes {stable_mosaic.version = 11 : i64} {
  func.func @_lenet_kernel(%arg0: i32, %arg1: memref<2x128x32xbf16, #tpu.memory_space<vmem>>, %arg2: memref<10x32x128xbf16, #tpu.memory_space<vmem>>, %arg3: memref<1x128xf32, #tpu.memory_space<vmem>>, %arg4: memref<5x128x256xbf16, #tpu.memory_space<vmem>>, %arg5: memref<1x256xf32, #tpu.memory_space<vmem>>, %arg6: memref<5x256x128xf32, #tpu.memory_space<vmem>>, %arg7: memref<1x128xf32, #tpu.memory_space<vmem>>, %arg8: memref<128x128xf32, #tpu.memory_space<vmem>>, %arg9: memref<1x128xf32, #tpu.memory_space<vmem>>, %arg10: memref<128x128xf32, #tpu.memory_space<vmem>>, %arg11: memref<1x128xf32, #tpu.memory_space<vmem>>, %arg12: memref<8x128xf32, #tpu.memory_space<vmem>>, %arg13: memref<126x128xf32, #tpu.memory_space<vmem>>, %arg14: memref<122x256xf32, #tpu.memory_space<vmem>>) attributes {dimension_semantics = [#tpu.dimension_semantics<parallel>], iteration_bounds = array<i64: 1>, scalar_prefetch = 0 : i64, scratch_operands = 2 : i64, tpu.core_type = #tpu.core_type<tc>, window_params = [{transform_indices = @transform_0, window_bounds = array<i64: 2, 128, 32>}, {pipeline_mode = #tpu.pipeline_mode<synchronous>, transform_indices = @transform_1, window_bounds = array<i64: 10, 32, 128>}, {pipeline_mode = #tpu.pipeline_mode<synchronous>, transform_indices = @transform_2, window_bounds = array<i64: 1, 128>}, {pipeline_mode = #tpu.pipeline_mode<synchronous>, transform_indices = @transform_3, window_bounds = array<i64: 5, 128, 256>}, {pipeline_mode = #tpu.pipeline_mode<synchronous>, transform_indices = @transform_4, window_bounds = array<i64: 1, 256>}, {pipeline_mode = #tpu.pipeline_mode<synchronous>, transform_indices = @transform_5, window_bounds = array<i64: 5, 256, 128>}, {pipeline_mode = #tpu.pipeline_mode<synchronous>, transform_indices = @transform_6, window_bounds = array<i64: 1, 128>}, {pipeline_mode = #tpu.pipeline_mode<synchronous>, transform_indices = @transform_7, window_bounds = array<i64: 128, 128>}, {pipeline_mode = #tpu.pipeline_mode<synchronous>, transform_indices = @transform_8, window_bounds = array<i64: 1, 128>}, {pipeline_mode = #tpu.pipeline_mode<synchronous>, transform_indices = @transform_9, window_bounds = array<i64: 128, 128>}, {pipeline_mode = #tpu.pipeline_mode<synchronous>, transform_indices = @transform_10, window_bounds = array<i64: 1, 128>}, {transform_indices = @transform_11, window_bounds = array<i64: 8, 128>}]} {
    %c0 = arith.constant 0 : index
    %c0_0 = arith.constant 0 : index
    %c0_1 = arith.constant 0 : index
    %0 = vector.load %arg1[%c0, %c0_0, %c0_1] : memref<2x128x32xbf16, #tpu.memory_space<vmem>>, vector<1x128x32xbf16>
    %1 = vector.shape_cast %0 : vector<1x128x32xbf16> to vector<128x32xbf16>
    %c1 = arith.constant 1 : index
    %c0_2 = arith.constant 0 : index
    %c0_3 = arith.constant 0 : index
    %2 = vector.load %arg1[%c1, %c0_2, %c0_3] : memref<2x128x32xbf16, #tpu.memory_space<vmem>>, vector<1x128x32xbf16>
    %3 = vector.shape_cast %2 : vector<1x128x32xbf16> to vector<128x32xbf16>
    %cst = arith.constant 0.000000e+00 : f32
    %4 = vector.broadcast %cst : f32 to vector<126x128xf32>
    %cst_4 = arith.constant 0.000000e+00 : f32
    %5 = vector.broadcast %cst_4 : f32 to vector<126x128xf32>
    %6 = vector.extract_strided_slice %1 {offsets = [0, 0], sizes = [126, 32], strides = [1, 1]} : vector<128x32xbf16> to vector<126x32xbf16>
    %c0_5 = arith.constant 0 : index
    %c0_6 = arith.constant 0 : index
    %c0_7 = arith.constant 0 : index
    %7 = vector.load %arg2[%c0_5, %c0_6, %c0_7] : memref<10x32x128xbf16, #tpu.memory_space<vmem>>, vector<1x32x128xbf16>
    %8 = vector.shape_cast %7 : vector<1x32x128xbf16> to vector<32x128xbf16>
    %cst_8 = arith.constant dense<0.000000e+00> : vector<126x128xf32>
    %9 = tpu.matmul %6, %8, %cst_8 {dimension_numbers = #tpu.dot_dimension_numbers<[1], [0], [0], [1], [0, 0, 1, 1], [], []>} : vector<126x32xbf16>, vector<32x128xbf16>, vector<126x128xf32> -> vector<126x128xf32>
    %10 = arith.addf %5, %9 : vector<126x128xf32>
    %11 = vector.extract_strided_slice %3 {offsets = [0, 0], sizes = [126, 32], strides = [1, 1]} : vector<128x32xbf16> to vector<126x32xbf16>
    %c1_9 = arith.constant 1 : index
    %c0_10 = arith.constant 0 : index
    %c0_11 = arith.constant 0 : index
    %12 = vector.load %arg2[%c1_9, %c0_10, %c0_11] : memref<10x32x128xbf16, #tpu.memory_space<vmem>>, vector<1x32x128xbf16>
    %13 = vector.shape_cast %12 : vector<1x32x128xbf16> to vector<32x128xbf16>
    %cst_12 = arith.constant dense<0.000000e+00> : vector<126x128xf32>
    %14 = tpu.matmul %11, %13, %cst_12 {dimension_numbers = #tpu.dot_dimension_numbers<[1], [0], [0], [1], [0, 0, 1, 1], [], []>} : vector<126x32xbf16>, vector<32x128xbf16>, vector<126x128xf32> -> vector<126x128xf32>
    %15 = arith.addf %10, %14 : vector<126x128xf32>
    %16 = vector.extract_strided_slice %1 {offsets = [1, 0], sizes = [126, 32], strides = [1, 1]} : vector<128x32xbf16> to vector<126x32xbf16>
    %c2 = arith.constant 2 : index
    %c0_13 = arith.constant 0 : index
    %c0_14 = arith.constant 0 : index
    %17 = vector.load %arg2[%c2, %c0_13, %c0_14] : memref<10x32x128xbf16, #tpu.memory_space<vmem>>, vector<1x32x128xbf16>
    %18 = vector.shape_cast %17 : vector<1x32x128xbf16> to vector<32x128xbf16>
    %cst_15 = arith.constant dense<0.000000e+00> : vector<126x128xf32>
    %19 = tpu.matmul %16, %18, %cst_15 {dimension_numbers = #tpu.dot_dimension_numbers<[1], [0], [0], [1], [0, 0, 1, 1], [], []>} : vector<126x32xbf16>, vector<32x128xbf16>, vector<126x128xf32> -> vector<126x128xf32>
    %20 = arith.addf %15, %19 : vector<126x128xf32>
    %21 = vector.extract_strided_slice %3 {offsets = [1, 0], sizes = [126, 32], strides = [1, 1]} : vector<128x32xbf16> to vector<126x32xbf16>
    %c3 = arith.constant 3 : index
    %c0_16 = arith.constant 0 : index
    %c0_17 = arith.constant 0 : index
    %22 = vector.load %arg2[%c3, %c0_16, %c0_17] : memref<10x32x128xbf16, #tpu.memory_space<vmem>>, vector<1x32x128xbf16>
    %23 = vector.shape_cast %22 : vector<1x32x128xbf16> to vector<32x128xbf16>
    %cst_18 = arith.constant dense<0.000000e+00> : vector<126x128xf32>
    %24 = tpu.matmul %21, %23, %cst_18 {dimension_numbers = #tpu.dot_dimension_numbers<[1], [0], [0], [1], [0, 0, 1, 1], [], []>} : vector<126x32xbf16>, vector<32x128xbf16>, vector<126x128xf32> -> vector<126x128xf32>
    %25 = arith.addf %20, %24 : vector<126x128xf32>
    %26 = vector.extract_strided_slice %1 {offsets = [2, 0], sizes = [126, 32], strides = [1, 1]} : vector<128x32xbf16> to vector<126x32xbf16>
    %c4 = arith.constant 4 : index
    %c0_19 = arith.constant 0 : index
    %c0_20 = arith.constant 0 : index
    %27 = vector.load %arg2[%c4, %c0_19, %c0_20] : memref<10x32x128xbf16, #tpu.memory_space<vmem>>, vector<1x32x128xbf16>
    %28 = vector.shape_cast %27 : vector<1x32x128xbf16> to vector<32x128xbf16>
    %cst_21 = arith.constant dense<0.000000e+00> : vector<126x128xf32>
    %29 = tpu.matmul %26, %28, %cst_21 {dimension_numbers = #tpu.dot_dimension_numbers<[1], [0], [0], [1], [0, 0, 1, 1], [], []>} : vector<126x32xbf16>, vector<32x128xbf16>, vector<126x128xf32> -> vector<126x128xf32>
    %30 = arith.addf %25, %29 : vector<126x128xf32>
    %c0_22 = arith.constant 0 : index
    %c0_23 = arith.constant 0 : index
    %31 = vector.load %arg3[%c0_22, %c0_23] : memref<1x128xf32, #tpu.memory_space<vmem>>, vector<1x128xf32>
    %32 = vector.broadcast %31 : vector<1x128xf32> to vector<126x128xf32>
    %33 = arith.addf %30, %32 : vector<126x128xf32>
    %34 = math.tanh %33 : vector<126x128xf32>
    %35 = arith.addf %4, %34 : vector<126x128xf32>
    %cst_24 = arith.constant 0.000000e+00 : f32
    %36 = vector.broadcast %cst_24 : f32 to vector<126x128xf32>
    %37 = vector.extract_strided_slice %1 {offsets = [0, 0], sizes = [126, 32], strides = [1, 1]} : vector<128x32xbf16> to vector<126x32xbf16>
    %c5 = arith.constant 5 : index
    %c0_25 = arith.constant 0 : index
    %c0_26 = arith.constant 0 : index
    %38 = vector.load %arg2[%c5, %c0_25, %c0_26] : memref<10x32x128xbf16, #tpu.memory_space<vmem>>, vector<1x32x128xbf16>
    %39 = vector.shape_cast %38 : vector<1x32x128xbf16> to vector<32x128xbf16>
    %cst_27 = arith.constant dense<0.000000e+00> : vector<126x128xf32>
    %40 = tpu.matmul %37, %39, %cst_27 {dimension_numbers = #tpu.dot_dimension_numbers<[1], [0], [0], [1], [0, 0, 1, 1], [], []>} : vector<126x32xbf16>, vector<32x128xbf16>, vector<126x128xf32> -> vector<126x128xf32>
    %41 = arith.addf %36, %40 : vector<126x128xf32>
    %42 = vector.extract_strided_slice %3 {offsets = [0, 0], sizes = [126, 32], strides = [1, 1]} : vector<128x32xbf16> to vector<126x32xbf16>
    %c6 = arith.constant 6 : index
    %c0_28 = arith.constant 0 : index
    %c0_29 = arith.constant 0 : index
    %43 = vector.load %arg2[%c6, %c0_28, %c0_29] : memref<10x32x128xbf16, #tpu.memory_space<vmem>>, vector<1x32x128xbf16>
    %44 = vector.shape_cast %43 : vector<1x32x128xbf16> to vector<32x128xbf16>
    %cst_30 = arith.constant dense<0.000000e+00> : vector<126x128xf32>
    %45 = tpu.matmul %42, %44, %cst_30 {dimension_numbers = #tpu.dot_dimension_numbers<[1], [0], [0], [1], [0, 0, 1, 1], [], []>} : vector<126x32xbf16>, vector<32x128xbf16>, vector<126x128xf32> -> vector<126x128xf32>
    %46 = arith.addf %41, %45 : vector<126x128xf32>
    %47 = vector.extract_strided_slice %1 {offsets = [1, 0], sizes = [126, 32], strides = [1, 1]} : vector<128x32xbf16> to vector<126x32xbf16>
    %c7 = arith.constant 7 : index
    %c0_31 = arith.constant 0 : index
    %c0_32 = arith.constant 0 : index
    %48 = vector.load %arg2[%c7, %c0_31, %c0_32] : memref<10x32x128xbf16, #tpu.memory_space<vmem>>, vector<1x32x128xbf16>
    %49 = vector.shape_cast %48 : vector<1x32x128xbf16> to vector<32x128xbf16>
    %cst_33 = arith.constant dense<0.000000e+00> : vector<126x128xf32>
    %50 = tpu.matmul %47, %49, %cst_33 {dimension_numbers = #tpu.dot_dimension_numbers<[1], [0], [0], [1], [0, 0, 1, 1], [], []>} : vector<126x32xbf16>, vector<32x128xbf16>, vector<126x128xf32> -> vector<126x128xf32>
    %51 = arith.addf %46, %50 : vector<126x128xf32>
    %52 = vector.extract_strided_slice %3 {offsets = [1, 0], sizes = [126, 32], strides = [1, 1]} : vector<128x32xbf16> to vector<126x32xbf16>
    %c8 = arith.constant 8 : index
    %c0_34 = arith.constant 0 : index
    %c0_35 = arith.constant 0 : index
    %53 = vector.load %arg2[%c8, %c0_34, %c0_35] : memref<10x32x128xbf16, #tpu.memory_space<vmem>>, vector<1x32x128xbf16>
    %54 = vector.shape_cast %53 : vector<1x32x128xbf16> to vector<32x128xbf16>
    %cst_36 = arith.constant dense<0.000000e+00> : vector<126x128xf32>
    %55 = tpu.matmul %52, %54, %cst_36 {dimension_numbers = #tpu.dot_dimension_numbers<[1], [0], [0], [1], [0, 0, 1, 1], [], []>} : vector<126x32xbf16>, vector<32x128xbf16>, vector<126x128xf32> -> vector<126x128xf32>
    %56 = arith.addf %51, %55 : vector<126x128xf32>
    %57 = vector.extract_strided_slice %1 {offsets = [2, 0], sizes = [126, 32], strides = [1, 1]} : vector<128x32xbf16> to vector<126x32xbf16>
    %c9 = arith.constant 9 : index
    %c0_37 = arith.constant 0 : index
    %c0_38 = arith.constant 0 : index
    %58 = vector.load %arg2[%c9, %c0_37, %c0_38] : memref<10x32x128xbf16, #tpu.memory_space<vmem>>, vector<1x32x128xbf16>
    %59 = vector.shape_cast %58 : vector<1x32x128xbf16> to vector<32x128xbf16>
    %cst_39 = arith.constant dense<0.000000e+00> : vector<126x128xf32>
    %60 = tpu.matmul %57, %59, %cst_39 {dimension_numbers = #tpu.dot_dimension_numbers<[1], [0], [0], [1], [0, 0, 1, 1], [], []>} : vector<126x32xbf16>, vector<32x128xbf16>, vector<126x128xf32> -> vector<126x128xf32>
    %61 = arith.addf %56, %60 : vector<126x128xf32>
    %c0_40 = arith.constant 0 : index
    %c0_41 = arith.constant 0 : index
    %62 = vector.load %arg3[%c0_40, %c0_41] : memref<1x128xf32, #tpu.memory_space<vmem>>, vector<1x128xf32>
    %63 = vector.broadcast %62 : vector<1x128xf32> to vector<126x128xf32>
    %64 = arith.addf %61, %63 : vector<126x128xf32>
    %65 = math.tanh %64 : vector<126x128xf32>
    %66 = arith.addf %35, %65 : vector<126x128xf32>
    %cst_42 = arith.constant 0.000000e+00 : f32
    %67 = vector.broadcast %cst_42 : f32 to vector<126x128xf32>
    %68 = vector.extract_strided_slice %3 {offsets = [0, 0], sizes = [126, 32], strides = [1, 1]} : vector<128x32xbf16> to vector<126x32xbf16>
    %c0_43 = arith.constant 0 : index
    %c0_44 = arith.constant 0 : index
    %c0_45 = arith.constant 0 : index
    %69 = vector.load %arg2[%c0_43, %c0_44, %c0_45] : memref<10x32x128xbf16, #tpu.memory_space<vmem>>, vector<1x32x128xbf16>
    %70 = vector.shape_cast %69 : vector<1x32x128xbf16> to vector<32x128xbf16>
    %cst_46 = arith.constant dense<0.000000e+00> : vector<126x128xf32>
    %71 = tpu.matmul %68, %70, %cst_46 {dimension_numbers = #tpu.dot_dimension_numbers<[1], [0], [0], [1], [0, 0, 1, 1], [], []>} : vector<126x32xbf16>, vector<32x128xbf16>, vector<126x128xf32> -> vector<126x128xf32>
    %72 = arith.addf %67, %71 : vector<126x128xf32>
    %73 = vector.extract_strided_slice %1 {offsets = [1, 0], sizes = [126, 32], strides = [1, 1]} : vector<128x32xbf16> to vector<126x32xbf16>
    %c1_47 = arith.constant 1 : index
    %c0_48 = arith.constant 0 : index
    %c0_49 = arith.constant 0 : index
    %74 = vector.load %arg2[%c1_47, %c0_48, %c0_49] : memref<10x32x128xbf16, #tpu.memory_space<vmem>>, vector<1x32x128xbf16>
    %75 = vector.shape_cast %74 : vector<1x32x128xbf16> to vector<32x128xbf16>
    %cst_50 = arith.constant dense<0.000000e+00> : vector<126x128xf32>
    %76 = tpu.matmul %73, %75, %cst_50 {dimension_numbers = #tpu.dot_dimension_numbers<[1], [0], [0], [1], [0, 0, 1, 1], [], []>} : vector<126x32xbf16>, vector<32x128xbf16>, vector<126x128xf32> -> vector<126x128xf32>
    %77 = arith.addf %72, %76 : vector<126x128xf32>
    %78 = vector.extract_strided_slice %3 {offsets = [1, 0], sizes = [126, 32], strides = [1, 1]} : vector<128x32xbf16> to vector<126x32xbf16>
    %c2_51 = arith.constant 2 : index
    %c0_52 = arith.constant 0 : index
    %c0_53 = arith.constant 0 : index
    %79 = vector.load %arg2[%c2_51, %c0_52, %c0_53] : memref<10x32x128xbf16, #tpu.memory_space<vmem>>, vector<1x32x128xbf16>
    %80 = vector.shape_cast %79 : vector<1x32x128xbf16> to vector<32x128xbf16>
    %cst_54 = arith.constant dense<0.000000e+00> : vector<126x128xf32>
    %81 = tpu.matmul %78, %80, %cst_54 {dimension_numbers = #tpu.dot_dimension_numbers<[1], [0], [0], [1], [0, 0, 1, 1], [], []>} : vector<126x32xbf16>, vector<32x128xbf16>, vector<126x128xf32> -> vector<126x128xf32>
    %82 = arith.addf %77, %81 : vector<126x128xf32>
    %83 = vector.extract_strided_slice %1 {offsets = [2, 0], sizes = [126, 32], strides = [1, 1]} : vector<128x32xbf16> to vector<126x32xbf16>
    %c3_55 = arith.constant 3 : index
    %c0_56 = arith.constant 0 : index
    %c0_57 = arith.constant 0 : index
    %84 = vector.load %arg2[%c3_55, %c0_56, %c0_57] : memref<10x32x128xbf16, #tpu.memory_space<vmem>>, vector<1x32x128xbf16>
    %85 = vector.shape_cast %84 : vector<1x32x128xbf16> to vector<32x128xbf16>
    %cst_58 = arith.constant dense<0.000000e+00> : vector<126x128xf32>
    %86 = tpu.matmul %83, %85, %cst_58 {dimension_numbers = #tpu.dot_dimension_numbers<[1], [0], [0], [1], [0, 0, 1, 1], [], []>} : vector<126x32xbf16>, vector<32x128xbf16>, vector<126x128xf32> -> vector<126x128xf32>
    %87 = arith.addf %82, %86 : vector<126x128xf32>
    %88 = vector.extract_strided_slice %3 {offsets = [2, 0], sizes = [126, 32], strides = [1, 1]} : vector<128x32xbf16> to vector<126x32xbf16>
    %c4_59 = arith.constant 4 : index
    %c0_60 = arith.constant 0 : index
    %c0_61 = arith.constant 0 : index
    %89 = vector.load %arg2[%c4_59, %c0_60, %c0_61] : memref<10x32x128xbf16, #tpu.memory_space<vmem>>, vector<1x32x128xbf16>
    %90 = vector.shape_cast %89 : vector<1x32x128xbf16> to vector<32x128xbf16>
    %cst_62 = arith.constant dense<0.000000e+00> : vector<126x128xf32>
    %91 = tpu.matmul %88, %90, %cst_62 {dimension_numbers = #tpu.dot_dimension_numbers<[1], [0], [0], [1], [0, 0, 1, 1], [], []>} : vector<126x32xbf16>, vector<32x128xbf16>, vector<126x128xf32> -> vector<126x128xf32>
    %92 = arith.addf %87, %91 : vector<126x128xf32>
    %c0_63 = arith.constant 0 : index
    %c0_64 = arith.constant 0 : index
    %93 = vector.load %arg3[%c0_63, %c0_64] : memref<1x128xf32, #tpu.memory_space<vmem>>, vector<1x128xf32>
    %94 = vector.broadcast %93 : vector<1x128xf32> to vector<126x128xf32>
    %95 = arith.addf %92, %94 : vector<126x128xf32>
    %96 = math.tanh %95 : vector<126x128xf32>
    %97 = arith.addf %66, %96 : vector<126x128xf32>
    %cst_65 = arith.constant 0.000000e+00 : f32
    %98 = vector.broadcast %cst_65 : f32 to vector<126x128xf32>
    %99 = vector.extract_strided_slice %3 {offsets = [0, 0], sizes = [126, 32], strides = [1, 1]} : vector<128x32xbf16> to vector<126x32xbf16>
    %c5_66 = arith.constant 5 : index
    %c0_67 = arith.constant 0 : index
    %c0_68 = arith.constant 0 : index
    %100 = vector.load %arg2[%c5_66, %c0_67, %c0_68] : memref<10x32x128xbf16, #tpu.memory_space<vmem>>, vector<1x32x128xbf16>
    %101 = vector.shape_cast %100 : vector<1x32x128xbf16> to vector<32x128xbf16>
    %cst_69 = arith.constant dense<0.000000e+00> : vector<126x128xf32>
    %102 = tpu.matmul %99, %101, %cst_69 {dimension_numbers = #tpu.dot_dimension_numbers<[1], [0], [0], [1], [0, 0, 1, 1], [], []>} : vector<126x32xbf16>, vector<32x128xbf16>, vector<126x128xf32> -> vector<126x128xf32>
    %103 = arith.addf %98, %102 : vector<126x128xf32>
    %104 = vector.extract_strided_slice %1 {offsets = [1, 0], sizes = [126, 32], strides = [1, 1]} : vector<128x32xbf16> to vector<126x32xbf16>
    %c6_70 = arith.constant 6 : index
    %c0_71 = arith.constant 0 : index
    %c0_72 = arith.constant 0 : index
    %105 = vector.load %arg2[%c6_70, %c0_71, %c0_72] : memref<10x32x128xbf16, #tpu.memory_space<vmem>>, vector<1x32x128xbf16>
    %106 = vector.shape_cast %105 : vector<1x32x128xbf16> to vector<32x128xbf16>
    %cst_73 = arith.constant dense<0.000000e+00> : vector<126x128xf32>
    %107 = tpu.matmul %104, %106, %cst_73 {dimension_numbers = #tpu.dot_dimension_numbers<[1], [0], [0], [1], [0, 0, 1, 1], [], []>} : vector<126x32xbf16>, vector<32x128xbf16>, vector<126x128xf32> -> vector<126x128xf32>
    %108 = arith.addf %103, %107 : vector<126x128xf32>
    %109 = vector.extract_strided_slice %3 {offsets = [1, 0], sizes = [126, 32], strides = [1, 1]} : vector<128x32xbf16> to vector<126x32xbf16>
    %c7_74 = arith.constant 7 : index
    %c0_75 = arith.constant 0 : index
    %c0_76 = arith.constant 0 : index
    %110 = vector.load %arg2[%c7_74, %c0_75, %c0_76] : memref<10x32x128xbf16, #tpu.memory_space<vmem>>, vector<1x32x128xbf16>
    %111 = vector.shape_cast %110 : vector<1x32x128xbf16> to vector<32x128xbf16>
    %cst_77 = arith.constant dense<0.000000e+00> : vector<126x128xf32>
    %112 = tpu.matmul %109, %111, %cst_77 {dimension_numbers = #tpu.dot_dimension_numbers<[1], [0], [0], [1], [0, 0, 1, 1], [], []>} : vector<126x32xbf16>, vector<32x128xbf16>, vector<126x128xf32> -> vector<126x128xf32>
    %113 = arith.addf %108, %112 : vector<126x128xf32>
    %114 = vector.extract_strided_slice %1 {offsets = [2, 0], sizes = [126, 32], strides = [1, 1]} : vector<128x32xbf16> to vector<126x32xbf16>
    %c8_78 = arith.constant 8 : index
    %c0_79 = arith.constant 0 : index
    %c0_80 = arith.constant 0 : index
    %115 = vector.load %arg2[%c8_78, %c0_79, %c0_80] : memref<10x32x128xbf16, #tpu.memory_space<vmem>>, vector<1x32x128xbf16>
    %116 = vector.shape_cast %115 : vector<1x32x128xbf16> to vector<32x128xbf16>
    %cst_81 = arith.constant dense<0.000000e+00> : vector<126x128xf32>
    %117 = tpu.matmul %114, %116, %cst_81 {dimension_numbers = #tpu.dot_dimension_numbers<[1], [0], [0], [1], [0, 0, 1, 1], [], []>} : vector<126x32xbf16>, vector<32x128xbf16>, vector<126x128xf32> -> vector<126x128xf32>
    %118 = arith.addf %113, %117 : vector<126x128xf32>
    %119 = vector.extract_strided_slice %3 {offsets = [2, 0], sizes = [126, 32], strides = [1, 1]} : vector<128x32xbf16> to vector<126x32xbf16>
    %c9_82 = arith.constant 9 : index
    %c0_83 = arith.constant 0 : index
    %c0_84 = arith.constant 0 : index
    %120 = vector.load %arg2[%c9_82, %c0_83, %c0_84] : memref<10x32x128xbf16, #tpu.memory_space<vmem>>, vector<1x32x128xbf16>
    %121 = vector.shape_cast %120 : vector<1x32x128xbf16> to vector<32x128xbf16>
    %cst_85 = arith.constant dense<0.000000e+00> : vector<126x128xf32>
    %122 = tpu.matmul %119, %121, %cst_85 {dimension_numbers = #tpu.dot_dimension_numbers<[1], [0], [0], [1], [0, 0, 1, 1], [], []>} : vector<126x32xbf16>, vector<32x128xbf16>, vector<126x128xf32> -> vector<126x128xf32>
    %123 = arith.addf %118, %122 : vector<126x128xf32>
    %c0_86 = arith.constant 0 : index
    %c0_87 = arith.constant 0 : index
    %124 = vector.load %arg3[%c0_86, %c0_87] : memref<1x128xf32, #tpu.memory_space<vmem>>, vector<1x128xf32>
    %125 = vector.broadcast %124 : vector<1x128xf32> to vector<126x128xf32>
    %126 = arith.addf %123, %125 : vector<126x128xf32>
    %127 = math.tanh %126 : vector<126x128xf32>
    %128 = arith.addf %97, %127 : vector<126x128xf32>
    %cst_88 = arith.constant 2.500000e-01 : f32
    %129 = vector.broadcast %cst_88 : f32 to vector<126x128xf32>
    %130 = arith.mulf %129, %128 : vector<126x128xf32>
    %c0_89 = arith.constant 0 : index
    %c0_90 = arith.constant 0 : index
    %131 = vector.load %arg13[%c0_89, %c0_90] : memref<126x128xf32, #tpu.memory_space<vmem>>, vector<126x128xf32>
    tpu.vector_store %arg13[%c0_89, %c0_90], %130 {strides = array<i32>} : memref<126x128xf32, #tpu.memory_space<vmem>>, vector<126x128xf32>,
    %cst_91 = arith.constant 0.000000e+00 : f32
    %132 = vector.broadcast %cst_91 : f32 to vector<122x256xf32>
    %c0_92 = arith.constant 0 : index
    %c0_93 = arith.constant 0 : index
    %133 = vector.load %arg13[%c0_92, %c0_93] : memref<126x128xf32, #tpu.memory_space<vmem>>, vector<122x128xf32>
    %134 = arith.truncf %133 : vector<122x128xf32> to vector<122x128xbf16>
    %c0_94 = arith.constant 0 : index
    %c0_95 = arith.constant 0 : index
    %c0_96 = arith.constant 0 : index
    %135 = vector.load %arg4[%c0_94, %c0_95, %c0_96] : memref<5x128x256xbf16, #tpu.memory_space<vmem>>, vector<1x128x256xbf16>
    %136 = vector.shape_cast %135 : vector<1x128x256xbf16> to vector<128x256xbf16>
    %cst_97 = arith.constant dense<0.000000e+00> : vector<122x256xf32>
    %137 = tpu.matmul %134, %136, %cst_97 {dimension_numbers = #tpu.dot_dimension_numbers<[1], [0], [0], [1], [0, 0, 1, 1], [], []>} : vector<122x128xbf16>, vector<128x256xbf16>, vector<122x256xf32> -> vector<122x256xf32>
    %138 = arith.addf %132, %137 : vector<122x256xf32>
    %c1_98 = arith.constant 1 : index
    %c0_99 = arith.constant 0 : index
    %139 = vector.load %arg13[%c1_98, %c0_99] : memref<126x128xf32, #tpu.memory_space<vmem>>, vector<122x128xf32>
    %140 = arith.truncf %139 : vector<122x128xf32> to vector<122x128xbf16>
    %c1_100 = arith.constant 1 : index
    %c0_101 = arith.constant 0 : index
    %c0_102 = arith.constant 0 : index
    %141 = vector.load %arg4[%c1_100, %c0_101, %c0_102] : memref<5x128x256xbf16, #tpu.memory_space<vmem>>, vector<1x128x256xbf16>
    %142 = vector.shape_cast %141 : vector<1x128x256xbf16> to vector<128x256xbf16>
    %cst_103 = arith.constant dense<0.000000e+00> : vector<122x256xf32>
    %143 = tpu.matmul %140, %142, %cst_103 {dimension_numbers = #tpu.dot_dimension_numbers<[1], [0], [0], [1], [0, 0, 1, 1], [], []>} : vector<122x128xbf16>, vector<128x256xbf16>, vector<122x256xf32> -> vector<122x256xf32>
    %144 = arith.addf %138, %143 : vector<122x256xf32>
    %c2_104 = arith.constant 2 : index
    %c0_105 = arith.constant 0 : index
    %145 = vector.load %arg13[%c2_104, %c0_105] : memref<126x128xf32, #tpu.memory_space<vmem>>, vector<122x128xf32>
    %146 = arith.truncf %145 : vector<122x128xf32> to vector<122x128xbf16>
    %c2_106 = arith.constant 2 : index
    %c0_107 = arith.constant 0 : index
    %c0_108 = arith.constant 0 : index
    %147 = vector.load %arg4[%c2_106, %c0_107, %c0_108] : memref<5x128x256xbf16, #tpu.memory_space<vmem>>, vector<1x128x256xbf16>
    %148 = vector.shape_cast %147 : vector<1x128x256xbf16> to vector<128x256xbf16>
    %cst_109 = arith.constant dense<0.000000e+00> : vector<122x256xf32>
    %149 = tpu.matmul %146, %148, %cst_109 {dimension_numbers = #tpu.dot_dimension_numbers<[1], [0], [0], [1], [0, 0, 1, 1], [], []>} : vector<122x128xbf16>, vector<128x256xbf16>, vector<122x256xf32> -> vector<122x256xf32>
    %150 = arith.addf %144, %149 : vector<122x256xf32>
    %c3_110 = arith.constant 3 : index
    %c0_111 = arith.constant 0 : index
    %151 = vector.load %arg13[%c3_110, %c0_111] : memref<126x128xf32, #tpu.memory_space<vmem>>, vector<122x128xf32>
    %152 = arith.truncf %151 : vector<122x128xf32> to vector<122x128xbf16>
    %c3_112 = arith.constant 3 : index
    %c0_113 = arith.constant 0 : index
    %c0_114 = arith.constant 0 : index
    %153 = vector.load %arg4[%c3_112, %c0_113, %c0_114] : memref<5x128x256xbf16, #tpu.memory_space<vmem>>, vector<1x128x256xbf16>
    %154 = vector.shape_cast %153 : vector<1x128x256xbf16> to vector<128x256xbf16>
    %cst_115 = arith.constant dense<0.000000e+00> : vector<122x256xf32>
    %155 = tpu.matmul %152, %154, %cst_115 {dimension_numbers = #tpu.dot_dimension_numbers<[1], [0], [0], [1], [0, 0, 1, 1], [], []>} : vector<122x128xbf16>, vector<128x256xbf16>, vector<122x256xf32> -> vector<122x256xf32>
    %156 = arith.addf %150, %155 : vector<122x256xf32>
    %c4_116 = arith.constant 4 : index
    %c0_117 = arith.constant 0 : index
    %157 = vector.load %arg13[%c4_116, %c0_117] : memref<126x128xf32, #tpu.memory_space<vmem>>, vector<122x128xf32>
    %158 = arith.truncf %157 : vector<122x128xf32> to vector<122x128xbf16>
    %c4_118 = arith.constant 4 : index
    %c0_119 = arith.constant 0 : index
    %c0_120 = arith.constant 0 : index
    %159 = vector.load %arg4[%c4_118, %c0_119, %c0_120] : memref<5x128x256xbf16, #tpu.memory_space<vmem>>, vector<1x128x256xbf16>
    %160 = vector.shape_cast %159 : vector<1x128x256xbf16> to vector<128x256xbf16>
    %cst_121 = arith.constant dense<0.000000e+00> : vector<122x256xf32>
    %161 = tpu.matmul %158, %160, %cst_121 {dimension_numbers = #tpu.dot_dimension_numbers<[1], [0], [0], [1], [0, 0, 1, 1], [], []>} : vector<122x128xbf16>, vector<128x256xbf16>, vector<122x256xf32> -> vector<122x256xf32>
    %162 = arith.addf %156, %161 : vector<122x256xf32>
    %c0_122 = arith.constant 0 : index
    %c0_123 = arith.constant 0 : index
    %163 = vector.load %arg5[%c0_122, %c0_123] : memref<1x256xf32, #tpu.memory_space<vmem>>, vector<1x256xf32>
    %164 = vector.broadcast %163 : vector<1x256xf32> to vector<122x256xf32>
    %165 = arith.addf %162, %164 : vector<122x256xf32>
    %166 = math.tanh %165 : vector<122x256xf32>
    %c0_124 = arith.constant 0 : index
    %c0_125 = arith.constant 0 : index
    %167 = vector.load %arg14[%c0_124, %c0_125] : memref<122x256xf32, #tpu.memory_space<vmem>>, vector<122x256xf32>
    tpu.vector_store %arg14[%c0_124, %c0_125], %166 {strides = array<i32>} : memref<122x256xf32, #tpu.memory_space<vmem>>, vector<122x256xf32>,
    %cst_126 = arith.constant 0.000000e+00 : f32
    %168 = vector.broadcast %cst_126 : f32 to vector<113x128xf32>
    %c0_127 = arith.constant 0 : index
    %c0_128 = arith.constant 0 : index
    %169 = vector.load %arg14[%c0_127, %c0_128] : memref<122x256xf32, #tpu.memory_space<vmem>>, vector<113x256xf32>
    %c0_129 = arith.constant 0 : index
    %c0_130 = arith.constant 0 : index
    %c0_131 = arith.constant 0 : index
    %170 = vector.load %arg6[%c0_129, %c0_130, %c0_131] : memref<5x256x128xf32, #tpu.memory_space<vmem>>, vector<1x256x128xf32>
    %171 = vector.shape_cast %170 : vector<1x256x128xf32> to vector<256x128xf32>
    %cst_132 = arith.constant dense<0.000000e+00> : vector<113x128xf32>
    %172 = tpu.matmul %169, %171, %cst_132 {dimension_numbers = #tpu.dot_dimension_numbers<[1], [0], [0], [1], [0, 0, 1, 1], [], []>} : vector<113x256xf32>, vector<256x128xf32>, vector<113x128xf32> -> vector<113x128xf32>
    %173 = arith.addf %168, %172 : vector<113x128xf32>
    %c1_133 = arith.constant 1 : index
    %c0_134 = arith.constant 0 : index
    %174 = vector.load %arg14[%c1_133, %c0_134] : memref<122x256xf32, #tpu.memory_space<vmem>>, vector<113x256xf32>
    %c0_135 = arith.constant 0 : index
    %c0_136 = arith.constant 0 : index
    %c0_137 = arith.constant 0 : index
    %175 = vector.load %arg6[%c0_135, %c0_136, %c0_137] : memref<5x256x128xf32, #tpu.memory_space<vmem>>, vector<1x256x128xf32>
    %176 = vector.shape_cast %175 : vector<1x256x128xf32> to vector<256x128xf32>
    %cst_138 = arith.constant dense<0.000000e+00> : vector<113x128xf32>
    %177 = tpu.matmul %174, %176, %cst_138 {dimension_numbers = #tpu.dot_dimension_numbers<[1], [0], [0], [1], [0, 0, 1, 1], [], []>} : vector<113x256xf32>, vector<256x128xf32>, vector<113x128xf32> -> vector<113x128xf32>
    %178 = arith.addf %173, %177 : vector<113x128xf32>
    %c2_139 = arith.constant 2 : index
    %c0_140 = arith.constant 0 : index
    %179 = vector.load %arg14[%c2_139, %c0_140] : memref<122x256xf32, #tpu.memory_space<vmem>>, vector<113x256xf32>
    %c1_141 = arith.constant 1 : index
    %c0_142 = arith.constant 0 : index
    %c0_143 = arith.constant 0 : index
    %180 = vector.load %arg6[%c1_141, %c0_142, %c0_143] : memref<5x256x128xf32, #tpu.memory_space<vmem>>, vector<1x256x128xf32>
    %181 = vector.shape_cast %180 : vector<1x256x128xf32> to vector<256x128xf32>
    %cst_144 = arith.constant dense<0.000000e+00> : vector<113x128xf32>
    %182 = tpu.matmul %179, %181, %cst_144 {dimension_numbers = #tpu.dot_dimension_numbers<[1], [0], [0], [1], [0, 0, 1, 1], [], []>} : vector<113x256xf32>, vector<256x128xf32>, vector<113x128xf32> -> vector<113x128xf32>
    %183 = arith.addf %178, %182 : vector<113x128xf32>
    %c3_145 = arith.constant 3 : index
    %c0_146 = arith.constant 0 : index
    %184 = vector.load %arg14[%c3_145, %c0_146] : memref<122x256xf32, #tpu.memory_space<vmem>>, vector<113x256xf32>
    %c1_147 = arith.constant 1 : index
    %c0_148 = arith.constant 0 : index
    %c0_149 = arith.constant 0 : index
    %185 = vector.load %arg6[%c1_147, %c0_148, %c0_149] : memref<5x256x128xf32, #tpu.memory_space<vmem>>, vector<1x256x128xf32>
    %186 = vector.shape_cast %185 : vector<1x256x128xf32> to vector<256x128xf32>
    %cst_150 = arith.constant dense<0.000000e+00> : vector<113x128xf32>
    %187 = tpu.matmul %184, %186, %cst_150 {dimension_numbers = #tpu.dot_dimension_numbers<[1], [0], [0], [1], [0, 0, 1, 1], [], []>} : vector<113x256xf32>, vector<256x128xf32>, vector<113x128xf32> -> vector<113x128xf32>
    %188 = arith.addf %183, %187 : vector<113x128xf32>
    %c4_151 = arith.constant 4 : index
    %c0_152 = arith.constant 0 : index
    %189 = vector.load %arg14[%c4_151, %c0_152] : memref<122x256xf32, #tpu.memory_space<vmem>>, vector<113x256xf32>
    %c2_153 = arith.constant 2 : index
    %c0_154 = arith.constant 0 : index
    %c0_155 = arith.constant 0 : index
    %190 = vector.load %arg6[%c2_153, %c0_154, %c0_155] : memref<5x256x128xf32, #tpu.memory_space<vmem>>, vector<1x256x128xf32>
    %191 = vector.shape_cast %190 : vector<1x256x128xf32> to vector<256x128xf32>
    %cst_156 = arith.constant dense<0.000000e+00> : vector<113x128xf32>
    %192 = tpu.matmul %189, %191, %cst_156 {dimension_numbers = #tpu.dot_dimension_numbers<[1], [0], [0], [1], [0, 0, 1, 1], [], []>} : vector<113x256xf32>, vector<256x128xf32>, vector<113x128xf32> -> vector<113x128xf32>
    %193 = arith.addf %188, %192 : vector<113x128xf32>
    %c5_157 = arith.constant 5 : index
    %c0_158 = arith.constant 0 : index
    %194 = vector.load %arg14[%c5_157, %c0_158] : memref<122x256xf32, #tpu.memory_space<vmem>>, vector<113x256xf32>
    %c2_159 = arith.constant 2 : index
    %c0_160 = arith.constant 0 : index
    %c0_161 = arith.constant 0 : index
    %195 = vector.load %arg6[%c2_159, %c0_160, %c0_161] : memref<5x256x128xf32, #tpu.memory_space<vmem>>, vector<1x256x128xf32>
    %196 = vector.shape_cast %195 : vector<1x256x128xf32> to vector<256x128xf32>
    %cst_162 = arith.constant dense<0.000000e+00> : vector<113x128xf32>
    %197 = tpu.matmul %194, %196, %cst_162 {dimension_numbers = #tpu.dot_dimension_numbers<[1], [0], [0], [1], [0, 0, 1, 1], [], []>} : vector<113x256xf32>, vector<256x128xf32>, vector<113x128xf32> -> vector<113x128xf32>
    %198 = arith.addf %193, %197 : vector<113x128xf32>
    %c6_163 = arith.constant 6 : index
    %c0_164 = arith.constant 0 : index
    %199 = vector.load %arg14[%c6_163, %c0_164] : memref<122x256xf32, #tpu.memory_space<vmem>>, vector<113x256xf32>
    %c3_165 = arith.constant 3 : index
    %c0_166 = arith.constant 0 : index
    %c0_167 = arith.constant 0 : index
    %200 = vector.load %arg6[%c3_165, %c0_166, %c0_167] : memref<5x256x128xf32, #tpu.memory_space<vmem>>, vector<1x256x128xf32>
    %201 = vector.shape_cast %200 : vector<1x256x128xf32> to vector<256x128xf32>
    %cst_168 = arith.constant dense<0.000000e+00> : vector<113x128xf32>
    %202 = tpu.matmul %199, %201, %cst_168 {dimension_numbers = #tpu.dot_dimension_numbers<[1], [0], [0], [1], [0, 0, 1, 1], [], []>} : vector<113x256xf32>, vector<256x128xf32>, vector<113x128xf32> -> vector<113x128xf32>
    %203 = arith.addf %198, %202 : vector<113x128xf32>
    %c7_169 = arith.constant 7 : index
    %c0_170 = arith.constant 0 : index
    %204 = vector.load %arg14[%c7_169, %c0_170] : memref<122x256xf32, #tpu.memory_space<vmem>>, vector<113x256xf32>
    %c3_171 = arith.constant 3 : index
    %c0_172 = arith.constant 0 : index
    %c0_173 = arith.constant 0 : index
    %205 = vector.load %arg6[%c3_171, %c0_172, %c0_173] : memref<5x256x128xf32, #tpu.memory_space<vmem>>, vector<1x256x128xf32>
    %206 = vector.shape_cast %205 : vector<1x256x128xf32> to vector<256x128xf32>
    %cst_174 = arith.constant dense<0.000000e+00> : vector<113x128xf32>
    %207 = tpu.matmul %204, %206, %cst_174 {dimension_numbers = #tpu.dot_dimension_numbers<[1], [0], [0], [1], [0, 0, 1, 1], [], []>} : vector<113x256xf32>, vector<256x128xf32>, vector<113x128xf32> -> vector<113x128xf32>
    %208 = arith.addf %203, %207 : vector<113x128xf32>
    %c8_175 = arith.constant 8 : index
    %c0_176 = arith.constant 0 : index
    %209 = vector.load %arg14[%c8_175, %c0_176] : memref<122x256xf32, #tpu.memory_space<vmem>>, vector<113x256xf32>
    %c4_177 = arith.constant 4 : index
    %c0_178 = arith.constant 0 : index
    %c0_179 = arith.constant 0 : index
    %210 = vector.load %arg6[%c4_177, %c0_178, %c0_179] : memref<5x256x128xf32, #tpu.memory_space<vmem>>, vector<1x256x128xf32>
    %211 = vector.shape_cast %210 : vector<1x256x128xf32> to vector<256x128xf32>
    %cst_180 = arith.constant dense<0.000000e+00> : vector<113x128xf32>
    %212 = tpu.matmul %209, %211, %cst_180 {dimension_numbers = #tpu.dot_dimension_numbers<[1], [0], [0], [1], [0, 0, 1, 1], [], []>} : vector<113x256xf32>, vector<256x128xf32>, vector<113x128xf32> -> vector<113x128xf32>
    %213 = arith.addf %208, %212 : vector<113x128xf32>
    %c9_181 = arith.constant 9 : index
    %c0_182 = arith.constant 0 : index
    %214 = vector.load %arg14[%c9_181, %c0_182] : memref<122x256xf32, #tpu.memory_space<vmem>>, vector<113x256xf32>
    %c4_183 = arith.constant 4 : index
    %c0_184 = arith.constant 0 : index
    %c0_185 = arith.constant 0 : index
    %215 = vector.load %arg6[%c4_183, %c0_184, %c0_185] : memref<5x256x128xf32, #tpu.memory_space<vmem>>, vector<1x256x128xf32>
    %216 = vector.shape_cast %215 : vector<1x256x128xf32> to vector<256x128xf32>
    %cst_186 = arith.constant dense<0.000000e+00> : vector<113x128xf32>
    %217 = tpu.matmul %214, %216, %cst_186 {dimension_numbers = #tpu.dot_dimension_numbers<[1], [0], [0], [1], [0, 0, 1, 1], [], []>} : vector<113x256xf32>, vector<256x128xf32>, vector<113x128xf32> -> vector<113x128xf32>
    %218 = arith.addf %213, %217 : vector<113x128xf32>
    %219 = vector.extract_strided_slice %218 {offsets = [0, 0], sizes = [1, 128], strides = [1, 1]} : vector<113x128xf32> to vector<1x128xf32>
    %220 = vector.extract_strided_slice %218 {offsets = [16, 0], sizes = [1, 128], strides = [1, 1]} : vector<113x128xf32> to vector<1x128xf32>
    %221 = vector.extract_strided_slice %218 {offsets = [32, 0], sizes = [1, 128], strides = [1, 1]} : vector<113x128xf32> to vector<1x128xf32>
    %222 = vector.extract_strided_slice %218 {offsets = [48, 0], sizes = [1, 128], strides = [1, 1]} : vector<113x128xf32> to vector<1x128xf32>
    %223 = vector.extract_strided_slice %218 {offsets = [64, 0], sizes = [1, 128], strides = [1, 1]} : vector<113x128xf32> to vector<1x128xf32>
    %224 = vector.extract_strided_slice %218 {offsets = [80, 0], sizes = [1, 128], strides = [1, 1]} : vector<113x128xf32> to vector<1x128xf32>
    %225 = vector.extract_strided_slice %218 {offsets = [96, 0], sizes = [1, 128], strides = [1, 1]} : vector<113x128xf32> to vector<1x128xf32>
    %226 = vector.extract_strided_slice %218 {offsets = [112, 0], sizes = [1, 128], strides = [1, 1]} : vector<113x128xf32> to vector<1x128xf32>
    %227 = tpu.concatenate %219, %220, %221, %222, %223, %224, %225, %226 in 0 : vector<1x128xf32>, vector<1x128xf32>, vector<1x128xf32>, vector<1x128xf32>, vector<1x128xf32>, vector<1x128xf32>, vector<1x128xf32>, vector<1x128xf32> -> vector<8x128xf32>
    %c0_187 = arith.constant 0 : index
    %c0_188 = arith.constant 0 : index
    %228 = vector.load %arg7[%c0_187, %c0_188] : memref<1x128xf32, #tpu.memory_space<vmem>>, vector<1x128xf32>
    %229 = vector.broadcast %228 : vector<1x128xf32> to vector<8x128xf32>
    %230 = arith.addf %227, %229 : vector<8x128xf32>
    %231 = math.tanh %230 : vector<8x128xf32>
    %c0_189 = arith.constant 0 : index
    %c0_190 = arith.constant 0 : index
    %232 = vector.load %arg8[%c0_189, %c0_190] : memref<128x128xf32, #tpu.memory_space<vmem>>, vector<128x128xf32>
    %cst_191 = arith.constant dense<0.000000e+00> : vector<8x128xf32>
    %233 = tpu.matmul %231, %232, %cst_191 {dimension_numbers = #tpu.dot_dimension_numbers<[1], [0], [0], [1], [0, 0, 1, 1], [], []>} : vector<8x128xf32>, vector<128x128xf32>, vector<8x128xf32> -> vector<8x128xf32>
    %c0_192 = arith.constant 0 : index
    %c0_193 = arith.constant 0 : index
    %234 = vector.load %arg9[%c0_192, %c0_193] : memref<1x128xf32, #tpu.memory_space<vmem>>, vector<1x128xf32>
    %235 = vector.broadcast %234 : vector<1x128xf32> to vector<8x128xf32>
    %236 = arith.addf %233, %235 : vector<8x128xf32>
    %c0_194 = arith.constant 0 : index
    %c0_195 = arith.constant 0 : index
    %237 = vector.load %arg10[%c0_194, %c0_195] : memref<128x128xf32, #tpu.memory_space<vmem>>, vector<128x128xf32>
    %cst_196 = arith.constant dense<0.000000e+00> : vector<8x128xf32>
    %238 = tpu.matmul %236, %237, %cst_196 {dimension_numbers = #tpu.dot_dimension_numbers<[1], [0], [0], [1], [0, 0, 1, 1], [], []>} : vector<8x128xf32>, vector<128x128xf32>, vector<8x128xf32> -> vector<8x128xf32>
    %c0_197 = arith.constant 0 : index
    %c0_198 = arith.constant 0 : index
    %239 = vector.load %arg11[%c0_197, %c0_198] : memref<1x128xf32, #tpu.memory_space<vmem>>, vector<1x128xf32>
    %240 = vector.broadcast %239 : vector<1x128xf32> to vector<8x128xf32>
    %241 = arith.addf %238, %240 : vector<8x128xf32>
    %c0_199 = arith.constant 0 : index
    %c0_200 = arith.constant 0 : index
    %242 = vector.load %arg12[%c0_199, %c0_200] : memref<8x128xf32, #tpu.memory_space<vmem>>, vector<8x128xf32>
    tpu.vector_store %arg12[%c0_199, %c0_200], %241 {strides = array<i32>} : memref<8x128xf32, #tpu.memory_space<vmem>>, vector<8x128xf32>,
    return
  }
  func.func @transform_0(%arg0: i32) -> (i32, i32, i32) {
    %c0_i32 = arith.constant 0 : i32
    %c0_i32_0 = arith.constant 0 : i32
    %c0_i32_1 = arith.constant 0 : i32
    return %c0_i32, %arg0, %c0_i32_0 : i32, i32, i32
  }
  func.func @transform_1(%arg0: i32) -> (i32, i32, i32) {
    %c0_i32 = arith.constant 0 : i32
    %c0_i32_0 = arith.constant 0 : i32
    %c0_i32_1 = arith.constant 0 : i32
    %c0_i32_2 = arith.constant 0 : i32
    return %c0_i32, %c0_i32_0, %c0_i32_1 : i32, i32, i32
  }
  func.func @transform_2(%arg0: i32) -> (i32, i32) {
    %c0_i32 = arith.constant 0 : i32
    %c0_i32_0 = arith.constant 0 : i32
    %c0_i32_1 = arith.constant 0 : i32
    return %c0_i32, %c0_i32_0 : i32, i32
  }
  func.func @transform_3(%arg0: i32) -> (i32, i32, i32) {
    %c0_i32 = arith.constant 0 : i32
    %c0_i32_0 = arith.constant 0 : i32
    %c0_i32_1 = arith.constant 0 : i32
    %c0_i32_2 = arith.constant 0 : i32
    return %c0_i32, %c0_i32_0, %c0_i32_1 : i32, i32, i32
  }
  func.func @transform_4(%arg0: i32) -> (i32, i32) {
    %c0_i32 = arith.constant 0 : i32
    %c0_i32_0 = arith.constant 0 : i32
    %c0_i32_1 = arith.constant 0 : i32
    return %c0_i32, %c0_i32_0 : i32, i32
  }
  func.func @transform_5(%arg0: i32) -> (i32, i32, i32) {
    %c0_i32 = arith.constant 0 : i32
    %c0_i32_0 = arith.constant 0 : i32
    %c0_i32_1 = arith.constant 0 : i32
    %c0_i32_2 = arith.constant 0 : i32
    return %c0_i32, %c0_i32_0, %c0_i32_1 : i32, i32, i32
  }
  func.func @transform_6(%arg0: i32) -> (i32, i32) {
    %c0_i32 = arith.constant 0 : i32
    %c0_i32_0 = arith.constant 0 : i32
    %c0_i32_1 = arith.constant 0 : i32
    return %c0_i32, %c0_i32_0 : i32, i32
  }
  func.func @transform_7(%arg0: i32) -> (i32, i32) {
    %c0_i32 = arith.constant 0 : i32
    %c0_i32_0 = arith.constant 0 : i32
    %c0_i32_1 = arith.constant 0 : i32
    return %c0_i32, %c0_i32_0 : i32, i32
  }
  func.func @transform_8(%arg0: i32) -> (i32, i32) {
    %c0_i32 = arith.constant 0 : i32
    %c0_i32_0 = arith.constant 0 : i32
    %c0_i32_1 = arith.constant 0 : i32
    return %c0_i32, %c0_i32_0 : i32, i32
  }
  func.func @transform_9(%arg0: i32) -> (i32, i32) {
    %c0_i32 = arith.constant 0 : i32
    %c0_i32_0 = arith.constant 0 : i32
    %c0_i32_1 = arith.constant 0 : i32
    return %c0_i32, %c0_i32_0 : i32, i32
  }
  func.func @transform_10(%arg0: i32) -> (i32, i32) {
    %c0_i32 = arith.constant 0 : i32
    %c0_i32_0 = arith.constant 0 : i32
    %c0_i32_1 = arith.constant 0 : i32
    return %c0_i32, %c0_i32_0 : i32, i32
  }
  func.func @transform_11(%arg0: i32) -> (i32, i32) {
    %c0_i32 = arith.constant 0 : i32
    %c0_i32_0 = arith.constant 0 : i32
    return %arg0, %c0_i32 : i32, i32
  }
}

</mosaic_0001>

<bundles_post_ra>
// kernel: forward.1
= control target key start
LH: loop header
LB: loop body
LE: loop exit
PB: predicated region body
PF: predicated region fallthrough
CT: control target
= control target key end

     0   :  { %16 = vsyncpa [#allocation5], 0  ;;  %s12875_s0 = inlined_call_operand.vmem [shape: bf16[2,128,32], index: 0, kind: input, shape index: {}]   ;;  %s12876_s1 = inlined_call_operand.vmem [shape: bf16[10,32,128], index: 1, kind: input, shape index: {}]   ;;  %s12877_s2 = inlined_call_operand.vmem [shape: f32[1,128], index: 2, kind: input, shape index: {}]   ;;  %s12878_s3 = inlined_call_operand.hbm [shape: bf16[5,128,256], index: 3, kind: input, shape index: {}]   ;;  %s12879_s4 = inlined_call_operand.vmem [shape: f32[1,256], index: 4, kind: input, shape index: {}]   ;;  %s12880_s5 = inlined_call_operand.hbm [shape: f32[5,256,128], index: 5, kind: input, shape index: {}]   ;;  %s12881_s6 = inlined_call_operand.vmem [shape: f32[1,128], index: 6, kind: input, shape index: {}]   ;;  %s12882_s7 = inlined_call_operand.vmem [shape: f32[128,128], index: 7, kind: input, shape index: {}]   ;;  %s12883_s8 = inlined_call_operand.vmem [shape: f32[1,128], index: 8, kind: input, shape index: {}]   ;;  %s12884_s9 = inlined_call_operand.vmem [shape: f32[128,128], index: 9, kind: input, shape index: {}]   ;;  %s12885_s10 = inlined_call_operand.vmem [shape: f32[1,128], index: 10, kind: input, shape index: {}]   ;;  %s12886_s11 = inlined_call_operand.vmem [shape: f32[8,128], index: 11, kind: output, shape index: {}]  }
   0x1   :  { %17 = vsyncpa [#allocation7], 0  ;;  %s9391_s17 = smov [#allocation4]  }
   0x2   :  { %s29_s18 = sshll.u32 %s9391_s17, 4  ;;  %s30_s18 = int_to_ptr.vmem [resolvable:$true] %s29_s18 }
   0x3   :  { %s9355_s19 = scalar_lea.vmem %s30_s18, 10240  ;;  %p9360_p1 = scmp.lt.s32.totalorder %s30_s18, %s30_s18 }
   0x4   :  { %p9356_p0 = scmp.ne.s32.totalorder %s30_s18, %s9355_s19  ;;  %p9361_p2 = scmp.lt.s32.totalorder %s9355_s19, %s9355_s19 }
   0x6   :  { %p9362_p3 = por %p9361_p2, %p9360_p1 }
   0x8   :  { %p9363_p4 = pnand %p9362_p3, %p9356_p0 }
   0xa   :  { %9366 = shalt.err (!%p9363_p4)
}
   0xb   :  { %s9392_s20 = smov 128   ;;  %s9393_s21 = smov 8  }
   0xc   :  { %35 = dma.hbm_to_vmem [thread:$0]  %s12878_s3, 10240, %s30_s18, [#allocation5], %s9392_s20, %s9392_s20, %s9393_s21  }
   0xd   :  { %s9394_s24 = smov [#allocation6]  }
   0xe   :  { %s43_s25 = sshll.u32 %s9394_s24, 4  ;;  %s44_s25 = int_to_ptr.vmem [resolvable:$true] %s43_s25 }
   0xf   :  { %s9375_s26 = scalar_lea.vmem %s44_s25, 20480  ;;  %p9380_p6 = scmp.lt.s32.totalorder %s44_s25, %s44_s25 }
  0x10   :  { %p9376_p5 = scmp.ne.s32.totalorder %s44_s25, %s9375_s26  ;;  %p9381_p7 = scmp.lt.s32.totalorder %s9375_s26, %s9375_s26 }
  0x12   :  { %p9382_p8 = por %p9381_p7, %p9380_p6 }
  0x14   :  { %p9383_p9 = pnand %p9382_p8, %p9376_p5 }
  0x16   :  { %9386 = shalt.err (!%p9383_p9)
}
  0x17   :  { %49 = dma.hbm_to_vmem [thread:$0]  %s12880_s5, 20480, %s44_s25, [#allocation7], %s9392_s20, %s9392_s20, %s9393_s21  }
  0x18   :  { %9387 = dma.done.wait [#allocation5], 10240  }
  0x19   :  { %9388 = vsyncadd [#allocation5], 4294957056 }
  0x1a   :  { %9389 = dma.done.wait [#allocation7], 20480  }
  0x1b   :  { %9390 = vsyncadd [#allocation7], 4294946816  ;;  %v9467_v0 = vld [vmem:[%s12876_s1 + $0x18] sm:$0xff]   ;;  %v9472_v1 = vld [vmem:[%s12876_s1 + $0x10] sm:$0xff]   ;;  %vm161_vm0 = vcmask 261120   ;;  %vm880_vm2 = vcmask 1046528  }
  0x1c   :  { %8383 = vmatprep.subr.bf16.mxu0 %v9467_v0  ;;  %v9478_v2 = vld [vmem:[%s12875_s0 + $0x40] sm:$0xff]   ;;  %v9487_v3 = vld [vmem:[%s12876_s1 + $0x8] sm:$0xff]   ;;  %v9505_v6 = vld [vmem:[%s12875_s0 + $0x10] sm:$0xff]   ;;  %vm461_vm1 = vsmask.f32 7424  ;;  %vm4864_vm3 = vcmask 1045504  }
  0x1d   :  { %8384 = vmatpush3.bf16.msra.mxu0 %v9467_v0  ;;  %8387 = vmatprep.mubr.msk.bf16.mxu0 %vm161_vm0, %v9478_v2  ;;  %v9492_v4 = vld [vmem:[%s12876_s1] sm:$0xff]   ;;  %v9497_v5 = vld [vmem:[%s12875_s0 + $0x48] sm:$0xff]   ;;  %v9512_v7 = vld [vmem:[%s12875_s0 + $0x50] sm:$0xff]   ;;  %v673_v13 = vshll.u32 %v9478_v2, 16  ;;  %v671_v17 = vshrl.u32 %v9478_v2, 16  ;;  %v475_v43 = vshll.u32 %v9505_v6, 16 }
  0x1e   :  { %8385 = vmatprep.subr.bf16.mxu0 %v9472_v1  ;;  %8853 = vmatprep.subr.bf16.mxu1 %v9487_v3  ;;  %v9521_v8 = vld [vmem:[%s12875_s0 + $0x18] sm:$0xff]   ;;  %v9528_v9 = vld [vmem:[%s12875_s0 + $0x20] sm:$0xff]   ;;  %v9558_v14 = vld [vmem:[%s12875_s0 + $0x28] sm:$0xff]   ;;  %v677_v19 = vshll.u32 %v9497_v5, 16  ;;  %v684_v27 = vshll.u32 %v9512_v7, 16  ;;  %v681_v30 = vshrl.u32 %v9497_v5, 16 }
  0x1f   :  { %8855 = vmatpush3.bf16.msra.mxu1 %v9487_v3  ;;  %8411 = vmatprep.mubr.msk.bf16.mxu1 %vm161_vm0, %v9505_v6  ;;  %v9536_v10 = vld [vmem:[%s12875_s0 + $0x58] sm:$0xff]   ;;  %v9548_v12 = vld [vmem:[%s12875_s0 + $0x60] sm:$0xff]   ;;  %v9566_v15 = vld [vmem:[%s12875_s0 + $0x30] sm:$0xff]   ;;  %v675_v18 = vrot.slane %v673_v13, 1  ;;  %v688_v31 = vshrl.u32 %v9512_v7, 16  ;;  %v479_v55 = vshrl.u32 %v9505_v6, 16 }
  0x20   :  { %8854 = vmatprep.subr.bf16.mxu1 %v9492_v4  ;;  %v9543_v11 = vld [vmem:[%s12876_s1 + $0x38] sm:$0xff]   ;;  %v9573_v16 = vld [vmem:[%s12876_s1 + $0x30] sm:$0xff]   ;;  %v9580_v20 = vld [vmem:[%s12875_s0 + $0x68] sm:$0xff]   ;;  %v679_v25 = vrot.slane %v677_v19, 1  ;;  %v691_v34 = vshll.u32 %v9536_v10, 16  ;;  %v686_v36 = vrot.slane %v684_v27, 1 }
  0x21   :  { %8386 = vmatpush3.bf16.msra.mxu0 %v9472_v1  ;;  %v9588_v21 = vld [vmem:[%s12876_s1 + $0x28] sm:$0xff]   ;;  %v9593_v22 = vld [vmem:[%s12875_s0 + $0x70] sm:$0xff]   ;;  %v9601_v23 = vld [vmem:[%s12875_s0] sm:$0xff]   ;;  %v676_v24 = vor.u32 %v675_v18, %v671_v17  ;;  %v698_v44 = vshll.u32 %v9548_v12, 16  ;;  %v695_v47 = vshrl.u32 %v9536_v10, 16  ;;  %v702_v48 = vshrl.u32 %v9548_v12, 16 }
  0x22   :  { %8403 = vmatprep.subr.bf16.mxu0 %v9487_v3  ;;  %v9609_v26 = vld [vmem:[%s12875_s0 + $0x38] sm:$0xff]   ;;  %v9615_v28 = vld [vmem:[%s12876_s1 + $0x68] sm:$0xff]   ;;  %v464_v33 = vshll.u32 %v9601_v23, 16  ;;  %v683_v37 = vor.u32 %v681_v30, %v679_v25  ;;  %v462_v39 = vshrl.u32 %v9601_v23, 16  ;;  %v690_v41 = vor.u32 %v688_v31, %v686_v36  ;;  %v9661_v52 = vld [vmem:[%s12876_s1 + $0x60] sm:$0xff]  }
  0x23   :  { %8856 = vmatpush3.bf16.msra.mxu1 %v9492_v4  ;;  %v9622_v29 = vld [vmem:[%s12875_s0 + $0x8] sm:$0xff]   ;;  %v9627_v32 = vsel %vm461_vm1, %v676_v24, %v679_v25  ;;  %v9635_v35 = vld [vmem:[%s12875_s0 + $0x78] sm:$0xff]   ;;  %v693_v42 = vrot.slane %v691_v34, 1  ;;  %v705_v51 = vshll.u32 %v9580_v20, 16  ;;  %v9666_v53 = vld [vmem:[%s12876_s1 + $0x20] sm:$0xff]   ;;  %v700_v54 = vrot.slane %v698_v44, 1 }
  0x24   :  { %8388 = vmatmul.mubr.msk.bf16.vlgmr.msra.gmra.mxu0 %vm161_vm0, %v9497_v5  ;;  %8443 = vmatprep.subr.bf16.mxu1 %v9543_v11  ;;  %v468_v38 = vshll.u32 %v9622_v29, 16  ;;  %v466_v40 = vrot.slane %v464_v33, 1  ;;  %v9650_v45 = vsel %vm461_vm1, %v683_v37, %v686_v36  ;;  %v482_v56 = vshll.u32 %v9521_v8, 16  ;;  %v9679_v59 = vld [vmem:[%s12876_s1 + $0x78] sm:$0xff]   ;;  %v9690_v13 = vld [vmem:[%s12876_s1 + $0x48] sm:$0xff]   ;;  %v9714_v37 = vld [vmem:[%s12876_s1 + $0x40] sm:$0xff]  }
  0x25   :  { %8404 = vmatpush3.bf16.msra.mxu0 %v9487_v3  ;;  %8391 = vmatprep.mubr.msk.bf16.mxu0 %vm161_vm0, %v9512_v7  ;;  %v9655_v50 = vsel %vm461_vm1, %v690_v41, %v693_v42  ;;  %v472_v57 = vshrl.u32 %v9622_v29, 16  ;;  %v697_v58 = vor.u32 %v695_v47, %v693_v42  ;;  %v477_v61 = vrot.slane %v475_v43, 1 }
  0x26   :  { %8405 = vmatprep.subr.bf16.mxu0 %v9492_v4  ;;  %8412 = vmatmul.mubr.msk.bf16.vlgmr.msra.gmra.mxu1 %vm161_vm0, %v9521_v8  ;;  %v470_v46 = vrot.slane %v468_v38, 1  ;;  %v467_v49 = vor.u32 %v466_v40, %v462_v39  ;;  %v704_v62 = vor.u32 %v702_v48, %v700_v54  ;;  %v707_v63 = vrot.slane %v705_v51, 1  ;;  %v9734_v48 = vld [vmem:[%s12876_s1 + $0x58] sm:$0xff]  }
  0x27   :  { %8415 = vmatprep.mubr.msk.bf16.mxu1 %vm161_vm0, %v9528_v9  ;;  %8444 = vmatpush3.bf16.msra.mxu1 %v9543_v11  ;;  %v481_v17 = vor.u32 %v479_v55, %v477_v61  ;;  %v712_v18 = vshll.u32 %v9593_v22, 16  ;;  %v9697_v24 = vsel %vm461_vm1, %v697_v58, %v700_v54  ;;  %v484_v25 = vrot.slane %v482_v56, 1 }
  0x28   :  { %8445 = vmatprep.subr.bf16.mxu1 %v9573_v16  ;;  %v9682_v60 = vsel %vm461_vm1, %v467_v49, %v470_v46  ;;  %v474_v19 = vor.u32 %v472_v57, %v470_v46  ;;  %v709_v27 = vshrl.u32 %v9580_v20, 16  ;;  %v9702_v30 = vsel %vm461_vm1, %v704_v62, %v707_v63 }
  0x29   :  { %8406 = vmatpush3.bf16.msra.mxu0 %v9492_v4  ;;  %v716_v31 = vshrl.u32 %v9593_v22, 16  ;;  %v719_v33 = vshll.u32 %v9635_v35, 16  ;;  %v489_v34 = vshll.u32 %v9528_v9, 16  ;;  %v714_v36 = vrot.slane %v712_v18, 1 }
  0x2a   :  { %8423 = vmatprep.subr.bf16.mxu0 %v9588_v21  ;;  %v9718_v38 = vsel %vm461_vm1, %v474_v19, %v477_v61  ;;  %v9721_v39 = vsel %vm461_vm1, %v481_v17, %v484_v25  ;;  %v486_v40 = vshrl.u32 %v9521_v8, 16  ;;  %v711_v41 = vor.u32 %v709_v27, %v707_v63 }
  0x2b   :  { %8446 = vmatpush3.bf16.msra.mxu1 %v9573_v16  ;;  %v493_v42 = vshrl.u32 %v9528_v9, 16  ;;  %v496_v43 = vshll.u32 %v9558_v14, 16  ;;  %v718_v44 = vor.u32 %v716_v31, %v714_v36  ;;  %v721_v46 = vrot.slane %v719_v33, 1 }
  0x2c   :  { %8392 = vmatmul.mubr.msk.bf16.gmra.mxu0 %vm161_vm0, %v9536_v10  ;;  %8483 = vmatprep.subr.bf16.mxu1 %v9615_v28  ;;  %v491_v47 = vrot.slane %v489_v34, 1  ;;  %v488_v49 = vor.u32 %v486_v40, %v484_v25  ;;  %v9740_v51 = vsel %vm461_vm1, %v711_v41, %v714_v36  ;;  %v503_v57 = vshll.u32 %v9566_v15, 16 }
  0x2d   :  { %8395 = vmatprep.mubr.msk.bf16.mxu0 %vm161_vm0, %v9548_v12  ;;  %v498_v55 = vrot.slane %v496_v43, 1  ;;  %v9744_v56 = vsel %vm461_vm1, %v718_v44, %v721_v46  ;;  %v723_v58 = vshrl.u32 %v9635_v35, 16  ;;  %v500_v62 = vshrl.u32 %v9558_v14, 16  ;;  %v9789_v43 = vld [vmem:[%s12876_s1 + $0x70] sm:$0xff]  }
  0x2e   :  { %8416 = vmatmul.mubr.msk.bf16.gmra.mxu1 %vm161_vm0, %v9558_v14  ;;  %v495_v54 = vor.u32 %v493_v42, %v491_v47  ;;  %v9751_v61 = vsel %vm461_vm1, %v488_v49, %v491_v47  ;;  %v507_v17 = vshrl.u32 %v9566_v15, 16  ;;  %v510_v18 = vshll.u32 %v9609_v26, 16  ;;  %v9805_v47 = vld [vmem:[%s12876_s1 + $0x98] sm:$0xff]  }
  0x2f   :  { %8419 = vmatprep.mubr.msk.bf16.mxu1 %vm161_vm0, %v9566_v15  ;;  %v505_v19 = vrot.slane %v503_v57, 1  ;;  %v9765_v25 = vor.u32 %v723_v58, %v721_v46  ;;  %v502_v27 = vor.u32 %v500_v62, %v498_v55  ;;  %v514_v40 = vshrl.u32 %v9609_v26, 16  ;;  %v9828_v58 = vld [vmem:[%s12876_s1 + $0x50] sm:$0xff]  }
  0x30   :  { %v9758_v63 = vsel %vm461_vm1, %v495_v54, %v498_v55  ;;  %v512_v33 = vrot.slane %v510_v18, 1  ;;  %v881_v41 = vrot.slane %v9601_v23, 1  ;;  %v882_v42 = vrot.slane %v9622_v29, 1  ;;  %v9841_v18 = vld [vmem:[%s12876_s1 + $0x88] sm:$0xff]  }
  0x31   :  { %v509_v31 = vor.u32 %v507_v17, %v505_v19  ;;  %v9772_v34 = vsel %vm461_vm1, %v502_v27, %v505_v19  ;;  %v884_v49 = vrot.slane %v9505_v6, 1  ;;  %v886_v54 = vrot.slane %v9521_v8, 1 }
  0x32   :  { %v9791_v44 = vor.u32 %v514_v40, %v512_v33  ;;  %v9799_v46 = vsel %vm880_vm2, %v881_v41, %v882_v42  ;;  %v888_v62 = vrot.slane %v9528_v9, 1  ;;  %v890_v17 = vrot.slane %v9558_v14, 1 }
  0x33   :  { %v9777_v36 = vsel %vm461_vm1, %v509_v31, %v512_v33  ;;  %v9818_v55 = vsel %vm880_vm2, %v882_v42, %v884_v49  ;;  %v9823_v57 = vsel %vm880_vm2, %v884_v49, %v886_v54  ;;  %v892_v31 = vrot.slane %v9566_v15, 1  ;;  %v9881_v42 = vld [vmem:[%s12876_s1 + $0x90] sm:$0xff]   ;;  %v9902_v49 = vld [vmem:[%s12876_s1 + $0x80] sm:$0xff]  }
  0x34   :  { %8396 = vmatmul.mubr.msk.bf16.gmra.mxu0 %vm161_vm0, %v9580_v20  ;;  %v9846_v19 = vsel %vm880_vm2, %v886_v54, %v888_v62  ;;  %v9852_v27 = vsel %vm880_vm2, %v888_v62, %v890_v17  ;;  %v9861_v33 = vrot.slane %v9609_v26, 1  ;;  %vm5373_vm4 = vcmask 1043456  }
  0x35   :  { %8399 = vmatprep.mubr.msk.bf16.mxu0 %vm161_vm0, %v9593_v22  ;;  %v9866_v40 = vsel %vm880_vm2, %v890_v17, %v892_v31  ;;  %vm5102_vm5 = vcmask 1044480   ;;  %vm5882_vm6 = vcmask 1041408   ;;  %vm5611_vm7 = vcmask 1042432  }
  0x36   :  { %8420 = vmatmul.mubr.msk.bf16.gmra.mxu1 %vm161_vm0, %v9609_v26  ;;  %12950 = vst [vmem:[#allocation10_spill] sm:$0xff] %v9861_v33  ;;  %v9872_v41 = vsel %vm880_vm2, %v892_v31, %v9861_v33  ;;  %vm6120_vm8 = vcmask 1040384   ;;  %vm9397_vm9 = vmmov 0  }
  0x37   :  { %8447 = vmatprep.mubr.msk.bf16.mxu1 %vm161_vm0, %v9627_v32  ;;  %12951 = vst [vmem:[#allocation11_spill] sm:$0xff] %v9872_v41 }
  0x3c   :  { %8400 = vmatmul.mubr.msk.bf16.gmra.mxu0 %vm161_vm0, %v9635_v35 }
  0x3d   :  { %8407 = vmatprep.mubr.msk.bf16.mxu0 %vm161_vm0, %v9601_v23 }
  0x3e   :  { %8448 = vmatmul.mubr.msk.bf16.vlgmr.msra.gmra.mxu1 %vm161_vm0, %v9650_v45 }
  0x3f   :  { %8484 = vmatpush3.bf16.msra.mxu1 %v9615_v28  ;;  %8451 = vmatprep.mubr.msk.bf16.mxu1 %vm161_vm0, %v9655_v50 }
  0x40   :  { %8485 = vmatprep.subr.bf16.mxu1 %v9661_v52 }
  0x43   :  { %8486 = vmatpush3.bf16.msra.mxu1 %v9661_v52 }
  0x44   :  { %8408 = vmatmul.mubr.msk.bf16.vlgmr.msra.gmra.mxu0 %vm161_vm0, %v9622_v29  ;;  %8523 = vmatprep.subr.bf16.mxu1 %v9679_v59 }
  0x45   :  { %8424 = vmatpush3.bf16.msra.mxu0 %v9588_v21  ;;  %8427 = vmatprep.mubr.msk.bf16.mxu0 %vm161_vm0, %v9682_v60 }
  0x46   :  { %8425 = vmatprep.subr.bf16.mxu0 %v9666_v53  ;;  %8452 = vmatmul.mubr.msk.bf16.gmra.mxu1 %vm161_vm0, %v9697_v24 }
  0x47   :  { %8455 = vmatprep.mubr.msk.bf16.mxu1 %vm161_vm0, %v9702_v30 }
  0x49   :  { %8426 = vmatpush3.bf16.msra.mxu0 %v9666_v53 }
  0x4a   :  { %8463 = vmatprep.subr.bf16.mxu0 %v9690_v13 }
  0x4c   :  { %8428 = vmatmul.mubr.msk.bf16.vlgmr.msra.gmra.mxu0 %vm161_vm0, %v9718_v38 }
  0x4d   :  { %8464 = vmatpush3.bf16.msra.mxu0 %v9690_v13  ;;  %8431 = vmatprep.mubr.msk.bf16.mxu0 %vm161_vm0, %v9721_v39 }
  0x4e   :  { %8465 = vmatprep.subr.bf16.mxu0 %v9714_v37  ;;  %8456 = vmatmul.mubr.msk.bf16.gmra.mxu1 %vm161_vm0, %v9740_v51 }
  0x4f   :  { %8459 = vmatprep.mubr.msk.bf16.mxu1 %vm161_vm0, %v9744_v56 }
  0x51   :  { %8466 = vmatpush3.bf16.msra.mxu0 %v9714_v37 }
  0x52   :  { %8503 = vmatprep.subr.bf16.mxu0 %v9734_v48 }
  0x54   :  { %8432 = vmatmul.mubr.msk.bf16.gmra.mxu0 %vm161_vm0, %v9751_v61 }
  0x55   :  { %8435 = vmatprep.mubr.msk.bf16.mxu0 %vm161_vm0, %v9758_v63 }
  0x56   :  { %8460 = vmatmul.mubr.msk.bf16.gmra.mxu1 %vm161_vm0, %v9765_v25 }
  0x57   :  { %8487 = vmatprep.mubr.msk.bf16.mxu1 %vm161_vm0, %v9478_v2 }
  0x5c   :  { %8436 = vmatmul.mubr.msk.bf16.gmra.mxu0 %vm161_vm0, %v9772_v34 }
  0x5d   :  { %8439 = vmatprep.mubr.msk.bf16.mxu0 %vm161_vm0, %v9777_v36 }
  0x5e   :  { %8488 = vmatmul.mubr.msk.bf16.vlgmr.msra.gmra.mxu1 %vm161_vm0, %v9497_v5 }
  0x5f   :  { %8524 = vmatpush3.bf16.msra.mxu1 %v9679_v59  ;;  %8491 = vmatprep.mubr.msk.bf16.mxu1 %vm161_vm0, %v9512_v7 }
  0x60   :  { %8525 = vmatprep.subr.bf16.mxu1 %v9789_v43 }
  0x63   :  { %8526 = vmatpush3.bf16.msra.mxu1 %v9789_v43 }
  0x64   :  { %8440 = vmatmul.mubr.msk.bf16.gmra.mxu0 %vm161_vm0, %v9791_v44  ;;  %8563 = vmatprep.subr.bf16.mxu1 %v9805_v47 }
  0x65   :  { %8467 = vmatprep.mubr.msk.bf16.mxu0 %vm161_vm0, %v9799_v46 }
  0x66   :  { %8492 = vmatmul.mubr.msk.bf16.gmra.mxu1 %vm161_vm0, %v9536_v10 }
  0x67   :  { %8495 = vmatprep.mubr.msk.bf16.mxu1 %vm161_vm0, %v9548_v12 }
  0x6c   :  { %8468 = vmatmul.mubr.msk.bf16.vlgmr.msra.gmra.mxu0 %vm161_vm0, %v9818_v55 }
  0x6d   :  { %8504 = vmatpush3.bf16.msra.mxu0 %v9734_v48  ;;  %8471 = vmatprep.mubr.msk.bf16.mxu0 %vm161_vm0, %v9823_v57 }
  0x6e   :  { %8505 = vmatprep.subr.bf16.mxu0 %v9828_v58  ;;  %8496 = vmatmul.mubr.msk.bf16.gmra.mxu1 %vm161_vm0, %v9580_v20 }
  0x6f   :  { %8499 = vmatprep.mubr.msk.bf16.mxu1 %vm161_vm0, %v9593_v22 }
  0x71   :  { %8506 = vmatpush3.bf16.msra.mxu0 %v9828_v58 }
  0x72   :  { %8543 = vmatprep.subr.bf16.mxu0 %v9841_v18 }
  0x74   :  { %8472 = vmatmul.mubr.msk.bf16.gmra.mxu0 %vm161_vm0, %v9846_v19 }
  0x75   :  { %8475 = vmatprep.mubr.msk.bf16.mxu0 %vm161_vm0, %v9852_v27 }
  0x76   :  { %8500 = vmatmul.mubr.msk.bf16.gmra.mxu1 %vm161_vm0, %v9635_v35 }
  0x77   :  { %8527 = vmatprep.mubr.msk.bf16.mxu1 %vm161_vm0, %v9682_v60 }
  0x7c   :  { %8476 = vmatmul.mubr.msk.bf16.gmra.mxu0 %vm161_vm0, %v9866_v40 }
  0x7d   :  { %8479 = vmatprep.mubr.msk.bf16.mxu0 %vm161_vm0, %v9872_v41 }
  0x7e   :  { %8528 = vmatmul.mubr.msk.bf16.vlgmr.msra.gmra.mxu1 %vm161_vm0, %v9718_v38 }
  0x7f   :  { %8564 = vmatpush3.bf16.msra.mxu1 %v9805_v47  ;;  %8531 = vmatprep.mubr.msk.bf16.mxu1 %vm161_vm0, %v9721_v39 }
  0x80   :  { %8565 = vmatprep.subr.bf16.mxu1 %v9881_v42 }
  0x83   :  { %8566 = vmatpush3.bf16.msra.mxu1 %v9881_v42 }
  0x84   :  { %8480 = vmatmul.mubr.msk.bf16.gmra.mxu0 %vm161_vm0, %v9861_v33  ;;  %8603 = vmatprep.subr.bf16.mxu1 %v9487_v3 }
  0x85   :  { %8507 = vmatprep.mubr.msk.bf16.mxu0 %vm161_vm0, %v9601_v23 }
  0x86   :  { %8532 = vmatmul.mubr.msk.bf16.gmra.mxu1 %vm161_vm0, %v9751_v61 }
  0x87   :  { %8535 = vmatprep.mubr.msk.bf16.mxu1 %vm161_vm0, %v9758_v63 }
  0x8c   :  { %8508 = vmatmul.mubr.msk.bf16.vlgmr.msra.gmra.mxu0 %vm161_vm0, %v9622_v29 }
  0x8d   :  { %8544 = vmatpush3.bf16.msra.mxu0 %v9841_v18  ;;  %8511 = vmatprep.mubr.msk.bf16.mxu0 %vm161_vm0, %v9505_v6 }
  0x8e   :  { %8545 = vmatprep.subr.bf16.mxu0 %v9902_v49  ;;  %8536 = vmatmul.mubr.msk.bf16.gmra.mxu1 %vm161_vm0, %v9772_v34 }
  0x8f   :  { %8539 = vmatprep.mubr.msk.bf16.mxu1 %vm161_vm0, %v9777_v36 }
  0x91   :  { %8546 = vmatpush3.bf16.msra.mxu0 %v9902_v49 }
  0x92   :  { %8583 = vmatprep.subr.bf16.mxu0 %v9467_v0 }
  0x94   :  { %8512 = vmatmul.mubr.msk.bf16.gmra.mxu0 %vm161_vm0, %v9521_v8 }
  0x95   :  { %8515 = vmatprep.mubr.msk.bf16.mxu0 %vm161_vm0, %v9528_v9 }
  0x96   :  { %8540 = vmatmul.mubr.msk.bf16.gmra.mxu1 %vm161_vm0, %v9791_v44 }
  0x97   :  { %8567 = vmatprep.mubr.msk.bf16.mxu1 %vm161_vm0, %v9799_v46 }
  0x9c   :  { %8516 = vmatmul.mubr.msk.bf16.gmra.mxu0 %vm161_vm0, %v9558_v14 }
  0x9d   :  { %8519 = vmatprep.mubr.msk.bf16.mxu0 %vm161_vm0, %v9566_v15 }
  0x9e   :  { %8568 = vmatmul.mubr.msk.bf16.vlgmr.msra.gmra.mxu1 %vm161_vm0, %v9818_v55 }
  0x9f   :  { %8604 = vmatpush3.bf16.msra.mxu1 %v9487_v3  ;;  %8571 = vmatprep.mubr.msk.bf16.mxu1 %vm161_vm0, %v9823_v57 }
  0xa0   :  { %8605 = vmatprep.subr.bf16.mxu1 %v9492_v4 }
  0xa3   :  { %8606 = vmatpush3.bf16.msra.mxu1 %v9492_v4 }
  0xa4   :  { %8520 = vmatmul.mubr.msk.bf16.gmra.mxu0 %vm161_vm0, %v9609_v26  ;;  %8643 = vmatprep.subr.bf16.mxu1 %v9543_v11 }
  0xa5   :  { %8547 = vmatprep.mubr.msk.bf16.mxu0 %vm161_vm0, %v9627_v32 }
  0xa6   :  { %8572 = vmatmul.mubr.msk.bf16.gmra.mxu1 %vm161_vm0, %v9846_v19 }
  0xa7   :  { %8575 = vmatprep.mubr.msk.bf16.mxu1 %vm161_vm0, %v9852_v27 }
  0xac   :  { %8548 = vmatmul.mubr.msk.bf16.vlgmr.msra.gmra.mxu0 %vm161_vm0, %v9650_v45 }
  0xad   :  { %8584 = vmatpush3.bf16.msra.mxu0 %v9467_v0  ;;  %8551 = vmatprep.mubr.msk.bf16.mxu0 %vm161_vm0, %v9655_v50 }
  0xae   :  { %8585 = vmatprep.subr.bf16.mxu0 %v9472_v1  ;;  %8576 = vmatmul.mubr.msk.bf16.gmra.mxu1 %vm161_vm0, %v9866_v40 }
  0xaf   :  { %8579 = vmatprep.mubr.msk.bf16.mxu1 %vm161_vm0, %v9872_v41 }
  0xb1   :  { %8586 = vmatpush3.bf16.msra.mxu0 %v9472_v1 }
  0xb2   :  { %8623 = vmatprep.subr.bf16.mxu0 %v9588_v21 }
  0xb4   :  { %8552 = vmatmul.mubr.msk.bf16.gmra.mxu0 %vm161_vm0, %v9697_v24 }
  0xb5   :  { %8555 = vmatprep.mubr.msk.bf16.mxu0 %vm161_vm0, %v9702_v30 }
  0xb6   :  { %8580 = vmatmul.mubr.msk.bf16.gmra.mxu1 %vm161_vm0, %v9861_v33 }
  0xb7   :  { %8607 = vmatprep.mubr.msk.bf16.mxu1 %vm161_vm0, %v9478_v2 }
  0xbc   :  { %8556 = vmatmul.mubr.msk.bf16.gmra.mxu0 %vm161_vm0, %v9740_v51 }
  0xbd   :  { %8559 = vmatprep.mubr.msk.bf16.mxu0 %vm161_vm0, %v9744_v56 }
  0xbe   :  { %8608 = vmatmul.mubr.msk.bf16.vlgmr.msra.gmra.mxu1 %vm161_vm0, %v9497_v5 }
  0xbf   :  { %8644 = vmatpush3.bf16.msra.mxu1 %v9543_v11  ;;  %8611 = vmatprep.mubr.msk.bf16.mxu1 %vm161_vm0, %v9512_v7 }
  0xc0   :  { %8645 = vmatprep.subr.bf16.mxu1 %v9573_v16 }
  0xc3   :  { %8646 = vmatpush3.bf16.msra.mxu1 %v9573_v16 }
  0xc4   :  { %8560 = vmatmul.mubr.msk.bf16.gmra.mxu0 %vm161_vm0, %v9765_v25  ;;  %8683 = vmatprep.subr.bf16.mxu1 %v9615_v28 }
  0xc5   :  { %8587 = vmatprep.mubr.msk.bf16.mxu0 %vm161_vm0, %v9682_v60 }
  0xc6   :  { %8612 = vmatmul.mubr.msk.bf16.gmra.mxu1 %vm161_vm0, %v9536_v10 }
  0xc7   :  { %8615 = vmatprep.mubr.msk.bf16.mxu1 %vm161_vm0, %v9548_v12 }
  0xcc   :  { %8588 = vmatmul.mubr.msk.bf16.vlgmr.msra.gmra.mxu0 %vm161_vm0, %v9718_v38 }
  0xcd   :  { %8624 = vmatpush3.bf16.msra.mxu0 %v9588_v21  ;;  %8591 = vmatprep.mubr.msk.bf16.mxu0 %vm161_vm0, %v9721_v39 }
  0xce   :  { %8625 = vmatprep.subr.bf16.mxu0 %v9666_v53  ;;  %8616 = vmatmul.mubr.msk.bf16.gmra.mxu1 %vm161_vm0, %v9580_v20 }
  0xcf   :  { %8619 = vmatprep.mubr.msk.bf16.mxu1 %vm161_vm0, %v9593_v22 }
  0xd1   :  { %8626 = vmatpush3.bf16.msra.mxu0 %v9666_v53 }
  0xd2   :  { %8663 = vmatprep.subr.bf16.mxu0 %v9690_v13 }
  0xd4   :  { %8592 = vmatmul.mubr.msk.bf16.gmra.mxu0 %vm161_vm0, %v9751_v61 }
  0xd5   :  { %8595 = vmatprep.mubr.msk.bf16.mxu0 %vm161_vm0, %v9758_v63 }
  0xd6   :  { %8620 = vmatmul.mubr.msk.bf16.gmra.mxu1 %vm161_vm0, %v9635_v35 }
  0xd7   :  { %8647 = vmatprep.mubr.msk.bf16.mxu1 %vm161_vm0, %v9799_v46 }
  0xdc   :  { %8596 = vmatmul.mubr.msk.bf16.gmra.mxu0 %vm161_vm0, %v9772_v34 }
  0xdd   :  { %8599 = vmatprep.mubr.msk.bf16.mxu0 %vm161_vm0, %v9777_v36 }
  0xde   :  { %8648 = vmatmul.mubr.msk.bf16.vlgmr.msra.gmra.mxu1 %vm161_vm0, %v9818_v55 }
  0xdf   :  { %8684 = vmatpush3.bf16.msra.mxu1 %v9615_v28  ;;  %8651 = vmatprep.mubr.msk.bf16.mxu1 %vm161_vm0, %v9823_v57 }
  0xe0   :  { %8685 = vmatprep.subr.bf16.mxu1 %v9661_v52 }
  0xe3   :  { %8686 = vmatpush3.bf16.msra.mxu1 %v9661_v52 }
  0xe4   :  { %v10014_v0 = vpop.f32.mrf.mxu0  ;;  %8600 = vmatmul.mubr.msk.bf16.gmra.mxu0 %vm161_vm0, %v9791_v44  ;;  %8723 = vmatprep.subr.bf16.mxu1 %v9679_v59 }
  0xe5   :  { %8627 = vmatprep.mubr.msk.bf16.mxu0 %vm161_vm0, %v9627_v32 }
  0xe6   :  { %v10021_v1 = vpop.f32.mrf.mxu0  ;;  %v8413_v4 = vpop.f32.mrf.mxu1  ;;  %8652 = vmatmul.mubr.msk.bf16.gmra.mxu1 %vm161_vm0, %v9846_v19 }
  0xe7   :  { %8655 = vmatprep.mubr.msk.bf16.mxu1 %vm161_vm0, %v9852_v27 }
  0xe8   :  { %v10024_v3 = vpop.f32.mrf.mxu0  ;;  %v409_v8 = vpop.f32.mrf.mxu1 }
  0xea   :  { %v10030_v6 = vpop.f32.mrf.mxu0  ;;  %v8414_v11 = vpop.f32.mrf.mxu1 }
  0xec   :  { %v8393_v9 = vpop.f32.mrf.mxu0  ;;  %8628 = vmatmul.mubr.msk.bf16.vlgmr.msra.gmra.mxu0 %vm161_vm0, %v9650_v45  ;;  %v412_v16 = vpop.f32.mrf.mxu1 }
  0xed   :  { %v10034_v14 = vadd.f32 %v8413_v4, %v8393_v9  ;;  %8664 = vmatpush3.bf16.msra.mxu0 %v9690_v13  ;;  %8631 = vmatprep.mubr.msk.bf16.mxu0 %vm161_vm0, %v9655_v50 }
  0xee   :  { %v236_v15 = vpop.f32.mrf.mxu0  ;;  %8665 = vmatprep.subr.bf16.mxu0 %v9714_v37  ;;  %v8417_v26 = vpop.f32.mrf.mxu1  ;;  %8656 = vmatmul.mubr.msk.bf16.gmra.mxu1 %vm161_vm0, %v9866_v40 }
  0xef   :  { %v10040_v21 = vadd.f32 %v409_v8, %v236_v15  ;;  %8659 = vmatprep.mubr.msk.bf16.mxu1 %vm161_vm0, %v9872_v41 }
  0xf0   :  { %v8394_v23 = vpop.f32.mrf.mxu0  ;;  %v425_v52 = vpop.f32.mrf.mxu1 }
  0xf1   :  { %v10044_v28 = vadd.f32 %v8414_v11, %v8394_v23  ;;  %8666 = vmatpush3.bf16.msra.mxu0 %v9714_v37 }
  0xf2   :  { %v239_v29 = vpop.f32.mrf.mxu0  ;;  %8703 = vmatprep.subr.bf16.mxu0 %v9734_v48  ;;  %v8418_v54 = vpop.f32.mrf.mxu1 }
  0xf3   :  { %v10050_v53 = vadd.f32 %v412_v16, %v239_v29 }
  0xf4   :  { %v8397_v13 = vpop.f32.mrf.mxu0  ;;  %8632 = vmatmul.mubr.msk.bf16.gmra.mxu0 %vm161_vm0, %v9697_v24  ;;  %v428_v17 = vpop.f32.mrf.mxu1 }
  0xf5   :  { %v10054_v62 = vadd.f32 %v8417_v26, %v8397_v13  ;;  %8635 = vmatprep.mubr.msk.bf16.mxu0 %vm161_vm0, %v9702_v30 }
  0xf6   :  { %v252_v37 = vpop.f32.mrf.mxu0  ;;  %v8421_v8 = vpop.f32.mrf.mxu1  ;;  %8660 = vmatmul.mubr.msk.bf16.gmra.mxu1 %vm161_vm0, %v9861_v33 }
  0xf7   :  { %v10058_v31 = vadd.f32 %v425_v52, %v252_v37  ;;  %8687 = vmatprep.mubr.msk.bf16.mxu1 %vm161_vm0, %v9682_v60  ;;  %v2187_v60 = vrot.slane %v9497_v5, 1 }
  0xf8   :  { %v8398_v4 = vpop.f32.mrf.mxu0  ;;  %v441_v15 = vpop.f32.mrf.mxu1 }
  0xf9   :  { %v10062_v9 = vadd.f32 %v8418_v54, %v8398_v4  ;;  %v2186_v54 = vrot.slane %v9478_v2, 1 }
  0xfa   :  { %v255_v11 = vpop.f32.mrf.mxu0  ;;  %v8422_v26 = vpop.f32.mrf.mxu1 }
  0xfb   :  { %v10066_v16 = vadd.f32 %v428_v17, %v255_v11  ;;  %v10086_v2 = vsel %vm880_vm2, %v2186_v54, %v2187_v60  ;;  %v2191_v54 = vrot.slane %v9536_v10, 1 }
  0xfc   :  { %v8401_v23 = vpop.f32.mrf.mxu0  ;;  %8636 = vmatmul.mubr.msk.bf16.gmra.mxu0 %vm161_vm0, %v9740_v51  ;;  %v444_v13 = vpop.f32.mrf.mxu1 }
  0xfd   :  { %v10070_v29 = vadd.f32 %v8421_v8, %v8401_v23  ;;  %8639 = vmatprep.mubr.msk.bf16.mxu0 %vm161_vm0, %v9744_v56 }
  0xfe   :  { %v268_v52 = vpop.f32.mrf.mxu0  ;;  %v8449_v4 = vpop.f32.mrf.mxu1  ;;  %8688 = vmatmul.mubr.msk.bf16.vlgmr.msra.gmra.mxu1 %vm161_vm0, %v9718_v38 }
  0xff   :  { %v10076_v37 = vadd.f32 %v441_v15, %v268_v52  ;;  %8724 = vmatpush3.bf16.msra.mxu1 %v9679_v59  ;;  %8691 = vmatprep.mubr.msk.bf16.mxu1 %vm161_vm0, %v9721_v39  ;;  %v2189_v59 = vrot.slane %v9512_v7, 1 }
 0x100   :  { %v8402_v17 = vpop.f32.mrf.mxu0  ;;  %v796_v23 = vpop.f32.mrf.mxu1  ;;  %8725 = vmatprep.subr.bf16.mxu1 %v9789_v43 }
 0x101   :  { %v10080_v11 = vadd.f32 %v8422_v26, %v8402_v17  ;;  %v10110_v10 = vsel %vm880_vm2, %v2189_v59, %v2191_v54 }
 0x102   :  { %v271_v8 = vpop.f32.mrf.mxu0  ;;  %v8450_v38 = vpop.f32.mrf.mxu1 }
 0x103   :  { %v10089_v5 = vadd.f32 %v444_v13, %v271_v8  ;;  %8726 = vmatpush3.bf16.msra.mxu1 %v9789_v43 }
 0x104   :  { %v8409_v15 = vpop.f32.mrf.mxu0  ;;  %8640 = vmatmul.mubr.msk.bf16.gmra.mxu0 %vm161_vm0, %v9765_v25  ;;  %v799_v52 = vpop.f32.mrf.mxu1  ;;  %8763 = vmatprep.subr.bf16.mxu1 %v9805_v47 }
 0x105   :  { %v402_v26 = vadd.f32 %v8409_v15, %v10014_v0  ;;  %8667 = vmatprep.mubr.msk.bf16.mxu0 %vm161_vm0, %v10086_v2  ;;  %v10105_v15 = vsel %vm880_vm2, %v2187_v60, %v2189_v59  ;;  %v2195_v59 = vrot.slane %v9580_v20, 1 }
 0x106   :  { %v393_v39 = vpop.f32.mrf.mxu0  ;;  %v8453_v8 = vpop.f32.mrf.mxu1  ;;  %8692 = vmatmul.mubr.msk.bf16.gmra.mxu1 %vm161_vm0, %v9751_v61 }
 0x107   :  { %v394_v13 = vadd.f32 %v393_v39, %v10021_v1  ;;  %8695 = vmatprep.mubr.msk.bf16.mxu1 %vm161_vm0, %v9758_v63  ;;  %v2193_v63 = vrot.slane %v9548_v12, 1 }
 0x108   :  { %v8410_v17 = vpop.f32.mrf.mxu0  ;;  %v812_v43 = vpop.f32.mrf.mxu1 }
 0x109   :  { %v405_v0 = vadd.f32 %v8410_v17, %v10024_v3 }
 0x10a   :  { %v396_v7 = vpop.f32.mrf.mxu0  ;;  %v8454_v61 = vpop.f32.mrf.mxu1 }
 0x10b   :  { %v397_v1 = vadd.f32 %v396_v7, %v10030_v6 }
 0x10c   :  { %v8429_v39 = vpop.f32.mrf.mxu0  ;;  %8668 = vmatmul.mubr.msk.bf16.vlgmr.msra.gmra.mxu0 %vm161_vm0, %v10105_v15  ;;  %v815_v60 = vpop.f32.mrf.mxu1 }
 0x10d   :  { %v652_v33 = vadd.f32 %v8429_v39, %v402_v26  ;;  %8704 = vmatpush3.bf16.msra.mxu0 %v9734_v48  ;;  %8671 = vmatprep.mubr.msk.bf16.mxu0 %vm161_vm0, %v10110_v10  ;;  %v10126_v26 = vsel %vm880_vm2, %v2191_v54, %v2193_v63 }
 0x10e   :  { %v587_v3 = vpop.f32.mrf.mxu0  ;;  %8705 = vmatprep.subr.bf16.mxu0 %v9828_v58  ;;  %v8457_v41 = vpop.f32.mrf.mxu1  ;;  %8696 = vmatmul.mubr.msk.bf16.gmra.mxu1 %vm161_vm0, %v9772_v34 }
 0x10f   :  { %v650_v6 = vadd.f32 %v587_v3, %v394_v13  ;;  %v10121_v17 = vadd.f32 %v8449_v4, %v652_v33  ;;  %8699 = vmatprep.mubr.msk.bf16.mxu1 %vm161_vm0, %v9777_v36  ;;  %v10134_v33 = vsel %vm880_vm2, %v2193_v63, %v2195_v59  ;;  %v2197_v36 = vrot.slane %v9593_v22, 1 }
 0x110   :  { %v8430_v7 = vpop.f32.mrf.mxu0  ;;  %v828_v13 = vpop.f32.mrf.mxu1 }
 0x111   :  { %v653_v48 = vadd.f32 %v8430_v7, %v405_v0  ;;  %8706 = vmatpush3.bf16.msra.mxu0 %v9828_v58  ;;  %v10131_v12 = vadd.f32 %v796_v23, %v650_v6  ;;  %v10157_v22 = vsel %vm880_vm2, %v2195_v59, %v2197_v36 }
 0x112   :  { %v590_v20 = vpop.f32.mrf.mxu0  ;;  %8743 = vmatprep.subr.bf16.mxu0 %v9841_v18  ;;  %v8458_v58 = vpop.f32.mrf.mxu1 }
 0x113   :  { %v651_v4 = vadd.f32 %v590_v20, %v397_v1  ;;  %v10137_v34 = vadd.f32 %v8450_v38, %v653_v48  ;;  %v10148_v1 = vrot.slane %v9635_v35, 1 }
 0x114   :  { %v8433_v0 = vpop.f32.mrf.mxu0  ;;  %8672 = vmatmul.mubr.msk.bf16.gmra.mxu0 %vm161_vm0, %v10126_v26  ;;  %v831_v63 = vpop.f32.mrf.mxu1 }
 0x115   :  { %v656_v54 = vadd.f32 %v8433_v0, %v10034_v14  ;;  %8675 = vmatprep.mubr.msk.bf16.mxu0 %vm161_vm0, %v10134_v33  ;;  %v10145_v23 = vadd.f32 %v799_v52, %v651_v4 }
 0x116   :  { %v603_v39 = vpop.f32.mrf.mxu0  ;;  %v8461_v7 = vpop.f32.mrf.mxu1  ;;  %8700 = vmatmul.mubr.msk.bf16.gmra.mxu1 %vm161_vm0, %v9791_v44 }
 0x117   :  { %v654_v38 = vadd.f32 %v603_v39, %v10040_v21  ;;  %v10151_v3 = vadd.f32 %v8453_v8, %v656_v54  ;;  %8727 = vmatprep.mubr.msk.bf16.mxu1 %vm161_vm0, %v9627_v32  ;;  %v10165_v21 = vsel %vm880_vm2, %v2197_v36, %v10148_v1 }
 0x118   :  { %v8434_v6 = vpop.f32.mrf.mxu0  ;;  %v844_v48 = vpop.f32.mrf.mxu1 }
 0x119   :  { %v657_v14 = vadd.f32 %v8434_v6, %v10044_v28  ;;  %v10161_v52 = vadd.f32 %v812_v43, %v654_v38 }
 0x11a   :  { %v606_v35 = vpop.f32.mrf.mxu0  ;;  %v8462_v28 = vpop.f32.mrf.mxu1 }
 0x11b   :  { %v655_v8 = vadd.f32 %v606_v35, %v10050_v53  ;;  %v10168_v20 = vadd.f32 %v8454_v61, %v657_v14 }
 0x11c   :  { %v8437_v44 = vpop.f32.mrf.mxu0  ;;  %8676 = vmatmul.mubr.msk.bf16.gmra.mxu0 %vm161_vm0, %v10157_v22  ;;  %v847_v4 = vpop.f32.mrf.mxu1 }
 0x11d   :  { %v660_v59 = vadd.f32 %v8437_v44, %v10054_v62  ;;  %8679 = vmatprep.mubr.msk.bf16.mxu0 %vm161_vm0, %v10165_v21  ;;  %v10175_v32 = vadd.f32 %v815_v60, %v655_v8 }
 0x11e   :  { %v619_v43 = vpop.f32.mrf.mxu0  ;;  %v10180_v61 = vpop.f32.mrf.mxu1  ;;  %8728 = vmatmul.mubr.msk.bf16.vlgmr.msra.gmra.mxu1 %vm161_vm0, %v9650_v45 }
 0x11f   :  { %v658_v0 = vadd.f32 %v619_v43, %v10058_v31  ;;  %v10178_v54 = vadd.f32 %v8457_v41, %v660_v59  ;;  %8764 = vmatpush3.bf16.msra.mxu1 %v9805_v47  ;;  %8731 = vmatprep.mubr.msk.bf16.mxu1 %vm161_vm0, %v9655_v50  ;;  %v9214_v50 = vld [vmem:[%s12875_s0 + $0x40] sm:$0xff]   ;;  %v9215_v59 = vld [vmem:[%s12875_s0 + $0x48] sm:$0xff]  }
 0x120   :  { %v8438_v53 = vpop.f32.mrf.mxu0  ;;  %v10190_v39 = vpop.f32.mrf.mxu1  ;;  %8765 = vmatprep.subr.bf16.mxu1 %v9881_v42 }
 0x121   :  { %v661_v36 = vadd.f32 %v8438_v53, %v10062_v9  ;;  %v10188_v62 = vadd.f32 %v828_v13, %v658_v0 }
 0x122   :  { %v622_v60 = vpop.f32.mrf.mxu0  ;;  %v10198_v45 = vpop.f32.mrf.mxu1 }
 0x123   :  { %v659_v41 = vadd.f32 %v622_v60, %v10066_v16  ;;  %v10194_v31 = vadd.f32 %v8458_v58, %v661_v36  ;;  %8766 = vmatpush3.bf16.msra.mxu1 %v9881_v42  ;;  %v9217_v60 = vld [vmem:[%s12875_s0 + $0x58] sm:$0xff]  }
 0x124   :  { %v8441_v38 = vpop.f32.mrf.mxu0  ;;  %8680 = vmatmul.mubr.msk.bf16.gmra.mxu0 %vm161_vm0, %v10148_v1  ;;  %v10208_v13 = vpop.f32.mrf.mxu1 }
 0x125   :  { %v664_v47 = vadd.f32 %v8441_v38, %v10070_v29  ;;  %8707 = vmatprep.mubr.msk.bf16.mxu0 %vm161_vm0, %v9214_v50  ;;  %v10206_v9 = vadd.f32 %v831_v63, %v659_v41 }
 0x126   :  { %v635_v16 = vpop.f32.mrf.mxu0  ;;  %v10213_v35 = vpop.f32.mrf.mxu1  ;;  %8732 = vmatmul.mubr.msk.bf16.gmra.mxu1 %vm161_vm0, %v9697_v24 }
 0x127   :  { %v662_v58 = vadd.f32 %v635_v16, %v10076_v37  ;;  %v10211_v6 = vadd.f32 %v8461_v7, %v664_v47  ;;  %8735 = vmatprep.mubr.msk.bf16.mxu1 %vm161_vm0, %v9702_v30 }
 0x128   :  { %v8442_v14 = vpop.f32.mrf.mxu0  ;;  %v10222_v8 = vpop.f32.mrf.mxu1 }
 0x129   :  { %v665_v29 = vadd.f32 %v8442_v14, %v10080_v11  ;;  %v10220_v42 = vadd.f32 %v844_v48, %v662_v58  ;;  %v9216_v11 = vld [vmem:[%s12875_s0 + $0x50] sm:$0xff]   ;;  %v9219_v14 = vld [vmem:[%s12875_s0 + $0x68] sm:$0xff]  }
 0x12a   :  { %v638_v63 = vpop.f32.mrf.mxu0  ;;  %v10231_v24 = vpop.f32.mrf.mxu1 }
 0x12b   :  { %v663_v37 = vadd.f32 %v638_v63, %v10089_v5  ;;  %v10225_v7 = vadd.f32 %v8462_v28, %v665_v29 }
 0x12c   :  { %v8469_v44 = vpop.f32.mrf.mxu0  ;;  %8708 = vmatmul.mubr.msk.bf16.vlgmr.msra.gmra.mxu0 %vm161_vm0, %v9215_v59  ;;  %v10243_v28 = vpop.f32.mrf.mxu1 }
 0x12d   :  { %v10234_v30 = vadd.f32 %v8469_v44, %v10121_v17  ;;  %8744 = vmatpush3.bf16.msra.mxu0 %v9841_v18  ;;  %8711 = vmatprep.mubr.msk.bf16.mxu0 %vm161_vm0, %v9216_v11  ;;  %v10241_v5 = vadd.f32 %v847_v4, %v663_v37 }
 0x12e   :  { %v966_v48 = vpop.f32.mrf.mxu0  ;;  %8745 = vmatprep.subr.bf16.mxu0 %v9902_v49  ;;  %v10249_v0 = vpop.f32.mrf.mxu1  ;;  %8736 = vmatmul.mubr.msk.bf16.gmra.mxu1 %vm161_vm0, %v9740_v51 }
 0x12f   :  { %v10247_v43 = vadd.f32 %v966_v48, %v10131_v12  ;;  %8739 = vmatprep.mubr.msk.bf16.mxu1 %vm161_vm0, %v9744_v56  ;;  %v9218_v56 = vld [vmem:[%s12875_s0 + $0x60] sm:$0xff]  }
 0x130   :  { %v8470_v17 = vpop.f32.mrf.mxu0  ;;  %v10259_v53 = vpop.f32.mrf.mxu1 }
 0x131   :  { %v10254_v18 = vadd.f32 %v8470_v17, %v10137_v34  ;;  %8746 = vmatpush3.bf16.msra.mxu0 %v9902_v49 }
 0x132   :  { %v969_v4 = vpop.f32.mrf.mxu0  ;;  %v10268_v51 = vpop.f32.mrf.mxu1 }
 0x133   :  { %v10262_v12 = vadd.f32 %v969_v4, %v10145_v23 }
 0x134   :  { %v8473_v36 = vpop.f32.mrf.mxu0  ;;  %8712 = vmatmul.mubr.msk.bf16.gmra.mxu0 %vm161_vm0, %v9217_v60  ;;  %v10277_v23 = vpop.f32.mrf.mxu1 }
 0x135   :  { %v10271_v49 = vadd.f32 %v8473_v36, %v10151_v3  ;;  %8715 = vmatprep.mubr.msk.bf16.mxu0 %vm161_vm0, %v9218_v56 }
 0x136   :  { %v982_v34 = vpop.f32.mrf.mxu0  ;;  %v10282_v47 = vpop.f32.mrf.mxu1  ;;  %8740 = vmatmul.mubr.msk.bf16.gmra.mxu1 %vm161_vm0, %v9765_v25 }
 0x137   :  { %v10280_v41 = vadd.f32 %v982_v34, %v10161_v52  ;;  %8767 = vmatprep.mubr.msk.bf16.mxu1 %vm161_vm0, %v10086_v2  ;;  %v9220_v2 = vld [vmem:[%s12875_s0 + $0x70] sm:$0xff]  }
 0x138   :  { %v8474_v38 = vpop.f32.mrf.mxu0  ;;  %v10291_v16 = vpop.f32.mrf.mxu1 }
 0x139   :  { %v10287_v3 = vadd.f32 %v8474_v38, %v10168_v20 }
 0x13a   :  { %v985_v50 = vpop.f32.mrf.mxu0  ;;  %v10300_v25 = vpop.f32.mrf.mxu1 }
 0x13b   :  { %v10294_v58 = vadd.f32 %v985_v50, %v10175_v32 }
 0x13c   :  { %v8477_v52 = vpop.f32.mrf.mxu0  ;;  %8716 = vmatmul.mubr.msk.bf16.gmra.mxu0 %vm161_vm0, %v9219_v14  ;;  %v10309_v29 = vpop.f32.mrf.mxu1 }
 0x13d   :  { %v10303_v20 = vadd.f32 %v8477_v52, %v10178_v54  ;;  %8719 = vmatprep.mubr.msk.bf16.mxu0 %vm161_vm0, %v9220_v2 }
 0x13e   :  { %v998_v32 = vpop.f32.mrf.mxu0  ;;  %v8529_v44 = vpop.f32.mrf.mxu1  ;;  %8768 = vmatmul.mubr.msk.bf16.vlgmr.msra.gmra.mxu1 %vm161_vm0, %v10105_v15 }
 0x13f   :  { %v10312_v63 = vadd.f32 %v998_v32, %v10188_v62  ;;  %8771 = vmatprep.mubr.msk.bf16.mxu1 %vm161_vm0, %v10110_v10  ;;  %v9221_v62 = vld [vmem:[%s12875_s0 + $0x78] sm:$0xff]  }
 0x140   :  { %v8478_v37 = vpop.f32.mrf.mxu0  ;;  %v1379_v11 = vpop.f32.mrf.mxu1 }
 0x141   :  { %v10317_v54 = vadd.f32 %v8478_v37, %v10194_v31 }
 0x142   :  { %v1001_v59 = vpop.f32.mrf.mxu0  ;;  %v8530_v4 = vpop.f32.mrf.mxu1 }
 0x143   :  { %v10322_v48 = vadd.f32 %v1001_v59, %v10206_v9 }
 0x144   :  { %v8481_v17 = vpop.f32.mrf.mxu0  ;;  %8720 = vmatmul.mubr.msk.bf16.gmra.mxu0 %vm161_vm0, %v9221_v62  ;;  %v10333_v31 = vpop.f32.mrf.mxu1 }
 0x145   :  { %v10329_v15 = vadd.f32 %v8481_v17, %v10211_v6  ;;  %8747 = vmatprep.mubr.msk.bf16.mxu0 %vm161_vm0, %v9799_v46 }
 0x146   :  { %v1014_v10 = vpop.f32.mrf.mxu0  ;;  %v8533_v60 = vpop.f32.mrf.mxu1  ;;  %8772 = vmatmul.mubr.msk.bf16.gmra.mxu1 %vm161_vm0, %v10126_v26 }
 0x147   :  { %v10336_v9 = vadd.f32 %v1014_v10, %v10220_v42  ;;  %8775 = vmatprep.mubr.msk.bf16.mxu1 %vm161_vm0, %v10134_v33 }
 0x148   :  { %v8482_v36 = vpop.f32.mrf.mxu0  ;;  %v1395_v34 = vpop.f32.mrf.mxu1 }
 0x149   :  { %v10341_v56 = vadd.f32 %v8482_v36, %v10225_v7 }
 0x14a   :  { %v1017_v6 = vpop.f32.mrf.mxu0  ;;  %v8534_v42 = vpop.f32.mrf.mxu1 }
 0x14b   :  { %v10346_v46 = vadd.f32 %v1017_v6, %v10241_v5 }
 0x14c   :  { %v8509_v38 = vpop.f32.mrf.mxu0  ;;  %8748 = vmatmul.mubr.msk.bf16.vlgmr.msra.gmra.mxu0 %vm161_vm0, %v9818_v55  ;;  %v10353_v7 = vpop.f32.mrf.mxu1 }
 0x14d   :  { %v1274_v50 = vadd.f32 %v8509_v38, %v10180_v61  ;;  %8751 = vmatprep.mubr.msk.bf16.mxu0 %vm161_vm0, %v9823_v57 }
 0x14e   :  { %v1265_v26 = vpop.f32.mrf.mxu0  ;;  %v8537_v2 = vpop.f32.mrf.mxu1  ;;  %8776 = vmatmul.mubr.msk.bf16.gmra.mxu1 %vm161_vm0, %v10157_v22 }
 0x14f   :  { %v1266_v33 = vadd.f32 %v1265_v26, %v10190_v39  ;;  %v1444_v52 = vadd.f32 %v8529_v44, %v1274_v50  ;;  %8779 = vmatprep.mubr.msk.bf16.mxu1 %vm161_vm0, %v10165_v21 }
 0x150   :  { %v8510_v14 = vpop.f32.mrf.mxu0  ;;  %v1411_v32 = vpop.f32.mrf.mxu1 }
 0x151   :  { %v1277_v5 = vadd.f32 %v8510_v14, %v10198_v45  ;;  %v1442_v55 = vadd.f32 %v1379_v11, %v1266_v33 }
 0x152   :  { %v1268_v61 = vpop.f32.mrf.mxu0  ;;  %v8538_v39 = vpop.f32.mrf.mxu1 }
 0x153   :  { %v10361_v57 = vadd.f32 %v8530_v4, %v1277_v5  ;;  %v12953_v5 = vld [vmem:[#allocation10_spill] sm:$0xff] }
 0x154   :  { %v8513_v37 = vpop.f32.mrf.mxu0  ;;  %8752 = vmatmul.mubr.msk.bf16.gmra.mxu0 %vm161_vm0, %v9846_v19  ;;  %v10368_v45 = vpop.f32.mrf.mxu1 }
 0x155   :  { %v1290_v44 = vadd.f32 %v8513_v37, %v10213_v35  ;;  %8755 = vmatprep.mubr.msk.bf16.mxu0 %vm161_vm0, %v9852_v27 }
 0x156   :  { %v1281_v22 = vpop.f32.mrf.mxu0  ;;  %v8541_v17 = vpop.f32.mrf.mxu1  ;;  %8780 = vmatmul.mubr.msk.bf16.gmra.mxu1 %vm161_vm0, %v10148_v1 }
 0x157   :  { %v1282_v21 = vadd.f32 %v1281_v22, %v10222_v8  ;;  %v10371_v59 = vadd.f32 %v8533_v60, %v1290_v44  ;;  %v12952_v60 = vld [vmem:[#allocation11_spill] sm:$0xff] }
 0x158   :  { %v8514_v11 = vpop.f32.mrf.mxu0  ;;  %v1427_v4 = vpop.f32.mrf.mxu1 }
 0x159   :  { %v1293_v19 = vadd.f32 %v8514_v11, %v10231_v24  ;;  %v10376_v62 = vadd.f32 %v1395_v34, %v1282_v21 }
 0x15a   :  { %v1284_v35 = vpop.f32.mrf.mxu0  ;;  %v8542_v8 = vpop.f32.mrf.mxu1 }
 0x15b   :  { %v10378_v10 = vadd.f32 %v8534_v42, %v1293_v19 }
 0x15c   :  { %v8517_v27 = vpop.f32.mrf.mxu0  ;;  %8756 = vmatmul.mubr.msk.bf16.gmra.mxu0 %vm161_vm0, %v9866_v40  ;;  %v10385_v1 = vpop.f32.mrf.mxu1 }
 0x15d   :  { %v1306_v36 = vadd.f32 %v8517_v27, %v10249_v0  ;;  %8759 = vmatprep.mubr.msk.bf16.mxu0 %vm161_vm0, %v12952_v60 }
 0x15e   :  { %v1297_v6 = vpop.f32.mrf.mxu0  ;;  %v8569_v42 = vpop.f32.mrf.mxu1 }
 0x15f   :  { %v1298_v24 = vadd.f32 %v1297_v6, %v10259_v53  ;;  %v10388_v34 = vadd.f32 %v8537_v2, %v1306_v36  ;;  %v10411_v36 = vld [vmem:[%s12877_s2] ss:$0 sm:$0xff] }
 0x160   :  { %v8518_v38 = vpop.f32.mrf.mxu0  ;;  %v1639_v33 = vpop.f32.mrf.mxu1 }
 0x161   :  { %v1309_v50 = vadd.f32 %v8518_v38, %v10268_v51  ;;  %v10391_v26 = vadd.f32 %v1411_v32, %v1298_v24 }
 0x162   :  { %v10393_v40 = vpop.f32.mrf.mxu0  ;;  %v8570_v37 = vpop.f32.mrf.mxu1 }
 0x163   :  { %v10395_v0 = vadd.f32 %v8538_v39, %v1309_v50 }
 0x164   :  { %v8521_v14 = vpop.f32.mrf.mxu0  ;;  %8760 = vmatmul.mubr.msk.bf16.gmra.mxu0 %vm161_vm0, %v12953_v5  ;;  %v1642_v44 = vpop.f32.mrf.mxu1 }
 0x165   :  { %v1322_v53 = vadd.f32 %v8521_v14, %v10282_v47  ;;  %v1052_v14 = vadd.f32 %v10411_v36, %v10247_v43 }
 0x166   :  { %v1313_v2 = vpop.f32.mrf.mxu0  ;;  %v8573_v32 = vpop.f32.mrf.mxu1 }
 0x167   :  { %v1314_v22 = vadd.f32 %v1313_v2, %v10291_v16  ;;  %v10401_v21 = vadd.f32 %v8541_v17, %v1322_v53  ;;  %v1269_v17 = vadd.f32 %v1268_v61, %v10208_v13 }
 0x168   :  { %v8522_v51 = vpop.f32.mrf.mxu0  ;;  %v1655_v27 = vpop.f32.mrf.mxu1 }
 0x169   :  { %v1325_v11 = vadd.f32 %v8522_v51, %v10300_v25  ;;  %v10404_v19 = vadd.f32 %v1427_v4, %v1314_v22  ;;  %v1054_v25 = vadd.f32 %v10411_v36, %v10234_v30  ;;  %v1443_v13 = vadd.f32 %v10333_v31, %v1269_v17 }
 0x16a   :  { %v10406_v39 = vpop.f32.mrf.mxu0  ;;  %v8574_v16 = vpop.f32.mrf.mxu1  ;;  %v1055_v30 = vadd.f32 %v10411_v36, %v10254_v18 }
 0x16b   :  { %v10413_v47 = vadd.f32 %v8542_v8, %v1325_v11  ;;  %9020 = vtanh.f32 %v1054_v25  ;;  %v1056_v25 = vadd.f32 %v10411_v36, %v10280_v41 }
 0x16c   :  { %v8549_v60 = vpop.f32.mrf.mxu0  ;;  %v1658_v24 = vpop.f32.mrf.mxu1 }
 0x16d   :  { %v1574_v6 = vadd.f32 %v8549_v60, %v1444_v52 }
 0x16e   :  { %v1509_v4 = vpop.f32.mrf.mxu0  ;;  %v10420_v53 = vpop.f32.mrf.mxu1 }
 0x16f   :  { %v1704_v38 = vadd.f32 %v8569_v42, %v1574_v6  ;;  %v1572_v50 = vadd.f32 %v1509_v4, %v1442_v55 }
 0x170   :  { %v8550_v5 = vpop.f32.mrf.mxu0  ;;  %v10427_v61 = vpop.f32.mrf.mxu1 }
 0x171   :  { %v1720_v8 = vadd.f32 %v10411_v36, %v1704_v38  ;;  %v1702_v2 = vadd.f32 %v1639_v33, %v1572_v50  ;;  %v1575_v22 = vadd.f32 %v8550_v5, %v10361_v57  ;;  %v1053_v33 = vadd.f32 %v10411_v36, %v10262_v12 }
 0x172   :  { %v1512_v52 = vpop.f32.mrf.mxu0  ;;  %v1285_v57 = vadd.f32 %v1284_v35, %v10243_v28  ;;  %v10433_v31 = vpop.f32.mrf.mxu1 }
 0x173   :  { %9022 = vtanh.f32 %v1720_v8  ;;  %v1718_v43 = vadd.f32 %v10411_v36, %v1702_v2  ;;  %v1705_v55 = vadd.f32 %v8570_v37, %v1575_v22  ;;  %v1573_v42 = vadd.f32 %v1512_v52, %v1443_v13 }
 0x174   :  { %9024 = vtanh.f32 %v1052_v14  ;;  %v8553_v51 = vpop.f32.mrf.mxu0  ;;  %v1058_v37 = vadd.f32 %v10411_v36, %v10271_v49  ;;  %v10439_v6 = vpop.f32.mrf.mxu1  ;;  %v1057_v8 = vadd.f32 %v10411_v36, %v10294_v58 }
 0x175   :  { %9026 = vtanh.f32 %v1718_v43  ;;  %v1721_v18 = vadd.f32 %v10411_v36, %v1705_v55  ;;  %v1703_v11 = vadd.f32 %v1642_v44, %v1573_v42  ;;  %v1578_v60 = vadd.f32 %v8553_v51, %v10371_v59 }
 0x176   :  { %9028 = vtanh.f32 %v1055_v30  ;;  %v1525_v17 = vpop.f32.mrf.mxu0  ;;  %v1447_v59 = vadd.f32 %v10353_v7, %v1285_v57  ;;  %v10446_v4 = vpop.f32.mrf.mxu1 }
 0x177   :  { %9030 = vtanh.f32 %v1721_v18  ;;  %v1719_v12 = vadd.f32 %v10411_v36, %v1703_v11  ;;  %v1708_v28 = vadd.f32 %v8573_v32, %v1578_v60  ;;  %v1576_v35 = vadd.f32 %v1525_v17, %v10376_v62 }
 0x178   :  { %9032 = vtanh.f32 %v1053_v33  ;;  %v8554_v44 = vpop.f32.mrf.mxu0  ;;  %v1059_v32 = vadd.f32 %v10411_v36, %v10287_v3  ;;  %v10452_v14 = vpop.f32.mrf.mxu1 }
 0x179   :  { %9034 = vtanh.f32 %v1719_v12  ;;  %v1724_v49 = vadd.f32 %v10411_v36, %v1708_v28  ;;  %v1706_v38 = vadd.f32 %v1655_v27, %v1576_v35  ;;  %v1579_v50 = vadd.f32 %v8554_v44, %v10378_v10  ;;  %v9021_v58 = vpop.eup %9020 }
 0x17a   :  { %9036 = vtanh.f32 %v1058_v37  ;;  %v1528_v62 = vpop.f32.mrf.mxu0  ;;  %v1301_v27 = vadd.f32 %v10393_v40, %v10277_v23  ;;  %v10459_v2 = vpop.f32.mrf.mxu1 }
 0x17b   :  { %9038 = vtanh.f32 %v1724_v49  ;;  %v1722_v41 = vadd.f32 %v10411_v36, %v1706_v38  ;;  %v1709_v5 = vadd.f32 %v8574_v16, %v1579_v50  ;;  %v1577_v7 = vadd.f32 %v1528_v62, %v1447_v59 }
 0x17c   :  { %9040 = vtanh.f32 %v1056_v25  ;;  %v8557_v10 = vpop.f32.mrf.mxu0  ;;  %v1062_v16 = vadd.f32 %v10411_v36, %v10303_v20  ;;  %v10465_v52 = vpop.f32.mrf.mxu1  ;;  %v1451_v42 = vadd.f32 %v10368_v45, %v1301_v27 }
 0x17d   :  { %9042 = vtanh.f32 %v1722_v41  ;;  %v1725_v3 = vadd.f32 %v10411_v36, %v1709_v5  ;;  %v1707_v22 = vadd.f32 %v1658_v24, %v1577_v7  ;;  %v1582_v13 = vadd.f32 %v8557_v10, %v10388_v34 }
 0x17e   :  { %9044 = vtanh.f32 %v1059_v32  ;;  %v1541_v30 = vpop.f32.mrf.mxu0  ;;  %v1060_v34 = vadd.f32 %v10411_v36, %v10312_v63  ;;  %v10473_v20 = vpop.f32.mrf.mxu1 }
 0x17f   :  { %9046 = vtanh.f32 %v1725_v3  ;;  %v1723_v23 = vadd.f32 %v10411_v36, %v1707_v22  ;;  %v1712_v40 = vadd.f32 %v10420_v53, %v1582_v13  ;;  %v1580_v43 = vadd.f32 %v1541_v30, %v10391_v26 }
 0x180   :  { %v9023_v55 = vpop.eup %9022  ;;  %9048 = vtanh.f32 %v1057_v8  ;;  %v8558_v24 = vpop.f32.mrf.mxu0  ;;  %v1063_v26 = vadd.f32 %v10411_v36, %v10317_v54  ;;  %v1317_v54 = vadd.f32 %v10406_v39, %v10309_v29 }
 0x181   :  { %v9025_v33 = vpop.eup %9024  ;;  %9050 = vtanh.f32 %v1723_v23  ;;  %v1728_v57 = vadd.f32 %v10411_v36, %v1712_v40  ;;  %v1710_v51 = vadd.f32 %v10427_v61, %v1580_v43  ;;  %v1583_v53 = vadd.f32 %v8558_v24, %v10395_v0  ;;  %v10480_v63 = vpop.f32.mrf.mxu1 }
 0x182   :  { %v9027_v18 = vpop.eup %9026  ;;  %9052 = vtanh.f32 %v1062_v16  ;;  %v1544_v11 = vpop.f32.mrf.mxu0  ;;  %v10482_v60 = vadd.f32 %v9023_v55, %v9021_v58  ;;  %v1061_v0 = vadd.f32 %v10411_v36, %v10322_v48  ;;  %v1066_v48 = vadd.f32 %v10411_v36, %v10329_v15 }
 0x183   :  { %v9029_v45 = vpop.eup %9028  ;;  %9054 = vtanh.f32 %v1728_v57  ;;  %v1726_v37 = vadd.f32 %v10411_v36, %v1710_v51  ;;  %v1713_v17 = vadd.f32 %v10433_v31, %v1583_v53  ;;  %v1581_v12 = vadd.f32 %v1544_v11, %v1451_v42  ;;  %v10490_v35 = vpop.f32.mrf.mxu1  ;;  %v8903_v57 = vld [vmem:[#allocation4 + $0x70] ss:$8 sps:$4 sm:$0xff]  }
 0x184   :  { %v9031_v61 = vpop.eup %9030  ;;  %9056 = vtanh.f32 %v1060_v34  ;;  %v8561_v28 = vpop.f32.mrf.mxu0  ;;  %v10492_v25 = vadd.f32 %v9027_v18, %v9025_v33  ;;  %v1455_v15 = vadd.f32 %v10385_v1, %v1317_v54  ;;  %v8905_v34 = vld [vmem:[#allocation4 + $0x74] ss:$8 sps:$4 sm:$0xff]  }
 0x185   :  { %v9033_v44 = vpop.eup %9032  ;;  %9058 = vtanh.f32 %v1726_v37  ;;  %v1729_v59 = vadd.f32 %v10411_v36, %v1713_v17  ;;  %v1711_v31 = vadd.f32 %v10439_v6, %v1581_v12  ;;  %v1586_v49 = vadd.f32 %v8561_v28, %v10401_v21  ;;  %v10499_v29 = vpop.f32.mrf.mxu1  ;;  %3353 = vmatprep.subr.bf16.mxu1 %v8905_v34  ;;  %v8911_v12 = vld [vmem:[#allocation4 + $0x64] ss:$8 sps:$4 sm:$0xff]   ;;  %v8909_v28 = vld [vmem:[#allocation4 + $0x60] ss:$8 sps:$4 sm:$0xff]  }
 0x186   :  { %v9035_v38 = vpop.eup %9034  ;;  %9060 = vtanh.f32 %v1063_v26  ;;  %v1557_v50 = vpop.f32.mrf.mxu0  ;;  %v10501_v39 = vadd.f32 %v9031_v61, %v9029_v45  ;;  %v1064_v21 = vadd.f32 %v10411_v36, %v10336_v9  ;;  %v1067_v9 = vadd.f32 %v10411_v36, %v10341_v56  ;;  %3354 = vmatpush1.bf16.msra.mxu1 %v8903_v57 }
 0x187   :  { %v9037_v32 = vpop.eup %9036  ;;  %9062 = vtanh.f32 %v1729_v59  ;;  %v1727_v62 = vadd.f32 %v10411_v36, %v1711_v31  ;;  %v1716_v41 = vadd.f32 %v10446_v4, %v1586_v49  ;;  %v1584_v6 = vadd.f32 %v1557_v50, %v10404_v19  ;;  %v10509_v8 = vpop.f32.mrf.mxu1  ;;  %3355 = vmatprep.subr.bf16.mxu1 %v8911_v12  ;;  %v8927_v12 = vld [vmem:[#allocation4 + $0x30] ss:$8 sps:$4 sm:$0xff]  }
 0x188   :  { %v9039_v5 = vpop.eup %9038  ;;  %9064 = vtanh.f32 %v1061_v0  ;;  %v8562_v7 = vpop.f32.mrf.mxu0  ;;  %v10511_v27 = vadd.f32 %v9035_v38, %v9033_v44 }
 0x189   :  { %v9041_v10 = vpop.eup %9040  ;;  %9066 = vtanh.f32 %v1727_v62  ;;  %v1732_v3 = vadd.f32 %v10411_v36, %v1716_v41  ;;  %v1714_v4 = vadd.f32 %v10452_v14, %v1584_v6  ;;  %v1587_v19 = vadd.f32 %v8562_v7, %v10413_v47  ;;  %v10518_v16 = vpop.f32.mrf.mxu1  ;;  %v8917_v62 = vld [vmem:[#allocation4 + $0x54] ss:$8 sps:$4 sm:$0xff]  }
 0x18a   :  { %12954 = vst [vmem:[#allocation11_spill] sm:$0xff] %v10511_v27  ;;  %v9043_v22 = vpop.eup %9042  ;;  %9068 = vtanh.f32 %v1066_v48  ;;  %v1560_v13 = vpop.f32.mrf.mxu0  ;;  %v10520_v1 = vadd.f32 %v9039_v5, %v9037_v32  ;;  %v1065_v47 = vadd.f32 %v10411_v36, %v10346_v46  ;;  %3356 = vmatpush1.bf16.msra.mxu1 %v8909_v28  ;;  %v8902_v32 = vld [vmem:[#allocation4 + $0xf4] ss:$8 sps:$4 sm:$0xff]   ;;  %v8900_v5 = vld [vmem:[#allocation4 + $0xf0] ss:$8 sps:$4 sm:$0xff]  }
 0x18b   :  { %v9045_v30 = vpop.eup %9044  ;;  %9070 = vtanh.f32 %v1732_v3  ;;  %v1730_v58 = vadd.f32 %v10411_v36, %v1714_v4  ;;  %v1717_v23 = vadd.f32 %v10459_v2, %v1587_v19  ;;  %v1585_v40 = vadd.f32 %v1560_v13, %v1455_v15  ;;  %v10526_v55 = vpop.f32.mrf.mxu1  ;;  %3160 = vmatprep.subr.bf16.mxu0 %v8902_v32  ;;  %3357 = vmatprep.subr.bf16.mxu1 %v8917_v62  ;;  %v8908_v13 = vld [vmem:[#allocation4 + $0xe4] ss:$8 sps:$4 sm:$0xff]  }
 0x18c   :  { %v9047_v14 = vpop.eup %9046  ;;  %9072 = vtanh.f32 %v1064_v21  ;;  %v8589_v43 = vpop.f32.mrf.mxu0  ;;  %v10528_v56 = vadd.f32 %v9043_v22, %v9041_v10  ;;  %v8915_v21 = vld [vmem:[#allocation4 + $0x50] ss:$8 sps:$4 sm:$0xff]   ;;  %3161 = vmatpush1.bf16.msra.mxu0 %v8900_v5  ;;  %v8935_v62 = vld [vmem:[#allocation4 + $0x24] ss:$8 sps:$4 sm:$0xff]   ;;  %v8918_v5 = vld [vmem:[#allocation4 + $0xc0] ss:$8 sps:$4 sm:$0xff]  }
 0x18d   :  { %v9049_v24 = vpop.eup %9048  ;;  %9074 = vtanh.f32 %v1730_v58  ;;  %v1733_v42 = vadd.f32 %v10411_v36, %v1717_v23  ;;  %v1715_v33 = vadd.f32 %v10465_v52, %v1585_v40  ;;  %v10533_v2 = vadd.f32 %v10473_v20, %v8589_v43  ;;  %v10535_v46 = vpop.f32.mrf.mxu1  ;;  %3162 = vmatprep.subr.bf16.mxu0 %v8908_v13 }
 0x18e   :  { %v9051_v51 = vpop.eup %9050  ;;  %9076 = vtanh.f32 %v1067_v9  ;;  %v1800_v53 = vpop.f32.mrf.mxu0  ;;  %v10537_v18 = vadd.f32 %v9047_v14, %v9045_v30  ;;  %3358 = vmatpush1.bf16.msra.mxu1 %v8915_v21  ;;  %v8923_v30 = vld [vmem:[#allocation4 + $0x44] ss:$8 sps:$4 sm:$0xff]   ;;  %v8906_v14 = vld [vmem:[#allocation4 + $0xe0] ss:$8 sps:$4 sm:$0xff]  }
 0x18f   :  { %v9053_v26 = vpop.eup %9052  ;;  %9078 = vtanh.f32 %v1733_v42  ;;  %v1731_v11 = vadd.f32 %v10411_v36, %v1715_v33  ;;  %v10541_v45 = vadd.f32 %v10480_v63, %v1800_v53  ;;  %v10543_v52 = vadd.f32 %v9051_v51, %v9049_v24  ;;  %v8617_v17 = vpop.f32.mrf.mxu1  ;;  %3359 = vmatprep.subr.bf16.mxu1 %v8923_v30  ;;  %v8929_v53 = vld [vmem:[#allocation4 + $0x34] ss:$8 sps:$4 sm:$0xff]   ;;  %v8933_v21 = vld [vmem:[#allocation4 + $0x20] ss:$8 sps:$4 sm:$0xff]   ;;  %v8924_v30 = vld [vmem:[#allocation4 + $0xb0] ss:$8 sps:$4 sm:$0xff]  }
 0x190   :  { %v9055_v20 = vpop.eup %9054  ;;  %9080 = vtanh.f32 %v1065_v47  ;;  %v8590_v37 = vpop.f32.mrf.mxu0  ;;  %v8921_v47 = vld [vmem:[#allocation4 + $0x40] ss:$8 sps:$4 sm:$0xff]   ;;  %3163 = vmatpush1.bf16.msra.mxu0 %v8906_v14 }
 0x191   :  { %12955 = vst [vmem:[#allocation10_spill] sm:$0xff] %v10543_v52  ;;  %v9057_v61 = vpop.eup %9056  ;;  %9082 = vtanh.f32 %v1731_v11  ;;  %v10546_v0 = vadd.f32 %v10490_v35, %v8590_v37  ;;  %v10548_v54 = vadd.f32 %v9055_v20, %v9053_v26  ;;  %v1929_v63 = vpop.f32.mrf.mxu1  ;;  %v8912_v37 = vld [vmem:[#allocation4 + $0xd0] ss:$8 sps:$4 sm:$0xff]  }
 0x192   :  { %v9059_v44 = vpop.eup %9058  ;;  %v10550_v59 = vpop.f32.mrf.mxu0  ;;  %3360 = vmatpush1.bf16.msra.mxu1 %v8921_v47 }
 0x193   :  { %v9061_v31 = vpop.eup %9060  ;;  %v10552_v49 = vadd.f32 %v9059_v44, %v9057_v61  ;;  %v8618_v50 = vpop.f32.mrf.mxu1  ;;  %3361 = vmatprep.subr.bf16.mxu1 %v8929_v53  ;;  %v8930_v53 = vld [vmem:[#allocation4 + $0xa0] ss:$8 sps:$4 sm:$0xff]  }
 0x194   :  { %v9063_v38 = vpop.eup %9062  ;;  %v8593_v48 = vpop.f32.mrf.mxu0 }
 0x195   :  { %v9065_v41 = vpop.eup %9064  ;;  %v10555_v35 = vadd.f32 %v10509_v8, %v8593_v48  ;;  %v10557_v6 = vadd.f32 %v9063_v38, %v9061_v31  ;;  %v10559_v10 = vpop.f32.mrf.mxu1 }
 0x196   :  { %v9067_v7 = vpop.eup %9066  ;;  %v1816_v15 = vpop.f32.mrf.mxu0  ;;  %3362 = vmatpush1.bf16.msra.mxu1 %v8927_v12 }
 0x197   :  { %v9069_v3 = vpop.eup %9068  ;;  %v10562_v4 = vadd.f32 %v10518_v16, %v1816_v15  ;;  %v10564_v19 = vadd.f32 %v9067_v7, %v9065_v41  ;;  %v8621_v9 = vpop.f32.mrf.mxu1  ;;  %3363 = vmatprep.subr.bf16.mxu1 %v8935_v62 }
 0x198   :  { %v9071_v8 = vpop.eup %9070  ;;  %v8594_v22 = vpop.f32.mrf.mxu0 }
 0x199   :  { %12956 = vst [vmem:[#allocation12_spill] sm:$0xff] %v10564_v19  ;;  %v9073_v58 = vpop.eup %9072  ;;  %v10567_v23 = vadd.f32 %v10526_v55, %v8594_v22  ;;  %v10569_v40 = vadd.f32 %v9071_v8, %v9069_v3  ;;  %v1945_v34 = vpop.f32.mrf.mxu1  ;;  %v8914_v55 = vld [vmem:[#allocation4 + $0xd4] ss:$8 sps:$4 sm:$0xff]  }
 0x19a   :  { %v9075_v43 = vpop.eup %9074  ;;  %v10571_v16 = vpop.f32.mrf.mxu0  ;;  %3164 = vmatprep.subr.bf16.mxu0 %v8914_v55  ;;  %3364 = vmatpush1.bf16.msra.mxu1 %v8933_v21  ;;  %v8926_v8 = vld [vmem:[#allocation4 + $0xb4] ss:$8 sps:$4 sm:$0xff]  }
 0x19b   :  { %v9077_v24 = vpop.eup %9076  ;;  %v10573_v42 = vadd.f32 %v9075_v43, %v9073_v58  ;;  %v8622_v51 = vpop.f32.mrf.mxu1  ;;  %3165 = vmatpush1.bf16.msra.mxu0 %v8912_v37  ;;  %v8941_v22 = vld [vmem:[#allocation4 + $0x14] ss:$8 sps:$4 sm:$0xff]   ;;  %v8939_v58 = vld [vmem:[#allocation4 + $0x10] ss:$8 sps:$4 sm:$0xff]  }
 0x19c   :  { %v9079_v33 = vpop.eup %9078  ;;  %v8597_v57 = vpop.f32.mrf.mxu0  ;;  %3365 = vmatprep.subr.bf16.mxu1 %v8941_v22  ;;  %v8944_v22 = vld [vmem:[#allocation4 + $0x84] ss:$8 sps:$4 sm:$0xff]  }
 0x19d   :  { %v9081_v26 = vpop.eup %9080  ;;  %v10575_v11 = vadd.f32 %v8617_v17, %v8597_v57  ;;  %v10577_v20 = vadd.f32 %v9079_v33, %v9077_v24  ;;  %v10579_v44 = vpop.f32.mrf.mxu1  ;;  %v8920_v17 = vld [vmem:[#allocation4 + $0xc4] ss:$8 sps:$4 sm:$0xff]  }
 0x19e   :  { %v9083_v61 = vpop.eup %9082  ;;  %v1832_v28 = vpop.f32.mrf.mxu0  ;;  %3166 = vmatprep.subr.bf16.mxu0 %v8920_v17  ;;  %3366 = vmatpush1.bf16.msra.mxu1 %v8939_v58  ;;  %v8932_v33 = vld [vmem:[#allocation4 + $0xa4] ss:$8 sps:$4 sm:$0xff]   ;;  %v12889_v17 = vmov 0   ;;  %v8942_v58 = vld [vmem:[#allocation4 + $0x80] ss:$8 sps:$4 sm:$0xff]  }
 0x19f   :  { %v10581_v31 = vadd.f32 %v1929_v63, %v1832_v28  ;;  %v10583_v38 = vadd.f32 %v9083_v61, %v9081_v26  ;;  %v8649_v32 = vpop.f32.mrf.mxu1  ;;  %3167 = vmatpush1.bf16.msra.mxu0 %v8918_v5  ;;  %v8947_v57 = vld [vmem:[#allocation4 + $0x4] ss:$8 sps:$4 sm:$0xff]   ;;  %v8938_v61 = vld [vmem:[#allocation4 + $0x94] ss:$8 sps:$4 sm:$0xff]   ;;  %3192 = vmatprep.mubr.bf16.mxu0 %v12889_v17 }
 0x1a0   :  { %v8598_v48 = vpop.f32.mrf.mxu0  ;;  %3168 = vmatprep.subr.bf16.mxu0 %v8926_v8  ;;  %3367 = vmatprep.subr.bf16.mxu1 %v8947_v57 }
 0x1a1   :  { %12957 = vst [vmem:[#allocation13_spill] sm:$0xff] %v10583_v38  ;;  %v10585_v41 = vadd.f32 %v8618_v50, %v8598_v48  ;;  %v2107_v15 = vpop.f32.mrf.mxu1  ;;  %v8936_v48 = vld [vmem:[#allocation4 + $0x90] ss:$8 sps:$4 sm:$0xff]   ;;  %3385 = vmatprep.mubr.bf16.mxu1 %v12889_v17 }
 0x1a2   :  { %v10587_v7 = vpop.f32.mrf.mxu0 }
 0x1a3   :  { %v8650_v3 = vpop.f32.mrf.mxu1  ;;  %3169 = vmatpush1.bf16.msra.mxu0 %v8924_v30 }
 0x1a4   :  { %v8601_v63 = vpop.f32.mrf.mxu0  ;;  %3170 = vmatprep.subr.bf16.mxu0 %v8932_v33 }
 0x1a5   :  { %v10589_v13 = vadd.f32 %v8621_v9, %v8601_v63  ;;  %v10591_v50 = vpop.f32.mrf.mxu1  ;;  %v8945_v9 = vld [vmem:[#allocation4] ss:$8 sps:$4 sm:$0xff]  }
 0x1a6   :  { %v1848_v14 = vpop.f32.mrf.mxu0  ;;  %3368 = vmatpush1.bf16.msra.mxu1 %v8945_v9 }
 0x1a7   :  { %v10593_v47 = vadd.f32 %v1945_v34, %v1848_v14  ;;  %v8653_v24 = vpop.f32.mrf.mxu1  ;;  %3171 = vmatpush1.bf16.msra.mxu0 %v8930_v53 }
 0x1a8   :  { %v8602_v43 = vpop.f32.mrf.mxu0  ;;  %3172 = vmatprep.subr.bf16.mxu0 %v8938_v61 }
 0x1a9   :  { %v10595_v55 = vadd.f32 %v8622_v51, %v8602_v43  ;;  %v2123_v37 = vpop.f32.mrf.mxu1 }
 0x1aa   :  { %v10597_v26 = vpop.f32.mrf.mxu0 }
 0x1ab   :  { %v8654_v34 = vpop.f32.mrf.mxu1  ;;  %3173 = vmatpush1.bf16.msra.mxu0 %v8936_v48 }
 0x1ac   :  { %v8629_v12 = vpop.f32.mrf.mxu0  ;;  %3174 = vmatprep.subr.bf16.mxu0 %v8944_v22 }
 0x1ad   :  { %v2059_v28 = vadd.f32 %v8629_v12, %v10533_v2  ;;  %v10602_v62 = vpop.f32.mrf.mxu1 }
 0x1ae   :  { %v1994_v51 = vpop.f32.mrf.mxu0 }
 0x1af   :  { %v2057_v5 = vadd.f32 %v1994_v51, %v10541_v45  ;;  %v2172_v21 = vadd.f32 %v8649_v32, %v2059_v28  ;;  %v8657_v8 = vpop.f32.mrf.mxu1  ;;  %3175 = vmatpush1.bf16.msra.mxu0 %v8942_v58 }
 0x1b0   :  { %v8630_v63 = vpop.f32.mrf.mxu0 }
 0x1b1   :  { %v2060_v30 = vadd.f32 %v8630_v63, %v10546_v0  ;;  %v2170_v2 = vadd.f32 %v2107_v15, %v2057_v5  ;;  %v2139_v43 = vpop.f32.mrf.mxu1 }
 0x1b2   :  { %v10606_v14 = vpop.f32.mrf.mxu0 }
 0x1b3   :  { %v2173_v33 = vadd.f32 %v8650_v3, %v2060_v30  ;;  %v8658_v53 = vpop.f32.mrf.mxu1 }
 0x1b4   :  { %v8633_v57 = vpop.f32.mrf.mxu0 }
 0x1b5   :  { %v2063_v9 = vadd.f32 %v8633_v57, %v10555_v35  ;;  %v10609_v32 = vpop.f32.mrf.mxu1 }
 0x1b6   :  { %v2010_v45 = vpop.f32.mrf.mxu0 }
 0x1b7   :  { %v2061_v12 = vadd.f32 %v2010_v45, %v10562_v4  ;;  %v2176_v61 = vadd.f32 %v8653_v24, %v2063_v9  ;;  %v8661_v0 = vpop.f32.mrf.mxu1 }
 0x1b8   :  { %v8634_v28 = vpop.f32.mrf.mxu0 }
 0x1b9   :  { %v2064_v15 = vadd.f32 %v8634_v28, %v10567_v23  ;;  %v2174_v48 = vadd.f32 %v2123_v37, %v2061_v12  ;;  %v2155_v5 = vpop.f32.mrf.mxu1 }
 0x1ba   :  { %v10613_v51 = vpop.f32.mrf.mxu0 }
 0x1bb   :  { %v2177_v3 = vadd.f32 %v8654_v34, %v2064_v15  ;;  %v8662_v22 = vpop.f32.mrf.mxu1 }
 0x1bc   :  { %v8637_v63 = vpop.f32.mrf.mxu0 }
 0x1bd   :  { %v2067_v30 = vadd.f32 %v8637_v63, %v10575_v11  ;;  %v10616_v58 = vpop.f32.mrf.mxu1  ;;  %v8950_v11 = vld [vmem:[#allocation4 + $0x174] ss:$8 sps:$4 sm:$0xff]  }
 0x1be   :  { %v2026_v35 = vpop.f32.mrf.mxu0  ;;  %12958 = vst [vmem:[#allocation14_spill] sm:$0xff] %v10616_v58  ;;  %3587 = vmatprep.subr.bf16.mxu0 %v8950_v11 }
 0x1bf   :  { %v2065_v57 = vadd.f32 %v2026_v35, %v10581_v31  ;;  %v2180_v4 = vadd.f32 %v8657_v8, %v2067_v30  ;;  %v10619_v9 = vpop.f32.mrf.mxu1 }
 0x1c0   :  { %v8638_v24 = vpop.f32.mrf.mxu0 }
 0x1c1   :  { %v2068_v23 = vadd.f32 %v8638_v24, %v10585_v41  ;;  %v10622_v37 = vadd.f32 %v2139_v43, %v2065_v57  ;;  %v10626_v34 = vpop.f32.mrf.mxu1 }
 0x1c2   :  { %v10624_v45 = vpop.f32.mrf.mxu0 }
 0x1c3   :  { %v10628_v12 = vadd.f32 %v8658_v53, %v2068_v23  ;;  %v10630_v15 = vpop.f32.mrf.mxu1 }
 0x1c4   :  { %v8641_v28 = vpop.f32.mrf.mxu0 }
 0x1c5   :  { %v2071_v31 = vadd.f32 %v8641_v28, %v10589_v13  ;;  %v10633_v63 = vpop.f32.mrf.mxu1 }
 0x1c6   :  { %v2042_v8 = vpop.f32.mrf.mxu0 }
 0x1c7   :  { %v2069_v41 = vadd.f32 %v2042_v8, %v10593_v47  ;;  %v10636_v43 = vadd.f32 %v8661_v0, %v2071_v31  ;;  %v10638_v35 = vpop.f32.mrf.mxu1  ;;  %v8965_v47 = vld [vmem:[#allocation4 + $0x1f4] ss:$8 sps:$4 sm:$0xff]  }
 0x1c8   :  { %v8642_v30 = vpop.f32.mrf.mxu0  ;;  %3853 = vmatprep.subr.bf16.mxu1 %v8965_v47 }
 0x1c9   :  { %v2072_v53 = vadd.f32 %v8642_v30, %v10595_v55  ;;  %v10641_v57 = vadd.f32 %v2155_v5, %v2069_v41  ;;  %v10645_v23 = vpop.f32.mrf.mxu1 }
 0x1ca   :  { %v10643_v24 = vpop.f32.mrf.mxu0 }
 0x1cb   :  { %v10647_v13 = vadd.f32 %v8662_v22, %v2072_v53  ;;  %v10649_v28 = vpop.f32.mrf.mxu1 }
 0x1cc   :  { %v8669_v11 = vpop.f32.mrf.mxu0 }
 0x1cd   :  { %v2324_v17 = vadd.f32 %v8669_v11, %v2172_v21  ;;  %v10651_v31 = vpop.f32.mrf.mxu1 }
 0x1ce   :  { %v2259_v0 = vpop.f32.mrf.mxu0 }
 0x1cf   :  { %v2340_v8 = vadd.f32 %v10411_v36, %v2324_v17  ;;  %v2322_v38 = vadd.f32 %v2259_v0, %v2170_v2  ;;  %v10654_v5 = vpop.f32.mrf.mxu1 }
 0x1d0   :  { %v8670_v55 = vpop.f32.mrf.mxu0 }
 0x1d1   :  { %9084 = vtanh.f32 %v2340_v8  ;;  %v2338_v41 = vadd.f32 %v10411_v36, %v2322_v38  ;;  %v2325_v22 = vadd.f32 %v8670_v55, %v2173_v33  ;;  %v10659_v53 = vpop.f32.mrf.mxu1 }
 0x1d2   :  { %v10657_v30 = vpop.f32.mrf.mxu0 }
 0x1d3   :  { %9086 = vtanh.f32 %v2338_v41  ;;  %v2341_v21 = vadd.f32 %v10411_v36, %v2325_v22  ;;  %v10662_v19 = vpop.f32.mrf.mxu1 }
 0x1d4   :  { %v8673_v11 = vpop.f32.mrf.mxu0 }
 0x1d5   :  { %9088 = vtanh.f32 %v2341_v21  ;;  %v2328_v17 = vadd.f32 %v8673_v11, %v2176_v61  ;;  %v10664_v47 = vpop.f32.mrf.mxu1 }
 0x1d6   :  { %v2275_v2 = vpop.f32.mrf.mxu0  ;;  %12959 = vst [vmem:[#allocation15_spill] sm:$0xff] %v10664_v47 }
 0x1d7   :  { %v2344_v0 = vadd.f32 %v10411_v36, %v2328_v17  ;;  %v2326_v8 = vadd.f32 %v2275_v2, %v2174_v48  ;;  %v10667_v33 = vpop.f32.mrf.mxu1 }
 0x1d8   :  { %v8674_v38 = vpop.f32.mrf.mxu0  ;;  %12960 = vst [vmem:[#allocation16_spill] sm:$0xff] %v10667_v33 }
 0x1d9   :  { %9090 = vtanh.f32 %v2344_v0  ;;  %v2342_v55 = vadd.f32 %v10411_v36, %v2326_v8  ;;  %v2329_v41 = vadd.f32 %v8674_v38, %v2177_v3  ;;  %v10672_v22 = vpop.f32.mrf.mxu1 }
 0x1da   :  { %v10670_v52 = vpop.f32.mrf.mxu0  ;;  %12961 = vst [vmem:[#allocation17_spill] sm:$0xff] %v10672_v22 }
 0x1db   :  { %9092 = vtanh.f32 %v2342_v55  ;;  %v2345_v61 = vadd.f32 %v10411_v36, %v2329_v41  ;;  %v10675_v11 = vpop.f32.mrf.mxu1 }
 0x1dc   :  { %v8677_v21 = vpop.f32.mrf.mxu0  ;;  %12962 = vst [vmem:[#allocation18_spill] sm:$0xff] %v10675_v11 }
 0x1dd   :  { %9094 = vtanh.f32 %v2345_v61  ;;  %v2332_v17 = vadd.f32 %v8677_v21, %v2180_v4  ;;  %v10677_v27 = vpop.f32.mrf.mxu1 }
 0x1de   :  { %v9085_v48 = vpop.eup %9084  ;;  %v2291_v2 = vpop.f32.mrf.mxu0  ;;  %12963 = vst [vmem:[#allocation19_spill] sm:$0xff] %v10677_v27 }
 0x1df   :  { %v10680_v0 = vadd.f32 %v9085_v48, %v10482_v60  ;;  %v2348_v3 = vadd.f32 %v10411_v36, %v2332_v17  ;;  %v2330_v8 = vadd.f32 %v2291_v2, %v10622_v37  ;;  %v10684_v22 = vpop.f32.mrf.mxu1 }
 0x1e0   :  { %v9087_v38 = vpop.eup %9086  ;;  %v8678_v55 = vpop.f32.mrf.mxu0 }
 0x1e1   :  { %12964 = vst [vmem:[#allocation20_spill] sm:$0xff] %v10680_v0  ;;  %v10687_v41 = vadd.f32 %v9087_v38, %v10492_v25  ;;  %9096 = vtanh.f32 %v2348_v3  ;;  %v2346_v4 = vadd.f32 %v10411_v36, %v2330_v8  ;;  %v2333_v61 = vadd.f32 %v8678_v55, %v10628_v12  ;;  %v10693_v60 = vpop.f32.mrf.mxu1 }
 0x1e2   :  { %v9089_v21 = vpop.eup %9088  ;;  %v10691_v27 = vpop.f32.mrf.mxu0 }
 0x1e3   :  { %12965 = vst [vmem:[#allocation21_spill] sm:$0xff] %v10687_v41  ;;  %v10696_v17 = vadd.f32 %v9089_v21, %v10501_v39  ;;  %9098 = vtanh.f32 %v2346_v4  ;;  %v2349_v37 = vadd.f32 %v10411_v36, %v2333_v61  ;;  %v10699_v2 = vpop.f32.mrf.mxu1 }
 0x1e4   :  { %v8681_v48 = vpop.f32.mrf.mxu0 }
 0x1e5   :  { %12966 = vst [vmem:[#allocation22_spill] sm:$0xff] %v10696_v17  ;;  %9100 = vtanh.f32 %v2349_v37  ;;  %v2336_v25 = vadd.f32 %v8681_v48, %v10636_v43  ;;  %v10702_v12 = vpop.f32.mrf.mxu1 }
 0x1e6   :  { %v9091_v3 = vpop.eup %9090  ;;  %v2307_v8 = vpop.f32.mrf.mxu0 }
 0x1e7   :  { %v10705_v38 = vadd.f32 %v9091_v3, %v10520_v1  ;;  %v2352_v55 = vadd.f32 %v10411_v36, %v2336_v25  ;;  %v2334_v39 = vadd.f32 %v2307_v8, %v10641_v57  ;;  %v10709_v61 = vpop.f32.mrf.mxu1 }
 0x1e8   :  { %v9093_v4 = vpop.eup %9092  ;;  %v8682_v21 = vpop.f32.mrf.mxu0 }
 0x1e9   :  { %12967 = vst [vmem:[#allocation23_spill] sm:$0xff] %v10705_v38  ;;  %v10712_v17 = vadd.f32 %v9093_v4, %v10528_v56  ;;  %9102 = vtanh.f32 %v2352_v55  ;;  %v2350_v43 = vadd.f32 %v10411_v36, %v2334_v39  ;;  %v2337_v37 = vadd.f32 %v8682_v21, %v10647_v13  ;;  %v10718_v1 = vpop.f32.mrf.mxu1 }
 0x1ea   :  { %v9095_v48 = vpop.eup %9094  ;;  %v10716_v41 = vpop.f32.mrf.mxu0 }
 0x1eb   :  { %12968 = vst [vmem:[#allocation24_spill] sm:$0xff] %v10712_v17  ;;  %12969 = vst [vmem:[#allocation25_spill] sm:$0xff] %v10716_v41  ;;  %v10721_v25 = vadd.f32 %v9095_v48, %v10537_v18  ;;  %9104 = vtanh.f32 %v2350_v43  ;;  %v2353_v57 = vadd.f32 %v10411_v36, %v2337_v37  ;;  %v10724_v8 = vpop.f32.mrf.mxu1 }
 0x1ec   :  { %v8709_v3 = vpop.f32.mrf.mxu0 }
 0x1ed   :  { %12970 = vst [vmem:[#allocation26_spill] sm:$0xff] %v10721_v25  ;;  %9106 = vtanh.f32 %v2353_v57  ;;  %v10726_v39 = vpop.f32.mrf.mxu1 }
 0x1ee   :  { %v9097_v56 = vpop.eup %9096  ;;  %v2517_v55 = vpop.f32.mrf.mxu0 }
 0x1ef   :  { %v10729_v13 = vadd.f32 %v9097_v56, %v10548_v54  ;;  %v10731_v17 = vpop.f32.mrf.mxu1 }
 0x1f0   :  { %v9099_v4 = vpop.eup %9098  ;;  %v8710_v21 = vpop.f32.mrf.mxu0 }
 0x1f1   :  { %12971 = vst [vmem:[#allocation27_spill] sm:$0xff] %v10729_v13  ;;  %v10734_v18 = vadd.f32 %v9099_v4, %v10552_v49  ;;  %v10736_v48 = vpop.f32.mrf.mxu1 }
 0x1f2   :  { %v9101_v43 = vpop.eup %9100  ;;  %v2520_v37 = vpop.f32.mrf.mxu0 }
 0x1f3   :  { %12972 = vst [vmem:[#allocation28_spill] sm:$0xff] %v10734_v18  ;;  %v10739_v57 = vadd.f32 %v9101_v43, %v10557_v6  ;;  %v10741_v38 = vpop.f32.mrf.mxu1 }
 0x1f4   :  { %v8713_v25 = vpop.f32.mrf.mxu0  ;;  %12974 = vst [vmem:[#allocation30_spill] sm:$0xff] %v10741_v38 }
 0x1f5   :  { %12973 = vst [vmem:[#allocation29_spill] sm:$0xff] %v10739_v57  ;;  %v10743_v56 = vpop.f32.mrf.mxu1 }
 0x1f6   :  { %v9103_v11 = vpop.eup %9102  ;;  %v2533_v54 = vpop.f32.mrf.mxu0  ;;  %12975 = vst [vmem:[#allocation31_spill] sm:$0xff] %v10743_v56 }
 0x1f7   :  { %v10746_v13 = vadd.f32 %v9103_v11, %v10569_v40  ;;  %v10748_v4 = vpop.f32.mrf.mxu1 }
 0x1f8   :  { %v9105_v41 = vpop.eup %9104  ;;  %v8714_v49 = vpop.f32.mrf.mxu0  ;;  %12977 = vst [vmem:[#allocation33_spill] sm:$0xff] %v10748_v4 }
 0x1f9   :  { %12976 = vst [vmem:[#allocation32_spill] sm:$0xff] %v10746_v13  ;;  %v10751_v18 = vadd.f32 %v9105_v41, %v10573_v42  ;;  %v10755_v43 = vpop.f32.mrf.mxu1  ;;  %v1901_v42 = vadd.f32 %v10499_v29, %v10550_v59 }
 0x1fa   :  { %v9107_v0 = vpop.eup %9106  ;;  %v10753_v6 = vpop.f32.mrf.mxu0  ;;  %12979 = vst [vmem:[#allocation35_spill] sm:$0xff] %v10755_v43 }
 0x1fb   :  { %12978 = vst [vmem:[#allocation34_spill] sm:$0xff] %v10751_v18  ;;  %v10758_v57 = vadd.f32 %v9107_v0, %v10577_v20  ;;  %v10762_v56 = vpop.f32.mrf.mxu1  ;;  %v2058_v13 = vadd.f32 %v10606_v14, %v1901_v42  ;;  %v2518_v14 = vadd.f32 %v2517_v55, %v10626_v34 }
 0x1fc   :  { %v10760_v38 = vpop.f32.mrf.mxu0  ;;  %12981 = vst [vmem:[#allocation37_spill] sm:$0xff] %v10762_v56 }
 0x1fd   :  { %12980 = vst [vmem:[#allocation36_spill] sm:$0xff] %v10758_v57  ;;  %v10766_v11 = vpop.f32.mrf.mxu1  ;;  %v2171_v56 = vadd.f32 %v10591_v50, %v2058_v13  ;;  %v1917_v50 = vadd.f32 %v10535_v46, %v10571_v16  ;;  %v1933_v16 = vadd.f32 %v10559_v10, %v10587_v7 }
 0x1fe   :  { %v10764_v40 = vpop.f32.mrf.mxu0  ;;  %12982 = vst [vmem:[#allocation38_spill] sm:$0xff] %v10766_v11  ;;  %v2526_v11 = vadd.f32 %v8709_v3, %v10619_v9 }
 0x1ff   :  { %v8769_v18 = vpop.f32.mrf.mxu1  ;;  %v2323_v29 = vadd.f32 %v10657_v30, %v2171_v56  ;;  %v2677_v30 = vadd.f32 %v10693_v60, %v2518_v14  ;;  %v2521_v56 = vadd.f32 %v2520_v37, %v10633_v63  ;;  %v2062_v55 = vadd.f32 %v10613_v51, %v1917_v50 }
 0x200   :  { %v10770_v41 = vpop.f32.mrf.mxu0  ;;  %v2679_v47 = vadd.f32 %v10684_v22, %v2526_v11  ;;  %v2534_v60 = vadd.f32 %v2533_v54, %v10645_v23 }
 0x201   :  { %v2840_v20 = vpop.f32.mrf.mxu1  ;;  %v2339_v13 = vadd.f32 %v10411_v36, %v2323_v29  ;;  %v2175_v37 = vadd.f32 %v10602_v62, %v2062_v55 }
 0x202   :  { %v10773_v43 = vpop.f32.mrf.mxu0  ;;  %v2681_v62 = vadd.f32 %v10718_v1, %v2534_v60  ;;  %v12988_v60 = vld [vmem:[#allocation14_spill] sm:$0xff] }
 0x203   :  { %12983 = vst [vmem:[#allocation39_spill] sm:$0xff] %v10773_v43  ;;  %v8770_v57 = vpop.f32.mrf.mxu1  ;;  %9108 = vtanh.f32 %v2339_v13 }
 0x204   :  { %v10775_v0 = vpop.f32.mrf.mxu0 }
 0x205   :  { %12984 = vst [vmem:[#allocation40_spill] sm:$0xff] %v10775_v0  ;;  %v2843_v33 = vpop.f32.mrf.mxu1  ;;  %v2529_v0 = vadd.f32 %v8710_v21, %v10630_v15 }
 0x206   :  { %v10778_v4 = vpop.f32.mrf.mxu0 }
 0x207   :  { %v8773_v58 = vpop.f32.mrf.mxu1  ;;  %v2680_v46 = vadd.f32 %v10699_v2, %v2529_v0  ;;  %v2545_v2 = vadd.f32 %v8714_v49, %v10649_v28  ;;  %v2537_v28 = vadd.f32 %v10753_v6, %v10651_v31 }
 0x208   :  { %v10782_v59 = vpop.f32.mrf.mxu0 }
 0x209   :  { %v2856_v43 = vpop.f32.mrf.mxu1  ;;  %v2684_v1 = vadd.f32 %v10724_v8, %v2545_v2 }
 0x20a   :  { %v10785_v42 = vpop.f32.mrf.mxu0 }
 0x20b   :  { %12985 = vst [vmem:[#allocation41_spill] sm:$0xff] %v10785_v42  ;;  %v10792_v3 = vpop.f32.mrf.mxu1  ;;  %v2542_v42 = vadd.f32 %v8713_v25, %v10638_v35  ;;  %v2678_v25 = vadd.f32 %v10702_v12, %v2521_v56 }
 0x20c   :  { %v8749_v9 = vpop.f32.mrf.mxu0 }
 0x20d   :  { %v2792_v34 = vadd.f32 %v8749_v9, %v2679_v47  ;;  %v10798_v21 = vpop.f32.mrf.mxu1  ;;  %v2683_v10 = vadd.f32 %v10709_v61, %v2542_v42  ;;  %v1949_v42 = vadd.f32 %v10579_v44, %v10597_v26  ;;  %v2550_v44 = vadd.f32 %v10764_v40, %v10659_v53 }
 0x20e   :  { %v2727_v15 = vpop.f32.mrf.mxu0 }
 0x20f   :  { %v2905_v22 = vadd.f32 %v8769_v18, %v2792_v34  ;;  %v2790_v11 = vadd.f32 %v2727_v15, %v2677_v30  ;;  %v10804_v63 = vpop.f32.mrf.mxu1  ;;  %v2066_v18 = vadd.f32 %v10624_v45, %v1933_v16  ;;  %v2327_v45 = vadd.f32 %v10670_v52, %v2175_v37 }
 0x210   :  { %v8750_v29 = vpop.f32.mrf.mxu0  ;;  %v2070_v56 = vadd.f32 %v10643_v24, %v1949_v42  ;;  %v12987_v24 = vld [vmem:[#allocation39_spill] sm:$0xff] }
 0x211   :  { %v2921_v51 = vadd.f32 %v10411_v36, %v2905_v22  ;;  %v2903_v47 = vadd.f32 %v2840_v20, %v2790_v11  ;;  %v2793_v35 = vadd.f32 %v8750_v29, %v2680_v46  ;;  %v10812_v7 = vpop.f32.mrf.mxu1  ;;  %v10817_v36 = vld [vmem:[%s12877_s2] ss:$0 sm:$0xff]  ;;  %v2179_v50 = vadd.f32 %v10609_v32, %v2066_v18  ;;  %v12986_v22 = vld [vmem:[#allocation15_spill] sm:$0xff] }
 0x212   :  { %v2730_v0 = vpop.f32.mrf.mxu0  ;;  %v2682_v32 = vadd.f32 %v10726_v39, %v2537_v28  ;;  %v2553_v11 = vadd.f32 %v12987_v24, %v12986_v22  ;;  %v2183_v29 = vadd.f32 %v12988_v60, %v2070_v56  ;;  %v13002_v56 = vld [vmem:[#allocation41_spill] sm:$0xff] }
 0x213   :  { %9110 = vtanh.f32 %v2921_v51  ;;  %v2919_v23 = vadd.f32 %v10817_v36, %v2903_v47  ;;  %v2906_v12 = vadd.f32 %v8770_v57, %v2793_v35  ;;  %v2791_v54 = vadd.f32 %v2730_v0, %v2678_v25  ;;  %v10831_v13 = vpop.f32.mrf.mxu1  ;;  %v12990_v51 = vld [vmem:[#allocation40_spill] sm:$0xff]  ;;  %v12991_v25 = vld [vmem:[#allocation30_spill] sm:$0xff] }
 0x214   :  { %v8753_v61 = vpop.f32.mrf.mxu0  ;;  %v2558_v57 = vadd.f32 %v10760_v38, %v10654_v5  ;;  %v2331_v30 = vadd.f32 %v10691_v27, %v2179_v50  ;;  %v12996_v50 = vld [vmem:[#allocation25_spill] sm:$0xff] }
 0x215   :  { %9112 = vtanh.f32 %v2919_v23  ;;  %v2922_v49 = vadd.f32 %v10817_v36, %v2906_v12  ;;  %v2904_v20 = vadd.f32 %v2843_v33, %v2791_v54  ;;  %v2796_v14 = vadd.f32 %v8753_v61, %v2683_v10  ;;  %v2875_v27 = vpop.f32.mrf.mxu1  ;;  %v12992_v23 = vld [vmem:[#allocation11_spill] sm:$0xff]  ;;  %v12995_v61 = vld [vmem:[#allocation20_spill] sm:$0xff] }
 0x216   :  { %v2743_v52 = vpop.f32.mrf.mxu0  ;;  %v2343_v33 = vadd.f32 %v10817_v36, %v2327_v45  ;;  %v2687_v55 = vadd.f32 %v10731_v17, %v2558_v57  ;;  %v2347_v15 = vadd.f32 %v10817_v36, %v2331_v30  ;;  %v2335_v57 = vadd.f32 %v12996_v50, %v2183_v29  ;;  %v12999_v30 = vld [vmem:[#allocation21_spill] sm:$0xff] }
 0x217   :  { %9114 = vtanh.f32 %v2922_v49  ;;  %v2920_v31 = vadd.f32 %v10817_v36, %v2904_v20  ;;  %v2909_v6 = vadd.f32 %v8773_v58, %v2796_v14  ;;  %v2794_v9 = vadd.f32 %v2743_v52, %v2681_v62  ;;  %v12994_v62 = vld [vmem:[#allocation31_spill] sm:$0xff] }
 0x218   :  { %v8754_v26 = vpop.f32.mrf.mxu0  ;;  %v2561_v58 = vadd.f32 %v10770_v41, %v10662_v19  ;;  %v9109_v19 = vpop.eup %9108  ;;  %v2686_v28 = vadd.f32 %v12994_v62, %v2553_v11  ;;  %v2351_v22 = vadd.f32 %v10817_v36, %v2335_v57 }
 0x219   :  { %9116 = vtanh.f32 %v2920_v31  ;;  %v2925_v5 = vadd.f32 %v10817_v36, %v2909_v6  ;;  %v2907_v38 = vadd.f32 %v2856_v43, %v2794_v9  ;;  %v2797_v8 = vadd.f32 %v8754_v26, %v2684_v1  ;;  %v12998_v6 = vld [vmem:[#allocation33_spill] sm:$0xff] }
 0x21a   :  { %v2746_v34 = vpop.f32.mrf.mxu0  ;;  %v2685_v43 = vadd.f32 %v10736_v48, %v2550_v44  ;;  %v2688_v18 = vadd.f32 %v12991_v25, %v2561_v58  ;;  %v8781_v48 = vpop.f32.mrf.mxu1  ;;  %v2371_v12 = vadd.f32 %v9109_v19, %v12992_v23 }
 0x21b   :  { %9118 = vtanh.f32 %v2925_v5  ;;  %v2923_v53 = vadd.f32 %v10817_v36, %v2907_v38  ;;  %v2910_v40 = vadd.f32 %v10792_v3, %v2797_v8  ;;  %v2795_v39 = vadd.f32 %v2746_v34, %v2682_v32  ;;  %v12989_v3 = vld [vmem:[#allocation16_spill] sm:$0xff]  ;;  %v13000_v5 = vld [vmem:[#allocation35_spill] sm:$0xff] }
 0x21c   :  { %9120 = vtanh.f32 %v2343_v33  ;;  %v8757_v46 = vpop.f32.mrf.mxu0  ;;  %v2574_v47 = vadd.f32 %v12990_v51, %v12989_v3  ;;  %v2888_v9 = vpop.f32.mrf.mxu1  ;;  %v13001_v8 = vld [vmem:[#allocation19_spill] sm:$0xff]  ;;  %v13005_v51 = vld [vmem:[#allocation38_spill] sm:$0xff] }
 0x21d   :  { %9122 = vtanh.f32 %v2923_v53  ;;  %v2926_v17 = vadd.f32 %v10817_v36, %v2910_v40  ;;  %v2908_v41 = vadd.f32 %v10798_v21, %v2795_v39  ;;  %v2800_v16 = vadd.f32 %v8757_v46, %v2687_v55  ;;  %v12993_v21 = vld [vmem:[#allocation17_spill] sm:$0xff]  ;;  %v13003_v53 = vld [vmem:[#allocation22_spill] sm:$0xff] }
 0x21e   :  { %v2759_v35 = vpop.f32.mrf.mxu0  ;;  %v2566_v54 = vadd.f32 %v10778_v4, %v12993_v21  ;;  %v2691_v4 = vadd.f32 %v12998_v6, %v2574_v47  ;;  %v2569_v58 = vadd.f32 %v13002_v56, %v13001_v8  ;;  %v13004_v46 = vld [vmem:[#allocation37_spill] sm:$0xff] }
 0x21f   :  { %9124 = vtanh.f32 %v2926_v17  ;;  %v2924_v37 = vadd.f32 %v10817_v36, %v2908_v41  ;;  %v2798_v2 = vadd.f32 %v2759_v35, %v2685_v43  ;;  %v2913_v0 = vadd.f32 %v10804_v63, %v2800_v16  ;;  %v12997_v63 = vld [vmem:[#allocation18_spill] sm:$0xff]  ;;  %v8782_v17 = vpop.f32.mrf.mxu1  ;;  %v8974_v56 = vld [vmem:[#allocation4 + $0x1d4] ss:$8 sps:$4 sm:$0xff]  }
 0x220   :  { %v9111_v10 = vpop.eup %9110  ;;  %9126 = vtanh.f32 %v2347_v15  ;;  %v8758_v45 = vpop.f32.mrf.mxu0  ;;  %v2577_v52 = vadd.f32 %v10782_v59, %v12997_v63  ;;  %v2689_v38 = vadd.f32 %v13000_v5, %v2566_v54  ;;  %v2690_v47 = vadd.f32 %v13005_v51, %v2569_v58  ;;  %v8968_v63 = vld [vmem:[#allocation4 + $0x1e4] ss:$8 sps:$4 sm:$0xff]   ;;  %v8951_v51 = vld [vmem:[#allocation4 + $0x160] ss:$8 sps:$4 sm:$0xff]  }
 0x221   :  { %v2953_v49 = vadd.f32 %v9111_v10, %v12995_v61  ;;  %9128 = vtanh.f32 %v2924_v37  ;;  %v2929_v20 = vadd.f32 %v10817_v36, %v2913_v0  ;;  %v2801_v14 = vadd.f32 %v8758_v45, %v2688_v18  ;;  %v13006_v18 = vld [vmem:[#allocation23_spill] sm:$0xff]  ;;  %v2891_v21 = vpop.f32.mrf.mxu1  ;;  %v13007_v45 = vld [vmem:[#allocation24_spill] sm:$0xff] }
 0x222   :  { %v9113_v42 = vpop.eup %9112  ;;  %v2911_v1 = vadd.f32 %v10812_v7, %v2798_v2  ;;  %v2762_v31 = vpop.f32.mrf.mxu0  ;;  %v2692_v19 = vadd.f32 %v13004_v46, %v2577_v52  ;;  %v13010_v5 = vmov 0   ;;  %v8972_v46 = vld [vmem:[#allocation4 + $0x1d0] ss:$8 sps:$4 sm:$0xff]  }
 0x223   :  { %v10869_v33 = vmul.f32 0.25, %v2953_v49  ;;  %v2951_v44 = vadd.f32 %v9113_v42, %v12999_v30  ;;  %9130 = vtanh.f32 %v2929_v20  ;;  %v2799_v26 = vadd.f32 %v2762_v31, %v2686_v28  ;;  %v8963_v49 = vld [vmem:[#allocation4 + $0x1f0] ss:$8 sps:$4 sm:$0xff]   ;;  %v13009_v31 = vld [vmem:[#allocation26_spill] sm:$0xff] }
 0x224   :  { %v9115_v32 = vpop.eup %9114  ;;  %v2927_v59 = vadd.f32 %v10817_v36, %v2911_v1  ;;  %v2914_v7 = vadd.f32 %v10831_v13, %v2801_v14  ;;  %v8761_v34 = vpop.f32.mrf.mxu0  ;;  %v13008_v14 = vld [vmem:[#allocation10_spill] sm:$0xff] }
 0x225   :  { %2985 = vst [vmem:[#allocation2 + $0x10] sm:$0xff] %v10869_v33  ;;  %v2967_v55 = vmul.f32 0.25, %v2951_v44  ;;  %v2954_v40 = vadd.f32 %v9115_v32, %v13003_v53  ;;  %v2804_v39 = vadd.f32 %v8761_v34, %v2691_v4  ;;  %v2912_v15 = vadd.f32 %v2875_v27, %v2799_v26 }
 0x226   :  { %v9117_v43 = vpop.eup %9116  ;;  %9132 = vtanh.f32 %v2927_v59  ;;  %v2930_v24 = vadd.f32 %v10817_v36, %v2914_v7  ;;  %v2775_v11 = vpop.f32.mrf.mxu0  ;;  %v13011_v59 = vld [vmem:[#allocation27_spill] sm:$0xff] }
 0x227   :  { %2983 = vst [vmem:[#allocation2] sm:$0xff] %v2967_v55  ;;  %v10882_v13 = vmul.f32 0.25, %v2954_v40  ;;  %v2952_v41 = vadd.f32 %v9117_v43, %v2371_v12  ;;  %v2928_v16 = vadd.f32 %v10817_v36, %v2912_v15  ;;  %v2802_v60 = vadd.f32 %v2775_v11, %v2689_v38  ;;  %v8966_v38 = vld [vmem:[#allocation4 + $0x1e0] ss:$8 sps:$4 sm:$0xff]   ;;  %v8953_v43 = vld [vmem:[#allocation4 + $0x164] ss:$8 sps:$4 sm:$0xff]  }
 0x228   :  { %v9119_v29 = vpop.eup %9118  ;;  %9134 = vtanh.f32 %v2930_v24  ;;  %v2917_v27 = vadd.f32 %v8781_v48, %v2804_v39  ;;  %v8762_v3 = vpop.f32.mrf.mxu0  ;;  %v13012_v24 = vld [vmem:[#allocation28_spill] sm:$0xff] }
 0x229   :  { %v9121_v35 = vpop.eup %9120  ;;  %2986 = vst [vmem:[#allocation2 + $0x18] sm:$0xff] %v10882_v13  ;;  %v2968_v25 = vmul.f32 0.25, %v2952_v41  ;;  %v2957_v37 = vadd.f32 %v9119_v29, %v13006_v18  ;;  %9136 = vtanh.f32 %v2928_v16  ;;  %v2805_v2 = vadd.f32 %v8762_v3, %v2692_v19  ;;  %v8977_v16 = vld [vmem:[#allocation4 + $0x1c4] ss:$8 sps:$4 sm:$0xff]  }
 0x22a   :  { %v9123_v0 = vpop.eup %9122  ;;  %9138 = vtanh.f32 %v2351_v22  ;;  %v2933_v10 = vadd.f32 %v10817_v36, %v2917_v27  ;;  %v2915_v23 = vadd.f32 %v2888_v9, %v2802_v60  ;;  %v2778_v12 = vpop.f32.mrf.mxu0  ;;  %v3016_v48 = vpack.c.bf16 %v10882_v13, %v10869_v33  ;;  %v13014_v27 = vld [vmem:[#allocation29_spill] sm:$0xff]  ;;  %v13015_v33 = vld [vmem:[#allocation32_spill] sm:$0xff] }
 0x22b   :  { %2984 = vst [vmem:[#allocation2 + $0x8] sm:$0xff] %v2968_v25  ;;  %v10891_v54 = vmul.f32 0.25, %v2957_v37  ;;  %v2955_v62 = vadd.f32 %v9123_v0, %v13007_v45  ;;  %v2803_v28 = vadd.f32 %v2778_v12, %v2690_v47  ;;  %v2918_v61 = vadd.f32 %v8782_v17, %v2805_v2  ;;  %v13013_v17 = vld [vmem:[#allocation12_spill] sm:$0xff]  ;;  %v8975_v2 = vld [vmem:[#allocation4 + $0x1c0] ss:$8 sps:$4 sm:$0xff]  }
 0x22c   :  { %v9125_v20 = vpop.eup %9124  ;;  %v2375_v42 = vadd.f32 %v9121_v35, %v13008_v14  ;;  %9140 = vtanh.f32 %v2933_v10  ;;  %v2931_v50 = vadd.f32 %v10817_v36, %v2915_v23  ;;  %v3015_v57 = vpack.c.bf16 %v2968_v25, %v2967_v55  ;;  %v8956_v25 = vld [vmem:[#allocation4 + $0x154] ss:$8 sps:$4 sm:$0xff]   ;;  %v13016_v14 = vld [vmem:[#allocation34_spill] sm:$0xff] }
 0x22d   :  { %v9127_v52 = vpop.eup %9126  ;;  %2989 = vst [vmem:[#allocation2 + $0x30] sm:$0xff] %v10891_v54  ;;  %v10897_v1 = vmul.f32 0.25, %v2955_v62  ;;  %v2958_v6 = vadd.f32 %v9125_v20, %v13009_v31  ;;  %v2934_v4 = vadd.f32 %v10817_v36, %v2918_v61  ;;  %v2916_v9 = vadd.f32 %v2891_v21, %v2803_v28  ;;  %v8983_v23 = vld [vmem:[#allocation4 + $0x1b4] ss:$8 sps:$4 sm:$0xff]   ;;  %v8954_v21 = vld [vmem:[#allocation4 + $0x150] ss:$8 sps:$4 sm:$0xff]  }
 0x22e   :  { %v9129_v30 = vpop.eup %9128  ;;  %9142 = vtanh.f32 %v2931_v50  ;;  %3386 = vmatmul.mubr.bf16.vlgmr.msra.gmra.mxu1 %v3015_v57  ;;  %v2379_v41 = vadd.f32 %v9127_v52, %v13013_v17  ;;  %v8959_v28 = vld [vmem:[#allocation4 + $0x144] ss:$8 sps:$4 sm:$0xff]   ;;  %v8981_v50 = vld [vmem:[#allocation4 + $0x1b0] ss:$8 sps:$4 sm:$0xff]  }
 0x22f   :  { %2987 = vst [vmem:[#allocation2 + $0x20] sm:$0xff] %v10897_v1  ;;  %v10902_v44 = vmul.f32 0.25, %v2958_v6  ;;  %v2956_v26 = vadd.f32 %v9129_v30, %v2375_v42  ;;  %9144 = vtanh.f32 %v2934_v4  ;;  %v2932_v32 = vadd.f32 %v10817_v36, %v2916_v9  ;;  %3395 = vmatprep.mubr.bf16.mxu1 %v13010_v5  ;;  %3854 = vmatpush1.bf16.msra.mxu1 %v8963_v49  ;;  %v8948_v36 = vld [vmem:[#allocation4 + $0x170] ss:$8 sps:$4 sm:$0xff]   ;;  %v8986_v31 = vld [vmem:[#allocation4 + $0x1a4] ss:$8 sps:$4 sm:$0xff]  }
 0x230   :  { %v9131_v8 = vpop.eup %9130  ;;  %3855 = vmatprep.subr.bf16.mxu1 %v8968_v63  ;;  %v3041_v12 = vld [vmem:[#allocation2 + $0x11] sm:$0xff]  ;;  %v8957_v9 = vld [vmem:[#allocation4 + $0x140] ss:$8 sps:$4 sm:$0xff]  }
 0x231   :  { %2990 = vst [vmem:[#allocation2 + $0x38] sm:$0xff] %v10902_v44  ;;  %v10907_v58 = vmul.f32 0.25, %v2956_v26  ;;  %v2961_v7 = vadd.f32 %v9131_v8, %v13011_v59  ;;  %9146 = vtanh.f32 %v2932_v32  ;;  %v3018_v34 = vpack.c.bf16 %v10902_v44, %v10891_v54  ;;  %v13017_v57 = vld [vmem:[#allocation13_spill] sm:$0xff]  ;;  %v13018_v52 = vld [vmem:[#allocation36_spill] sm:$0xff]  ;;  %v8987_v54 = vld [vmem:[#allocation4 + $0x100] ss:$8 sps:$4 sm:$0xff]  }
 0x232   :  { %v3039_v55 = vld [vmem:[#allocation2 + $0x1] sm:$0xff]  ;;  %v3040_v53 = vld [vmem:[#allocation2 + $0x9] sm:$0xff]  ;;  %v8962_v32 = vld [vmem:[#allocation4 + $0x134] ss:$8 sps:$4 sm:$0xff]  }
 0x233   :  { %v9133_v40 = vpop.eup %9132  ;;  %2988 = vst [vmem:[#allocation2 + $0x28] sm:$0xff] %v10907_v58  ;;  %v10913_v39 = vmul.f32 0.25, %v2961_v7  ;;  %v3055_v15 = vpack.c.bf16 %v3040_v53, %v3039_v55  ;;  %v3017_v22 = vpack.c.bf16 %v10907_v58, %v10897_v1  ;;  %3856 = vmatpush1.bf16.msra.mxu1 %v8966_v38  ;;  %v8992_v59 = vld [vmem:[#allocation4 + $0x194] ss:$8 sps:$4 sm:$0xff]   ;;  %v8960_v7 = vld [vmem:[#allocation4 + $0x130] ss:$8 sps:$4 sm:$0xff]  }
 0x234   :  { %v2959_v11 = vadd.f32 %v9133_v40, %v13012_v24  ;;  %3857 = vmatprep.subr.bf16.mxu1 %v8974_v56  ;;  %v8984_v56 = vld [vmem:[#allocation4 + $0x1a0] ss:$8 sps:$4 sm:$0xff]   ;;  %v8971_v53 = vld [vmem:[#allocation4 + $0x124] ss:$8 sps:$4 sm:$0xff]   ;;  %v8990_v40 = vld [vmem:[#allocation4 + $0x190] ss:$8 sps:$4 sm:$0xff]  }
 0x235   :  { %v9135_v19 = vpop.eup %9134  ;;  %2993 = vst [vmem:[#allocation2 + $0x50] sm:$0xff] %v10913_v39  ;;  %3193 = vmatmul.mubr.bf16.vlgmr.msra.gmra.mxu0 %v3055_v15  ;;  %v8995_v15 = vld [vmem:[#allocation4 + $0x184] ss:$8 sps:$4 sm:$0xff]   ;;  %v8998_v44 = vld [vmem:[#allocation4 + $0x274] ss:$8 sps:$4 sm:$0xff]  }
 0x236   :  { %v9137_v60 = vpop.eup %9136  ;;  %v10920_v29 = vmul.f32 0.25, %v2959_v11  ;;  %v2962_v3 = vadd.f32 %v9135_v19, %v13014_v27  ;;  %3588 = vmatpush1.bf16.msra.mxu0 %v8948_v36  ;;  %3202 = vmatprep.mubr.bf16.mxu0 %v13010_v5  ;;  %v3042_v37 = vld [vmem:[#allocation2 + $0x19] sm:$0xff] }
 0x237   :  { %v9139_v47 = vpop.eup %9138  ;;  %v2960_v35 = vadd.f32 %v9137_v60, %v2379_v41  ;;  %3396 = vmatmul.mubr.bf16.gmra.mxu1 %v3016_v48  ;;  %3589 = vmatprep.subr.bf16.mxu0 %v8953_v43  ;;  %v3056_v62 = vpack.c.bf16 %v3042_v37, %v3041_v12  ;;  %v8969_v43 = vld [vmem:[#allocation4 + $0x120] ss:$8 sps:$4 sm:$0xff]   ;;  %v8978_v19 = vld [vmem:[#allocation4 + $0x110] ss:$8 sps:$4 sm:$0xff]   ;;  %v8989_v41 = vld [vmem:[#allocation4 + $0x104] ss:$8 sps:$4 sm:$0xff]  }
 0x238   :  { %2991 = vst [vmem:[#allocation2 + $0x40] sm:$0xff] %v10920_v29  ;;  %v10928_v18 = vmul.f32 0.25, %v2962_v3  ;;  %3405 = vmatprep.mubr.bf16.mxu1 %v13010_v5  ;;  %3858 = vmatpush1.bf16.msra.mxu1 %v8972_v46  ;;  %v2383_v63 = vadd.f32 %v9139_v47, %v13017_v57  ;;  %v8993_v11 = vld [vmem:[#allocation4 + $0x180] ss:$8 sps:$4 sm:$0xff]   ;;  %v3045_v46 = vld [vmem:[#allocation2 + $0x31] sm:$0xff] }
 0x239   :  { %v9141_v0 = vpop.eup %9140  ;;  %v10931_v10 = vmul.f32 0.25, %v2960_v35  ;;  %3859 = vmatprep.subr.bf16.mxu1 %v8977_v16  ;;  %v8996_v12 = vld [vmem:[#allocation4 + $0x270] ss:$8 sps:$4 sm:$0xff]  }
 0x23a   :  { %2994 = vst [vmem:[#allocation2 + $0x58] sm:$0xff] %v10928_v18  ;;  %v2965_v13 = vadd.f32 %v9141_v0, %v13015_v33  ;;  %3590 = vmatpush1.bf16.msra.mxu0 %v8951_v51  ;;  %v3020_v48 = vpack.c.bf16 %v10928_v18, %v10913_v39  ;;  %v3043_v38 = vld [vmem:[#allocation2 + $0x21] sm:$0xff]  ;;  %v3044_v8 = vld [vmem:[#allocation2 + $0x29] sm:$0xff] }
 0x23b   :  { %v9143_v45 = vpop.eup %9142  ;;  %2992 = vst [vmem:[#allocation2 + $0x48] sm:$0xff] %v10931_v10  ;;  %3591 = vmatprep.subr.bf16.mxu0 %v8956_v25  ;;  %v3019_v61 = vpack.c.bf16 %v10931_v10, %v10920_v29  ;;  %v3057_v55 = vpack.c.bf16 %v3044_v8, %v3043_v38  ;;  %v3733_v0 = vld [vmem:[#allocation2 + $0xb] sm:$0xff]  ;;  %v3466_v33 = vld [vmem:[#allocation2 + $0x2] sm:$0xff]  ;;  %v3738_v8 = vld [vmem:[#allocation2 + $0x33] sm:$0xff] }
 0x23c   :  { %v9145_v49 = vpop.eup %9144  ;;  %v10940_v20 = vmul.f32 0.25, %v2965_v13  ;;  %v2963_v42 = vadd.f32 %v9143_v45, %v13016_v14  ;;  %3860 = vmatpush1.bf16.msra.mxu1 %v8975_v2  ;;  %v3732_v2 = vld [vmem:[#allocation2 + $0x3] sm:$0xff]  ;;  %v9002_v14 = vld [vmem:[#allocation4 + $0x250] ss:$8 sps:$4 sm:$0xff]  }
 0x23d   :  { %v2966_v1 = vadd.f32 %v9145_v49, %v13018_v52  ;;  %3203 = vmatmul.mubr.bf16.gmra.mxu0 %v3056_v62  ;;  %3861 = vmatprep.subr.bf16.mxu1 %v8983_v23  ;;  %v3748_v23 = vpack.c.bf16 %v3733_v0, %v3732_v2  ;;  %v3467_v13 = vld [vmem:[#allocation2 + $0xa] sm:$0xff]  ;;  %v3734_v62 = vld [vmem:[#allocation2 + $0x13] sm:$0xff] }
 0x23e   :  { %v9147_v6 = vpop.eup %9146  ;;  %2997 = vst [vmem:[#allocation2 + $0x70] sm:$0xff] %v10940_v20  ;;  %v10946_v4 = vmul.f32 0.25, %v2963_v42  ;;  %3212 = vmatprep.mubr.bf16.mxu0 %v13010_v5  ;;  %3592 = vmatpush1.bf16.msra.mxu0 %v8954_v21  ;;  %v3735_v21 = vld [vmem:[#allocation2 + $0x1b] sm:$0xff]  ;;  %v9001_v45 = vld [vmem:[#allocation4 + $0x264] ss:$8 sps:$4 sm:$0xff]   ;;  %v3468_v42 = vld [vmem:[#allocation2 + $0x12] sm:$0xff] }
 0x23f   :  { %v2982_v30 = vmul.f32 0.25, %v2966_v1  ;;  %v2964_v26 = vadd.f32 %v9147_v6, %v2383_v63  ;;  %3406 = vmatmul.mubr.bf16.gmra.mxu1 %v3017_v22  ;;  %3593 = vmatprep.subr.bf16.mxu0 %v8959_v28  ;;  %v8980_v22 = vld [vmem:[#allocation4 + $0x114] ss:$8 sps:$4 sm:$0xff]   ;;  %v3749_v28 = vpack.c.bf16 %v3735_v21, %v3734_v62  ;;  %v3737_v57 = vld [vmem:[#allocation2 + $0x2b] sm:$0xff] }
 0x240   :  { %2995 = vst [vmem:[#allocation2 + $0x60] sm:$0xff] %v10946_v4  ;;  %3415 = vmatprep.mubr.bf16.mxu1 %v13010_v5  ;;  %3862 = vmatpush1.bf16.msra.mxu1 %v8981_v50  ;;  %v3046_v24 = vld [vmem:[#allocation2 + $0x39] sm:$0xff]  ;;  %v3736_v50 = vld [vmem:[#allocation2 + $0x23] sm:$0xff] }
 0x241   :  { %2998 = vst [vmem:[#allocation2 + $0x78] sm:$0x3f] %v2982_v30  ;;  %v2980_v58 = vmul.f32 0.25, %v2964_v26  ;;  %3863 = vmatprep.subr.bf16.mxu1 %v8986_v31  ;;  %v3058_v17 = vpack.c.bf16 %v3046_v24, %v3045_v46  ;;  %v3049_v29 = vld [vmem:[#allocation2 + $0x51] sm:$0xff]  ;;  %v9007_v52 = vld [vmem:[#allocation4 + $0x244] ss:$8 sps:$4 sm:$0xff]   ;;  %v3750_v1 = vpack.c.bf16 %v3737_v57, %v3736_v50 }
 0x242   :  { %3594 = vmatpush1.bf16.msra.mxu0 %v8957_v9  ;;  %v3048_v16 = vld [vmem:[#allocation2 + $0x49] sm:$0xff]  ;;  %v9004_v49 = vld [vmem:[#allocation4 + $0x254] ss:$8 sps:$4 sm:$0xff]  }
 0x243   :  { %2996 = vst [vmem:[#allocation2 + $0x68] sm:$0xff] %v2980_v58  ;;  %3595 = vmatprep.subr.bf16.mxu0 %v8962_v32  ;;  %v3021_v36 = vpack.c.bf16 %v2980_v58, %v10946_v4  ;;  %v9005_v31 = vld [vmem:[#allocation4 + $0x240] ss:$8 sps:$4 sm:$0xff]   ;;  %v9010_v6 = vld [vmem:[#allocation4 + $0x234] ss:$8 sps:$4 sm:$0xff]  }
 0x244   :  { %3864 = vmatpush1.bf16.msra.mxu1 %v8984_v56  ;;  %v3470_v4 = vld [vmem:[#allocation2 + $0x22] sm:$0xff]  ;;  %v3471_v9 = vld [vmem:[#allocation2 + $0x2a] sm:$0xff]  ;;  %v4008_v50 = vld [vmem:[#allocation2 + $0x54] sm:$0xff] }
 0x245   :  { %3213 = vmatmul.mubr.bf16.gmra.mxu0 %v3057_v55  ;;  %3865 = vmatprep.subr.bf16.mxu1 %v8992_v59  ;;  %v3739_v30 = vld [vmem:[#allocation2 + $0x3b] sm:$0xff]  ;;  %v3484_v32 = vpack.c.bf16 %v3471_v9, %v3470_v4  ;;  %v9013_v38 = vld [vmem:[#allocation4 + $0x224] ss:$8 sps:$4 sm:$0xff]   ;;  %v11003_v4 = vld [vmem:[#allocation6 + $0x70] sm:$0xff] }
 0x246   :  { %3222 = vmatprep.mubr.bf16.mxu0 %v13010_v5  ;;  %3596 = vmatpush1.bf16.msra.mxu0 %v8960_v7  ;;  %v9008_v26 = vld [vmem:[#allocation4 + $0x230] ss:$8 sps:$4 sm:$0xff]   ;;  %v3751_v56 = vpack.c.bf16 %v3739_v30, %v3738_v8  ;;  %v9011_v58 = vld [vmem:[#allocation4 + $0x220] ss:$8 sps:$4 sm:$0xff]   ;;  %v9016_v59 = vld [vmem:[#allocation4 + $0x214] ss:$8 sps:$4 sm:$0xff]  }
 0x247   :  { %3416 = vmatmul.mubr.bf16.gmra.mxu1 %v3018_v34  ;;  %3597 = vmatprep.subr.bf16.mxu0 %v8971_v53  ;;  %v3047_v34 = vld [vmem:[#allocation2 + $0x41] sm:$0xff]  ;;  %v3050_v27 = vld [vmem:[#allocation2 + $0x59] sm:$0xff]  ;;  %v3475_v46 = vld [vmem:[#allocation2 + $0x4a] sm:$0xff]  ;;  %13021 = vst [vmem:[#allocation14_spill] sm:$0xff] %v11003_v4 }
 0x248   :  { %3425 = vmatprep.mubr.bf16.mxu1 %v13010_v5  ;;  %3866 = vmatpush1.bf16.msra.mxu1 %v8990_v40  ;;  %v3059_v60 = vpack.c.bf16 %v3048_v16, %v3047_v34  ;;  %v3060_v3 = vpack.c.bf16 %v3050_v27, %v3049_v29  ;;  %v3014_v35 = vld [vmem:[#allocation2 + $0x78] sm:$0x3]  ;;  %v3473_v7 = vld [vmem:[#allocation2 + $0x3a] sm:$0xff]  ;;  %v3741_v40 = vld [vmem:[#allocation2 + $0x4b] sm:$0xff] }
 0x249   :  { %3867 = vmatprep.subr.bf16.mxu1 %v8995_v15  ;;  %v3022_v37 = vpack.c.bf16 %v3014_v35, %v10940_v20  ;;  %v3053_v39 = vld [vmem:[#allocation2 + $0x71] sm:$0xff]  ;;  %v3054_v18 = vld [vmem:[#allocation2 + $0x79] sm:$0x3]  ;;  %v9017_v24 = vld [vmem:[#allocation4 + $0x200] ss:$8 sps:$4 sm:$0xff]  }
 0x24a   :  { %3598 = vmatpush1.bf16.msra.mxu0 %v8969_v43  ;;  %v3051_v51 = vld [vmem:[#allocation2 + $0x61] sm:$0xff]  ;;  %v3052_v47 = vld [vmem:[#allocation2 + $0x69] sm:$0xff]  ;;  %v3062_v10 = vpack.c.bf16 %v3054_v18, %v3053_v39  ;;  %v3472_v53 = vld [vmem:[#allocation2 + $0x32] sm:$0xff] }
 0x24b   :  { %3599 = vmatprep.subr.bf16.mxu0 %v8980_v22  ;;  %v3061_v25 = vpack.c.bf16 %v3052_v47, %v3051_v51  ;;  %v3469_v20 = vld [vmem:[#allocation2 + $0x1a] sm:$0xff]  ;;  %v3485_v15 = vpack.c.bf16 %v3473_v7, %v3472_v53  ;;  %v9019_v43 = vld [vmem:[#allocation4 + $0x204] ss:$8 sps:$4 sm:$0xff]   ;;  %v3476_v34 = vld [vmem:[#allocation2 + $0x52] sm:$0xff] }
 0x24c   :  { %3868 = vmatpush1.bf16.msra.mxu1 %v8993_v11  ;;  %v3483_v63 = vpack.c.bf16 %v3469_v20, %v3468_v42  ;;  %v9014_v55 = vld [vmem:[#allocation4 + $0x210] ss:$8 sps:$4 sm:$0xff]   ;;  %v3474_v11 = vld [vmem:[#allocation2 + $0x42] sm:$0xff] }
 0x24d   :  { %3223 = vmatmul.mubr.bf16.gmra.mxu0 %v3058_v17  ;;  %v3486_v17 = vpack.c.bf16 %v3475_v46, %v3474_v11  ;;  %v3744_v16 = vld [vmem:[#allocation2 + $0x63] sm:$0xff]  ;;  %v3746_v47 = vld [vmem:[#allocation2 + $0x73] sm:$0xff]  ;;  %v3747_v35 = vld [vmem:[#allocation2 + $0x7b] sm:$0x3] }
 0x24e   :  { %3232 = vmatprep.mubr.bf16.mxu0 %v13010_v5  ;;  %3600 = vmatpush1.bf16.msra.mxu0 %v8978_v19  ;;  %v3743_v19 = vld [vmem:[#allocation2 + $0x5b] sm:$0xff]  ;;  %v3479_v51 = vld [vmem:[#allocation2 + $0x6a] sm:$0xff]  ;;  %v3480_v39 = vld [vmem:[#allocation2 + $0x72] sm:$0xff] }
 0x24f   :  { %3426 = vmatmul.mubr.bf16.gmra.mxu1 %v3019_v61  ;;  %3601 = vmatprep.subr.bf16.mxu0 %v8989_v41  ;;  %v8999_v61 = vld [vmem:[#allocation4 + $0x260] ss:$8 sps:$4 sm:$0xff]   ;;  %v3742_v41 = vld [vmem:[#allocation2 + $0x53] sm:$0xff] }
 0x250   :  { %3435 = vmatprep.mubr.bf16.mxu1 %v13010_v5  ;;  %v3481_v18 = vld [vmem:[#allocation2 + $0x7a] sm:$0x3]  ;;  %v3998_v0 = vld [vmem:[#allocation2 + $0x4] sm:$0xff]  ;;  %v4005_v62 = vld [vmem:[#allocation2 + $0x3c] sm:$0xff] }
 0x251   :  { %v3489_v2 = vpack.c.bf16 %v3481_v18, %v3480_v39  ;;  %v4002_v21 = vld [vmem:[#allocation2 + $0x24] sm:$0xff]  ;;  %v4007_v20 = vld [vmem:[#allocation2 + $0x4c] sm:$0xff]  ;;  %v4009_v42 = vld [vmem:[#allocation2 + $0x5c] sm:$0xff] }
 0x252   :  { %3602 = vmatpush1.bf16.msra.mxu0 %v8987_v54  ;;  %v3753_v54 = vpack.c.bf16 %v3743_v19, %v3742_v41  ;;  %v4019_v57 = vpack.c.bf16 %v4009_v42, %v4008_v50  ;;  %v11006_v30 = vld [vmem:[#allocation6 + $0xe8] sm:$0xff]  ;;  %v4430_v8 = vld [vmem:[#allocation6 + $0xe0] sm:$0xff] }
 0x253   :  { %4119 = vmatprep.subr.bf16.mxu0 %v8998_v44  ;;  %v3477_v44 = vld [vmem:[#allocation2 + $0x5a] sm:$0xff]  ;;  %13022 = vst [vmem:[#allocation16_spill] sm:$0xff] %v11006_v30 }
 0x254   :  { %v3487_v27 = vpack.c.bf16 %v3477_v44, %v3476_v34  ;;  %v4859_v44 = vld [vmem:[#allocation6 + $0x1f8] sm:$0xff]  ;;  %v4856_v39 = vld [vmem:[#allocation6 + $0x1e0] sm:$0xff] }
 0x255   :  { %3233 = vmatmul.mubr.bf16.gmra.mxu0 %v3059_v60  ;;  %v3745_v60 = vld [vmem:[#allocation2 + $0x6b] sm:$0xff]  ;;  %v4843_v34 = vld [vmem:[#allocation6 + $0x178] sm:$0xff]  ;;  %v4840_v18 = vld [vmem:[#allocation6 + $0x160] sm:$0xff] }
 0x256   :  { %3242 = vmatprep.mubr.bf16.mxu0 %v13010_v5  ;;  %v3754_v29 = vpack.c.bf16 %v3745_v60, %v3744_v16  ;;  %v4410_v42 = vld [vmem:[#allocation6 + $0x40] sm:$0xff] }
 0x257   :  { %3436 = vmatmul.mubr.bf16.gmra.mxu1 %v3020_v48  ;;  %v3482_v48 = vpack.c.bf16 %v3467_v13, %v3466_v33  ;;  %v4001_v33 = vld [vmem:[#allocation2 + $0x1c] sm:$0xff]  ;;  %v4000_v13 = vld [vmem:[#allocation2 + $0x14] sm:$0xff] }
 0x258   :  { %3445 = vmatprep.mubr.bf16.mxu1 %v13010_v5  ;;  %v4836_v50 = vld [vmem:[#allocation6 + $0x140] sm:$0xff] }
 0x25d   :  { %3243 = vmatmul.mubr.bf16.gmra.mxu0 %v3060_v3  ;;  %v3478_v3 = vld [vmem:[#allocation2 + $0x62] sm:$0xff] }
 0x25e   :  { %3252 = vmatprep.mubr.bf16.mxu0 %v13010_v5 }
 0x25f   :  { %3446 = vmatmul.mubr.bf16.gmra.mxu1 %v3021_v36  ;;  %v3740_v36 = vld [vmem:[#allocation2 + $0x43] sm:$0xff] }
 0x260   :  { %3455 = vmatprep.mubr.bf16.mxu1 %v13010_v5  ;;  %v3752_v22 = vpack.c.bf16 %v3741_v40, %v3740_v36  ;;  %v4428_v36 = vld [vmem:[#allocation6 + $0xd0] sm:$0xff] }
 0x261   :  { %v4412_v40 = vld [vmem:[#allocation6 + $0x50] sm:$0xff] }
 0x265   :  { %3253 = vmatmul.mubr.bf16.gmra.mxu0 %v3061_v25  ;;  %v3488_v25 = vpack.c.bf16 %v3479_v51, %v3478_v3 }
 0x266   :  { %3262 = vmatprep.mubr.bf16.mxu0 %v13010_v5 }
 0x267   :  { %3456 = vmatmul.mubr.bf16.gmra.mxu1 %v3022_v37  ;;  %v3755_v37 = vpack.c.bf16 %v3747_v35, %v3746_v47  ;;  %v4857_v47 = vld [vmem:[#allocation6 + $0x1e8] sm:$0xff] }
 0x268   :  { %3885 = vmatprep.mubr.bf16.mxu1 %v13010_v5  ;;  %v4841_v35 = vld [vmem:[#allocation6 + $0x168] sm:$0xff] }
 0x26d   :  { %3263 = vmatmul.mubr.bf16.gmra.mxu0 %v3062_v10  ;;  %v3999_v10 = vld [vmem:[#allocation2 + $0xc] sm:$0xff] }
 0x26e   :  { %3619 = vmatprep.mubr.bf16.mxu0 %v13010_v5 }
 0x26f   :  { %3886 = vmatmul.mubr.bf16.vlgmr.msra.gmra.mxu1 %v3748_v23  ;;  %v4014_v23 = vpack.c.bf16 %v3999_v10, %v3998_v0  ;;  %v4855_v10 = vld [vmem:[#allocation6 + $0x1d8] sm:$0xff] }
 0x270   :  { %3895 = vmatprep.mubr.bf16.mxu1 %v13010_v5 }
 0x275   :  { %3620 = vmatmul.mubr.bf16.vlgmr.msra.gmra.mxu0 %v3482_v48  ;;  %v4003_v48 = vld [vmem:[#allocation2 + $0x2c] sm:$0xff] }
 0x276   :  { %4120 = vmatpush1.bf16.msra.mxu0 %v8996_v12  ;;  %3629 = vmatprep.mubr.bf16.mxu0 %v13010_v5  ;;  %v4015_v12 = vpack.c.bf16 %v4001_v33, %v4000_v13 }
 0x277   :  { %3896 = vmatmul.mubr.bf16.gmra.mxu1 %v3749_v28  ;;  %4121 = vmatprep.subr.bf16.mxu0 %v9001_v45  ;;  %v4016_v45 = vpack.c.bf16 %v4003_v48, %v4002_v21  ;;  %v4004_v28 = vld [vmem:[#allocation2 + $0x34] sm:$0xff] }
 0x278   :  { %3905 = vmatprep.mubr.bf16.mxu1 %v13010_v5  ;;  %v4838_v21 = vld [vmem:[#allocation6 + $0x150] sm:$0xff] }
 0x27a   :  { %4122 = vmatpush1.bf16.msra.mxu0 %v8999_v61  ;;  %v4017_v61 = vpack.c.bf16 %v4005_v62, %v4004_v28  ;;  %v4853_v62 = vld [vmem:[#allocation6 + $0x1c8] sm:$0xff]  ;;  %v4426_v28 = vld [vmem:[#allocation6 + $0xc0] sm:$0xff] }
 0x27b   :  { %4123 = vmatprep.subr.bf16.mxu0 %v9004_v49  ;;  %v4006_v49 = vld [vmem:[#allocation2 + $0x44] sm:$0xff] }
 0x27d   :  { %3630 = vmatmul.mubr.bf16.gmra.mxu0 %v3483_v63  ;;  %v10993_v63 = vld [vmem:[#allocation6 + $0xf8] sm:$0xff] }
 0x27e   :  { %3639 = vmatprep.mubr.bf16.mxu0 %v13010_v5  ;;  %4124 = vmatpush1.bf16.msra.mxu0 %v9002_v14  ;;  %v4018_v14 = vpack.c.bf16 %v4007_v20, %v4006_v49 }
 0x27f   :  { %3906 = vmatmul.mubr.bf16.gmra.mxu1 %v3750_v1  ;;  %4125 = vmatprep.subr.bf16.mxu0 %v9007_v52  ;;  %v10997_v52 = vld [vmem:[#allocation6 + $0x78] sm:$0xff]  ;;  %v4010_v1 = vld [vmem:[#allocation2 + $0x64] sm:$0xff] }
 0x280   :  { %3915 = vmatprep.mubr.bf16.mxu1 %v13010_v5  ;;  %7579 = vmatprep.subr.mxu1 %v10993_v63  ;;  %13019 = vst [vmem:[#allocation15_spill] sm:$0xff] %v10997_v52 }
 0x281   :  { %7580 = vmatpush3.msra.mxu1 %v10997_v52 }
 0x282   :  { %4126 = vmatpush1.bf16.msra.mxu0 %v9005_v31  ;;  %v4011_v31 = vld [vmem:[#allocation2 + $0x6c] sm:$0xff] }
 0x283   :  { %4127 = vmatprep.subr.bf16.mxu0 %v9010_v6  ;;  %v11000_v6 = vld [vmem:[#allocation6 + $0xf0] sm:$0xff]  ;;  %v4020_v9 = vpack.c.bf16 %v4011_v31, %v4010_v1  ;;  %v4425_v31 = vld [vmem:[#allocation6 + $0xb8] sm:$0xff] }
 0x284   :  { %13020 = vst [vmem:[#allocation39_spill] sm:$0xff] %v11000_v6  ;;  %7581 = vmatprep.subr.mxu1 %v11000_v6 }
 0x285   :  { %3640 = vmatmul.mubr.bf16.gmra.mxu0 %v3484_v32  ;;  %7582 = vmatpush3.msra.mxu1 %v11003_v4  ;;  %v4012_v32 = vld [vmem:[#allocation2 + $0x74] sm:$0xff] }
 0x286   :  { %3649 = vmatprep.mubr.bf16.mxu0 %v13010_v5  ;;  %4128 = vmatpush1.bf16.msra.mxu0 %v9008_v26  ;;  %v4415_v26 = vld [vmem:[#allocation6 + $0x68] sm:$0xff] }
 0x287   :  { %3916 = vmatmul.mubr.bf16.gmra.mxu1 %v3751_v56  ;;  %4129 = vmatprep.subr.bf16.mxu0 %v9013_v38  ;;  %v4013_v38 = vld [vmem:[#allocation2 + $0x7c] sm:$0x3]  ;;  %v4414_v56 = vld [vmem:[#allocation6 + $0x60] sm:$0xff] }
 0x288   :  { %3925 = vmatprep.mubr.bf16.mxu1 %v13010_v5  ;;  %7583 = vmatprep.subr.mxu1 %v11006_v30 }
 0x289   :  { %7584 = vmatpush3.msra.mxu1 %v4415_v26  ;;  %v4409_v26 = vld [vmem:[#allocation6 + $0x38] sm:$0xff] }
 0x28a   :  { %4130 = vmatpush1.bf16.msra.mxu0 %v9011_v58  ;;  %7585 = vmatprep.subr.mxu1 %v4430_v8  ;;  %v4021_v58 = vpack.c.bf16 %v4013_v38, %v4012_v32  ;;  %v4835_v32 = vld [vmem:[#allocation6 + $0x138] sm:$0xff] }
 0x28b   :  { %4131 = vmatprep.subr.bf16.mxu0 %v9016_v59  ;;  %7586 = vmatpush3.msra.mxu1 %v4414_v56  ;;  %v4429_v59 = vld [vmem:[#allocation6 + $0xd8] sm:$0xff]  ;;  %v4424_v56 = vld [vmem:[#allocation6 + $0xb0] sm:$0xff] }
 0x28c   :  { %7587 = vmatprep.subr.mxu1 %v4429_v59  ;;  %v4408_v59 = vld [vmem:[#allocation6 + $0x30] sm:$0xff] }
 0x28d   :  { %3650 = vmatmul.mubr.bf16.gmra.mxu0 %v3485_v15 }
 0x28e   :  { %3659 = vmatprep.mubr.bf16.mxu0 %v13010_v5  ;;  %4132 = vmatpush1.bf16.msra.mxu0 %v9014_v55  ;;  %v4413_v55 = vld [vmem:[#allocation6 + $0x58] sm:$0xff] }
 0x28f   :  { %3926 = vmatmul.mubr.bf16.gmra.mxu1 %v3752_v22  ;;  %4133 = vmatprep.subr.bf16.mxu0 %v9019_v43  ;;  %v4427_v43 = vld [vmem:[#allocation6 + $0xc8] sm:$0xff] }
 0x290   :  { %3935 = vmatprep.mubr.bf16.mxu1 %v13010_v5  ;;  %7588 = vmatpush3.msra.mxu1 %v4413_v55  ;;  %v4834_v55 = vld [vmem:[#allocation6 + $0x130] sm:$0xff] }
 0x291   :  { %7589 = vmatprep.subr.mxu1 %v4428_v36 }
 0x292   :  { %4134 = vmatpush1.bf16.msra.mxu0 %v9017_v24  ;;  %7590 = vmatpush3.msra.mxu1 %v4412_v40  ;;  %v4411_v24 = vld [vmem:[#allocation6 + $0x48] sm:$0xff] }
 0x293   :  { %7591 = vmatprep.subr.mxu1 %v4427_v43  ;;  %7733 = vmatprep.subr.mxu0 %v4859_v44  ;;  %v4423_v43 = vld [vmem:[#allocation6 + $0xa8] sm:$0xff] }
 0x294   :  { %7592 = vmatpush3.msra.mxu1 %v4411_v24  ;;  %v4849_v24 = vld [vmem:[#allocation6 + $0x1a8] sm:$0xff] }
 0x295   :  { %3660 = vmatmul.mubr.bf16.gmra.mxu0 %v3486_v17  ;;  %7593 = vmatprep.subr.mxu1 %v4426_v28  ;;  %v4407_v44 = vld [vmem:[#allocation6 + $0x28] sm:$0xff]  ;;  %v4831_v28 = vld [vmem:[#allocation6 + $0x118] sm:$0xff] }
 0x296   :  { %3669 = vmatprep.mubr.bf16.mxu0 %v13010_v5  ;;  %7594 = vmatpush3.msra.mxu1 %v4410_v42  ;;  %v4420_v42 = vld [vmem:[#allocation6 + $0x90] sm:$0xff] }
 0x297   :  { %3936 = vmatmul.mubr.bf16.gmra.mxu1 %v3753_v54  ;;  %7595 = vmatprep.subr.mxu1 %v4425_v31  ;;  %v4404_v31 = vld [vmem:[#allocation6 + $0x10] sm:$0xff] }
 0x298   :  { %3945 = vmatprep.mubr.bf16.mxu1 %v13010_v5  ;;  %7596 = vmatpush3.msra.mxu1 %v4409_v26 }
 0x299   :  { %7597 = vmatprep.subr.mxu1 %v4424_v56  ;;  %v4419_v56 = vld [vmem:[#allocation6 + $0x88] sm:$0xff] }
 0x29a   :  { %7598 = vmatpush3.msra.mxu1 %v4408_v59  ;;  %v4403_v59 = vld [vmem:[#allocation6 + $0x8] sm:$0xff] }
 0x29b   :  { %7599 = vmatprep.subr.mxu1 %v4423_v43 }
 0x29c   :  { %7600 = vmatpush3.msra.mxu1 %v4407_v44  ;;  %v4418_v44 = vld [vmem:[#allocation6 + $0x80] sm:$0xff] }
 0x29d   :  { %3670 = vmatmul.mubr.bf16.gmra.mxu0 %v3487_v27  ;;  %v4858_v27 = vld [vmem:[#allocation6 + $0x1f0] sm:$0xff] }
 0x29e   :  { %3679 = vmatprep.mubr.bf16.mxu0 %v13010_v5 }
 0x29f   :  { %3946 = vmatmul.mubr.bf16.gmra.mxu1 %v3754_v29  ;;  %v4842_v29 = vld [vmem:[#allocation6 + $0x170] sm:$0xff] }
 0x2a0   :  { %3955 = vmatprep.mubr.bf16.mxu1 %v13010_v5 }
 0x2a5   :  { %3680 = vmatmul.mubr.bf16.gmra.mxu0 %v3488_v25 }
 0x2a6   :  { %3689 = vmatprep.mubr.bf16.mxu0 %v13010_v5 }
 0x2a7   :  { %3956 = vmatmul.mubr.bf16.gmra.mxu1 %v3755_v37 }
 0x2ad   :  { %3690 = vmatmul.mubr.bf16.gmra.mxu0 %v3489_v2 }
 0x2ae   :  { %4151 = vmatprep.mubr.bf16.mxu0 %v13010_v5 }
 0x2b5   :  { %4152 = vmatmul.mubr.bf16.vlgmr.msra.gmra.mxu0 %v4014_v23  ;;  %v4839_v23 = vld [vmem:[#allocation6 + $0x158] sm:$0xff] }
 0x2b6   :  { %4161 = vmatprep.mubr.bf16.mxu0 %v13010_v5  ;;  %7734 = vmatpush3.msra.mxu0 %v4843_v34  ;;  %v4833_v34 = vld [vmem:[#allocation6 + $0x128] sm:$0xff] }
 0x2b7   :  { %7735 = vmatprep.subr.mxu0 %v4858_v27 }
 0x2b8   :  { %7736 = vmatpush3.msra.mxu0 %v4842_v29 }
 0x2b9   :  { %7737 = vmatprep.subr.mxu0 %v4857_v47  ;;  %v4422_v47 = vld [vmem:[#allocation6 + $0xa0] sm:$0xff] }
 0x2ba   :  { %7738 = vmatpush3.msra.mxu0 %v4841_v35  ;;  %v4848_v35 = vld [vmem:[#allocation6 + $0x1a0] sm:$0xff]  ;;  %7601 = vmatprep.subr.mxu1 %v4422_v47 }
 0x2bb   :  { %7739 = vmatprep.subr.mxu0 %v4856_v39  ;;  %v4406_v39 = vld [vmem:[#allocation6 + $0x20] sm:$0xff] }
 0x2bc   :  { %7740 = vmatpush3.msra.mxu0 %v4840_v18  ;;  %v4832_v18 = vld [vmem:[#allocation6 + $0x120] sm:$0xff]  ;;  %7602 = vmatpush3.msra.mxu1 %v4406_v39 }
 0x2bd   :  { %4162 = vmatmul.mubr.bf16.gmra.mxu0 %v4015_v12  ;;  %7741 = vmatprep.subr.mxu0 %v4855_v10  ;;  %v4854_v12 = vld [vmem:[#allocation6 + $0x1d0] sm:$0xff]  ;;  %v4402_v47 = vld [vmem:[#allocation6] sm:$0xff] }
 0x2be   :  { %4171 = vmatprep.mubr.bf16.mxu0 %v13010_v5  ;;  %7742 = vmatpush3.msra.mxu0 %v4839_v23 }
 0x2bf   :  { %7743 = vmatprep.subr.mxu0 %v4854_v12  ;;  %v4421_v12 = vld [vmem:[#allocation6 + $0x98] sm:$0xff] }
 0x2c0   :  { %7744 = vmatpush3.msra.mxu0 %v4838_v21  ;;  %v4847_v21 = vld [vmem:[#allocation6 + $0x198] sm:$0xff]  ;;  %7603 = vmatprep.subr.mxu1 %v4421_v12 }
 0x2c1   :  { %7745 = vmatprep.subr.mxu0 %v4853_v62  ;;  %v4405_v62 = vld [vmem:[#allocation6 + $0x18] sm:$0xff] }
 0x2c2   :  { %7604 = vmatpush3.msra.mxu1 %v4405_v62 }
 0x2c3   :  { %7605 = vmatprep.subr.mxu1 %v4420_v42 }
 0x2c4   :  { %7606 = vmatpush3.msra.mxu1 %v4404_v31 }
 0x2c5   :  { %4172 = vmatmul.mubr.bf16.gmra.mxu0 %v4016_v45  ;;  %7607 = vmatprep.subr.mxu1 %v4419_v56 }
 0x2c6   :  { %4181 = vmatprep.mubr.bf16.mxu0 %v13010_v5  ;;  %7608 = vmatpush3.msra.mxu1 %v4403_v59 }
 0x2c7   :  { %7609 = vmatprep.subr.mxu1 %v4418_v44 }
 0x2c8   :  { %7610 = vmatpush3.msra.mxu1 %v4402_v47 }
 0x2c9   :  { %7656 = vmatprep.subr.mxu1 %v10993_v63 }
 0x2cd   :  { %4182 = vmatmul.mubr.bf16.gmra.mxu0 %v4017_v61  ;;  %v4837_v61 = vld [vmem:[#allocation6 + $0x148] sm:$0xff] }
 0x2ce   :  { %4191 = vmatprep.mubr.bf16.mxu0 %v13010_v5  ;;  %7746 = vmatpush3.msra.mxu0 %v4837_v61 }
 0x2d5   :  { %4192 = vmatmul.mubr.bf16.gmra.mxu0 %v4018_v14  ;;  %v4852_v14 = vld [vmem:[#allocation6 + $0x1c0] sm:$0xff] }
 0x2d6   :  { %4201 = vmatprep.mubr.bf16.mxu0 %v13010_v5  ;;  %7747 = vmatprep.subr.mxu0 %v4852_v14 }
 0x2d7   :  { %7748 = vmatpush3.msra.mxu0 %v4836_v50  ;;  %v4846_v50 = vld [vmem:[#allocation6 + $0x190] sm:$0xff] }
 0x2dd   :  { %4202 = vmatmul.mubr.bf16.gmra.mxu0 %v4019_v57 }
 0x2de   :  { %4211 = vmatprep.mubr.bf16.mxu0 %v13010_v5 }
 0x2e5   :  { %4212 = vmatmul.mubr.bf16.gmra.mxu0 %v4020_v9  ;;  %v4851_v9 = vld [vmem:[#allocation6 + $0x1b8] sm:$0xff] }
 0x2e6   :  { %4221 = vmatprep.mubr.bf16.mxu0 %v13010_v5  ;;  %7749 = vmatprep.subr.mxu0 %v4851_v9  ;;  %v4830_v9 = vld [vmem:[#allocation6 + $0x110] sm:$0xff] }
 0x2e7   :  { %7750 = vmatpush3.msra.mxu0 %v4835_v32 }
 0x2ed   :  { %4222 = vmatmul.mubr.bf16.gmra.mxu0 %v4021_v58  ;;  %v4850_v58 = vld [vmem:[#allocation6 + $0x1b0] sm:$0xff] }
 0x2ee   :  { %v11010_v7 = vpop.f32.mrf.mxu1  ;;  %7751 = vmatprep.subr.mxu0 %v4850_v58  ;;  %v4845_v58 = vld [vmem:[#allocation6 + $0x188] sm:$0xff] }
 0x2ef   :  { %7752 = vmatpush3.msra.mxu0 %v4834_v55  ;;  %v4829_v55 = vld [vmem:[#allocation6 + $0x108] sm:$0xff] }
 0x2f0   :  { %v11012_v53 = vpop.f32.mrf.mxu1  ;;  %7753 = vmatprep.subr.mxu0 %v4849_v24 }
 0x2f1   :  { %7754 = vmatpush3.msra.mxu0 %v4833_v34  ;;  %v4844_v34 = vld [vmem:[#allocation6 + $0x180] sm:$0xff] }
 0x2f2   :  { %v11014_v5 = vpop.f32.mrf.mxu1  ;;  %7755 = vmatprep.subr.mxu0 %v4848_v35  ;;  %v4828_v35 = vld [vmem:[#allocation6 + $0x100] sm:$0xff] }
 0x2f3   :  { %7756 = vmatpush3.msra.mxu0 %v4832_v18 }
 0x2f4   :  { %v11016_v15 = vpop.f32.mrf.mxu1  ;;  %7757 = vmatprep.subr.mxu0 %v4847_v21 }
 0x2f5   :  { %v11018_v22 = vpop.f32.mrf.mxu0  ;;  %7758 = vmatpush3.msra.mxu0 %v4831_v28 }
 0x2f6   :  { %7759 = vmatprep.subr.mxu0 %v4846_v50 }
 0x2f7   :  { %v11020_v11 = vpop.f32.mrf.mxu0  ;;  %v11022_v46 = vpop.f32.mrf.mxu1  ;;  %7760 = vmatpush3.msra.mxu0 %v4830_v9 }
 0x2f8   :  { %7761 = vmatprep.subr.mxu0 %v4845_v58 }
 0x2f9   :  { %v11024_v19 = vpop.f32.mrf.mxu0  ;;  %v11026_v17 = vpop.f32.mrf.mxu1  ;;  %7762 = vmatpush3.msra.mxu0 %v4829_v55 }
 0x2fa   :  { %7763 = vmatprep.subr.mxu0 %v4844_v34 }
 0x2fb   :  { %v11028_v41 = vpop.f32.mrf.mxu0  ;;  %v11030_v54 = vpop.f32.mrf.mxu1  ;;  %7764 = vmatpush3.msra.mxu0 %v4828_v35 }
 0x2fd   :  { %v11032_v16 = vpop.f32.mrf.mxu0  ;;  %v11034_v60 = vpop.f32.mrf.mxu1 }
 0x2ff   :  { %v11036_v3 = vpop.f32.mrf.mxu0  ;;  %v11038_v51 = vpop.f32.mrf.mxu1 }
 0x301   :  { %v11040_v25 = vpop.f32.mrf.mxu0  ;;  %v11042_v37 = vpop.f32.mrf.mxu1 }
 0x303   :  { %v11044_v2 = vpop.f32.mrf.mxu0  ;;  %v11046_v0 = vpop.f32.mrf.mxu1 }
 0x305   :  { %v11048_v33 = vpop.f32.mrf.mxu0  ;;  %v11050_v13 = vpop.f32.mrf.mxu1 }
 0x307   :  { %v11052_v48 = vpop.f32.mrf.mxu0  ;;  %v11054_v45 = vpop.f32.mrf.mxu1 }
 0x309   :  { %v11056_v49 = vpop.f32.mrf.mxu0  ;;  %v11058_v20 = vpop.f32.mrf.mxu1 }
 0x30b   :  { %v11060_v57 = vpop.f32.mrf.mxu0  ;;  %v11062_v1 = vpop.f32.mrf.mxu1 }
 0x30d   :  { %v11064_v38 = vpop.f32.mrf.mxu0  ;;  %v11066_v8 = vpop.f32.mrf.mxu1 }
 0x30f   :  { %v11068_v36 = vpop.f32.mrf.mxu0  ;;  %v11070_v40 = vpop.f32.mrf.mxu1 }
 0x311   :  { %v11072_v27 = vpop.f32.mrf.mxu0  ;;  %v11074_v29 = vpop.f32.mrf.mxu1 }
 0x313   :  { %v11076_v10 = vpop.f32.mrf.mxu0  ;;  %v11078_v23 = vpop.f32.mrf.mxu1 }
 0x315   :  { %v11080_v61 = vpop.f32.mrf.mxu0  ;;  %v11082_v14 = vpop.f32.mrf.mxu1 }
 0x317   :  { %v11084_v26 = vpop.f32.mrf.mxu0  ;;  %v11086_v32 = vpop.f32.mrf.mxu1 }
 0x318   :  { %13023 = vst [vmem:[#allocation40_spill] sm:$0xff] %v11086_v32 }
 0x319   :  { %v11088_v43 = vpop.f32.mrf.mxu0  ;;  %v11090_v24 = vpop.f32.mrf.mxu1 }
 0x31a   :  { %13024 = vst [vmem:[#allocation30_spill] sm:$0xff] %v11090_v24 }
 0x31b   :  { %v11092_v39 = vpop.f32.mrf.mxu0  ;;  %v11094_v18 = vpop.f32.mrf.mxu1 }
 0x31c   :  { %13025 = vst [vmem:[#allocation11_spill] sm:$0xff] %v11094_v18 }
 0x31d   :  { %v11097_v12 = vpop.f32.mrf.mxu0  ;;  %v11099_v21 = vpop.f32.mrf.mxu1 }
 0x31e   :  { %13026 = vst [vmem:[#allocation17_spill] sm:$0xff] %v11099_v21 }
 0x31f   :  { %v11101_v62 = vpop.f32.mrf.mxu0  ;;  %v11103_v28 = vpop.f32.mrf.mxu1 }
 0x320   :  { %13027 = vst [vmem:[#allocation31_spill] sm:$0xff] %v11101_v62  ;;  %13028 = vst [vmem:[#allocation20_spill] sm:$0xff] %v11103_v28 }
 0x321   :  { %v11105_v42 = vpop.f32.mrf.mxu0  ;;  %v11107_v50 = vpop.f32.mrf.mxu1 }
 0x322   :  { %13029 = vst [vmem:[#allocation25_spill] sm:$0xff] %v11105_v42  ;;  %13030 = vst [vmem:[#allocation18_spill] sm:$0xff] %v11107_v50 }
 0x323   :  { %v11109_v31 = vpop.f32.mrf.mxu0  ;;  %v11111_v9 = vpop.f32.mrf.mxu1 }
 0x324   :  { %13031 = vst [vmem:[#allocation33_spill] sm:$0xff] %v11109_v31  ;;  %13032 = vst [vmem:[#allocation21_spill] sm:$0xff] %v11111_v9 }
 0x325   :  { %v11113_v56 = vpop.f32.mrf.mxu0  ;;  %v11115_v58 = vpop.f32.mrf.mxu1 }
 0x326   :  { %13033 = vst [vmem:[#allocation35_spill] sm:$0xff] %v11113_v56  ;;  %13034 = vst [vmem:[#allocation19_spill] sm:$0xff] %v11115_v58 }
 0x327   :  { %v11117_v63 = vpop.f32.mrf.mxu0  ;;  %v11119_v59 = vpop.f32.mrf.mxu1 }
 0x328   :  { %13035 = vst [vmem:[#allocation41_spill] sm:$0xff] %v11117_v63  ;;  %13036 = vst [vmem:[#allocation22_spill] sm:$0xff] %v11119_v59 }
 0x329   :  { %v11121_v55 = vpop.f32.mrf.mxu0  ;;  %v11123_v44 = vpop.f32.mrf.mxu1 }
 0x32a   :  { %13037 = vst [vmem:[#allocation37_spill] sm:$0xff] %v11121_v55  ;;  %13038 = vst [vmem:[#allocation38_spill] sm:$0xff] %v11123_v44 }
 0x32b   :  { %v11125_v34 = vpop.f32.mrf.mxu0  ;;  %v11127_v47 = vpop.f32.mrf.mxu1 }
 0x32c   :  { %13039 = vst [vmem:[#allocation23_spill] sm:$0xff] %v11125_v34  ;;  %13040 = vst [vmem:[#allocation24_spill] sm:$0xff] %v11127_v47 }
 0x32d   :  { %v11129_v35 = vpop.f32.mrf.mxu0  ;;  %v11131_v30 = vpop.f32.mrf.mxu1 }
 0x32e   :  { %13041 = vst [vmem:[#allocation10_spill] sm:$0xff] %v11129_v35  ;;  %13042 = vst [vmem:[#allocation26_spill] sm:$0xff] %v11131_v30  ;;  %v5368_v30 = vld [vmem:[#allocation6 + $0x2f8] sm:$0xff] }
 0x32f   :  { %v11133_v4 = vpop.f32.mrf.mxu0  ;;  %v11135_v6 = vpop.f32.mrf.mxu1  ;;  %7887 = vmatprep.subr.mxu0 %v5368_v30 }
 0x330   :  { %13043 = vst [vmem:[#allocation27_spill] sm:$0xff] %v11133_v4 }
 0x331   :  { %v11137_v52 = vpop.f32.mrf.mxu0  ;;  %v11139_v58 = vpop.f32.mrf.mxu1 }
 0x332   :  { %13044 = vst [vmem:[#allocation28_spill] sm:$0xff] %v11137_v52 }
 0x333   :  { %v11141_v59 = vpop.f32.mrf.mxu0  ;;  %v11143_v9 = vpop.f32.mrf.mxu1 }
 0x334   :  { %13045 = vst [vmem:[#allocation12_spill] sm:$0xff] %v11141_v59 }
 0x335   :  { %v3621_v44 = vpop.f32.mrf.mxu0  ;;  %v11145_v55 = vpop.f32.mrf.mxu1 }
 0x337   :  { %v3623_v34 = vpop.f32.mrf.mxu0  ;;  %v11151_v4 = vpop.f32.mrf.mxu1 }
 0x338   :  { %13046 = vst [vmem:[#allocation29_spill] sm:$0xff] %v11151_v4 }
 0x339   :  { %v11147_v47 = vpop.f32.mrf.mxu0  ;;  %v11157_v63 = vpop.f32.mrf.mxu1 }
 0x33a   :  { %13047 = vst [vmem:[#allocation32_spill] sm:$0xff] %v11157_v63 }
 0x33b   :  { %v11149_v35 = vpop.f32.mrf.mxu0  ;;  %v11163_v56 = vpop.f32.mrf.mxu1 }
 0x33c   :  { %13050 = vst [vmem:[#allocation36_spill] sm:$0xff] %v11163_v56 }
 0x33d   :  { %v11153_v50 = vpop.f32.mrf.mxu0  ;;  %v11169_v18 = vpop.f32.mrf.mxu1 }
 0x33e   :  { %13053 = vst [vmem:[#allocation44_spill] sm:$0xff] %v11169_v18 }
 0x33f   :  { %v11155_v52 = vpop.f32.mrf.mxu0  ;;  %v11175_v42 = vpop.f32.mrf.mxu1 }
 0x340   :  { %13056 = vst [vmem:[#allocation47_spill] sm:$0xff] %v11175_v42 }
 0x341   :  { %v11159_v59 = vpop.f32.mrf.mxu0 }
 0x342   :  { %13048 = vst [vmem:[#allocation34_spill] sm:$0xff] %v11159_v59  ;;  %v11181_v59 = vpop.f32.mrf.mxu1 }
 0x343   :  { %v11161_v28 = vpop.f32.mrf.mxu0  ;;  %13059 = vst [vmem:[#allocation50_spill] sm:$0xff] %v11181_v59 }
 0x344   :  { %13049 = vst [vmem:[#allocation13_spill] sm:$0xff] %v11161_v28 }
 0x345   :  { %v11165_v21 = vpop.f32.mrf.mxu0 }
 0x346   :  { %13051 = vst [vmem:[#allocation42_spill] sm:$0xff] %v11165_v21  ;;  %v11187_v21 = vpop.f32.mrf.mxu1 }
 0x347   :  { %v11167_v31 = vpop.f32.mrf.mxu0  ;;  %13062 = vst [vmem:[#allocation53_spill] sm:$0xff] %v11187_v21 }
 0x348   :  { %13052 = vst [vmem:[#allocation43_spill] sm:$0xff] %v11167_v31 }
 0x349   :  { %v11171_v4 = vpop.f32.mrf.mxu0 }
 0x34a   :  { %13054 = vst [vmem:[#allocation45_spill] sm:$0xff] %v11171_v4  ;;  %v11193_v4 = vpop.f32.mrf.mxu1 }
 0x34b   :  { %v11173_v30 = vpop.f32.mrf.mxu0  ;;  %13065 = vst [vmem:[#allocation56_spill] sm:$0xff] %v11193_v4 }
 0x34c   :  { %13055 = vst [vmem:[#allocation46_spill] sm:$0xff] %v11173_v30 }
 0x34d   :  { %v11177_v24 = vpop.f32.mrf.mxu0 }
 0x34e   :  { %13057 = vst [vmem:[#allocation48_spill] sm:$0xff] %v11177_v24  ;;  %v11199_v24 = vpop.f32.mrf.mxu1 }
 0x34f   :  { %v11179_v63 = vpop.f32.mrf.mxu0  ;;  %13068 = vst [vmem:[#allocation59_spill] sm:$0xff] %v11199_v24 }
 0x350   :  { %13058 = vst [vmem:[#allocation49_spill] sm:$0xff] %v11179_v63 }
 0x351   :  { %v11183_v28 = vpop.f32.mrf.mxu0 }
 0x352   :  { %13060 = vst [vmem:[#allocation51_spill] sm:$0xff] %v11183_v28  ;;  %v11205_v28 = vpop.f32.mrf.mxu1 }
 0x353   :  { %v11185_v56 = vpop.f32.mrf.mxu0  ;;  %13071 = vst [vmem:[#allocation62_spill] sm:$0xff] %v11205_v28 }
 0x354   :  { %13061 = vst [vmem:[#allocation52_spill] sm:$0xff] %v11185_v56 }
 0x355   :  { %v11189_v31 = vpop.f32.mrf.mxu0 }
 0x356   :  { %13063 = vst [vmem:[#allocation54_spill] sm:$0xff] %v11189_v31  ;;  %v11211_v31 = vpop.f32.mrf.mxu1 }
 0x357   :  { %v11191_v18 = vpop.f32.mrf.mxu0  ;;  %13074 = vst [vmem:[#allocation65_spill] sm:$0xff] %v11211_v31 }
 0x358   :  { %13064 = vst [vmem:[#allocation55_spill] sm:$0xff] %v11191_v18 }
 0x359   :  { %v11195_v30 = vpop.f32.mrf.mxu0 }
 0x35a   :  { %13066 = vst [vmem:[#allocation57_spill] sm:$0xff] %v11195_v30  ;;  %v4266_v30 = vlaneseq }
 0x35b   :  { %v11197_v42 = vpop.f32.mrf.mxu0 }
 0x35c   :  { %13067 = vst [vmem:[#allocation58_spill] sm:$0xff] %v11197_v42  ;;  %v11217_v42 = vpop.f32.mrf.mxu1 }
 0x35d   :  { %v11201_v63 = vpop.f32.mrf.mxu0  ;;  %13077 = vst [vmem:[#allocation68_spill] sm:$0xff] %v11217_v42 }
 0x35e   :  { %13069 = vst [vmem:[#allocation60_spill] sm:$0xff] %v11201_v63  ;;  %v11223_v62 = vpop.f32.mrf.mxu1 }
 0x35f   :  { %v11203_v59 = vpop.f32.mrf.mxu0 }
 0x360   :  { %13070 = vst [vmem:[#allocation61_spill] sm:$0xff] %v11203_v59  ;;  %v4267_v59 = vshrl.u32 %v4266_v30, 7  ;;  %v11233_v32 = vpop.f32.mrf.mxu1  ;;  %v4264_v30 = vld [vmem:[%s12879_s4] sm:$0x3] }
 0x361   :  { %v11207_v56 = vpop.f32.mrf.mxu0 }
 0x362   :  { %13072 = vst [vmem:[#allocation63_spill] sm:$0xff] %v11207_v56  ;;  %v4272_v31 = vsub.s32 1, %v4267_v59 }
 0x363   :  { %v11209_v21 = vpop.f32.mrf.mxu0 }
 0x364   :  { %13073 = vst [vmem:[#allocation64_spill] sm:$0xff] %v11209_v21  ;;  %v3388_v21 = vadd.f32 %v11010_v7, %v11018_v22  ;;  %v3394_v7 = vadd.f32 %v11016_v15, %v11028_v41  ;;  %v3412_v41 = vadd.f32 %v11046_v0, %v11056_v49  ;;  %v11286_v0 = vadd.f32 %v11070_v40, %v11080_v61 }
 0x365   :  { %v11213_v18 = vpop.f32.mrf.mxu0 }
 0x366   :  { %13075 = vst [vmem:[#allocation66_spill] sm:$0xff] %v11213_v18  ;;  %v4268_v18 = vsub.s32 0, %v4267_v59  ;;  %v3700_v42 = vadd.f32 %v3621_v44, %v3388_v21  ;;  %v3398_v59 = vadd.f32 %v11022_v46, %v11032_v16  ;;  %v11252_v44 = vrot.slane %v4264_v30, %v4272_v31  ;;  %v11260_v46 = vpop.f32.mrf.mxu1 }
 0x367   :  { %v11215_v4 = vpop.f32.mrf.mxu0 }
 0x368   :  { %13076 = vst [vmem:[#allocation67_spill] sm:$0xff] %v11215_v4  ;;  %v3390_v4 = vadd.f32 %v11012_v53, %v11020_v11  ;;  %v3400_v53 = vadd.f32 %v11026_v17, %v11036_v3  ;;  %v11250_v21 = vrot.slane %v4264_v30, %v4268_v18  ;;  %v3410_v17 = vadd.f32 %v11042_v37, %v11052_v48  ;;  %v13084_v18 = vld [vmem:[#allocation25_spill] sm:$0xff]  ;;  %v13091_v30 = vld [vmem:[#allocation20_spill] sm:$0xff] }
 0x369   :  { %v11219_v24 = vpop.f32.mrf.mxu0  ;;  %v11278_v37 = vadd.f32 %v11062_v1, %v11072_v27  ;;  %v3704_v48 = vadd.f32 %v11153_v50, %v3398_v59  ;;  %v11299_v1 = vadd.f32 %v11078_v23, %v11088_v43  ;;  %v13083_v23 = vld [vmem:[#allocation30_spill] sm:$0xff] }
 0x36a   :  { %v3701_v22 = vadd.f32 %v3623_v34, %v3390_v4  ;;  %v3966_v4 = vadd.f32 %v11135_v6, %v3700_v42  ;;  %v3418_v6 = vadd.f32 %v11054_v45, %v11064_v38  ;;  %v11290_v45 = vpop.f32.mrf.mxu1  ;;  %v11303_v38 = vadd.f32 %v11082_v14, %v11092_v39  ;;  %v13085_v14 = vld [vmem:[#allocation11_spill] sm:$0xff]  ;;  %v13089_v34 = vld [vmem:[#allocation17_spill] sm:$0xff]  ;;  %v13093_v59 = vld [vmem:[#allocation18_spill] sm:$0xff] }
 0x36b   :  { %v11221_v63 = vpop.f32.mrf.mxu0  ;;  %v3705_v40 = vadd.f32 %v11155_v52, %v3400_v53  ;;  %v11318_v39 = vadd.f32 %v13085_v14, %v13084_v18  ;;  %v13087_v52 = vld [vmem:[#allocation29_spill] sm:$0xff] }
 0x36c   :  { %13078 = vst [vmem:[#allocation69_spill] sm:$0xff] %v11221_v63  ;;  %v3967_v3 = vadd.f32 %v11139_v58, %v3701_v22  ;;  %v3970_v31 = vadd.f32 %v13087_v52, %v3704_v48  ;;  %v13092_v22 = vld [vmem:[#allocation41_spill] sm:$0xff]  ;;  %v13105_v52 = vld [vmem:[#allocation38_spill] sm:$0xff] }
 0x36d   :  { %v11225_v28 = vpop.f32.mrf.mxu0  ;;  %v13094_v53 = vld [vmem:[#allocation13_spill] sm:$0xff] }
 0x36e   :  { %13079 = vst [vmem:[#allocation70_spill] sm:$0xff] %v11225_v28  ;;  %v3392_v28 = vadd.f32 %v11014_v5, %v11024_v19  ;;  %v3404_v5 = vadd.f32 %v11034_v60, %v11044_v2  ;;  %v3408_v19 = vadd.f32 %v11038_v51, %v11048_v33  ;;  %v3414_v60 = vadd.f32 %v11050_v13, %v11060_v57 }
 0x36f   :  { %v11229_v56 = vpop.f32.mrf.mxu0  ;;  %v3420_v51 = vadd.f32 %v11058_v20, %v11068_v36  ;;  %v11282_v2 = vadd.f32 %v11066_v8, %v11076_v10  ;;  %v11295_v57 = vadd.f32 %v11074_v29, %v11084_v26  ;;  %v13081_v29 = vld [vmem:[#allocation40_spill] sm:$0xff]  ;;  %v13082_v26 = vld [vmem:[#allocation31_spill] sm:$0xff] }
 0x370   :  { %v3702_v15 = vadd.f32 %v11147_v47, %v3392_v28  ;;  %v11310_v61 = vadd.f32 %v13081_v29, %v11097_v12  ;;  %v11314_v43 = vadd.f32 %v13083_v23, %v13082_v26  ;;  %v13086_v28 = vld [vmem:[#allocation34_spill] sm:$0xff] }
 0x371   :  { %v11238_v63 = vpop.f32.mrf.mxu0 }
 0x372   :  { %13080 = vst [vmem:[#allocation71_spill] sm:$0xff] %v11238_v63  ;;  %v3402_v63 = vadd.f32 %v11030_v54, %v11040_v25  ;;  %v3703_v54 = vadd.f32 %v11149_v35, %v3394_v7  ;;  %v3968_v13 = vadd.f32 %v11143_v9, %v3702_v15  ;;  %v11322_v9 = vpop.f32.mrf.mxu1  ;;  %v13090_v35 = vld [vmem:[#allocation35_spill] sm:$0xff] }
 0x373   :  { %v11248_v11 = vpop.f32.mrf.mxu0  ;;  %v11331_v7 = vadd.f32 %v13091_v30, %v13090_v35  ;;  %v13108_v35 = vld [vmem:[#allocation45_spill] sm:$0xff] }
 0x374   :  { %v3969_v8 = vadd.f32 %v11145_v55, %v3703_v54  ;;  %v3706_v42 = vadd.f32 %v13086_v28, %v3402_v63  ;;  %v13088_v55 = vld [vmem:[#allocation33_spill] sm:$0xff]  ;;  %v11335_v63 = vadd.f32 %v13093_v59, %v13092_v22  ;;  %v13095_v54 = vld [vmem:[#allocation32_spill] sm:$0xff]  ;;  %v11354_v18 = vpop.f32.mrf.mxu1  ;;  %v3710_v30 = vadd.f32 %v13108_v35, %v3412_v41  ;;  %v13109_v22 = vld [vmem:[#allocation46_spill] sm:$0xff] }
 0x375   :  { %v4153_v16 = vpop.f32.mrf.mxu0  ;;  %v11327_v47 = vadd.f32 %v13089_v34, %v13088_v55  ;;  %v13107_v55 = vld [vmem:[#allocation43_spill] sm:$0xff]  ;;  %v3711_v59 = vadd.f32 %v13109_v22, %v3414_v60 }
 0x376   :  { %v4232_v25 = vadd.f32 %v4153_v16, %v3966_v4  ;;  %v3707_v4 = vadd.f32 %v13094_v53, %v3404_v5  ;;  %v3971_v16 = vadd.f32 %v13095_v54, %v3705_v40  ;;  %v13102_v5 = vld [vmem:[#allocation36_spill] sm:$0xff]  ;;  %v13103_v40 = vld [vmem:[#allocation42_spill] sm:$0xff]  ;;  %v3709_v34 = vadd.f32 %v13107_v55, %v3410_v17  ;;  %v13115_v17 = vld [vmem:[#allocation49_spill] sm:$0xff]  ;;  %v3941_v60 = vpop.f32.mrf.mxu1 }
 0x377   :  { %v4155_v33 = vpop.f32.mrf.mxu0  ;;  %v3972_v29 = vadd.f32 %v13102_v5, %v3706_v42  ;;  %v3708_v23 = vadd.f32 %v13103_v40, %v3408_v19  ;;  %v13111_v54 = vld [vmem:[#allocation24_spill] sm:$0xff]  ;;  %v13118_v40 = vld [vmem:[#allocation53_spill] sm:$0xff]  ;;  %v13122_v22 = vld [vmem:[#allocation59_spill] sm:$0xff] }
 0x378   :  { %v4276_v49 = vadd.f32 %v11250_v21, %v4232_v25  ;;  %v4233_v20 = vadd.f32 %v4155_v33, %v3967_v3  ;;  %v13096_v33 = vld [vmem:[#allocation37_spill] sm:$0xff] }
 0x379   :  { %v4157_v36 = vpop.f32.mrf.mxu0 }
 0x37a   :  { %9148 = vtanh.f32 %v4276_v49  ;;  %v4277_v27 = vadd.f32 %v11252_v44, %v4233_v20  ;;  %v4234_v10 = vadd.f32 %v4157_v36, %v3968_v13  ;;  %v13097_v13 = vld [vmem:[#allocation21_spill] sm:$0xff]  ;;  %v13098_v49 = vld [vmem:[#allocation23_spill] sm:$0xff]  ;;  %v13100_v36 = vld [vmem:[#allocation10_spill] sm:$0xff] }
 0x37b   :  { %v4159_v50 = vpop.f32.mrf.mxu0  ;;  %v11342_v48 = vadd.f32 %v13097_v13, %v13096_v33  ;;  %v13099_v20 = vld [vmem:[#allocation19_spill] sm:$0xff] }
 0x37c   :  { %9150 = vtanh.f32 %v4277_v27  ;;  %v4278_v58 = vadd.f32 %v11250_v21, %v4234_v10  ;;  %v4235_v12 = vadd.f32 %v4159_v50, %v3969_v8  ;;  %v11346_v8 = vadd.f32 %v13099_v20, %v13098_v49  ;;  %v13101_v27 = vld [vmem:[#allocation22_spill] sm:$0xff]  ;;  %v13104_v50 = vld [vmem:[#allocation27_spill] sm:$0xff] }
 0x37d   :  { %v4163_v15 = vpop.f32.mrf.mxu0  ;;  %v11350_v10 = vadd.f32 %v13101_v27, %v13100_v36  ;;  %v3713_v49 = vadd.f32 %v13115_v17, %v3420_v51  ;;  %v13116_v20 = vld [vmem:[#allocation47_spill] sm:$0xff]  ;;  %v13121_v51 = vld [vmem:[#allocation56_spill] sm:$0xff] }
 0x37e   :  { %9152 = vtanh.f32 %v4278_v58  ;;  %v4279_v3 = vadd.f32 %v11252_v44, %v4235_v12  ;;  %v4236_v25 = vadd.f32 %v4163_v15, %v3970_v31  ;;  %v11359_v31 = vadd.f32 %v13105_v52, %v13104_v50  ;;  %v13106_v58 = vld [vmem:[#allocation44_spill] sm:$0xff] }
 0x37f   :  { %v4165_v26 = vpop.f32.mrf.mxu0  ;;  %v3973_v12 = vadd.f32 %v13106_v58, %v3707_v4  ;;  %v13110_v15 = vld [vmem:[#allocation28_spill] sm:$0xff]  ;;  %v3974_v36 = vadd.f32 %v13116_v20, %v3708_v23  ;;  %v3977_v55 = vadd.f32 %v13121_v51, %v3711_v59  ;;  %v3943_v59 = vpop.f32.mrf.mxu1 }
 0x380   :  { %9154 = vtanh.f32 %v4279_v3  ;;  %v4280_v14 = vadd.f32 %v11250_v21, %v4236_v25  ;;  %v4237_v28 = vadd.f32 %v4165_v26, %v3971_v16  ;;  %v11368_v16 = vadd.f32 %v13111_v54, %v13110_v15  ;;  %v13112_v3 = vld [vmem:[#allocation12_spill] sm:$0xff]  ;;  %v13113_v25 = vld [vmem:[#allocation26_spill] sm:$0xff] }
 0x381   :  { %v4167_v42 = vpop.f32.mrf.mxu0  ;;  %v11372_v33 = vadd.f32 %v13113_v25, %v13112_v3  ;;  %v13114_v4 = vld [vmem:[#allocation48_spill] sm:$0xff] }
 0x382   :  { %9156 = vtanh.f32 %v4280_v14  ;;  %v4281_v19 = vadd.f32 %v11252_v44, %v4237_v28  ;;  %v4238_v53 = vadd.f32 %v4167_v42, %v3972_v29  ;;  %v3712_v13 = vadd.f32 %v13114_v4, %v3418_v6  ;;  %v13117_v29 = vld [vmem:[#allocation50_spill] sm:$0xff]  ;;  %v13119_v28 = vld [vmem:[#allocation51_spill] sm:$0xff]  ;;  %v13120_v52 = vld [vmem:[#allocation52_spill] sm:$0xff] }
 0x383   :  { %v4169_v41 = vpop.f32.mrf.mxu0  ;;  %v3975_v26 = vadd.f32 %v13117_v29, %v3709_v34  ;;  %v3976_v14 = vadd.f32 %v13118_v40, %v3710_v30  ;;  %v3714_v50 = vadd.f32 %v13119_v28, %v11278_v37  ;;  %v3715_v6 = vadd.f32 %v13120_v52, %v11282_v2  ;;  %v13124_v30 = vld [vmem:[#allocation54_spill] sm:$0xff]  ;;  %v13125_v37 = vld [vmem:[#allocation55_spill] sm:$0xff]  ;;  %v13126_v2 = vld [vmem:[#allocation57_spill] sm:$0xff] }
 0x384   :  { %9158 = vtanh.f32 %v4281_v19  ;;  %v4282_v27 = vadd.f32 %v11250_v21, %v4238_v53  ;;  %v4239_v5 = vadd.f32 %v4169_v41, %v3973_v12  ;;  %v3978_v12 = vadd.f32 %v13122_v22, %v3712_v13  ;;  %v13123_v19 = vld [vmem:[#allocation62_spill] sm:$0xff]  ;;  %v13127_v13 = vld [vmem:[#allocation65_spill] sm:$0xff] }
 0x385   :  { %v4173_v58 = vpop.f32.mrf.mxu0  ;;  %v3979_v34 = vadd.f32 %v13123_v19, %v3713_v49  ;;  %v3716_v53 = vadd.f32 %v13124_v30, %v11286_v0  ;;  %v3717_v15 = vadd.f32 %v13125_v37, %v11295_v57  ;;  %v3718_v3 = vadd.f32 %v13126_v2, %v11299_v1  ;;  %v13128_v49 = vld [vmem:[#allocation68_spill] sm:$0xff]  ;;  %v13129_v0 = vld [vmem:[#allocation58_spill] sm:$0xff]  ;;  %v13131_v1 = vld [vmem:[#allocation61_spill] sm:$0xff] }
 0x386   :  { %9160 = vtanh.f32 %v4282_v27  ;;  %v4283_v23 = vadd.f32 %v11252_v44, %v4239_v5  ;;  %v4240_v35 = vadd.f32 %v4173_v58, %v3974_v36  ;;  %v3980_v41 = vadd.f32 %v13127_v13, %v3714_v50  ;;  %v13130_v57 = vld [vmem:[#allocation60_spill] sm:$0xff] }
 0x387   :  { %v9149_v42 = vpop.eup %9148  ;;  %v4175_v54 = vpop.f32.mrf.mxu0  ;;  %v11397_v20 = vadd.f32 %v13128_v49, %v3715_v6  ;;  %v3719_v36 = vadd.f32 %v13129_v0, %v11303_v38  ;;  %v3720_v27 = vadd.f32 %v13130_v57, %v11310_v61  ;;  %v3721_v29 = vadd.f32 %v13131_v1, %v11314_v43  ;;  %v13132_v61 = vld [vmem:[#allocation63_spill] sm:$0xff]  ;;  %v13133_v6 = vld [vmem:[#allocation64_spill] sm:$0xff] }
 0x388   :  { %4340 = vst [vmem:[#allocation3 + $0xb0] sm:$0xff] %v9149_v42  ;;  %9162 = vtanh.f32 %v4283_v23  ;;  %v4284_v25 = vadd.f32 %v11250_v21, %v4240_v35  ;;  %v4241_v4 = vadd.f32 %v4175_v54, %v3975_v26  ;;  %v11409_v50 = vadd.f32 %v11223_v62, %v3716_v53 }
 0x389   :  { %v9151_v17 = vpop.eup %9150  ;;  %v4177_v5 = vpop.f32.mrf.mxu0  ;;  %v11412_v38 = vadd.f32 %v11233_v32, %v3717_v15  ;;  %v3722_v52 = vadd.f32 %v13132_v61, %v11318_v39  ;;  %v3723_v43 = vadd.f32 %v13133_v6, %v11327_v47  ;;  %v11419_v51 = vadd.f32 %v11260_v46, %v3718_v3  ;;  %v13134_v47 = vld [vmem:[#allocation66_spill] sm:$0xff]  ;;  %v13135_v46 = vld [vmem:[#allocation67_spill] sm:$0xff] }
 0x38a   :  { %4341 = vst [vmem:[#allocation3] sm:$0xff] %v9151_v17  ;;  %9164 = vtanh.f32 %v4284_v25  ;;  %v4285_v26 = vadd.f32 %v11252_v44, %v4241_v4  ;;  %v4242_v40 = vadd.f32 %v4177_v5, %v3976_v14  ;;  %v3947_v14 = vpop.f32.mrf.mxu1  ;;  %v11426_v32 = vadd.f32 %v11290_v45, %v3719_v36 }
 0x38b   :  { %v11406_v28 = vpop.eup %9152  ;;  %v4179_v58 = vpop.f32.mrf.mxu0  ;;  %v11429_v39 = vadd.f32 %v11322_v9, %v3720_v27  ;;  %v3724_v42 = vadd.f32 %v13134_v47, %v11331_v7  ;;  %v3725_v22 = vadd.f32 %v13135_v46, %v11335_v63  ;;  %v11436_v30 = vadd.f32 %v11354_v18, %v3721_v29 }
 0x38c   :  { %4342 = vst [vmem:[#allocation3 + $0xd8] sm:$0xff] %v11406_v28  ;;  %9166 = vtanh.f32 %v4285_v26  ;;  %v4286_v62 = vadd.f32 %v11250_v21, %v4242_v40  ;;  %v4243_v23 = vadd.f32 %v4179_v58, %v3977_v55  ;;  %v11442_v9 = vadd.f32 %v3941_v60, %v3722_v52  ;;  %v3949_v2 = vpop.f32.mrf.mxu1 }
 0x38d   :  { %v11423_v35 = vpop.eup %9154  ;;  %v4183_v19 = vpop.f32.mrf.mxu0  ;;  %v11444_v37 = vadd.f32 %v3943_v59, %v3723_v43  ;;  %v4470_v63 = vrot.slane %v11406_v28, 1  ;;  %v4866_v18 = vrot.slane %v11406_v28, 2  ;;  %v11453_v59 = vadd.f32 %v3947_v14, %v3724_v42 }
 0x38e   :  { %4343 = vst [vmem:[#allocation3 + $0x18] sm:$0xff] %v11423_v35  ;;  %9168 = vtanh.f32 %v4286_v62  ;;  %v4287_v55 = vadd.f32 %v11252_v44, %v4243_v23  ;;  %v4244_v45 = vadd.f32 %v4183_v19, %v3978_v12  ;;  %v4473_v25 = vrot.slane %v11423_v35, 1 }
 0x38f   :  { %v11440_v53 = vpop.eup %9156  ;;  %v4185_v7 = vpop.f32.mrf.mxu0  ;;  %v4434_v15 = vld [vmem:[#allocation3 + $0xb0] sm:$0xfe]  ;;  %v11455_v4 = vadd.f32 %v3949_v2, %v3725_v22  ;;  %v4869_v26 = vrot.slane %v11423_v35, 2  ;;  %v5352_v22 = vld [vmem:[#allocation6 + $0x278] sm:$0xff] }
 0x390   :  { %v4823_v54 = vld [vmem:[#allocation3 + $0xb0] sm:$0xfc]  ;;  %4344 = vst [vmem:[#allocation3 + $0x50] sm:$0xff] %v11440_v53  ;;  %9170 = vtanh.f32 %v4287_v55  ;;  %v4288_v3 = vadd.f32 %v11250_v21, %v4244_v45  ;;  %v4245_v12 = vadd.f32 %v4185_v7, %v3979_v34  ;;  %v4469_v0 = vrot.slane %v4434_v15, 1  ;;  %v13136_v45 = vld [vmem:[#allocation15_spill] sm:$0xff] }
 0x391   :  { %v11451_v60 = vpop.eup %9158  ;;  %v4187_v17 = vpop.f32.mrf.mxu0  ;;  %v4435_v13 = vld [vmem:[#allocation3] sm:$0xfe]  ;;  %v4865_v36 = vrot.slane %v4823_v54, 2  ;;  %v4475_v61 = vrot.slane %v11440_v53, 1  ;;  %v4871_v46 = vrot.slane %v11440_v53, 2 }
 0x392   :  { %v4824_v49 = vld [vmem:[#allocation3] sm:$0xfc]  ;;  %4345 = vst [vmem:[#allocation3 + $0x68] sm:$0xff] %v11451_v60  ;;  %9172 = vtanh.f32 %v4288_v3  ;;  %v4289_v57 = vadd.f32 %v11252_v44, %v4245_v12  ;;  %v4246_v27 = vadd.f32 %v4187_v17, %v3980_v41  ;;  %v4472_v34 = vrot.slane %v4435_v13, 1  ;;  %v3951_v12 = vpop.f32.mrf.mxu1 }
 0x393   :  { %v11459_v5 = vpop.eup %9160  ;;  %v4189_v1 = vpop.f32.mrf.mxu0  ;;  %v4868_v29 = vrot.slane %v4824_v49, 2  ;;  %v4477_v40 = vrot.slane %v11451_v60, 1  ;;  %v4471_v62 = vsel %vm880_vm2, %v4469_v0, %v4470_v63  ;;  %v4867_v23 = vsel %vm4864_vm3, %v4865_v36, %v4866_v18  ;;  %v13137_v49 = vld [vmem:[#allocation69_spill] sm:$0xff] }
 0x394   :  { %4346 = vst [vmem:[#allocation3 + $0x30] sm:$0xff] %v11459_v5  ;;  %9174 = vtanh.f32 %v4289_v57  ;;  %v4290_v52 = vadd.f32 %v11250_v21, %v4246_v27  ;;  %v4247_v6 = vadd.f32 %v4189_v1, %v11397_v20  ;;  %v4474_v41 = vsel %vm880_vm2, %v4472_v34, %v4473_v25  ;;  %v5351_v34 = vld [vmem:[#allocation6 + $0x270] sm:$0xff] }
 0x395   :  { %v11468_v43 = vpop.eup %9162  ;;  %v4193_v58 = vpop.f32.mrf.mxu0  ;;  %4621 = vmatprep.mubr.f32.mxu1 %v4474_v41  ;;  %v4870_v14 = vsel %vm4864_vm3, %v4868_v29, %v4869_v26  ;;  %v4873_v47 = vrot.slane %v11451_v60, 2  ;;  %v4478_v7 = vsel %vm880_vm2, %v4473_v25, %v4477_v40  ;;  %v3726_v3 = vadd.f32 %v11219_v24, %v11342_v48  ;;  %v13138_v48 = vld [vmem:[#allocation39_spill] sm:$0xff] }
 0x396   :  { %4347 = vst [vmem:[#allocation3 + $0x48] sm:$0xff] %v11468_v43  ;;  %9176 = vtanh.f32 %v4290_v52  ;;  %v4291_v20 = vadd.f32 %v11252_v44, %v4247_v6  ;;  %v4248_v42 = vadd.f32 %v4193_v58, %v11409_v50  ;;  %5017 = vmatprep.mubr.f32.mxu0 %v4870_v14  ;;  %4622 = vmatmul.mubr.f32.vlgmr.msra.gmra.mxu1 %v4471_v62  ;;  %v4481_v54 = vrot.slane %v11468_v43, 1  ;;  %v5367_v50 = vld [vmem:[#allocation6 + $0x2f0] sm:$0xff]  ;;  %v5366_v41 = vld [vmem:[#allocation6 + $0x2e8] sm:$0xff]  ;;  %v3953_v14 = vpop.f32.mrf.mxu1 }
 0x397   :  { %v11482_v19 = vpop.eup %9164  ;;  %v4195_v55 = vpop.f32.mrf.mxu0  ;;  %5018 = vmatmul.mubr.f32.vlgmr.msra.gmra.mxu0 %v4867_v23  ;;  %7657 = vmatpush3.msra.mxu1 %v13136_v45  ;;  %v4874_v15 = vsel %vm4864_vm3, %v4869_v26, %v4873_v47  ;;  %v4877_v2 = vrot.slane %v11468_v43, 2  ;;  %v3727_v0 = vadd.f32 %v13137_v49, %v11346_v8  ;;  %v4476_v24 = vsel %vm880_vm2, %v4470_v63, %v4475_v61  ;;  %v5365_v49 = vld [vmem:[#allocation6 + $0x2e0] sm:$0xff] }
 0x398   :  { %4348 = vst [vmem:[#allocation3 + $0x80] sm:$0xff] %v11482_v19  ;;  %9178 = vtanh.f32 %v4291_v20  ;;  %v4292_v17 = vadd.f32 %v11250_v21, %v4248_v42  ;;  %v4249_v13 = vadd.f32 %v4195_v55, %v11412_v38  ;;  %4626 = vmatprep.mubr.f32.mxu1 %v4478_v7  ;;  %5022 = vmatprep.mubr.f32.mxu0 %v4874_v15  ;;  %v4479_v57 = vrot.slane %v11459_v5, 1 }
 0x399   :  { %v11494_v25 = vpop.eup %9166  ;;  %v4197_v36 = vpop.f32.mrf.mxu0  ;;  %7658 = vmatprep.subr.mxu1 %v13138_v48  ;;  %v4872_v38 = vsel %vm4864_vm3, %v4866_v18, %v4871_v46  ;;  %7888 = vmatpush3.msra.mxu0 %v5352_v22  ;;  %v4875_v63 = vrot.slane %v11459_v5, 2  ;;  %v13139_v18 = vld [vmem:[#allocation14_spill] sm:$0xff]  ;;  %v4482_v26 = vsel %vm880_vm2, %v4477_v40, %v4481_v54  ;;  %v4878_v52 = vsel %vm4864_vm3, %v4873_v47, %v4877_v2  ;;  %v13140_v22 = vld [vmem:[#allocation16_spill] sm:$0xff] }
 0x39a   :  { %4349 = vst [vmem:[#allocation3 + $0x88] sm:$0xff] %v11494_v25  ;;  %9180 = vtanh.f32 %v4292_v17  ;;  %v4293_v8 = vadd.f32 %v11252_v44, %v4249_v13  ;;  %v4250_v27 = vadd.f32 %v4197_v36, %v11419_v51  ;;  %4627 = vmatmul.mubr.f32.gmra.mxu1 %v4476_v24  ;;  %7889 = vmatprep.subr.mxu0 %v5367_v50  ;;  %v4485_v51 = vrot.slane %v11494_v25, 1 }
 0x39b   :  { %v11514_v1 = vpop.eup %9168  ;;  %v4199_v29 = vpop.f32.mrf.mxu0  ;;  %5023 = vmatmul.mubr.f32.gmra.mxu0 %v4872_v38  ;;  %7659 = vmatpush3.msra.mxu1 %v13139_v18  ;;  %v4881_v6 = vrot.slane %v11494_v25, 2  ;;  %v11525_v58 = vadd.f32 %v3951_v12, %v3726_v3  ;;  %v11532_v47 = vadd.f32 %v3953_v14, %v3727_v0  ;;  %v4480_v42 = vsel %vm880_vm2, %v4475_v61, %v4479_v57  ;;  %v5350_v61 = vld [vmem:[#allocation6 + $0x268] sm:$0xff]  ;;  %v13141_v0 = vld [vmem:[#allocation70_spill] sm:$0xff] }
 0x39c   :  { %4350 = vst [vmem:[#allocation3 + $0xe8] sm:$0xff] %v11514_v1  ;;  %9182 = vtanh.f32 %v4293_v8  ;;  %v4294_v62 = vadd.f32 %v11250_v21, %v4250_v27  ;;  %v4251_v23 = vadd.f32 %v4199_v29, %v11426_v32  ;;  %4630 = vmatprep.mubr.f32.mxu1 %v4482_v26  ;;  %5026 = vmatprep.mubr.f32.mxu0 %v4878_v52  ;;  %v4483_v55 = vrot.slane %v11482_v19, 1  ;;  %v9223_v12 = vld [vmem:[#allocation6 + $0x68] sm:$0xff]  ;;  %v9224_v8 = vld [vmem:[#allocation6 + $0xe0] sm:$0xff] }
 0x39d   :  { %v11530_v40 = vpop.eup %9170  ;;  %v4203_v20 = vpop.f32.mrf.mxu0  ;;  %7660 = vmatprep.subr.mxu1 %v13140_v22  ;;  %v4879_v45 = vrot.slane %v11482_v19, 2  ;;  %7890 = vmatpush3.msra.mxu0 %v5351_v34  ;;  %v4876_v15 = vsel %vm4864_vm3, %v4871_v46, %v4875_v63  ;;  %v4486_v17 = vsel %vm880_vm2, %v4481_v54, %v4485_v51  ;;  %v3728_v36 = vadd.f32 %v13141_v0, %v11350_v10  ;;  %v9227_v22 = vld [vmem:[#allocation6 + $0x58] sm:$0xff] }
 0x39e   :  { %4351 = vst [vmem:[#allocation3 + $0xb8] sm:$0xff] %v11530_v40  ;;  %9184 = vtanh.f32 %v4294_v62  ;;  %v4295_v32 = vadd.f32 %v11252_v44, %v4251_v23  ;;  %v4252_v7 = vadd.f32 %v4203_v20, %v11429_v39  ;;  %4631 = vmatmul.mubr.f32.gmra.mxu1 %v4480_v42  ;;  %7891 = vmatprep.subr.mxu0 %v5366_v41  ;;  %v4489_v46 = vrot.slane %v11530_v40, 1  ;;  %v3957_v34 = vpop.f32.mrf.mxu1  ;;  %v9225_v41 = vld [vmem:[#allocation6 + $0x60] sm:$0xff]  ;;  %v9226_v23 = vld [vmem:[#allocation6 + $0xd8] sm:$0xff] }
 0x39f   :  { %v11548_v50 = vpop.eup %9172  ;;  %v4205_v3 = vpop.f32.mrf.mxu0  ;;  %5027 = vmatmul.mubr.f32.gmra.mxu0 %v4876_v15  ;;  %7661 = vmatpush3.msra.mxu1 %v9223_v12  ;;  %v4882_v39 = vsel %vm4864_vm3, %v4877_v2, %v4881_v6  ;;  %v4885_v13 = vrot.slane %v11530_v40, 2  ;;  %v4484_v38 = vsel %vm880_vm2, %v4479_v57, %v4483_v55  ;;  %v4880_v10 = vsel %vm4864_vm3, %v4875_v63, %v4879_v45 }
 0x3a0   :  { %4352 = vst [vmem:[#allocation3 + $0x60] sm:$0xff] %v11548_v50  ;;  %9186 = vtanh.f32 %v4295_v32  ;;  %v4296_v24 = vadd.f32 %v11250_v21, %v4252_v7  ;;  %v4253_v54 = vadd.f32 %v4205_v3, %v11436_v30  ;;  %4635 = vmatprep.mubr.f32.mxu1 %v4486_v17  ;;  %5031 = vmatprep.mubr.f32.mxu0 %v4882_v39  ;;  %v4487_v27 = vrot.slane %v11514_v1, 1  ;;  %v3959_v15 = vpop.f32.mrf.mxu1  ;;  %v9228_v3 = vld [vmem:[#allocation6 + $0xd0] sm:$0xff]  ;;  %v5349_v17 = vld [vmem:[#allocation6 + $0x260] sm:$0xff] }
 0x3a1   :  { %v11567_v48 = vpop.eup %9174  ;;  %v4207_v2 = vpop.f32.mrf.mxu0  ;;  %7662 = vmatprep.subr.mxu1 %v9224_v8  ;;  %v4883_v30 = vrot.slane %v11514_v1, 2  ;;  %7892 = vmatpush3.msra.mxu0 %v5350_v61  ;;  %v3729_v63 = vadd.f32 %v11229_v56, %v11359_v31  ;;  %v4490_v14 = vsel %vm880_vm2, %v4485_v51, %v4489_v46  ;;  %v4491_v51 = vrot.slane %v11548_v50, 1 }
 0x3a2   :  { %4353 = vst [vmem:[#allocation3 + $0xf0] sm:$0xff] %v11567_v48  ;;  %9188 = vtanh.f32 %v4296_v24  ;;  %v4297_v29 = vadd.f32 %v11252_v44, %v4253_v54  ;;  %v4254_v18 = vadd.f32 %v4207_v2, %v11442_v9  ;;  %4636 = vmatmul.mubr.f32.gmra.mxu1 %v4484_v38  ;;  %v4493_v57 = vrot.slane %v11567_v48, 1  ;;  %7893 = vmatprep.subr.mxu0 %v5365_v49  ;;  %v5364_v24 = vld [vmem:[#allocation6 + $0x2d8] sm:$0xff]  ;;  %v9229_v38 = vld [vmem:[#allocation6 + $0x50] sm:$0xff] }
 0x3a3   :  { %v11583_v26 = vpop.eup %9176  ;;  %v4209_v52 = vpop.f32.mrf.mxu0  ;;  %5032 = vmatmul.mubr.f32.gmra.mxu0 %v4880_v10  ;;  %7663 = vmatpush3.msra.mxu1 %v9225_v41  ;;  %v4886_v9 = vsel %vm4864_vm3, %v4881_v6, %v4885_v13  ;;  %v4889_v62 = vrot.slane %v11567_v48, 2  ;;  %v4488_v6 = vsel %vm880_vm2, %v4483_v55, %v4487_v27  ;;  %v4887_v7 = vrot.slane %v11548_v50, 2 }
 0x3a4   :  { %4354 = vst [vmem:[#allocation3 + $0x8] sm:$0xff] %v11583_v26  ;;  %9190 = vtanh.f32 %v4297_v29  ;;  %v4298_v56 = vadd.f32 %v11250_v21, %v4254_v18  ;;  %v4255_v31 = vadd.f32 %v4209_v52, %v11444_v37  ;;  %4639 = vmatprep.mubr.f32.mxu1 %v4490_v14  ;;  %7664 = vmatprep.subr.mxu1 %v9226_v23  ;;  %v9230_v29 = vld [vmem:[#allocation6 + $0xc8] sm:$0xff]  ;;  %v4891_v18 = vrot.slane %v11583_v26, 2 }
 0x3a5   :  { %v11600_v20 = vpop.eup %9178  ;;  %v4213_v42 = vpop.f32.mrf.mxu0  ;;  %5035 = vmatprep.mubr.f32.mxu0 %v4886_v9  ;;  %7665 = vmatpush3.msra.mxu1 %v9227_v22  ;;  %v4884_v37 = vsel %vm4864_vm3, %v4879_v45, %v4883_v30  ;;  %v4494_v32 = vsel %vm880_vm2, %v4489_v46, %v4493_v57  ;;  %v11618_v45 = vadd.f32 %v3957_v34, %v3728_v36  ;;  %v13142_v14 = vld [vmem:[#allocation71_spill] sm:$0xff] }
 0x3a6   :  { %4355 = vst [vmem:[#allocation3 + $0x78] sm:$0xff] %v11600_v20  ;;  %9192 = vtanh.f32 %v4298_v56  ;;  %v4299_v61 = vadd.f32 %v11252_v44, %v4255_v31  ;;  %v4256_v55 = vadd.f32 %v4213_v42, %v11453_v59  ;;  %4640 = vmatmul.mubr.f32.gmra.mxu1 %v4488_v6  ;;  %7666 = vmatprep.subr.mxu1 %v9228_v3  ;;  %v4497_v12 = vrot.slane %v11600_v20, 1  ;;  %v5363_v42 = vld [vmem:[#allocation6 + $0x2d0] sm:$0xff] }
 0x3a7   :  { %v11616_v39 = vpop.eup %9180  ;;  %v11620_v46 = vadd.f32 %v3959_v15, %v3729_v63  ;;  %v4215_v49 = vpop.f32.mrf.mxu0  ;;  %5036 = vmatmul.mubr.f32.gmra.mxu0 %v4884_v37  ;;  %4644 = vmatprep.mubr.f32.mxu1 %v4494_v32  ;;  %v4890_v59 = vsel %vm4864_vm3, %v4885_v13, %v4889_v62  ;;  %v4893_v0 = vrot.slane %v11600_v20, 2  ;;  %v4492_v2 = vsel %vm880_vm2, %v4487_v27, %v4491_v51  ;;  %v9232_v15 = vld [vmem:[#allocation6 + $0xc0] sm:$0xff] }
 0x3a8   :  { %4356 = vst [vmem:[#allocation3 + $0x38] sm:$0xff] %v11616_v39  ;;  %9194 = vtanh.f32 %v4299_v61  ;;  %v4300_v36 = vadd.f32 %v11250_v21, %v4256_v55  ;;  %v4257_v54 = vadd.f32 %v4215_v49, %v11455_v4  ;;  %5040 = vmatprep.mubr.f32.mxu0 %v4890_v59  ;;  %7667 = vmatpush3.msra.mxu1 %v9229_v38  ;;  %v4495_v4 = vrot.slane %v11583_v26, 1  ;;  %v3961_v27 = vpop.f32.mrf.mxu1 }
 0x3a9   :  { %v11634_v8 = vpop.eup %9182  ;;  %v4217_v13 = vpop.f32.mrf.mxu0  ;;  %v4888_v10 = vsel %vm4864_vm3, %v4883_v30, %v4887_v7  ;;  %v4498_v34 = vsel %vm880_vm2, %v4493_v57, %v4497_v12  ;;  %7668 = vmatprep.subr.mxu1 %v9230_v29  ;;  %7894 = vmatpush3.msra.mxu0 %v5349_v17  ;;  %v5348_v57 = vld [vmem:[#allocation6 + $0x258] sm:$0xff]  ;;  %v3730_v9 = vadd.f32 %v13142_v14, %v11368_v16  ;;  %v4895_v61 = vrot.slane %v11616_v39, 2  ;;  %v11707_v14 = vld [vmem:[#allocation6 + $0x248] sm:$0xff] }
 0x3aa   :  { %4357 = vst [vmem:[#allocation3 + $0x58] sm:$0xff] %v11634_v8  ;;  %9196 = vtanh.f32 %v4300_v36  ;;  %v4301_v63 = vadd.f32 %v11252_v44, %v4257_v54  ;;  %v4258_v52 = vadd.f32 %v4217_v13, %v11525_v58  ;;  %4645 = vmatmul.mubr.f32.gmra.mxu1 %v4492_v2  ;;  %v4501_v30 = vrot.slane %v11634_v8, 1  ;;  %7895 = vmatprep.subr.mxu0 %v5364_v24  ;;  %v3963_v55 = vpop.f32.mrf.mxu1  ;;  %v5362_v54 = vld [vmem:[#allocation6 + $0x2c8] sm:$0xff] }
 0x3ab   :  { %v11648_v41 = vpop.eup %9184  ;;  %v3731_v56 = vadd.f32 %v11248_v11, %v11372_v33  ;;  %v4219_v31 = vpop.f32.mrf.mxu0  ;;  %5041 = vmatmul.mubr.f32.gmra.mxu0 %v4888_v10  ;;  %4648 = vmatprep.mubr.f32.mxu1 %v4498_v34  ;;  %v4894_v58 = vsel %vm4864_vm3, %v4889_v62, %v4893_v0  ;;  %v4897_v23 = vrot.slane %v11634_v8, 2  ;;  %v9231_v11 = vld [vmem:[#allocation6 + $0x48] sm:$0xff]  ;;  %v4499_v33 = vrot.slane %v11616_v39, 1  ;;  %v9233_v10 = vld [vmem:[#allocation6 + $0x40] sm:$0xff] }
 0x3ac   :  { %4358 = vst [vmem:[#allocation3 + $0x40] sm:$0xff] %v11648_v41  ;;  %9198 = vtanh.f32 %v4301_v63  ;;  %v4302_v16 = vadd.f32 %v11250_v21, %v4258_v52  ;;  %v4259_v6 = vadd.f32 %v4219_v31, %v11532_v47  ;;  %5044 = vmatprep.mubr.f32.mxu0 %v4894_v58  ;;  %7669 = vmatpush3.msra.mxu1 %v9231_v11  ;;  %v4503_v63 = vrot.slane %v11648_v41, 1  ;;  %v5361_v58 = vld [vmem:[#allocation6 + $0x2c0] sm:$0xff] }
 0x3ad   :  { %v11664_v22 = vpop.eup %9186  ;;  %v4223_v37 = vpop.f32.mrf.mxu0  ;;  %v4496_v62 = vsel %vm880_vm2, %v4491_v51, %v4495_v4  ;;  %v4892_v32 = vsel %vm4864_vm3, %v4887_v7, %v4891_v18  ;;  %v4502_v47 = vsel %vm880_vm2, %v4497_v12, %v4501_v30  ;;  %7670 = vmatprep.subr.mxu1 %v9232_v15  ;;  %7896 = vmatpush3.msra.mxu0 %v5348_v57  ;;  %v5347_v7 = vld [vmem:[#allocation6 + $0x250] sm:$0xff]  ;;  %v4899_v52 = vrot.slane %v11648_v41, 2 }
 0x3ae   :  { %4359 = vst [vmem:[#allocation3 + $0xc8] sm:$0xff] %v11664_v22  ;;  %9200 = vtanh.f32 %v4302_v16  ;;  %v4303_v3 = vadd.f32 %v11252_v44, %v4259_v6  ;;  %v4260_v51 = vadd.f32 %v4223_v37, %v11618_v45  ;;  %4649 = vmatmul.mubr.f32.gmra.mxu1 %v4496_v62  ;;  %v4505_v17 = vrot.slane %v11664_v22, 1  ;;  %7897 = vmatprep.subr.mxu0 %v5363_v42  ;;  %v9235_v6 = vld [vmem:[#allocation6 + $0x38] sm:$0xff]  ;;  %v9236_v62 = vld [vmem:[#allocation6 + $0xb0] sm:$0xff] }
 0x3af   :  { %v11680_v49 = vpop.eup %9188  ;;  %v3996_v12 = vadd.f32 %v3961_v27, %v3730_v9  ;;  %v3997_v59 = vadd.f32 %v3963_v55, %v3731_v56  ;;  %v4225_v24 = vpop.f32.mrf.mxu0  ;;  %5045 = vmatmul.mubr.f32.gmra.mxu0 %v4892_v32  ;;  %4653 = vmatprep.mubr.f32.mxu1 %v4502_v47  ;;  %v4898_v36 = vsel %vm4864_vm3, %v4893_v0, %v4897_v23  ;;  %v4901_v45 = vrot.slane %v11664_v22, 2  ;;  %v9234_v27 = vld [vmem:[#allocation6 + $0xb8] sm:$0xff] }
 0x3b0   :  { %4360 = vst [vmem:[#allocation3 + $0xe0] sm:$0xff] %v11680_v49  ;;  %9202 = vtanh.f32 %v4303_v3  ;;  %v4304_v2 = vadd.f32 %v11250_v21, %v4260_v51  ;;  %v4261_v38 = vadd.f32 %v4225_v24, %v11620_v46  ;;  %5049 = vmatprep.mubr.f32.mxu0 %v4898_v36  ;;  %v4500_v13 = vsel %vm880_vm2, %v4495_v4, %v4499_v33 }
 0x3b1   :  { %7671 = vmatpush3.msra.mxu1 %v9233_v10  ;;  %v11694_v34 = vpop.eup %9190  ;;  %v4227_v0 = vpop.f32.mrf.mxu0  ;;  %v4896_v29 = vsel %vm4864_vm3, %v4891_v18, %v4895_v61  ;;  %v4506_v46 = vsel %vm880_vm2, %v4501_v30, %v4505_v17  ;;  %7898 = vmatpush3.msra.mxu0 %v5347_v7  ;;  %v4902_v56 = vsel %vm4864_vm3, %v4897_v23, %v4901_v45  ;;  %v4507_v32 = vrot.slane %v11680_v49, 1  ;;  %v11738_v7 = vld [vmem:[#allocation6 + $0x2b8] sm:$0xff] }
 0x3b2   :  { %7672 = vmatprep.subr.mxu1 %v9234_v27  ;;  %4361 = vst [vmem:[#allocation3 + $0x90] sm:$0xff] %v11694_v34  ;;  %9204 = vtanh.f32 %v4304_v2  ;;  %v4305_v4 = vadd.f32 %v11252_v44, %v4261_v38  ;;  %v4262_v57 = vadd.f32 %v4227_v0, %v3996_v12  ;;  %4654 = vmatmul.mubr.f32.gmra.mxu1 %v4500_v13  ;;  %v4509_v18 = vrot.slane %v11694_v34, 1  ;;  %v11752_v38 = vld [vmem:[#allocation6 + $0x238] sm:$0xff]  ;;  %v9239_v27 = vld [vmem:[#allocation6 + $0x28] sm:$0xff] }
 0x3b3   :  { %7899 = vmatprep.subr.mxu0 %v5362_v54  ;;  %v11709_v9 = vpop.eup %9192  ;;  %v4229_v30 = vpop.f32.mrf.mxu0  ;;  %5050 = vmatmul.mubr.f32.gmra.mxu0 %v4896_v29  ;;  %v4905_v31 = vrot.slane %v11694_v34, 2  ;;  %v4504_v37 = vsel %vm880_vm2, %v4499_v33, %v4503_v63  ;;  %v4900_v23 = vsel %vm4864_vm3, %v4895_v61, %v4899_v52  ;;  %v4903_v47 = vrot.slane %v11680_v49, 2  ;;  %v11732_v61 = vld [vmem:[#allocation6 + $0x240] sm:$0xff]  ;;  %v11758_v29 = vld [vmem:[#allocation6 + $0x2b0] sm:$0xff] }
 0x3b4   :  { %4657 = vmatprep.mubr.f32.mxu1 %v4506_v46  ;;  %4362 = vst [vmem:[#allocation3 + $0x70] sm:$0xff] %v11709_v9  ;;  %9206 = vtanh.f32 %v4305_v4  ;;  %v4306_v42 = vadd.f32 %v11250_v21, %v4262_v57  ;;  %v4263_v16 = vadd.f32 %v4229_v30, %v3997_v59  ;;  %7673 = vmatpush3.msra.mxu1 %v9235_v6  ;;  %v9238_v59 = vld [vmem:[#allocation6 + $0xa8] sm:$0xff]  ;;  %v4511_v24 = vrot.slane %v11709_v9, 1 }
 0x3b5   :  { %5053 = vmatprep.mubr.f32.mxu0 %v4902_v56  ;;  %v11717_v11 = vpop.eup %9194  ;;  %7674 = vmatprep.subr.mxu1 %v9236_v62  ;;  %v4510_v33 = vsel %vm880_vm2, %v4505_v17, %v4509_v18  ;;  %v4906_v3 = vsel %vm4864_vm3, %v4901_v45, %v4905_v31  ;;  %v4508_v12 = vsel %vm880_vm2, %v4503_v63, %v4507_v32  ;;  %v4907_v54 = vrot.slane %v11709_v9, 2  ;;  %v11771_v56 = vld [vmem:[#allocation6 + $0x230] sm:$0xff]  ;;  %v11776_v6 = vld [vmem:[#allocation6 + $0x2a8] sm:$0xff] }
 0x3b6   :  { %7900 = vmatpush3.msra.mxu0 %v11707_v14  ;;  %4363 = vst [vmem:[#allocation3 + $0xc0] sm:$0xff] %v11717_v11  ;;  %9208 = vtanh.f32 %v4306_v42  ;;  %v4307_v21 = vadd.f32 %v11252_v44, %v4263_v16  ;;  %4658 = vmatmul.mubr.f32.gmra.mxu1 %v4504_v37  ;;  %v4513_v15 = vrot.slane %v11717_v11, 1  ;;  %v4909_v51 = vrot.slane %v11717_v11, 2  ;;  %v9237_v44 = vld [vmem:[#allocation6 + $0x30] sm:$0xff]  ;;  %v9241_v37 = vld [vmem:[#allocation6 + $0x20] sm:$0xff] }
 0x3b7   :  { %7901 = vmatprep.subr.mxu0 %v5361_v58  ;;  %v11734_v55 = vpop.eup %9196  ;;  %5054 = vmatmul.mubr.f32.gmra.mxu0 %v4900_v23  ;;  %v4904_v36 = vsel %vm4864_vm3, %v4899_v52, %v4903_v47  ;;  %v4512_v63 = vsel %vm880_vm2, %v4507_v32, %v4511_v24  ;;  %v9240_v52 = vld [vmem:[#allocation6 + $0xa0] sm:$0xff]  ;;  %v4908_v57 = vsel %vm4864_vm3, %v4903_v47, %v4907_v54  ;;  %v9242_v32 = vld [vmem:[#allocation6 + $0x98] sm:$0xff] }
 0x3b8   :  { %4662 = vmatprep.mubr.f32.mxu1 %v4510_v33  ;;  %4364 = vst [vmem:[#allocation3 + $0xa8] sm:$0xff] %v11734_v55  ;;  %9210 = vtanh.f32 %v4307_v21  ;;  %7675 = vmatpush3.msra.mxu1 %v9237_v44  ;;  %v4514_v45 = vsel %vm880_vm2, %v4509_v18, %v4513_v15  ;;  %v4910_v10 = vsel %vm4864_vm3, %v4905_v31, %v4909_v51  ;;  %v4515_v4 = vrot.slane %v11734_v55, 1 }
 0x3b9   :  { %5058 = vmatprep.mubr.f32.mxu0 %v4906_v3  ;;  %v11741_v17 = vpop.eup %9198  ;;  %7676 = vmatprep.subr.mxu1 %v9238_v59  ;;  %v4911_v30 = vrot.slane %v11734_v55, 2  ;;  %v11792_v59 = vld [vmem:[#allocation6 + $0x2a0] sm:$0xff] }
 0x3ba   :  { %7902 = vmatpush3.msra.mxu0 %v11732_v61  ;;  %4365 = vst [vmem:[#allocation3 + $0xd0] sm:$0xff] %v11741_v17  ;;  %4663 = vmatmul.mubr.f32.gmra.mxu1 %v4508_v12  ;;  %v4517_v2 = vrot.slane %v11741_v17, 1  ;;  %v4913_v0 = vrot.slane %v11741_v17, 2  ;;  %v4516_v62 = vsel %vm880_vm2, %v4511_v24, %v4515_v4 }
 0x3bb   :  { %7903 = vmatprep.subr.mxu0 %v11738_v7  ;;  %v11754_v13 = vpop.eup %9200  ;;  %5059 = vmatmul.mubr.f32.gmra.mxu0 %v4904_v36  ;;  %v4912_v21 = vsel %vm4864_vm3, %v4907_v54, %v4911_v30  ;;  %v11798_v54 = vld [vmem:[#allocation6 + $0x220] sm:$0xff] }
 0x3bc   :  { %4666 = vmatprep.mubr.f32.mxu1 %v4514_v45  ;;  %4366 = vst [vmem:[#allocation3 + $0x10] sm:$0xff] %v11754_v13  ;;  %7677 = vmatpush3.msra.mxu1 %v9239_v27  ;;  %v4518_v18 = vsel %vm880_vm2, %v4513_v15, %v4517_v2  ;;  %v4914_v58 = vsel %vm4864_vm3, %v4909_v51, %v4913_v0  ;;  %v4519_v47 = vrot.slane %v11754_v13, 1  ;;  %v4915_v33 = vrot.slane %v11754_v13, 2  ;;  %v11784_v15 = vld [vmem:[#allocation6 + $0x228] sm:$0xff]  ;;  %v9243_v51 = vld [vmem:[#allocation6 + $0x18] sm:$0xff]  ;;  %v9244_v45 = vld [vmem:[#allocation6 + $0x90] sm:$0xff] }
 0x3bd   :  { %5062 = vmatprep.mubr.f32.mxu0 %v4910_v10  ;;  %v11761_v46 = vpop.eup %9202  ;;  %7678 = vmatprep.subr.mxu1 %v9240_v52  ;;  %v11802_v10 = vld [vmem:[#allocation6 + $0x298] sm:$0xff] }
 0x3be   :  { %7904 = vmatpush3.msra.mxu0 %v11752_v38  ;;  %4367 = vst [vmem:[#allocation3 + $0x28] sm:$0xff] %v11761_v46  ;;  %4667 = vmatmul.mubr.f32.gmra.mxu1 %v4512_v63  ;;  %v4521_v42 = vrot.slane %v11761_v46, 1  ;;  %v4917_v16 = vrot.slane %v11761_v46, 2  ;;  %v4520_v36 = vsel %vm880_vm2, %v4515_v4, %v4519_v47  ;;  %v11804_v52 = vld [vmem:[#allocation6 + $0x218] sm:$0xff]  ;;  %v9246_v4 = vld [vmem:[#allocation6 + $0x88] sm:$0xff] }
 0x3bf   :  { %7905 = vmatprep.subr.mxu0 %v11758_v29  ;;  %v9205_v31 = vpop.eup %9204  ;;  %5063 = vmatmul.mubr.f32.gmra.mxu0 %v4908_v57  ;;  %v11807_v57 = vld [vmem:[#allocation6 + $0x290] sm:$0xff] }
 0x3c0   :  { %4671 = vmatprep.mubr.f32.mxu1 %v4518_v18  ;;  %4368 = vst [vmem:[#allocation3 + $0xa0] sm:$0xff] %v9205_v31  ;;  %7679 = vmatpush3.msra.mxu1 %v9241_v37  ;;  %v4522_v44 = vsel %vm880_vm2, %v4517_v2, %v4521_v42  ;;  %v4918_v12 = vsel %vm4864_vm3, %v4913_v0, %v4917_v16  ;;  %v9245_v0 = vld [vmem:[#allocation6 + $0x10] sm:$0xff] }
 0x3c1   :  { %5067 = vmatprep.mubr.f32.mxu0 %v4914_v58  ;;  %v9207_v23 = vpop.eup %9206  ;;  %7680 = vmatprep.subr.mxu1 %v9242_v32  ;;  %v4916_v2 = vsel %vm4864_vm3, %v4911_v30, %v4915_v33  ;;  %v11809_v18 = vld [vmem:[#allocation6 + $0x210] sm:$0xff] }
 0x3c2   :  { %7906 = vmatpush3.msra.mxu0 %v11771_v56  ;;  %4369 = vst [vmem:[#allocation3 + $0xf8] sm:$0xff] %v9207_v23  ;;  %4672 = vmatmul.mubr.f32.gmra.mxu1 %v4516_v62  ;;  %v9247_v23 = vld [vmem:[#allocation6 + $0x8] sm:$0xff] }
 0x3c3   :  { %7907 = vmatprep.subr.mxu0 %v11776_v6  ;;  %v9209_v3 = vpop.eup %9208  ;;  %5068 = vmatmul.mubr.f32.gmra.mxu0 %v4912_v21  ;;  %v9248_v21 = vld [vmem:[#allocation6 + $0x80] sm:$0xff] }
 0x3c4   :  { %7681 = vmatpush3.msra.mxu1 %v9243_v51  ;;  %4370 = vst [vmem:[#allocation3 + $0x20] sm:$0x3] %v9209_v3  ;;  %4675 = vmatprep.mubr.f32.mxu1 %v4522_v44  ;;  %v5333_v3 = vld [vmem:[#allocation3] sm:$0xf0] }
 0x3c5   :  { %5071 = vmatprep.mubr.f32.mxu0 %v4918_v12  ;;  %v9211_v24 = vpop.eup %9210  ;;  %7682 = vmatprep.subr.mxu1 %v9244_v45  ;;  %v9249_v51 = vld [vmem:[#allocation6] sm:$0xff] }
 0x3c6   :  { %7908 = vmatpush3.msra.mxu0 %v11784_v15  ;;  %4371 = vst [vmem:[#allocation3 + $0x98] sm:$0x3] %v9211_v24  ;;  %4676 = vmatmul.mubr.f32.gmra.mxu1 %v4520_v36  ;;  %v9250_v24 = vld [vmem:[#allocation6 + $0x1f8] sm:$0xff] }
 0x3c7   :  { %7909 = vmatprep.subr.mxu0 %v11792_v59  ;;  %5072 = vmatmul.mubr.f32.gmra.mxu0 %v4916_v2  ;;  %v4436_v27 = vld [vmem:[#allocation3 + $0xa0] sm:$0x3]  ;;  %v11825_v2 = vld [vmem:[#allocation6 + $0x288] sm:$0xff] }
 0x3c8   :  { %7683 = vmatpush3.msra.mxu1 %v9245_v0  ;;  %v4825_v63 = vld [vmem:[#allocation3 + $0xa0] sm:$0x7]  ;;  %7910 = vmatpush3.msra.mxu0 %v11798_v54  ;;  %v4523_v58 = vrot.slane %v4436_v27, 1  ;;  %v5377_v0 = vrot.slane %v5333_v3, 4  ;;  %v5378_v27 = vrot.slane %v11423_v35, 4  ;;  %v9251_v3 = vld [vmem:[#allocation6 + $0x178] sm:$0xff] }
 0x3c9   :  { %7684 = vmatprep.subr.mxu1 %v9246_v4  ;;  %v4437_v30 = vld [vmem:[#allocation3 + $0xf8] sm:$0x3]  ;;  %v4919_v37 = vrot.slane %v4825_v63, 2  ;;  %7911 = vmatprep.subr.mxu0 %v11802_v10  ;;  %v4373_v63 = vld [vmem:[#allocation3] sm:$0xff] }
 0x3ca   :  { %v4826_v31 = vld [vmem:[#allocation3 + $0xf8] sm:$0x7]  ;;  %7685 = vmatpush3.msra.mxu1 %v9247_v23  ;;  %v4525_v62 = vrot.slane %v4437_v30, 1  ;;  %7912 = vmatpush3.msra.mxu0 %v11804_v52  ;;  %v4524_v36 = vsel %vm880_vm2, %v4519_v47, %v4523_v58  ;;  %v11832_v47 = vld [vmem:[#allocation6 + $0x280] sm:$0xff]  ;;  %v5379_v4 = vsel %vm5373_vm4, %v5377_v0, %v5378_v27  ;;  %v5382_v23 = vrot.slane %v11451_v60, 4 }
 0x3cb   :  { %v4921_v32 = vrot.slane %v4826_v31, 2  ;;  %7686 = vmatprep.subr.mxu1 %v9248_v21  ;;  %7913 = vmatprep.subr.mxu0 %v11807_v57  ;;  %v4920_v45 = vsel %vm4864_vm3, %v4915_v33, %v4919_v37  ;;  %v11835_v30 = vld [vmem:[#allocation6 + $0x200] sm:$0xff]  ;;  %v5375_v31 = vrot.slane %v11406_v28, 4  ;;  %v11844_v21 = vld [vmem:[#allocation6 + $0x3f8] sm:$0xff]  ;;  %v5390_v0 = vrot.slane %v11494_v25, 4 }
 0x3cc   :  { %7687 = vmatpush3.msra.mxu1 %v9249_v51  ;;  %v4526_v44 = vsel %vm880_vm2, %v4521_v42, %v4525_v62  ;;  %7914 = vmatpush3.msra.mxu0 %v11809_v18  ;;  %v11827_v42 = vld [vmem:[#allocation6 + $0x208] sm:$0xff]  ;;  %v5383_v51 = vsel %vm5373_vm4, %v5378_v27, %v5382_v23 }
 0x3cd   :  { %v4922_v12 = vsel %vm4864_vm3, %v4917_v16, %v4921_v32  ;;  %7810 = vmatprep.subr.mxu1 %v9250_v24  ;;  %4680 = vmatprep.mubr.f32.mxu1 %v4526_v44  ;;  %v5332_v16 = vld [vmem:[#allocation3 + $0xb0] sm:$0xf0]  ;;  %v9254_v27 = vld [vmem:[#allocation6 + $0x1e8] sm:$0xff] }
 0x3ce   :  { %5076 = vmatprep.mubr.f32.mxu0 %v4922_v12  ;;  %4681 = vmatmul.mubr.f32.gmra.mxu1 %v4524_v36  ;;  %v5374_v33 = vrot.slane %v5332_v16, 4  ;;  %v9252_v44 = vld [vmem:[#allocation6 + $0x1f0] sm:$0xff]  ;;  %v5384_v36 = vrot.slane %v11459_v5, 4 }
 0x3cf   :  { %5077 = vmatmul.mubr.f32.gmra.mxu0 %v4920_v45  ;;  %4684 = vmatprep.mubr.f32.mxu1 %v4525_v62  ;;  %v4372_v62 = vld [vmem:[#allocation3 + $0xb0] sm:$0xff]  ;;  %v11851_v45 = vld [vmem:[#allocation6 + $0x378] sm:$0xff] }
 0x3d0   :  { %5080 = vmatprep.mubr.f32.mxu0 %v4921_v32  ;;  %7915 = vmatprep.subr.mxu0 %v11825_v2  ;;  %v5376_v32 = vsel %vm5373_vm4, %v5374_v33, %v5375_v31  ;;  %v9253_v24 = vld [vmem:[#allocation6 + $0x170] sm:$0xff] }
 0x3d1   :  { %7916 = vmatpush3.msra.mxu0 %v11827_v42  ;;  %v11856_v16 = vld [vmem:[#allocation6 + $0x3f0] sm:$0xff] }
 0x3d2   :  { %4685 = vmatmul.mubr.f32.gmra.mxu1 %v4523_v58  ;;  %7917 = vmatprep.subr.mxu0 %v11832_v47  ;;  %v5380_v58 = vrot.slane %v11440_v53, 4 }
 0x3d3   :  { %5081 = vmatmul.mubr.f32.gmra.mxu0 %v4919_v37  ;;  %4754 = vmatprep.mubr.f32.mxu1 %v4373_v63  ;;  %v5386_v37 = vrot.slane %v11468_v43, 4  ;;  %v9255_v63 = vld [vmem:[#allocation6 + $0x168] sm:$0xff] }
 0x3d4   :  { %5526 = vmatprep.mubr.f32.mxu0 %v5379_v4  ;;  %7918 = vmatpush3.msra.mxu0 %v11835_v30  ;;  %v5381_v12 = vsel %vm5373_vm4, %v5375_v31, %v5380_v58  ;;  %v5385_v33 = vsel %vm5373_vm4, %v5380_v58, %v5384_v36  ;;  %v11863_v4 = vld [vmem:[#allocation6 + $0x370] sm:$0xff]  ;;  %v5394_v31 = vrot.slane %v11530_v40, 4  ;;  %v9257_v58 = vld [vmem:[#allocation6 + $0x160] sm:$0xff] }
 0x3d5   :  { %8041 = vmatprep.subr.mxu0 %v11844_v21 }
 0x3d6   :  { %4755 = vmatmul.mubr.f32.vlgmr.msra.gmra.mxu1 %v4372_v62  ;;  %v9256_v62 = vld [vmem:[#allocation6 + $0x1e0] sm:$0xff] }
 0x3d7   :  { %5527 = vmatmul.mubr.f32.vlgmr.msra.gmra.mxu0 %v5376_v32  ;;  %4759 = vmatprep.mubr.f32.mxu1 %v11423_v35  ;;  %v5387_v35 = vsel %vm5373_vm4, %v5382_v23, %v5386_v37  ;;  %v11868_v23 = vld [vmem:[#allocation6 + $0x3e8] sm:$0xff] }
 0x3d8   :  { %7811 = vmatpush3.msra.mxu1 %v9251_v3  ;;  %5531 = vmatprep.mubr.f32.mxu0 %v5383_v51  ;;  %v5398_v3 = vrot.slane %v11567_v48, 4  ;;  %v11880_v51 = vld [vmem:[#allocation6 + $0x3e0] sm:$0xff] }
 0x3d9   :  { %7812 = vmatprep.subr.mxu1 %v9252_v44  ;;  %8042 = vmatpush3.msra.mxu0 %v11851_v45  ;;  %v9258_v44 = vld [vmem:[#allocation6 + $0x1d8] sm:$0xff] }
 0x3da   :  { %7813 = vmatpush3.msra.mxu1 %v9253_v24  ;;  %8043 = vmatprep.subr.mxu0 %v11856_v16 }
 0x3db   :  { %4760 = vmatmul.mubr.f32.gmra.mxu1 %v11406_v28  ;;  %5532 = vmatmul.mubr.f32.gmra.mxu0 %v5381_v12  ;;  %v5388_v28 = vrot.slane %v11482_v19, 4  ;;  %v9259_v12 = vld [vmem:[#allocation6 + $0x158] sm:$0xff] }
 0x3dc   :  { %4763 = vmatprep.mubr.f32.mxu1 %v11451_v60  ;;  %5535 = vmatprep.mubr.f32.mxu0 %v5387_v35  ;;  %v5391_v60 = vsel %vm5373_vm4, %v5386_v37, %v5390_v0  ;;  %v11875_v37 = vld [vmem:[#allocation6 + $0x368] sm:$0xff]  ;;  %v5402_v35 = vrot.slane %v11600_v20, 4 }
 0x3dd   :  { %7814 = vmatprep.subr.mxu1 %v9254_v27  ;;  %8044 = vmatpush3.msra.mxu0 %v11863_v4  ;;  %v5389_v32 = vsel %vm5373_vm4, %v5384_v36, %v5388_v28  ;;  %v11887_v36 = vld [vmem:[#allocation6 + $0x360] sm:$0xff]  ;;  %v9260_v27 = vld [vmem:[#allocation6 + $0x1d0] sm:$0xff] }
 0x3de   :  { %7815 = vmatpush3.msra.mxu1 %v9255_v63  ;;  %8045 = vmatprep.subr.mxu0 %v11868_v23 }
 0x3df   :  { %4764 = vmatmul.mubr.f32.gmra.mxu1 %v11440_v53  ;;  %5536 = vmatmul.mubr.f32.gmra.mxu0 %v5385_v33  ;;  %v5392_v53 = vrot.slane %v11514_v1, 4  ;;  %v9261_v33 = vld [vmem:[#allocation6 + $0x150] sm:$0xff] }
 0x3e0   :  { %4768 = vmatprep.mubr.f32.mxu1 %v11468_v43  ;;  %5540 = vmatprep.mubr.f32.mxu0 %v5391_v60  ;;  %v5395_v43 = vsel %vm5373_vm4, %v5390_v0, %v5394_v31  ;;  %v11892_v0 = vld [vmem:[#allocation6 + $0x3d8] sm:$0xff]  ;;  %v5406_v60 = vrot.slane %v11634_v8, 4 }
 0x3e1   :  { %7816 = vmatprep.subr.mxu1 %v9256_v62  ;;  %8046 = vmatpush3.msra.mxu0 %v11875_v37  ;;  %v5393_v24 = vsel %vm5373_vm4, %v5388_v28, %v5392_v53  ;;  %v11899_v28 = vld [vmem:[#allocation6 + $0x358] sm:$0xff]  ;;  %v9262_v62 = vld [vmem:[#allocation6 + $0x1c8] sm:$0xff] }
 0x3e2   :  { %7817 = vmatpush3.msra.mxu1 %v9257_v58  ;;  %8047 = vmatprep.subr.mxu0 %v11880_v51 }
 0x3e3   :  { %4769 = vmatmul.mubr.f32.gmra.mxu1 %v11459_v5  ;;  %5541 = vmatmul.mubr.f32.gmra.mxu0 %v5389_v32  ;;  %v5396_v5 = vrot.slane %v11548_v50, 4  ;;  %v9263_v32 = vld [vmem:[#allocation6 + $0x148] sm:$0xff] }
 0x3e4   :  { %4772 = vmatprep.mubr.f32.mxu1 %v11494_v25  ;;  %5544 = vmatprep.mubr.f32.mxu0 %v5395_v43  ;;  %v5399_v25 = vsel %vm5373_vm4, %v5394_v31, %v5398_v3  ;;  %v11904_v31 = vld [vmem:[#allocation6 + $0x3d0] sm:$0xff]  ;;  %v5410_v43 = vrot.slane %v11664_v22, 4 }
 0x3e5   :  { %7818 = vmatprep.subr.mxu1 %v9258_v44  ;;  %8048 = vmatpush3.msra.mxu0 %v11887_v36  ;;  %v5397_v63 = vsel %vm5373_vm4, %v5392_v53, %v5396_v5  ;;  %v11911_v53 = vld [vmem:[#allocation6 + $0x350] sm:$0xff]  ;;  %v9264_v44 = vld [vmem:[#allocation6 + $0x1c0] sm:$0xff] }
 0x3e6   :  { %7819 = vmatpush3.msra.mxu1 %v9259_v12  ;;  %8049 = vmatprep.subr.mxu0 %v11892_v0  ;;  %v9265_v12 = vld [vmem:[#allocation6 + $0x140] sm:$0xff] }
 0x3e7   :  { %4773 = vmatmul.mubr.f32.gmra.mxu1 %v11482_v19  ;;  %5545 = vmatmul.mubr.f32.gmra.mxu0 %v5393_v24  ;;  %v5400_v19 = vrot.slane %v11583_v26, 4 }
 0x3e8   :  { %4777 = vmatprep.mubr.f32.mxu1 %v11530_v40  ;;  %5549 = vmatprep.mubr.f32.mxu0 %v5399_v25  ;;  %v5403_v40 = vsel %vm5373_vm4, %v5398_v3, %v5402_v35  ;;  %v11916_v3 = vld [vmem:[#allocation6 + $0x3c8] sm:$0xff]  ;;  %v5414_v25 = vrot.slane %v11694_v34, 4 }
 0x3e9   :  { %7820 = vmatprep.subr.mxu1 %v9260_v27  ;;  %8050 = vmatpush3.msra.mxu0 %v11899_v28  ;;  %v5401_v58 = vsel %vm5373_vm4, %v5396_v5, %v5400_v19  ;;  %13143 = vst [vmem:[#allocation40_spill] sm:$0xff] %v11916_v3  ;;  %v11923_v5 = vld [vmem:[#allocation6 + $0x348] sm:$0xff]  ;;  %v9266_v27 = vld [vmem:[#allocation6 + $0x1b8] sm:$0xff] }
 0x3ea   :  { %7821 = vmatpush3.msra.mxu1 %v9261_v33  ;;  %8051 = vmatprep.subr.mxu0 %v11904_v31  ;;  %13144 = vst [vmem:[#allocation31_spill] sm:$0xff] %v11923_v5  ;;  %v9267_v33 = vld [vmem:[#allocation6 + $0x138] sm:$0xff] }
 0x3eb   :  { %4778 = vmatmul.mubr.f32.gmra.mxu1 %v11514_v1  ;;  %5550 = vmatmul.mubr.f32.gmra.mxu0 %v5397_v63  ;;  %v5404_v1 = vrot.slane %v11616_v39, 4 }
 0x3ec   :  { %4781 = vmatprep.mubr.f32.mxu1 %v11567_v48  ;;  %5553 = vmatprep.mubr.f32.mxu0 %v5403_v40  ;;  %v5407_v48 = vsel %vm5373_vm4, %v5402_v35, %v5406_v60  ;;  %v11928_v35 = vld [vmem:[#allocation6 + $0x3c0] sm:$0xff]  ;;  %v5418_v40 = vrot.slane %v11717_v11, 4 }
 0x3ed   :  { %7822 = vmatprep.subr.mxu1 %v9262_v62  ;;  %8052 = vmatpush3.msra.mxu0 %v11911_v53  ;;  %v5405_v24 = vsel %vm5373_vm4, %v5400_v19, %v5404_v1  ;;  %13145 = vst [vmem:[#allocation30_spill] sm:$0xff] %v11928_v35  ;;  %v11935_v19 = vld [vmem:[#allocation6 + $0x340] sm:$0xff]  ;;  %v9268_v62 = vld [vmem:[#allocation6 + $0x1b0] sm:$0xff] }
 0x3ee   :  { %7823 = vmatpush3.msra.mxu1 %v9263_v32  ;;  %8053 = vmatprep.subr.mxu0 %v11916_v3  ;;  %13146 = vst [vmem:[#allocation25_spill] sm:$0xff] %v11935_v19  ;;  %v9269_v32 = vld [vmem:[#allocation6 + $0x130] sm:$0xff] }
 0x3ef   :  { %4782 = vmatmul.mubr.f32.gmra.mxu1 %v11548_v50  ;;  %5554 = vmatmul.mubr.f32.gmra.mxu0 %v5401_v58  ;;  %v5408_v50 = vrot.slane %v11648_v41, 4  ;;  %v12099_v3 = vld [vmem:[#allocation6 + $0x450] sm:$0xff] }
 0x3f0   :  { %4786 = vmatprep.mubr.f32.mxu1 %v11600_v20  ;;  %5558 = vmatprep.mubr.f32.mxu0 %v5407_v48  ;;  %v5411_v20 = vsel %vm5373_vm4, %v5406_v60, %v5410_v43  ;;  %v5869_v60 = vld [vmem:[#allocation6 + $0x3b8] sm:$0xff]  ;;  %v5419_v48 = vsel %vm5373_vm4, %v5414_v25, %v5418_v40  ;;  %13161 = vst [vmem:[#allocation19_spill] sm:$0xff] %v12099_v3 }
 0x3f1   :  { %7824 = vmatprep.subr.mxu1 %v9264_v44  ;;  %8054 = vmatpush3.msra.mxu0 %v11923_v5  ;;  %v5409_v63 = vsel %vm5373_vm4, %v5404_v1, %v5408_v50  ;;  %v5416_v1 = vrot.slane %v11709_v9, 4  ;;  %v9270_v44 = vld [vmem:[#allocation6 + $0x1a8] sm:$0xff] }
 0x3f2   :  { %7825 = vmatpush3.msra.mxu1 %v9265_v12  ;;  %8055 = vmatprep.subr.mxu0 %v11928_v35  ;;  %v9271_v12 = vld [vmem:[#allocation6 + $0x128] sm:$0xff]  ;;  %v12081_v35 = vld [vmem:[#allocation6 + $0x458] sm:$0xff] }
 0x3f3   :  { %4787 = vmatmul.mubr.f32.gmra.mxu1 %v11583_v26  ;;  %5559 = vmatmul.mubr.f32.gmra.mxu0 %v5405_v24  ;;  %v5412_v26 = vrot.slane %v11680_v49, 4  ;;  %13159 = vst [vmem:[#allocation21_spill] sm:$0xff] %v12081_v35 }
 0x3f4   :  { %4790 = vmatprep.mubr.f32.mxu1 %v11634_v8  ;;  %5562 = vmatprep.mubr.f32.mxu0 %v5411_v20  ;;  %v5415_v8 = vsel %vm5373_vm4, %v5410_v43, %v5414_v25  ;;  %v5868_v43 = vld [vmem:[#allocation6 + $0x3b0] sm:$0xff]  ;;  %v5426_v25 = vrot.slane %v11761_v46, 4 }
 0x3f5   :  { %7826 = vmatprep.subr.mxu1 %v9266_v27  ;;  %8056 = vmatpush3.msra.mxu0 %v11935_v19  ;;  %v5413_v58 = vsel %vm5373_vm4, %v5408_v50, %v5412_v26  ;;  %v5417_v24 = vsel %vm5373_vm4, %v5412_v26, %v5416_v1  ;;  %v5420_v50 = vrot.slane %v11734_v55, 4  ;;  %v5335_v27 = vld [vmem:[#allocation3 + $0xf8] sm:$0x1f] }
 0x3f6   :  { %7827 = vmatpush3.msra.mxu1 %v9267_v33  ;;  %8057 = vmatprep.subr.mxu0 %v5869_v60  ;;  %v9272_v33 = vld [vmem:[#allocation6 + $0x1a0] sm:$0xff]  ;;  %v9274_v60 = vld [vmem:[#allocation6 + $0x198] sm:$0xff] }
 0x3f7   :  { %4791 = vmatmul.mubr.f32.gmra.mxu1 %v11616_v39  ;;  %5563 = vmatmul.mubr.f32.gmra.mxu0 %v5409_v63  ;;  %v11944_v39 = vld [vmem:[#allocation6 + $0x338] sm:$0xff]  ;;  %v9273_v63 = vld [vmem:[#allocation6 + $0x120] sm:$0xff]  ;;  %v5421_v26 = vsel %vm5373_vm4, %v5416_v1, %v5420_v50  ;;  %v9276_v1 = vld [vmem:[#allocation6 + $0x190] sm:$0xff] }
 0x3f8   :  { %4795 = vmatprep.mubr.f32.mxu1 %v11664_v22  ;;  %5567 = vmatprep.mubr.f32.mxu0 %v5415_v8  ;;  %13147 = vst [vmem:[#allocation11_spill] sm:$0xff] %v11944_v39  ;;  %v5422_v22 = vrot.slane %v11741_v17, 4  ;;  %v5430_v8 = vrot.slane %v5335_v27, 4 }
 0x3f9   :  { %7828 = vmatprep.subr.mxu1 %v9268_v62  ;;  %8058 = vmatpush3.msra.mxu0 %v11944_v39  ;;  %v12063_v39 = vld [vmem:[#allocation6 + $0x460] sm:$0xff] }
 0x3fa   :  { %7829 = vmatpush3.msra.mxu1 %v9269_v32  ;;  %8059 = vmatprep.subr.mxu0 %v5868_v43  ;;  %v5423_v20 = vsel %vm5373_vm4, %v5418_v40, %v5422_v22  ;;  %v5334_v40 = vld [vmem:[#allocation3 + $0xa0] sm:$0x1f]  ;;  %v5427_v62 = vsel %vm5373_vm4, %v5422_v22, %v5426_v25  ;;  %v9275_v32 = vld [vmem:[#allocation6 + $0x118] sm:$0xff]  ;;  %v9277_v22 = vld [vmem:[#allocation6 + $0x110] sm:$0xff]  ;;  %13157 = vst [vmem:[#allocation32_spill] sm:$0xff] %v12063_v39 }
 0x3fb   :  { %4796 = vmatmul.mubr.f32.gmra.mxu1 %v11648_v41  ;;  %5568 = vmatmul.mubr.f32.gmra.mxu0 %v5413_v58  ;;  %v11953_v41 = vld [vmem:[#allocation6 + $0x330] sm:$0xff]  ;;  %v11971_v43 = vld [vmem:[#allocation6 + $0x320] sm:$0xff] }
 0x3fc   :  { %4799 = vmatprep.mubr.f32.mxu1 %v11694_v34  ;;  %5571 = vmatprep.mubr.f32.mxu0 %v5419_v48  ;;  %13148 = vst [vmem:[#allocation34_spill] sm:$0xff] %v11953_v41  ;;  %v5867_v34 = vld [vmem:[#allocation6 + $0x3a8] sm:$0xff]  ;;  %v5428_v48 = vrot.slane %v5334_v40, 4  ;;  %13150 = vst [vmem:[#allocation33_spill] sm:$0xff] %v11971_v43  ;;  %v5841_v40 = vld [vmem:[#allocation3 + $0xb0] sm:$0xc0] }
 0x3fd   :  { %7830 = vmatprep.subr.mxu1 %v9270_v44  ;;  %8060 = vmatpush3.msra.mxu0 %v11953_v41  ;;  %v5865_v44 = vld [vmem:[#allocation6 + $0x398] sm:$0xff]  ;;  %v12056_v41 = vld [vmem:[#allocation3 + $0x60] sm:$0xff] }
 0x3fe   :  { %7831 = vmatpush3.msra.mxu1 %v9271_v12  ;;  %8061 = vmatprep.subr.mxu0 %v5867_v34  ;;  %v5095_v12 = vld [vmem:[#allocation3] sm:$0xf8]  ;;  %v4401_v34 = vld [vmem:[#allocation3 + $0xf8] sm:$0x1] }
 0x3ff   :  { %4800 = vmatmul.mubr.f32.gmra.mxu1 %v11680_v49  ;;  %5572 = vmatmul.mubr.f32.gmra.mxu0 %v5417_v24  ;;  %v5424_v49 = vrot.slane %v11754_v13, 4  ;;  %v5106_v27 = vrot.slane %v5095_v12, 3  ;;  %v5846_v12 = vld [vmem:[#allocation6 + $0x300] sm:$0xff] }
 0x400   :  { %4804 = vmatprep.mubr.f32.mxu1 %v11717_v11  ;;  %5576 = vmatprep.mubr.f32.mxu0 %v5423_v20  ;;  %v11963_v11 = vld [vmem:[#allocation6 + $0x328] sm:$0xff]  ;;  %v5842_v20 = vld [vmem:[#allocation3] sm:$0xc0] }
 0x401   :  { %7832 = vmatprep.subr.mxu1 %v9272_v33  ;;  %13149 = vst [vmem:[#allocation29_spill] sm:$0xff] %v11963_v11  ;;  %v5425_v58 = vsel %vm5373_vm4, %v5420_v50, %v5424_v49  ;;  %8062 = vmatpush3.msra.mxu0 %v11963_v11  ;;  %v5429_v24 = vsel %vm5373_vm4, %v5424_v49, %v5428_v48  ;;  %v9278_v50 = vld [vmem:[#allocation6 + $0x188] sm:$0xff]  ;;  %v5094_v33 = vld [vmem:[#allocation3 + $0xb0] sm:$0xf8] }
 0x402   :  { %7833 = vmatpush3.msra.mxu1 %v9273_v63  ;;  %v5863_v63 = vld [vmem:[#allocation6 + $0x388] sm:$0xff] }
 0x403   :  { %4805 = vmatmul.mubr.f32.gmra.mxu1 %v11709_v9  ;;  %5577 = vmatmul.mubr.f32.gmra.mxu0 %v5421_v26  ;;  %v5866_v9 = vld [vmem:[#allocation6 + $0x3a0] sm:$0xff]  ;;  %v5886_v26 = vrot.slane %v5842_v20, 6  ;;  %v9279_v49 = vld [vmem:[#allocation6 + $0x108] sm:$0xff] }
 0x404   :  { %4808 = vmatprep.mubr.f32.mxu1 %v11741_v17  ;;  %7834 = vmatprep.subr.mxu1 %v9274_v60  ;;  %v5431_v17 = vsel %vm5373_vm4, %v5426_v25, %v5430_v8  ;;  %v5864_v25 = vld [vmem:[#allocation6 + $0x390] sm:$0xff]  ;;  %v4400_v60 = vld [vmem:[#allocation3 + $0xa0] sm:$0x1]  ;;  %v12038_v11 = vld [vmem:[#allocation3 + $0xe8] sm:$0xff] }
 0x405   :  { %5580 = vmatprep.mubr.f32.mxu0 %v5427_v62  ;;  %7835 = vmatpush3.msra.mxu1 %v9275_v32  ;;  %v11977_v62 = vld [vmem:[#allocation3 + $0x18] sm:$0xff]  ;;  %v5847_v32 = vld [vmem:[#allocation6 + $0x308] sm:$0xff] }
 0x406   :  { %7836 = vmatprep.subr.mxu1 %v9276_v1  ;;  %8063 = vmatprep.subr.mxu0 %v5866_v9  ;;  %v5103_v1 = vrot.slane %v5094_v33, 3  ;;  %v5862_v9 = vld [vmem:[#allocation6 + $0x380] sm:$0xff] }
 0x407   :  { %4809 = vmatmul.mubr.f32.gmra.mxu1 %v11734_v55  ;;  %5581 = vmatmul.mubr.f32.gmra.mxu0 %v5425_v58  ;;  %v5849_v55 = vld [vmem:[#allocation6 + $0x318] sm:$0xff]  ;;  %v5887_v58 = vrot.slane %v11977_v62, 6 }
 0x408   :  { %4813 = vmatprep.mubr.f32.mxu1 %v11761_v46  ;;  %5585 = vmatprep.mubr.f32.mxu0 %v5431_v17  ;;  %v5848_v46 = vld [vmem:[#allocation6 + $0x310] sm:$0xff]  ;;  %v5883_v17 = vrot.slane %v5841_v40, 6  ;;  %v11997_v40 = vld [vmem:[#allocation3 + $0x48] sm:$0xff] }
 0x409   :  { %7837 = vmatpush3.msra.mxu1 %v9277_v22  ;;  %8064 = vmatpush3.msra.mxu0 %v11971_v43  ;;  %v9281_v22 = vld [vmem:[#allocation6 + $0x180] sm:$0xff]  ;;  %v12027_v43 = vld [vmem:[#allocation3 + $0xb8] sm:$0xff] }
 0x40a   :  { %7838 = vmatprep.subr.mxu1 %v9278_v50  ;;  %8065 = vmatprep.subr.mxu0 %v5865_v44  ;;  %v5888_v44 = vsel %vm5882_vm6, %v5886_v26, %v5887_v58 }
 0x40b   :  { %4814 = vmatmul.mubr.f32.gmra.mxu1 %v11754_v13  ;;  %5586 = vmatmul.mubr.f32.gmra.mxu0 %v5429_v24  ;;  %v5107_v13 = vrot.slane %v11977_v62, 3  ;;  %v11983_v24 = vld [vmem:[#allocation3 + $0xd8] sm:$0xff] }
 0x40c   :  { %4817 = vmatprep.mubr.f32.mxu1 %v4401_v34  ;;  %5589 = vmatprep.mubr.f32.mxu0 %v5430_v8  ;;  %v5104_v50 = vrot.slane %v11983_v24, 3  ;;  %v5884_v20 = vrot.slane %v11983_v24, 6 }
 0x40d   :  { %8066 = vmatpush3.msra.mxu0 %v5849_v55  ;;  %7839 = vmatpush3.msra.mxu1 %v9279_v49  ;;  %v5108_v8 = vsel %vm5102_vm5, %v5106_v27, %v5107_v13  ;;  %v11986_v55 = vld [vmem:[#allocation3 + $0x68] sm:$0xff]  ;;  %v11992_v27 = vld [vmem:[#allocation3 + $0x50] sm:$0xff]  ;;  %v5115_v49 = vrot.slane %v11997_v40, 3 }
 0x40e   :  { %8067 = vmatprep.subr.mxu0 %v5864_v25  ;;  %7840 = vmatprep.subr.mxu1 %v9281_v22  ;;  %v5891_v34 = vrot.slane %v11986_v55, 6  ;;  %v9284_v25 = vld [vmem:[#allocation6 + $0x100] sm:$0xff]  ;;  %v5109_v33 = vrot.slane %v11992_v27, 3  ;;  %v5889_v26 = vrot.slane %v11992_v27, 6 }
 0x40f   :  { %8068 = vmatpush3.msra.mxu0 %v5848_v46  ;;  %4818 = vmatmul.mubr.f32.gmra.mxu1 %v4400_v60  ;;  %v5105_v46 = vsel %vm5102_vm5, %v5103_v1, %v5104_v50  ;;  %v9287_v60 = vld [vmem:[#allocation6 + $0x2f8] sm:$0xff]  ;;  %v5895_v1 = vrot.slane %v11997_v40, 6 }
 0x410   :  { %5590 = vmatmul.mubr.f32.gmra.mxu0 %v5428_v48  ;;  %8069 = vmatprep.subr.mxu0 %v5863_v63  ;;  %v5111_v48 = vrot.slane %v11986_v55, 3  ;;  %v5885_v63 = vsel %vm5882_vm6, %v5883_v17, %v5884_v20  ;;  %v5892_v22 = vsel %vm5882_vm6, %v5887_v58, %v5891_v34  ;;  %v5110_v17 = vsel %vm5102_vm5, %v5104_v50, %v5109_v33 }
 0x411   :  { %5255 = vmatprep.mubr.f32.mxu1 %v5108_v8  ;;  %8070 = vmatpush3.msra.mxu0 %v5847_v32  ;;  %v6412_v8 = vld [vmem:[#allocation6 + $0x4f8] sm:$0xff]  ;;  %v5896_v50 = vsel %vm5882_vm6, %v5891_v34, %v5895_v1 }
 0x412   :  { %6035 = vmatprep.mubr.f32.mxu0 %v5888_v44  ;;  %7841 = vmatpush3.msra.mxu1 %v9284_v25  ;;  %v5112_v32 = vsel %vm5102_vm5, %v5107_v13, %v5111_v48  ;;  %v9289_v44 = vld [vmem:[#allocation6 + $0x2f0] sm:$0xff]  ;;  %v5890_v13 = vsel %vm5882_vm6, %v5884_v20, %v5889_v26 }
 0x413   :  { %8071 = vmatprep.subr.mxu0 %v5862_v9  ;;  %5256 = vmatmul.mubr.f32.vlgmr.msra.gmra.mxu1 %v5105_v46  ;;  %v9288_v9 = vld [vmem:[#allocation6 + $0x278] sm:$0xff]  ;;  %v5116_v46 = vsel %vm5102_vm5, %v5111_v48, %v5115_v49  ;;  %v9292_v20 = vld [vmem:[#allocation6 + $0x270] sm:$0xff] }
 0x414   :  { %8072 = vmatpush3.msra.mxu0 %v5846_v12  ;;  %7964 = vmatprep.subr.mxu1 %v9287_v60  ;;  %v12004_v12 = vld [vmem:[#allocation3 + $0x30] sm:$0xff]  ;;  %v12010_v60 = vld [vmem:[#allocation3 + $0x88] sm:$0xff] }
 0x415   :  { %6036 = vmatmul.mubr.f32.vlgmr.msra.gmra.mxu0 %v5885_v63  ;;  %5260 = vmatprep.mubr.f32.mxu1 %v5112_v32  ;;  %v5113_v25 = vrot.slane %v12004_v12, 3  ;;  %v5893_v63 = vrot.slane %v12004_v12, 6  ;;  %v5119_v58 = vrot.slane %v12010_v60, 3  ;;  %v12013_v32 = vld [vmem:[#allocation6 + $0x478] sm:$0xff] }
 0x416   :  { %7965 = vmatpush3.msra.mxu1 %v9288_v9  ;;  %6040 = vmatprep.mubr.f32.mxu0 %v5892_v22  ;;  %13151 = vst [vmem:[#allocation17_spill] sm:$0xff] %v12013_v32  ;;  %v5899_v9 = vrot.slane %v12010_v60, 6  ;;  %v12017_v22 = vld [vmem:[#allocation6 + $0x4f0] sm:$0xff] }
 0x417   :  { %7966 = vmatprep.subr.mxu1 %v9289_v44  ;;  %5261 = vmatmul.mubr.f32.gmra.mxu1 %v5110_v17  ;;  %13152 = vst [vmem:[#allocation35_spill] sm:$0xff] %v12017_v22  ;;  %v5114_v48 = vsel %vm5102_vm5, %v5109_v33, %v5113_v25  ;;  %v9293_v17 = vld [vmem:[#allocation6 + $0x2e8] sm:$0xff]  ;;  %v12020_v44 = vld [vmem:[#allocation3 + $0x80] sm:$0xff]  ;;  %v5894_v34 = vsel %vm5882_vm6, %v5889_v26, %v5893_v63  ;;  %v12031_v33 = vld [vmem:[#allocation6 + $0x470] sm:$0xff] }
 0x418   :  { %8195 = vmatprep.subr.mxu0 %v6412_v8  ;;  %5264 = vmatprep.mubr.f32.mxu1 %v5116_v46  ;;  %v5117_v8 = vrot.slane %v12020_v44, 3  ;;  %v5897_v46 = vrot.slane %v12020_v44, 6  ;;  %13153 = vst [vmem:[#allocation20_spill] sm:$0xff] %v12031_v33  ;;  %v9296_v26 = vld [vmem:[#allocation6 + $0x268] sm:$0xff] }
 0x419   :  { %6041 = vmatmul.mubr.f32.gmra.mxu0 %v5890_v13  ;;  %7967 = vmatpush3.msra.mxu1 %v9292_v20  ;;  %v5120_v13 = vsel %vm5102_vm5, %v5115_v49, %v5119_v58  ;;  %v5900_v20 = vsel %vm5882_vm6, %v5895_v1, %v5899_v9 }
 0x41a   :  { %6044 = vmatprep.mubr.f32.mxu0 %v5896_v50  ;;  %7968 = vmatprep.subr.mxu1 %v9293_v17  ;;  %v5123_v50 = vrot.slane %v12027_v43, 3  ;;  %v12035_v17 = vld [vmem:[#allocation6 + $0x4e8] sm:$0xff]  ;;  %v5118_v49 = vsel %vm5102_vm5, %v5113_v25, %v5117_v8  ;;  %v5898_v1 = vsel %vm5882_vm6, %v5893_v63, %v5897_v46  ;;  %v9300_v63 = vld [vmem:[#allocation6 + $0x260] sm:$0xff] }
 0x41b   :  { %8196 = vmatpush3.msra.mxu0 %v12013_v32  ;;  %5265 = vmatmul.mubr.f32.gmra.mxu1 %v5114_v48  ;;  %v5903_v48 = vrot.slane %v12027_v43, 6  ;;  %13154 = vst [vmem:[#allocation41_spill] sm:$0xff] %v12035_v17  ;;  %v9297_v32 = vld [vmem:[#allocation6 + $0x2e0] sm:$0xff] }
 0x41c   :  { %8197 = vmatprep.subr.mxu0 %v12017_v22  ;;  %5269 = vmatprep.mubr.f32.mxu1 %v5120_v13  ;;  %v5121_v22 = vrot.slane %v12038_v11, 3  ;;  %v5901_v13 = vrot.slane %v12038_v11, 6 }
 0x41d   :  { %6045 = vmatmul.mubr.f32.gmra.mxu0 %v5894_v34  ;;  %7969 = vmatpush3.msra.mxu1 %v9296_v26  ;;  %v5124_v34 = vsel %vm5102_vm5, %v5119_v58, %v5123_v50  ;;  %v5904_v25 = vsel %vm5882_vm6, %v5899_v9, %v5903_v48  ;;  %v9301_v58 = vld [vmem:[#allocation6 + $0x2d8] sm:$0xff] }
 0x41e   :  { %6049 = vmatprep.mubr.f32.mxu0 %v5900_v20  ;;  %7970 = vmatprep.subr.mxu1 %v9297_v32  ;;  %v12046_v20 = vld [vmem:[#allocation6 + $0x468] sm:$0xff]  ;;  %v12049_v32 = vld [vmem:[#allocation3 + $0xf0] sm:$0xff]  ;;  %v5902_v9 = vsel %vm5882_vm6, %v5897_v46, %v5901_v13  ;;  %v12071_v46 = vld [vmem:[#allocation6 + $0x4d8] sm:$0xff] }
 0x41f   :  { %8198 = vmatpush3.msra.mxu0 %v12031_v33  ;;  %5270 = vmatmul.mubr.f32.gmra.mxu1 %v5118_v49  ;;  %13155 = vst [vmem:[#allocation18_spill] sm:$0xff] %v12046_v20  ;;  %v5127_v26 = vrot.slane %v12049_v32, 3  ;;  %v5907_v49 = vrot.slane %v12049_v32, 6  ;;  %v12053_v33 = vld [vmem:[#allocation6 + $0x4e0] sm:$0xff]  ;;  %13158 = vst [vmem:[#allocation37_spill] sm:$0xff] %v12071_v46 }
 0x420   :  { %8199 = vmatprep.subr.mxu0 %v12035_v17  ;;  %5273 = vmatprep.mubr.f32.mxu1 %v5124_v34  ;;  %13156 = vst [vmem:[#allocation13_spill] sm:$0xff] %v12053_v33  ;;  %v5122_v17 = vsel %vm5102_vm5, %v5117_v8, %v5121_v22  ;;  %v5905_v34 = vrot.slane %v12056_v41, 6 }
 0x421   :  { %6050 = vmatmul.mubr.f32.gmra.mxu0 %v5898_v1  ;;  %7971 = vmatpush3.msra.mxu1 %v9300_v63  ;;  %v5125_v1 = vrot.slane %v12056_v41, 3  ;;  %v5128_v8 = vsel %vm5102_vm5, %v5123_v50, %v5127_v26  ;;  %v5908_v63 = vsel %vm5882_vm6, %v5903_v48, %v5907_v49 }
 0x422   :  { %6053 = vmatprep.mubr.f32.mxu0 %v5904_v25  ;;  %7972 = vmatprep.subr.mxu1 %v9301_v58  ;;  %v9303_v25 = vld [vmem:[#allocation6 + $0x258] sm:$0xff]  ;;  %v5906_v48 = vsel %vm5882_vm6, %v5901_v13, %v5905_v34  ;;  %v12089_v13 = vld [vmem:[#allocation6 + $0x4d0] sm:$0xff] }
 0x423   :  { %8200 = vmatpush3.msra.mxu0 %v12046_v20  ;;  %5274 = vmatmul.mubr.f32.gmra.mxu1 %v5122_v17  ;;  %v12067_v58 = vld [vmem:[#allocation3 + $0x78] sm:$0xff]  ;;  %v5126_v19 = vsel %vm5102_vm5, %v5121_v22, %v5125_v1  ;;  %13160 = vst [vmem:[#allocation23_spill] sm:$0xff] %v12089_v13 }
 0x424   :  { %8201 = vmatprep.subr.mxu0 %v12053_v33  ;;  %7973 = vmatpush3.msra.mxu1 %v9303_v25  ;;  %v5131_v20 = vrot.slane %v12067_v58, 3  ;;  %v5911_v17 = vrot.slane %v12067_v58, 6  ;;  %v9305_v33 = vld [vmem:[#allocation6 + $0x2d0] sm:$0xff]  ;;  %v12074_v25 = vld [vmem:[#allocation3 + $0x8] sm:$0xff] }
 0x425   :  { %6054 = vmatmul.mubr.f32.gmra.mxu0 %v5902_v9  ;;  %5278 = vmatprep.mubr.f32.mxu1 %v5128_v8  ;;  %v5129_v50 = vrot.slane %v12074_v25, 3  ;;  %v5909_v9 = vrot.slane %v12074_v25, 6  ;;  %v9307_v8 = vld [vmem:[#allocation6 + $0x250] sm:$0xff] }
 0x426   :  { %6058 = vmatprep.mubr.f32.mxu0 %v5908_v63  ;;  %7974 = vmatprep.subr.mxu1 %v9305_v33  ;;  %v5132_v22 = vsel %vm5102_vm5, %v5127_v26, %v5131_v20  ;;  %v5912_v33 = vsel %vm5882_vm6, %v5907_v49, %v5911_v17  ;;  %v12085_v63 = vld [vmem:[#allocation3 + $0x58] sm:$0xff] }
 0x427   :  { %8202 = vmatpush3.msra.mxu0 %v12063_v39  ;;  %5279 = vmatmul.mubr.f32.gmra.mxu1 %v5126_v19  ;;  %v5135_v39 = vrot.slane %v12085_v63, 3  ;;  %v5915_v19 = vrot.slane %v12085_v63, 6  ;;  %v5130_v5 = vsel %vm5102_vm5, %v5125_v1, %v5129_v50  ;;  %v5910_v49 = vsel %vm5882_vm6, %v5905_v34, %v5909_v9  ;;  %v12108_v34 = vld [vmem:[#allocation6 + $0x4c8] sm:$0xff] }
 0x428   :  { %8203 = vmatprep.subr.mxu0 %v12071_v46  ;;  %7975 = vmatpush3.msra.mxu1 %v9307_v8  ;;  %v9309_v46 = vld [vmem:[#allocation6 + $0x2c8] sm:$0xff]  ;;  %v12092_v8 = vld [vmem:[#allocation3 + $0x38] sm:$0xff]  ;;  %13163 = vst [vmem:[#allocation22_spill] sm:$0xff] %v12108_v34 }
 0x429   :  { %6059 = vmatmul.mubr.f32.gmra.mxu0 %v5906_v48  ;;  %5282 = vmatprep.mubr.f32.mxu1 %v5132_v22  ;;  %v5133_v26 = vrot.slane %v12092_v8, 3  ;;  %v5913_v48 = vrot.slane %v12092_v8, 6  ;;  %v5136_v1 = vsel %vm5102_vm5, %v5131_v20, %v5135_v39  ;;  %v12104_v22 = vld [vmem:[#allocation3 + $0xc8] sm:$0xff]  ;;  %v12113_v20 = vld [vmem:[#allocation3 + $0x40] sm:$0xff] }
 0x42a   :  { %6062 = vmatprep.mubr.f32.mxu0 %v5912_v33  ;;  %7976 = vmatprep.subr.mxu1 %v9309_v46  ;;  %v5916_v46 = vsel %vm5882_vm6, %v5911_v17, %v5915_v19  ;;  %13162 = vst [vmem:[#allocation10_spill] sm:$0xff] %v12104_v22  ;;  %v5139_v33 = vrot.slane %v12104_v22, 3  ;;  %v5137_v17 = vrot.slane %v12113_v20, 3 }
 0x42b   :  { %8204 = vmatpush3.msra.mxu0 %v12081_v35  ;;  %5283 = vmatmul.mubr.f32.gmra.mxu1 %v5130_v5  ;;  %v5919_v5 = vrot.slane %v12104_v22, 6  ;;  %v5134_v35 = vsel %vm5102_vm5, %v5129_v50, %v5133_v26  ;;  %v12118_v22 = vld [vmem:[#allocation6 + $0x448] sm:$0xff] }
 0x42c   :  { %8205 = vmatprep.subr.mxu0 %v12089_v13  ;;  %7977 = vmatpush3.msra.mxu1 %v11707_v14  ;;  %v9312_v13 = vld [vmem:[#allocation6 + $0x2c0] sm:$0xff]  ;;  %v5914_v14 = vsel %vm5882_vm6, %v5909_v9, %v5913_v48  ;;  %13164 = vst [vmem:[#allocation36_spill] sm:$0xff] %v12118_v22  ;;  %v5140_v50 = vsel %vm5102_vm5, %v5135_v39, %v5139_v33 }
 0x42d   :  { %6063 = vmatmul.mubr.f32.gmra.mxu0 %v5910_v49  ;;  %5287 = vmatprep.mubr.f32.mxu1 %v5136_v1  ;;  %v5917_v49 = vrot.slane %v12113_v20, 6 }
 0x42e   :  { %6067 = vmatprep.mubr.f32.mxu0 %v5916_v46  ;;  %7978 = vmatprep.subr.mxu1 %v9312_v13  ;;  %v5920_v13 = vsel %vm5882_vm6, %v5915_v19, %v5919_v5  ;;  %v12127_v46 = vld [vmem:[#allocation6 + $0x4c0] sm:$0xff] }
 0x42f   :  { %8206 = vmatpush3.msra.mxu0 %v12099_v3  ;;  %5288 = vmatmul.mubr.f32.gmra.mxu1 %v5134_v35  ;;  %v12123_v35 = vld [vmem:[#allocation3 + $0x90] sm:$0xff]  ;;  %13165 = vst [vmem:[#allocation42_spill] sm:$0xff] %v12127_v46  ;;  %v5918_v39 = vsel %vm5882_vm6, %v5913_v48, %v5917_v49  ;;  %v12134_v19 = vld [vmem:[#allocation3 + $0xe0] sm:$0xff]  ;;  %v5097_v3 = vld [vmem:[#allocation3 + $0xf8] sm:$0xf] }
 0x430   :  { %8207 = vmatprep.subr.mxu0 %v12108_v34  ;;  %7979 = vmatpush3.msra.mxu1 %v11732_v61  ;;  %v5143_v9 = vrot.slane %v12123_v35, 3  ;;  %v5923_v1 = vrot.slane %v12123_v35, 6  ;;  %v5138_v61 = vsel %vm5102_vm5, %v5133_v26, %v5137_v17  ;;  %v5921_v34 = vrot.slane %v12134_v19, 6 }
 0x431   :  { %6068 = vmatmul.mubr.f32.gmra.mxu0 %v5914_v14  ;;  %5291 = vmatprep.mubr.f32.mxu1 %v5140_v50  ;;  %v5141_v14 = vrot.slane %v12134_v19, 3  ;;  %v12139_v50 = vld [vmem:[#allocation6 + $0x440] sm:$0xff] }
 0x432   :  { %6071 = vmatprep.mubr.f32.mxu0 %v5920_v13  ;;  %7980 = vmatprep.subr.mxu1 %v11738_v7  ;;  %13166 = vst [vmem:[#allocation27_spill] sm:$0xff] %v12139_v50  ;;  %v5144_v7 = vsel %vm5102_vm5, %v5139_v33, %v5143_v9  ;;  %v12143_v13 = vld [vmem:[#allocation3 + $0xc0] sm:$0xff] }
 0x433   :  { %8208 = vmatpush3.msra.mxu0 %v12118_v22  ;;  %7981 = vmatpush3.msra.mxu1 %v11752_v38  ;;  %v5924_v38 = vsel %vm5882_vm6, %v5919_v5, %v5923_v1  ;;  %v5147_v26 = vrot.slane %v12143_v13, 3  ;;  %v5927_v48 = vrot.slane %v12143_v13, 6  ;;  %v12147_v22 = vld [vmem:[#allocation6 + $0x4b8] sm:$0xff]  ;;  %v5142_v33 = vsel %vm5102_vm5, %v5137_v17, %v5141_v14 }
 0x434   :  { %8209 = vmatprep.subr.mxu0 %v12127_v46  ;;  %5292 = vmatmul.mubr.f32.gmra.mxu1 %v5138_v61  ;;  %13167 = vst [vmem:[#allocation38_spill] sm:$0xff] %v12147_v22  ;;  %v5922_v5 = vsel %vm5882_vm6, %v5917_v49, %v5921_v34  ;;  %v12154_v61 = vld [vmem:[#allocation3 + $0x70] sm:$0xff] }
 0x435   :  { %6072 = vmatmul.mubr.f32.gmra.mxu0 %v5918_v39  ;;  %5296 = vmatprep.mubr.f32.mxu1 %v5144_v7  ;;  %v5145_v39 = vrot.slane %v12154_v61, 3  ;;  %v5925_v46 = vrot.slane %v12154_v61, 6  ;;  %v12159_v7 = vld [vmem:[#allocation6 + $0x438] sm:$0xff] }
 0x436   :  { %6076 = vmatprep.mubr.f32.mxu0 %v5924_v38  ;;  %7982 = vmatprep.subr.mxu1 %v11758_v29  ;;  %13168 = vst [vmem:[#allocation44_spill] sm:$0xff] %v12159_v7  ;;  %v5148_v29 = vsel %vm5102_vm5, %v5143_v9, %v5147_v26  ;;  %v12163_v38 = vld [vmem:[#allocation3 + $0xd0] sm:$0xff] }
 0x437   :  { %8210 = vmatpush3.msra.mxu0 %v12139_v50  ;;  %7983 = vmatpush3.msra.mxu1 %v11771_v56  ;;  %v5928_v56 = vsel %vm5882_vm6, %v5923_v1, %v5927_v48  ;;  %v5151_v17 = vrot.slane %v12163_v38, 3  ;;  %v5931_v49 = vrot.slane %v12163_v38, 6  ;;  %v12167_v50 = vld [vmem:[#allocation6 + $0x4b0] sm:$0xff]  ;;  %v5146_v9 = vsel %vm5102_vm5, %v5141_v14, %v5145_v39  ;;  %v12186_v14 = vld [vmem:[#allocation6 + $0x4a8] sm:$0xff] }
 0x438   :  { %8211 = vmatprep.subr.mxu0 %v12147_v22  ;;  %5297 = vmatmul.mubr.f32.gmra.mxu1 %v5142_v33  ;;  %13169 = vst [vmem:[#allocation43_spill] sm:$0xff] %v12167_v50  ;;  %v5926_v1 = vsel %vm5882_vm6, %v5921_v34, %v5925_v46  ;;  %v12174_v33 = vld [vmem:[#allocation3 + $0xa8] sm:$0xff]  ;;  %13172 = vst [vmem:[#allocation28_spill] sm:$0xff] %v12186_v14 }
 0x439   :  { %6077 = vmatmul.mubr.f32.gmra.mxu0 %v5922_v5  ;;  %5300 = vmatprep.mubr.f32.mxu1 %v5148_v29  ;;  %v5149_v5 = vrot.slane %v12174_v33, 3  ;;  %v5929_v22 = vrot.slane %v12174_v33, 6  ;;  %v12179_v29 = vld [vmem:[#allocation6 + $0x430] sm:$0xff] }
 0x43a   :  { %6080 = vmatprep.mubr.f32.mxu0 %v5928_v56  ;;  %7984 = vmatprep.subr.mxu1 %v11776_v6  ;;  %13170 = vst [vmem:[#allocation45_spill] sm:$0xff] %v12179_v29  ;;  %v5152_v6 = vsel %vm5102_vm5, %v5147_v26, %v5151_v17  ;;  %v12183_v56 = vld [vmem:[#allocation3 + $0x28] sm:$0xff] }
 0x43b   :  { %8212 = vmatpush3.msra.mxu0 %v12159_v7  ;;  %7985 = vmatpush3.msra.mxu1 %v11784_v15  ;;  %v5932_v15 = vsel %vm5882_vm6, %v5927_v48, %v5931_v49  ;;  %13171 = vst [vmem:[#allocation46_spill] sm:$0xff] %v12183_v56  ;;  %v5155_v34 = vrot.slane %v12183_v56, 3  ;;  %v5935_v7 = vrot.slane %v12183_v56, 6  ;;  %v5150_v26 = vsel %vm5102_vm5, %v5145_v39, %v5149_v5  ;;  %v5096_v56 = vld [vmem:[#allocation3 + $0xa0] sm:$0xf] }
 0x43c   :  { %8213 = vmatprep.subr.mxu0 %v12167_v50  ;;  %5301 = vmatmul.mubr.f32.gmra.mxu1 %v5146_v9  ;;  %v5844_v50 = vld [vmem:[#allocation3 + $0xf8] sm:$0x7f]  ;;  %v5930_v48 = vsel %vm5882_vm6, %v5925_v46, %v5929_v22  ;;  %v12194_v9 = vld [vmem:[#allocation3 + $0x10] sm:$0xff]  ;;  %v5843_v39 = vld [vmem:[#allocation3 + $0xa0] sm:$0x7f] }
 0x43d   :  { %6081 = vmatmul.mubr.f32.gmra.mxu0 %v5926_v1  ;;  %5305 = vmatprep.mubr.f32.mxu1 %v5152_v6  ;;  %13173 = vst [vmem:[#allocation24_spill] sm:$0xff] %v12194_v9  ;;  %v5153_v1 = vrot.slane %v12194_v9, 3  ;;  %v5933_v6 = vrot.slane %v12194_v9, 6  ;;  %v5936_v46 = vsel %vm5882_vm6, %v5931_v49, %v5935_v7 }
 0x43e   :  { %6085 = vmatprep.mubr.f32.mxu0 %v5932_v15  ;;  %7986 = vmatprep.subr.mxu1 %v11792_v59  ;;  %v12199_v15 = vld [vmem:[#allocation6 + $0x428] sm:$0xff]  ;;  %v5156_v59 = vsel %vm5102_vm5, %v5151_v17, %v5155_v34  ;;  %v5937_v17 = vrot.slane %v5843_v39, 6 }
 0x43f   :  { %8214 = vmatpush3.msra.mxu0 %v12179_v29  ;;  %7987 = vmatpush3.msra.mxu1 %v11798_v54  ;;  %v5159_v29 = vrot.slane %v5097_v3, 3  ;;  %v5939_v54 = vrot.slane %v5844_v50, 6  ;;  %v5934_v9 = vsel %vm5882_vm6, %v5929_v22, %v5933_v6  ;;  %v12209_v3 = vld [vmem:[#allocation6 + $0x4a0] sm:$0xff]  ;;  %v5157_v50 = vrot.slane %v5096_v56, 3  ;;  %v12225_v56 = vld [vmem:[#allocation6 + $0x490] sm:$0xff] }
 0x440   :  { %8215 = vmatprep.subr.mxu0 %v12186_v14  ;;  %5306 = vmatmul.mubr.f32.gmra.mxu1 %v5150_v26  ;;  %v5154_v14 = vsel %vm5102_vm5, %v5149_v5, %v5153_v1  ;;  %v12213_v26 = vld [vmem:[#allocation6 + $0x420] sm:$0xff]  ;;  %v5938_v5 = vsel %vm5882_vm6, %v5933_v6, %v5937_v17 }
 0x441   :  { %6086 = vmatmul.mubr.f32.gmra.mxu0 %v5930_v48  ;;  %5309 = vmatprep.mubr.f32.mxu1 %v5156_v59  ;;  %v5940_v49 = vsel %vm5882_vm6, %v5935_v7, %v5939_v54  ;;  %v5158_v22 = vsel %vm5102_vm5, %v5153_v1, %v5157_v50  ;;  %v12223_v7 = vld [vmem:[#allocation6 + $0x418] sm:$0xff]  ;;  %v12231_v48 = vld [vmem:[#allocation6 + $0x488] sm:$0xff]  ;;  %v12241_v6 = vld [vmem:[#allocation6 + $0x480] sm:$0xff] }
 0x442   :  { %7988 = vmatprep.subr.mxu1 %v11802_v10  ;;  %6089 = vmatprep.mubr.f32.mxu0 %v5936_v46  ;;  %v5160_v10 = vsel %vm5102_vm5, %v5155_v34, %v5159_v29  ;;  %v12244_v59 = vld [vmem:[#allocation6 + $0x400] sm:$0xff]  ;;  %v5618_v46 = vrot.slane %v11992_v27, 5  ;;  %v5622_v27 = vrot.slane %v12004_v12, 5 }
 0x443   :  { %7989 = vmatpush3.msra.mxu1 %v11804_v52  ;;  %8216 = vmatpush3.msra.mxu0 %v12199_v15  ;;  %v12217_v52 = vld [vmem:[#allocation6 + $0x498] sm:$0xff] }
 0x444   :  { %7990 = vmatprep.subr.mxu1 %v11807_v57  ;;  %5310 = vmatmul.mubr.f32.gmra.mxu1 %v5154_v14  ;;  %v5604_v57 = vld [vmem:[#allocation3] sm:$0xe0]  ;;  %v5603_v14 = vld [vmem:[#allocation3 + $0xb0] sm:$0xe0]  ;;  %v5623_v12 = vsel %vm5611_vm7, %v5618_v46, %v5622_v27 }
 0x445   :  { %6090 = vmatmul.mubr.f32.gmra.mxu0 %v5934_v9  ;;  %5314 = vmatprep.mubr.f32.mxu1 %v5160_v10  ;;  %v5615_v34 = vrot.slane %v5604_v57, 5  ;;  %v5612_v9 = vrot.slane %v5603_v14, 5  ;;  %v12283_v14 = vld [vmem:[#allocation3 + $0x88] sm:$0xff] }
 0x446   :  { %6094 = vmatprep.mubr.f32.mxu0 %v5940_v49  ;;  %7991 = vmatpush3.msra.mxu1 %v11809_v18  ;;  %v12228_v18 = vld [vmem:[#allocation6 + $0x410] sm:$0xff]  ;;  %v5626_v49 = vrot.slane %v12020_v44, 5  ;;  %13175 = vst [vmem:[#allocation26_spill] sm:$0xff] %v12283_v14 }
 0x447   :  { %8217 = vmatprep.subr.mxu0 %v12209_v3  ;;  %7992 = vmatprep.subr.mxu1 %v11825_v2  ;;  %v5616_v2 = vrot.slane %v11977_v62, 5  ;;  %v5613_v62 = vrot.slane %v11983_v24, 5 }
 0x448   :  { %8218 = vmatpush3.msra.mxu0 %v12213_v26  ;;  %5315 = vmatmul.mubr.f32.gmra.mxu1 %v5158_v22 }
 0x449   :  { %6095 = vmatmul.mubr.f32.gmra.mxu0 %v5938_v5  ;;  %8219 = vmatprep.subr.mxu0 %v12217_v52  ;;  %v5617_v1 = vsel %vm5611_vm7, %v5615_v34, %v5616_v2  ;;  %v5614_v39 = vsel %vm5611_vm7, %v5612_v9, %v5613_v62  ;;  %v5632_v5 = vrot.slane %v12027_v43, 5  ;;  %v5627_v9 = vsel %vm5611_vm7, %v5622_v27, %v5626_v49 }
 0x44a   :  { %5318 = vmatprep.mubr.f32.mxu1 %v5159_v29  ;;  %6098 = vmatprep.mubr.f32.mxu0 %v5939_v54  ;;  %v12237_v29 = vld [vmem:[#allocation6 + $0x408] sm:$0xff]  ;;  %v5620_v54 = vrot.slane %v11986_v55, 5  ;;  %v5619_v55 = vsel %vm5611_vm7, %v5613_v62, %v5618_v46  ;;  %v5630_v43 = vrot.slane %v12038_v11, 5 }
 0x44b   :  { %8220 = vmatpush3.msra.mxu0 %v12223_v7  ;;  %7993 = vmatpush3.msra.mxu1 %v11827_v42  ;;  %v6351_v42 = vld [vmem:[#allocation3 + $0x18] sm:$0xff] }
 0x44c   :  { %8221 = vmatprep.subr.mxu0 %v12225_v56  ;;  %5319 = vmatmul.mubr.f32.gmra.mxu1 %v5157_v50  ;;  %v5624_v50 = vrot.slane %v11997_v40, 5  ;;  %v5621_v24 = vsel %vm5611_vm7, %v5616_v2, %v5620_v54  ;;  %v12264_v40 = vld [vmem:[#allocation3 + $0x50] sm:$0xff]  ;;  %v5631_v11 = vsel %vm5611_vm7, %v5626_v49, %v5630_v43  ;;  %v12320_v49 = vld [vmem:[#allocation3 + $0x60] sm:$0xff] }
 0x44d   :  { %8222 = vmatpush3.msra.mxu0 %v12228_v18  ;;  %7994 = vmatprep.subr.mxu1 %v11832_v47  ;;  %v6350_v47 = vld [vmem:[#allocation3 + $0xd8] sm:$0xff]  ;;  %13180 = vst [vmem:[#allocation53_spill] sm:$0xff] %v12320_v49 }
 0x44e   :  { %6099 = vmatmul.mubr.f32.gmra.mxu0 %v5937_v17  ;;  %8223 = vmatprep.subr.mxu0 %v12231_v48  ;;  %v5628_v17 = vrot.slane %v12010_v60, 5  ;;  %v12276_v60 = vld [vmem:[#allocation3 + $0x30] sm:$0xff] }
 0x44f   :  { %5764 = vmatprep.mubr.f32.mxu1 %v5617_v1  ;;  %8224 = vmatpush3.msra.mxu0 %v12237_v29  ;;  %13174 = vst [vmem:[#allocation12_spill] sm:$0xff] %v12276_v60 }
 0x450   :  { %6477 = vmatprep.mubr.f32.mxu0 %v6351_v42  ;;  %7995 = vmatpush3.msra.mxu1 %v11835_v30  ;;  %v12258_v30 = vld [vmem:[#allocation3 + $0x68] sm:$0xff]  ;;  %v5629_v22 = vsel %vm5611_vm7, %v5624_v50, %v5628_v17  ;;  %v12292_v42 = vld [vmem:[#allocation3 + $0x80] sm:$0xff]  ;;  %v5633_v62 = vsel %vm5611_vm7, %v5628_v17, %v5632_v5 }
 0x451   :  { %8225 = vmatprep.subr.mxu0 %v12241_v6  ;;  %5765 = vmatmul.mubr.f32.vlgmr.msra.gmra.mxu1 %v5614_v39  ;;  %13176 = vst [vmem:[#allocation48_spill] sm:$0xff] %v12292_v42  ;;  %v5636_v39 = vrot.slane %v12049_v32, 5 }
 0x452   :  { %8226 = vmatpush3.msra.mxu0 %v12244_v59  ;;  %8118 = vmatprep.subr.mxu1 %v11844_v21  ;;  %v5625_v21 = vsel %vm5611_vm7, %v5620_v54, %v5624_v50 }
 0x453   :  { %6478 = vmatmul.mubr.f32.vlgmr.msra.gmra.mxu0 %v6350_v47  ;;  %5769 = vmatprep.mubr.f32.mxu1 %v5621_v24  ;;  %v5634_v47 = vrot.slane %v12056_v41, 5  ;;  %v12304_v24 = vld [vmem:[#allocation3 + $0xe8] sm:$0xff] }
 0x454   :  { %8119 = vmatpush3.msra.mxu1 %v11851_v45  ;;  %6482 = vmatprep.mubr.f32.mxu0 %v12258_v30  ;;  %v12269_v45 = vld [vmem:[#allocation3 + $0x48] sm:$0xff]  ;;  %13178 = vst [vmem:[#allocation47_spill] sm:$0xff] %v12304_v24 }
 0x455   :  { %8120 = vmatprep.subr.mxu1 %v11856_v16  ;;  %5770 = vmatmul.mubr.f32.gmra.mxu1 %v5619_v55 }
 0x456   :  { %5773 = vmatprep.mubr.f32.mxu1 %v5625_v21  ;;  %v7611_v10 = vpop.f32.mrf.mxu1  ;;  %8121 = vmatpush3.msra.mxu1 %v11863_v4  ;;  %v12311_v21 = vld [vmem:[#allocation3 + $0xf0] sm:$0xff] }
 0x457   :  { %6483 = vmatmul.mubr.f32.gmra.mxu0 %v12264_v40  ;;  %v7765_v16 = vpop.f32.mrf.mxu0  ;;  %8122 = vmatprep.subr.mxu1 %v11868_v23  ;;  %13179 = vst [vmem:[#allocation50_spill] sm:$0xff] %v12311_v21 }
 0x458   :  { %6486 = vmatprep.mubr.f32.mxu0 %v12269_v45  ;;  %v7612_v57 = vpop.f32.mrf.mxu1  ;;  %8123 = vmatpush3.msra.mxu1 %v11875_v37  ;;  %v12296_v37 = vld [vmem:[#allocation3 + $0xb8] sm:$0xff] }
 0x459   :  { %5774 = vmatmul.mubr.f32.gmra.mxu1 %v5623_v12  ;;  %v12280_v34 = vadd.f32 %v7612_v57, %v7611_v10  ;;  %v7766_v4 = vpop.f32.mrf.mxu0  ;;  %8124 = vmatprep.subr.mxu1 %v11880_v51  ;;  %13177 = vst [vmem:[#allocation49_spill] sm:$0xff] %v12296_v37 }
 0x45a   :  { %5778 = vmatprep.mubr.f32.mxu1 %v5629_v22  ;;  %v12285_v2 = vadd.f32 %v7766_v4, %v7765_v16  ;;  %v7614_v23 = vpop.f32.mrf.mxu1  ;;  %8125 = vmatpush3.msra.mxu1 %v11887_v36  ;;  %v5637_v36 = vsel %vm5611_vm7, %v5632_v5, %v5636_v39  ;;  %v5635_v16 = vsel %vm5611_vm7, %v5630_v43, %v5634_v47  ;;  %v12325_v5 = vld [vmem:[#allocation3 + $0x78] sm:$0xff]  ;;  %v5644_v4 = vrot.slane %v12085_v63, 5  ;;  %v12334_v43 = vld [vmem:[#allocation3 + $0x8] sm:$0xff] }
 0x45b   :  { %6487 = vmatmul.mubr.f32.gmra.mxu0 %v12276_v60  ;;  %v7768_v44 = vpop.f32.mrf.mxu0  ;;  %8126 = vmatprep.subr.mxu1 %v11892_v0  ;;  %v5640_v0 = vrot.slane %v12067_v58, 5  ;;  %13181 = vst [vmem:[#allocation51_spill] sm:$0xff] %v12325_v5  ;;  %v13182_v23 = vld [vmem:[#allocation40_spill] sm:$0xff]  ;;  %13183 = vst [vmem:[#allocation52_spill] sm:$0xff] %v12334_v43  ;;  %v13216_v60 = vld [vmem:[#allocation37_spill] sm:$0xff] }
 0x45c   :  { %6491 = vmatprep.mubr.f32.mxu0 %v12283_v14  ;;  %v7615_v1 = vpop.f32.mrf.mxu1  ;;  %8127 = vmatpush3.msra.mxu1 %v11899_v28  ;;  %v5638_v28 = vrot.slane %v12074_v25, 5  ;;  %v9337_v14 = vld [vmem:[#allocation6 + $0x4f8] sm:$0xff] }
 0x45d   :  { %5779 = vmatmul.mubr.f32.gmra.mxu1 %v5627_v9  ;;  %v7769_v54 = vpop.f32.mrf.mxu0  ;;  %8128 = vmatprep.subr.mxu1 %v11904_v31  ;;  %v5641_v22 = vsel %vm5611_vm7, %v5636_v39, %v5640_v0  ;;  %v5645_v39 = vsel %vm5611_vm7, %v5640_v0, %v5644_v4 }
 0x45e   :  { %5782 = vmatprep.mubr.f32.mxu1 %v5633_v62  ;;  %v7617_v46 = vpop.f32.mrf.mxu1  ;;  %8129 = vmatpush3.msra.mxu1 %v11911_v53  ;;  %v5639_v44 = vsel %vm5611_vm7, %v5634_v47, %v5638_v28  ;;  %v5642_v53 = vrot.slane %v12092_v8, 5  ;;  %v13184_v54 = vld [vmem:[#allocation31_spill] sm:$0xff] }
 0x45f   :  { %6492 = vmatmul.mubr.f32.gmra.mxu0 %v12292_v42  ;;  %v7771_v51 = vpop.f32.mrf.mxu0  ;;  %8130 = vmatprep.subr.mxu1 %v13182_v23 }
 0x460   :  { %6495 = vmatprep.mubr.f32.mxu0 %v12296_v37  ;;  %v7618_v50 = vpop.f32.mrf.mxu1  ;;  %8131 = vmatpush3.msra.mxu1 %v13184_v54  ;;  %v13191_v54 = vld [vmem:[#allocation11_spill] sm:$0xff] }
 0x461   :  { %5783 = vmatmul.mubr.f32.gmra.mxu1 %v5631_v11  ;;  %v12306_v55 = vadd.f32 %v7618_v50, %v7617_v46  ;;  %v7772_v27 = vpop.f32.mrf.mxu0  ;;  %v12343_v46 = vld [vmem:[#allocation3 + $0x58] sm:$0xff] }
 0x462   :  { %v12314_v17 = vadd.f32 %v7772_v27, %v7771_v51  ;;  %v7620_v41 = vpop.f32.mrf.mxu1  ;;  %5787 = vmatprep.mubr.f32.mxu1 %v5637_v36  ;;  %13185 = vst [vmem:[#allocation56_spill] sm:$0xff] %v12343_v46  ;;  %v13186_v51 = vld [vmem:[#allocation10_spill] sm:$0xff]  ;;  %v5643_v36 = vsel %vm5611_vm7, %v5638_v28, %v5642_v53 }
 0x463   :  { %6496 = vmatmul.mubr.f32.gmra.mxu0 %v12304_v24  ;;  %v7774_v10 = vpop.f32.mrf.mxu0  ;;  %v5648_v11 = vrot.slane %v13186_v51, 5  ;;  %v13187_v27 = vld [vmem:[#allocation30_spill] sm:$0xff] }
 0x464   :  { %6500 = vmatprep.mubr.f32.mxu0 %v12311_v21  ;;  %v7621_v12 = vpop.f32.mrf.mxu1  ;;  %8132 = vmatprep.subr.mxu1 %v13187_v27  ;;  %v12349_v10 = vld [vmem:[#allocation3 + $0x38] sm:$0xff]  ;;  %v6378_v21 = vld [vmem:[#allocation3 + $0x20] sm:$0x1] }
 0x465   :  { %5788 = vmatmul.mubr.f32.gmra.mxu1 %v5635_v16  ;;  %v7775_v57 = vpop.f32.mrf.mxu0  ;;  %13188 = vst [vmem:[#allocation59_spill] sm:$0xff] %v12349_v10  ;;  %v5646_v16 = vrot.slane %v12113_v20, 5  ;;  %v13189_v12 = vld [vmem:[#allocation25_spill] sm:$0xff]  ;;  %v9333_v24 = vld [vmem:[#allocation6 + $0x380] sm:$0xff] }
 0x466   :  { %v7623_v31 = vpop.f32.mrf.mxu1  ;;  %5791 = vmatprep.mubr.f32.mxu1 %v5641_v22  ;;  %8133 = vmatpush3.msra.mxu1 %v13189_v12  ;;  %v5649_v57 = vsel %vm5611_vm7, %v5644_v4, %v5648_v11  ;;  %v12355_v22 = vld [vmem:[#allocation3 + $0xc8] sm:$0xff]  ;;  %v5650_v4 = vrot.slane %v12134_v19, 5 }
 0x467   :  { %6501 = vmatmul.mubr.f32.gmra.mxu0 %v12320_v49  ;;  %v12329_v25 = vpop.f32.mrf.mxu0  ;;  %13190 = vst [vmem:[#allocation62_spill] sm:$0xff] %v12355_v22  ;;  %v6113_v49 = vld [vmem:[#allocation3] sm:$0x80] }
 0x468   :  { %6504 = vmatprep.mubr.f32.mxu0 %v12325_v5  ;;  %v7624_v9 = vpop.f32.mrf.mxu1 }
 0x469   :  { %5792 = vmatmul.mubr.f32.gmra.mxu1 %v5639_v44  ;;  %v12336_v1 = vadd.f32 %v7624_v9, %v7623_v31  ;;  %v12338_v62 = vpop.f32.mrf.mxu0  ;;  %v5652_v31 = vrot.slane %v12123_v35, 5  ;;  %v9322_v44 = vld [vmem:[#allocation6 + $0x3b8] sm:$0xff] }
 0x46a   :  { %v7626_v47 = vpop.f32.mrf.mxu1  ;;  %5796 = vmatprep.mubr.f32.mxu1 %v5645_v39  ;;  %8134 = vmatprep.subr.mxu1 %v9322_v44  ;;  %v5647_v39 = vsel %vm5611_vm7, %v5642_v53, %v5646_v16  ;;  %v9323_v44 = vld [vmem:[#allocation6 + $0x3b0] sm:$0xff] }
 0x46b   :  { %6505 = vmatmul.mubr.f32.gmra.mxu0 %v12334_v43  ;;  %v7780_v50 = vpop.f32.mrf.mxu0  ;;  %8135 = vmatpush3.msra.mxu1 %v13191_v54  ;;  %v12361_v47 = vld [vmem:[#allocation3 + $0x40] sm:$0xff]  ;;  %v5651_v54 = vsel %vm5611_vm7, %v5646_v16, %v5650_v4  ;;  %v9324_v16 = vld [vmem:[#allocation6 + $0x3a8] sm:$0xff] }
 0x46c   :  { %6509 = vmatprep.mubr.f32.mxu0 %v12343_v46  ;;  %v7627_v41 = vpop.f32.mrf.mxu1  ;;  %13192 = vst [vmem:[#allocation54_spill] sm:$0xff] %v12361_v47  ;;  %8136 = vmatprep.subr.mxu1 %v9323_v44  ;;  %v13203_v46 = vld [vmem:[#allocation24_spill] sm:$0xff] }
 0x46d   :  { %5797 = vmatmul.mubr.f32.gmra.mxu1 %v5643_v36  ;;  %v7781_v0 = vpop.f32.mrf.mxu0  ;;  %v5653_v36 = vsel %vm5611_vm7, %v5648_v11, %v5652_v31  ;;  %v12368_v41 = vld [vmem:[#allocation3 + $0x90] sm:$0xff]  ;;  %v5654_v11 = vrot.slane %v12154_v61, 5  ;;  %v5662_v43 = vrot.slane %v13203_v46, 5 }
 0x46e   :  { %v7629_v23 = vpop.f32.mrf.mxu1  ;;  %5800 = vmatprep.mubr.f32.mxu1 %v5649_v57  ;;  %13193 = vst [vmem:[#allocation55_spill] sm:$0xff] %v12368_v41  ;;  %v5656_v0 = vrot.slane %v12143_v13, 5 }
 0x46f   :  { %6510 = vmatmul.mubr.f32.gmra.mxu0 %v12349_v10  ;;  %v7783_v28 = vpop.f32.mrf.mxu0  ;;  %v5606_v10 = vld [vmem:[#allocation3 + $0xf8] sm:$0x3f] }
 0x470   :  { %6513 = vmatprep.mubr.f32.mxu0 %v12355_v22  ;;  %v7630_v9 = vpop.f32.mrf.mxu1 }
 0x471   :  { %v12364_v50 = vadd.f32 %v7630_v9, %v7629_v23  ;;  %v7784_v27 = vpop.f32.mrf.mxu0  ;;  %5801 = vmatmul.mubr.f32.gmra.mxu1 %v5647_v39  ;;  %v13194_v9 = vld [vmem:[#allocation34_spill] sm:$0xff] }
 0x472   :  { %v12371_v12 = vadd.f32 %v7784_v27, %v7783_v28  ;;  %v7632_v57 = vpop.f32.mrf.mxu1  ;;  %5805 = vmatprep.mubr.f32.mxu1 %v5653_v36  ;;  %8137 = vmatpush3.msra.mxu1 %v13194_v9  ;;  %v12376_v39 = vld [vmem:[#allocation3 + $0xe0] sm:$0xff]  ;;  %v5657_v28 = vsel %vm5611_vm7, %v5652_v31, %v5656_v0  ;;  %v5660_v36 = vrot.slane %v12163_v38, 5  ;;  %v12387_v9 = vld [vmem:[#allocation3 + $0x70] sm:$0xff]  ;;  %v5658_v31 = vrot.slane %v12174_v33, 5 }
 0x473   :  { %6514 = vmatmul.mubr.f32.gmra.mxu0 %v12361_v47  ;;  %v7786_v53 = vpop.f32.mrf.mxu0  ;;  %13195 = vst [vmem:[#allocation57_spill] sm:$0xff] %v12376_v39  ;;  %v12381_v27 = vld [vmem:[#allocation3 + $0xc0] sm:$0xff]  ;;  %8138 = vmatprep.subr.mxu1 %v9324_v16  ;;  %13198 = vst [vmem:[#allocation68_spill] sm:$0xff] %v12387_v9 }
 0x474   :  { %6518 = vmatprep.mubr.f32.mxu0 %v12368_v41  ;;  %v7633_v23 = vpop.f32.mrf.mxu1  ;;  %13196 = vst [vmem:[#allocation65_spill] sm:$0xff] %v12381_v27  ;;  %v13200_v16 = vld [vmem:[#allocation46_spill] sm:$0xff] }
 0x475   :  { %v7787_v47 = vpop.f32.mrf.mxu0  ;;  %5806 = vmatmul.mubr.f32.gmra.mxu1 %v5651_v54  ;;  %v13197_v23 = vld [vmem:[#allocation29_spill] sm:$0xff]  ;;  %v5664_v41 = vrot.slane %v13200_v16, 5 }
 0x476   :  { %v7635_v57 = vpop.f32.mrf.mxu1  ;;  %5809 = vmatprep.mubr.f32.mxu1 %v5657_v28  ;;  %8139 = vmatpush3.msra.mxu1 %v13197_v23  ;;  %v5655_v47 = vsel %vm5611_vm7, %v5650_v4, %v5654_v11  ;;  %v5661_v28 = vsel %vm5611_vm7, %v5656_v0, %v5660_v36  ;;  %v12402_v0 = vld [vmem:[#allocation3 + $0xa8] sm:$0xff] }
 0x477   :  { %6519 = vmatmul.mubr.f32.gmra.mxu0 %v12376_v39  ;;  %v7789_v53 = vpop.f32.mrf.mxu0  ;;  %13202 = vst [vmem:[#allocation60_spill] sm:$0xff] %v12402_v0 }
 0x478   :  { %6522 = vmatprep.mubr.f32.mxu0 %v12381_v27  ;;  %v7636_v44 = vpop.f32.mrf.mxu1  ;;  %v12394_v27 = vld [vmem:[#allocation3 + $0xd0] sm:$0xff] }
 0x479   :  { %v12390_v54 = vadd.f32 %v7636_v44, %v7635_v57  ;;  %v7790_v39 = vpop.f32.mrf.mxu0  ;;  %5810 = vmatmul.mubr.f32.gmra.mxu1 %v5655_v47  ;;  %13199 = vst [vmem:[#allocation58_spill] sm:$0xff] %v12394_v27  ;;  %v9325_v57 = vld [vmem:[#allocation6 + $0x3a0] sm:$0xff]  ;;  %v13201_v47 = vld [vmem:[#allocation33_spill] sm:$0xff] }
 0x47a   :  { %v12397_v22 = vadd.f32 %v7790_v39, %v7789_v53  ;;  %v7638_v23 = vpop.f32.mrf.mxu1  ;;  %5814 = vmatprep.mubr.f32.mxu1 %v5661_v28  ;;  %8140 = vmatprep.subr.mxu1 %v9325_v57  ;;  %v5665_v39 = vsel %vm5611_vm7, %v5660_v36, %v5664_v41  ;;  %v5668_v53 = vrot.slane %v5606_v10, 5  ;;  %v12407_v57 = vld [vmem:[#allocation3 + $0x28] sm:$0xff] }
 0x47b   :  { %6523 = vmatmul.mubr.f32.gmra.mxu0 %v12387_v9  ;;  %v7792_v4 = vpop.f32.mrf.mxu0  ;;  %8141 = vmatpush3.msra.mxu1 %v13201_v47  ;;  %v5659_v9 = vsel %vm5611_vm7, %v5654_v11, %v5658_v31  ;;  %v5605_v23 = vld [vmem:[#allocation3 + $0xa0] sm:$0x3f]  ;;  %13204 = vst [vmem:[#allocation61_spill] sm:$0xff] %v12407_v57  ;;  %v9327_v11 = vld [vmem:[#allocation6 + $0x318] sm:$0xff] }
 0x47c   :  { %6527 = vmatprep.mubr.f32.mxu0 %v12394_v27  ;;  %v7639_v44 = vpop.f32.mrf.mxu1  ;;  %v9326_v4 = vld [vmem:[#allocation6 + $0x398] sm:$0xff]  ;;  %v5666_v10 = vrot.slane %v5605_v23, 5 }
 0x47d   :  { %v7793_v5 = vpop.f32.mrf.mxu0  ;;  %5815 = vmatmul.mubr.f32.gmra.mxu1 %v5659_v9  ;;  %8142 = vmatprep.subr.mxu1 %v9326_v4  ;;  %v12411_v9 = vld [vmem:[#allocation3 + $0x10] sm:$0xff]  ;;  %v5669_v4 = vsel %vm5611_vm7, %v5664_v41, %v5668_v53  ;;  %v12417_v27 = vld [vmem:[#allocation3 + $0xf8] sm:$0xff] }
 0x47e   :  { %v7641_v28 = vpop.f32.mrf.mxu1  ;;  %5818 = vmatprep.mubr.f32.mxu1 %v5665_v39  ;;  %8143 = vmatpush3.msra.mxu1 %v9327_v11  ;;  %v5663_v5 = vsel %vm5611_vm7, %v5658_v31, %v5662_v43  ;;  %13205 = vst [vmem:[#allocation63_spill] sm:$0xff] %v12411_v9  ;;  %v5667_v23 = vsel %vm5611_vm7, %v5662_v43, %v5666_v10 }
 0x47f   :  { %6528 = vmatmul.mubr.f32.gmra.mxu0 %v12402_v0  ;;  %v7795_v44 = vpop.f32.mrf.mxu0  ;;  %v9328_v0 = vld [vmem:[#allocation6 + $0x390] sm:$0xff] }
 0x480   :  { %6531 = vmatprep.mubr.f32.mxu0 %v12407_v57  ;;  %v7642_v47 = vpop.f32.mrf.mxu1  ;;  %8144 = vmatprep.subr.mxu1 %v9328_v0  ;;  %v9329_v0 = vld [vmem:[#allocation6 + $0x310] sm:$0xff] }
 0x481   :  { %v12413_v36 = vadd.f32 %v7642_v47, %v7641_v28  ;;  %v7796_v39 = vpop.f32.mrf.mxu0  ;;  %5819 = vmatmul.mubr.f32.gmra.mxu1 %v5663_v5  ;;  %v12423_v47 = vld [vmem:[#allocation3 + $0xa0] sm:$0xff]  ;;  %v9330_v5 = vld [vmem:[#allocation6 + $0x388] sm:$0xff] }
 0x482   :  { %v12419_v57 = vadd.f32 %v7796_v39, %v7795_v44  ;;  %v7644_v11 = vpop.f32.mrf.mxu1  ;;  %5823 = vmatprep.mubr.f32.mxu1 %v5669_v4  ;;  %8145 = vmatpush3.msra.mxu1 %v9329_v0  ;;  %v6379_v44 = vld [vmem:[#allocation3 + $0x98] sm:$0x1]  ;;  %v6124_v39 = vrot.slane %v6113_v49, 7 }
 0x483   :  { %6532 = vmatmul.mubr.f32.gmra.mxu0 %v12411_v9  ;;  %v7798_v31 = vpop.f32.mrf.mxu0  ;;  %8146 = vmatprep.subr.mxu1 %v9330_v5  ;;  %v6112_v11 = vld [vmem:[#allocation3 + $0xb0] sm:$0x80]  ;;  %v9331_v9 = vld [vmem:[#allocation6 + $0x308] sm:$0xff]  ;;  %v9332_v0 = vld [vmem:[#allocation3 + $0x18] sm:$0xff] }
 0x484   :  { %6536 = vmatprep.mubr.f32.mxu0 %v12417_v27  ;;  %v7645_v28 = vpop.f32.mrf.mxu1  ;;  %8147 = vmatpush3.msra.mxu1 %v9331_v9  ;;  %v6121_v5 = vrot.slane %v6112_v11, 7  ;;  %v9335_v9 = vld [vmem:[#allocation6 + $0x300] sm:$0xff] }
 0x485   :  { %v7799_v41 = vpop.f32.mrf.mxu0  ;;  %5824 = vmatmul.mubr.f32.gmra.mxu1 %v5667_v23  ;;  %v6125_v28 = vrot.slane %v9332_v0, 7  ;;  %8148 = vmatprep.subr.mxu1 %v9333_v24  ;;  %v9336_v0 = vld [vmem:[#allocation3 + $0xd8] sm:$0xff] }
 0x486   :  { %v7647_v4 = vpop.f32.mrf.mxu1  ;;  %5827 = vmatprep.mubr.f32.mxu1 %v5668_v53  ;;  %v9334_v53 = vld [vmem:[#allocation3 + $0x68] sm:$0xff]  ;;  %8149 = vmatpush3.msra.mxu1 %v9335_v9  ;;  %v6122_v42 = vrot.slane %v9336_v0, 7  ;;  %v13210_v0 = vld [vmem:[#allocation20_spill] sm:$0xff] }
 0x487   :  { %6537 = vmatmul.mubr.f32.gmra.mxu0 %v12423_v47  ;;  %v7801_v31 = vpop.f32.mrf.mxu0  ;;  %v6126_v49 = vsel %vm6120_vm8, %v6124_v39, %v6125_v28  ;;  %8272 = vmatprep.subr.mxu1 %v9337_v14 }
 0x488   :  { %6540 = vmatprep.mubr.f32.mxu0 %v6379_v44  ;;  %v7648_v43 = vpop.f32.mrf.mxu1  ;;  %v6129_v44 = vrot.slane %v9334_v53, 7  ;;  %v6123_v24 = vsel %vm6120_vm8, %v6121_v5, %v6122_v42  ;;  %v9340_v5 = vld [vmem:[#allocation3 + $0x30] sm:$0xff] }
 0x489   :  { %v12426_v23 = vadd.f32 %v7648_v43, %v7647_v4  ;;  %v7802_v41 = vpop.f32.mrf.mxu0  ;;  %5828 = vmatmul.mubr.f32.gmra.mxu1 %v5666_v10  ;;  %v9338_v4 = vld [vmem:[#allocation3 + $0x50] sm:$0xff]  ;;  %v9339_v43 = vld [vmem:[#allocation3 + $0x48] sm:$0xff] }
 0x48a   :  { %v12429_v37 = vadd.f32 %v7802_v41, %v7801_v31  ;;  %6273 = vmatprep.mubr.f32.mxu1 %v6126_v49  ;;  %v6127_v11 = vrot.slane %v9338_v4, 7  ;;  %v6133_v53 = vrot.slane %v9339_v43, 7  ;;  %v13208_v31 = vld [vmem:[#allocation17_spill] sm:$0xff]  ;;  %v13209_v41 = vld [vmem:[#allocation35_spill] sm:$0xff]  ;;  %v6131_v4 = vrot.slane %v9340_v5, 7 }
 0x48b   :  { %13206 = vst [vmem:[#allocation64_spill] sm:$0xff] %v12426_v23  ;;  %6541 = vmatmul.mubr.f32.gmra.mxu0 %v6378_v21  ;;  %v6130_v21 = vsel %vm6120_vm8, %v6125_v28, %v6129_v44 }
 0x48c   :  { %13207 = vst [vmem:[#allocation66_spill] sm:$0xff] %v12429_v37  ;;  %v6128_v14 = vsel %vm6120_vm8, %v6122_v42, %v6127_v11  ;;  %v6134_v28 = vsel %vm6120_vm8, %v6129_v44, %v6133_v53  ;;  %v6132_v42 = vsel %vm6120_vm8, %v6127_v11, %v6131_v4  ;;  %v9342_v44 = vld [vmem:[#allocation3 + $0x80] sm:$0xff]  ;;  %v13215_v37 = vld [vmem:[#allocation32_spill] sm:$0xff] }
 0x48d   :  { %6274 = vmatmul.mubr.f32.vlgmr.msra.gmra.mxu1 %v6123_v24  ;;  %v6135_v5 = vrot.slane %v9342_v44, 7  ;;  %v13219_v44 = vld [vmem:[#allocation19_spill] sm:$0xff] }
 0x48e   :  { %v7650_v10 = vpop.f32.mrf.mxu1  ;;  %6278 = vmatprep.mubr.f32.mxu1 %v6130_v21  ;;  %8273 = vmatpush3.msra.mxu1 %v13208_v31  ;;  %v9341_v21 = vld [vmem:[#allocation3 + $0x88] sm:$0xff]  ;;  %v13212_v31 = vld [vmem:[#allocation18_spill] sm:$0xff] }
 0x48f   :  { %v7804_v39 = vpop.f32.mrf.mxu0  ;;  %8274 = vmatprep.subr.mxu1 %v13209_v41  ;;  %v6137_v43 = vrot.slane %v9341_v21, 7 }
 0x490   :  { %v7651_v49 = vpop.f32.mrf.mxu1  ;;  %8275 = vmatpush3.msra.mxu1 %v13210_v0  ;;  %v13211_v39 = vld [vmem:[#allocation41_spill] sm:$0xff] }
 0x491   :  { %v7805_v9 = vpop.f32.mrf.mxu0  ;;  %6279 = vmatmul.mubr.f32.gmra.mxu1 %v6128_v14  ;;  %8276 = vmatprep.subr.mxu1 %v13211_v39  ;;  %v6138_v39 = vsel %vm6120_vm8, %v6133_v53, %v6137_v43 }
 0x492   :  { %v7653_v24 = vpop.f32.mrf.mxu1  ;;  %6282 = vmatprep.mubr.f32.mxu1 %v6134_v28  ;;  %8277 = vmatpush3.msra.mxu1 %v13212_v31  ;;  %v13213_v9 = vld [vmem:[#allocation13_spill] sm:$0xff] }
 0x493   :  { %v7807_v10 = vpop.f32.mrf.mxu0  ;;  %8278 = vmatprep.subr.mxu1 %v13213_v9  ;;  %v9343_v31 = vld [vmem:[#allocation3 + $0xb8] sm:$0xff] }
 0x494   :  { %v7654_v41 = vpop.f32.mrf.mxu1  ;;  %8279 = vmatpush3.msra.mxu1 %v13215_v37  ;;  %v6141_v23 = vrot.slane %v9343_v31, 7  ;;  %v13217_v9 = vld [vmem:[#allocation21_spill] sm:$0xff] }
 0x495   :  { %v7808_v49 = vpop.f32.mrf.mxu0  ;;  %v12442_v0 = vadd.f32 %v7654_v41, %v7653_v24  ;;  %6283 = vmatmul.mubr.f32.gmra.mxu1 %v6132_v42  ;;  %8280 = vmatprep.subr.mxu1 %v13216_v60  ;;  %v6136_v41 = vsel %vm6120_vm8, %v6131_v4, %v6135_v5  ;;  %v9344_v42 = vld [vmem:[#allocation3 + $0xe8] sm:$0xff]  ;;  %v13221_v4 = vld [vmem:[#allocation36_spill] sm:$0xff] }
 0x496   :  { %v12444_v14 = vadd.f32 %v7808_v49, %v7807_v10  ;;  %v7688_v28 = vpop.f32.mrf.mxu1  ;;  %6287 = vmatprep.mubr.f32.mxu1 %v6138_v39  ;;  %8281 = vmatpush3.msra.mxu1 %v13217_v9  ;;  %v13218_v10 = vld [vmem:[#allocation23_spill] sm:$0xff]  ;;  %v6139_v53 = vrot.slane %v9344_v42, 7  ;;  %v6142_v31 = vsel %vm6120_vm8, %v6137_v43, %v6141_v23  ;;  %v6145_v9 = vrot.slane %v12049_v32, 7 }
 0x497   :  { %v7919_v21 = vpop.f32.mrf.mxu0  ;;  %8282 = vmatprep.subr.mxu1 %v13218_v10  ;;  %v13223_v43 = vld [vmem:[#allocation27_spill] sm:$0xff] }
 0x498   :  { %13214 = vst [vmem:[#allocation67_spill] sm:$0xff] %v12444_v14  ;;  %v7689_v11 = vpop.f32.mrf.mxu1  ;;  %8283 = vmatpush3.msra.mxu1 %v13219_v44  ;;  %v13220_v14 = vld [vmem:[#allocation22_spill] sm:$0xff]  ;;  %v6146_v32 = vsel %vm6120_vm8, %v6141_v23, %v6145_v9 }
 0x499   :  { %v7920_v24 = vpop.f32.mrf.mxu0  ;;  %v7690_v49 = vadd.f32 %v7689_v11, %v7688_v28  ;;  %6288 = vmatmul.mubr.f32.gmra.mxu1 %v6136_v41  ;;  %8284 = vmatprep.subr.mxu1 %v13220_v14  ;;  %v13222_v11 = vld [vmem:[#allocation42_spill] sm:$0xff] }
 0x49a   :  { %v12452_v37 = vadd.f32 %v7920_v24, %v7919_v21  ;;  %6291 = vmatprep.mubr.f32.mxu1 %v6142_v31  ;;  %8285 = vmatpush3.msra.mxu1 %v13221_v4  ;;  %v6140_v24 = vsel %vm6120_vm8, %v6135_v5, %v6139_v53  ;;  %v9345_v41 = vld [vmem:[#allocation3 + $0x60] sm:$0xff]  ;;  %v13226_v4 = vld [vmem:[#allocation43_spill] sm:$0xff] }
 0x49b   :  { %v7691_v60 = vpop.f32.mrf.mxu1  ;;  %v7922_v39 = vpop.f32.mrf.mxu0  ;;  %v4757_v10 = vadd.f32 %v7690_v49, %v12280_v34  ;;  %8286 = vmatprep.subr.mxu1 %v13222_v11  ;;  %v6143_v42 = vrot.slane %v9345_v41, 7  ;;  %v6149_v49 = vrot.slane %v12067_v58, 7  ;;  %v13224_v31 = vld [vmem:[#allocation38_spill] sm:$0xff]  ;;  %v13227_v11 = vld [vmem:[#allocation45_spill] sm:$0xff] }
 0x49c   :  { %8287 = vmatpush3.msra.mxu1 %v13223_v43  ;;  %v13225_v60 = vld [vmem:[#allocation44_spill] sm:$0xff]  ;;  %v6153_v43 = vrot.slane %v12085_v63, 7 }
 0x49d   :  { %v7692_v28 = vpop.f32.mrf.mxu1  ;;  %v7923_v21 = vpop.f32.mrf.mxu0  ;;  %v12464_v44 = vadd.f32 %v12285_v2, %v4757_v10  ;;  %6292 = vmatmul.mubr.f32.gmra.mxu1 %v6140_v24  ;;  %8288 = vmatprep.subr.mxu1 %v13224_v31  ;;  %v6150_v58 = vsel %vm6120_vm8, %v6145_v9, %v6149_v49 }
 0x49e   :  { %6296 = vmatprep.mubr.f32.mxu1 %v6146_v32  ;;  %8289 = vmatpush3.msra.mxu1 %v13225_v60  ;;  %v6144_v28 = vsel %vm6120_vm8, %v6139_v53, %v6143_v42  ;;  %v9346_v21 = vld [vmem:[#allocation3 + $0x8] sm:$0xff]  ;;  %v13228_v32 = vld [vmem:[#allocation28_spill] sm:$0xff]  ;;  %v6151_v60 = vrot.slane %v12092_v8, 7  ;;  %v6154_v63 = vsel %vm6120_vm8, %v6149_v49, %v6153_v43  ;;  %v6155_v49 = vrot.slane %v12113_v20, 7 }
 0x49f   :  { %v7694_v14 = vpop.f32.mrf.mxu1  ;;  %v7925_v34 = vpop.f32.mrf.mxu0  ;;  %8290 = vmatprep.subr.mxu1 %v13226_v4  ;;  %v6147_v23 = vrot.slane %v9346_v21, 7 }
 0x4a0   :  { %8291 = vmatpush3.msra.mxu1 %v13227_v11 }
 0x4a1   :  { %v7695_v5 = vpop.f32.mrf.mxu1  ;;  %v7926_v39 = vpop.f32.mrf.mxu0  ;;  %6297 = vmatmul.mubr.f32.gmra.mxu1 %v6144_v28  ;;  %8292 = vmatprep.subr.mxu1 %v13228_v32  ;;  %v6152_v8 = vsel %vm6120_vm8, %v6147_v23, %v6151_v60 }
 0x4a2   :  { %v7696_v2 = vadd.f32 %v7695_v5, %v7694_v14  ;;  %v12472_v10 = vadd.f32 %v7926_v39, %v7925_v34  ;;  %6300 = vmatprep.mubr.f32.mxu1 %v6150_v58  ;;  %8293 = vmatpush3.msra.mxu1 %v12199_v15  ;;  %v6148_v34 = vsel %vm6120_vm8, %v6143_v42, %v6147_v23  ;;  %v6157_v15 = vrot.slane %v13186_v51, 7 }
 0x4a3   :  { %v7697_v24 = vpop.f32.mrf.mxu1  ;;  %v7928_v41 = vpop.f32.mrf.mxu0  ;;  %8294 = vmatprep.subr.mxu1 %v12209_v3 }
 0x4a4   :  { %v4766_v31 = vadd.f32 %v7696_v2, %v12306_v55  ;;  %8295 = vmatpush3.msra.mxu1 %v12213_v26  ;;  %v6158_v51 = vsel %vm6120_vm8, %v6153_v43, %v6157_v15  ;;  %v6159_v2 = vrot.slane %v12134_v19, 7  ;;  %v6163_v19 = vrot.slane %v12154_v61, 7 }
 0x4a5   :  { %v7698_v53 = vpop.f32.mrf.mxu1  ;;  %v7929_v14 = vpop.f32.mrf.mxu0  ;;  %6301 = vmatmul.mubr.f32.gmra.mxu1 %v6148_v34  ;;  %8296 = vmatprep.subr.mxu1 %v12217_v52  ;;  %v6169_v41 = vrot.slane %v12163_v38, 7 }
 0x4a6   :  { %v12485_v9 = vadd.f32 %v12314_v17, %v4766_v31  ;;  %6305 = vmatprep.mubr.f32.mxu1 %v6154_v63  ;;  %8297 = vmatpush3.msra.mxu1 %v12223_v7  ;;  %v6161_v7 = vrot.slane %v12123_v35, 7  ;;  %v6164_v31 = vsel %vm6120_vm8, %v6159_v2, %v6163_v19  ;;  %v6167_v53 = vrot.slane %v12174_v33, 7 }
 0x4a7   :  { %v7700_v5 = vpop.f32.mrf.mxu1  ;;  %v7931_v55 = vpop.f32.mrf.mxu0  ;;  %8298 = vmatprep.subr.mxu1 %v12225_v56  ;;  %v7779_v56 = vadd.f32 %v12338_v62, %v12329_v25  ;;  %v6173_v63 = vrot.slane %v13200_v16, 7  ;;  %v6171_v33 = vrot.slane %v13203_v46, 7 }
 0x4a8   :  { %8299 = vmatpush3.msra.mxu1 %v12228_v18  ;;  %v6156_v18 = vsel %vm6120_vm8, %v6151_v60, %v6155_v49 }
 0x4a9   :  { %v7701_v3 = vpop.f32.mrf.mxu1  ;;  %v7932_v42 = vpop.f32.mrf.mxu0  ;;  %6306 = vmatmul.mubr.f32.gmra.mxu1 %v6152_v8  ;;  %8300 = vmatprep.subr.mxu1 %v12231_v48  ;;  %v6162_v48 = vsel %vm6120_vm8, %v6157_v15, %v6161_v7  ;;  %v6177_v8 = vrot.slane %v12417_v27, 7 }
 0x4aa   :  { %v7702_v26 = vadd.f32 %v7701_v3, %v7700_v5  ;;  %v12493_v17 = vadd.f32 %v7932_v42, %v7931_v55  ;;  %6309 = vmatprep.mubr.f32.mxu1 %v6158_v51  ;;  %8301 = vmatpush3.msra.mxu1 %v12237_v29  ;;  %v6172_v51 = vsel %vm6120_vm8, %v6167_v53, %v6171_v33 }
 0x4ab   :  { %v7703_v52 = vpop.f32.mrf.mxu1  ;;  %v7934_v39 = vpop.f32.mrf.mxu0  ;;  %8302 = vmatprep.subr.mxu1 %v12241_v6  ;;  %v6160_v6 = vsel %vm6120_vm8, %v6155_v49, %v6159_v2  ;;  %v6178_v46 = vsel %vm6120_vm8, %v6173_v63, %v6177_v8  ;;  %v6555_v2 = vld [vmem:[#allocation3 + $0x18] sm:$0xfe] }
 0x4ac   :  { %v4775_v4 = vadd.f32 %v7702_v26, %v12336_v1  ;;  %8303 = vmatpush3.msra.mxu1 %v12244_v59  ;;  %v6165_v1 = vrot.slane %v12143_v13, 7  ;;  %v6175_v52 = vrot.slane %v12423_v47, 7 }
 0x4ad   :  { %v7704_v20 = vpop.f32.mrf.mxu1  ;;  %v7935_v28 = vpop.f32.mrf.mxu0  ;;  %6310 = vmatmul.mubr.f32.gmra.mxu1 %v6156_v18 }
 0x4ae   :  { %v12508_v35 = vadd.f32 %v7779_v56, %v4775_v4  ;;  %6314 = vmatprep.mubr.f32.mxu1 %v6162_v48  ;;  %v6166_v59 = vsel %vm6120_vm8, %v6161_v7, %v6165_v1  ;;  %v6170_v61 = vsel %vm6120_vm8, %v6165_v1, %v6169_v41  ;;  %v6176_v28 = vsel %vm6120_vm8, %v6171_v33, %v6175_v52 }
 0x4af   :  { %v7706_v25 = vpop.f32.mrf.mxu1  ;;  %v7937_v62 = vpop.f32.mrf.mxu0  ;;  %v6592_v48 = vrot.slane %v12258_v30, 1  ;;  %v6591_v1 = vrot.slane %v6555_v2, 1 }
 0x4b1   :  { %v7707_v29 = vpop.f32.mrf.mxu1  ;;  %v7938_v21 = vpop.f32.mrf.mxu0  ;;  %6315 = vmatmul.mubr.f32.gmra.mxu1 %v6160_v6  ;;  %v6554_v6 = vld [vmem:[#allocation3 + $0xd8] sm:$0xfe]  ;;  %v6593_v30 = vsel %vm880_vm2, %v6591_v1, %v6592_v48 }
 0x4b2   :  { %v7708_v23 = vadd.f32 %v7707_v29, %v7706_v25  ;;  %v12513_v11 = vadd.f32 %v7938_v21, %v7937_v62  ;;  %6318 = vmatprep.mubr.f32.mxu1 %v6166_v59  ;;  %v6596_v59 = vrot.slane %v12269_v45, 1  ;;  %v13237_v1 = vld [vmem:[#allocation53_spill] sm:$0xff] }
 0x4b3   :  { %v7709_v58 = vpop.f32.mrf.mxu1  ;;  %v7940_v24 = vpop.f32.mrf.mxu0 }
 0x4b4   :  { %v4784_v13 = vadd.f32 %v7708_v23, %v12364_v50  ;;  %v6168_v50 = vsel %vm6120_vm8, %v6163_v19, %v6167_v53  ;;  %v6589_v23 = vrot.slane %v12264_v40, 1  ;;  %v6597_v45 = vsel %vm880_vm2, %v6592_v48, %v6596_v59 }
 0x4b5   :  { %v7710_v43 = vpop.f32.mrf.mxu1  ;;  %v7941_v32 = vpop.f32.mrf.mxu0  ;;  %6319 = vmatmul.mubr.f32.gmra.mxu1 %v6164_v31 }
 0x4b6   :  { %v12522_v14 = vadd.f32 %v12371_v12, %v4784_v13  ;;  %6323 = vmatprep.mubr.f32.mxu1 %v6170_v61  ;;  %v6174_v12 = vsel %vm6120_vm8, %v6169_v41, %v6173_v63  ;;  %v6588_v41 = vrot.slane %v6554_v6, 1  ;;  %v13229_v43 = vld [vmem:[#allocation12_spill] sm:$0xff] }
 0x4b7   :  { %v7712_v34 = vpop.f32.mrf.mxu1  ;;  %v7943_v60 = vpop.f32.mrf.mxu0  ;;  %v6594_v32 = vrot.slane %v13229_v43, 1  ;;  %v13231_v63 = vld [vmem:[#allocation64_spill] sm:$0xff] }
 0x4b8   :  { %v6590_v31 = vsel %vm880_vm2, %v6588_v41, %v6589_v23 }
 0x4b9   :  { %v7713_v38 = vpop.f32.mrf.mxu1  ;;  %v7944_v5 = vpop.f32.mrf.mxu0  ;;  %6324 = vmatmul.mubr.f32.gmra.mxu1 %v6168_v50 }
 0x4ba   :  { %v7714_v55 = vadd.f32 %v7713_v38, %v7712_v34  ;;  %v12527_v15 = vadd.f32 %v7944_v5, %v7943_v60  ;;  %6327 = vmatprep.mubr.f32.mxu1 %v6174_v12  ;;  %v6595_v12 = vsel %vm880_vm2, %v6589_v23, %v6594_v32  ;;  %v13238_v23 = vld [vmem:[#allocation67_spill] sm:$0xff] }
 0x4bb   :  { %v7715_v3 = vpop.f32.mrf.mxu1  ;;  %v7946_v42 = vpop.f32.mrf.mxu0 }
 0x4bc   :  { %v4793_v16 = vadd.f32 %v7714_v55, %v12390_v54  ;;  %v13232_v55 = vld [vmem:[#allocation48_spill] sm:$0xff]  ;;  %v13233_v3 = vld [vmem:[#allocation66_spill] sm:$0xff] }
 0x4bd   :  { %v7716_v26 = vpop.f32.mrf.mxu1  ;;  %v7947_v49 = vpop.f32.mrf.mxu0  ;;  %6328 = vmatmul.mubr.f32.gmra.mxu1 %v6172_v51  ;;  %v6598_v33 = vrot.slane %v13232_v55, 1  ;;  %v13242_v55 = vld [vmem:[#allocation59_spill] sm:$0xff] }
 0x4be   :  { %v12536_v39 = vadd.f32 %v12397_v22, %v4793_v16  ;;  %6332 = vmatprep.mubr.f32.mxu1 %v6178_v46  ;;  %v13235_v46 = vld [vmem:[#allocation47_spill] sm:$0xff] }
 0x4bf   :  { %v7718_v7 = vpop.f32.mrf.mxu1  ;;  %v7949_v56 = vpop.f32.mrf.mxu0 }
 0x4c1   :  { %v7719_v4 = vpop.f32.mrf.mxu1  ;;  %v7950_v20 = vpop.f32.mrf.mxu0  ;;  %6333 = vmatmul.mubr.f32.gmra.mxu1 %v6176_v28  ;;  %v13236_v28 = vld [vmem:[#allocation50_spill] sm:$0xff] }
 0x4c2   :  { %v7720_v54 = vadd.f32 %v7719_v4, %v7718_v7  ;;  %v12540_v18 = vadd.f32 %v7950_v20, %v7949_v56  ;;  %6336 = vmatprep.mubr.f32.mxu1 %v6177_v8  ;;  %v13234_v8 = vld [vmem:[#allocation49_spill] sm:$0xff]  ;;  %v6602_v7 = vrot.slane %v13235_v46, 1  ;;  %v6599_v56 = vsel %vm880_vm2, %v6594_v32, %v6598_v33 }
 0x4c3   :  { %v7721_v25 = vpop.f32.mrf.mxu1  ;;  %v7952_v22 = vpop.f32.mrf.mxu0  ;;  %v6604_v16 = vrot.slane %v13234_v8, 1 }
 0x4c4   :  { %v4802_v62 = vadd.f32 %v7720_v54, %v12413_v36  ;;  %v6608_v54 = vrot.slane %v13236_v28, 1  ;;  %v13245_v28 = vld [vmem:[#allocation55_spill] sm:$0xff] }
 0x4c5   :  { %v7722_v29 = vpop.f32.mrf.mxu1  ;;  %v7953_v21 = vpop.f32.mrf.mxu0  ;;  %6337 = vmatmul.mubr.f32.gmra.mxu1 %v6175_v52 }
 0x4c6   :  { %v12546_v19 = vadd.f32 %v12419_v57, %v4802_v62  ;;  %6740 = vmatprep.mubr.f32.mxu1 %v6593_v30  ;;  %v13230_v57 = vld [vmem:[#allocation26_spill] sm:$0xff]  ;;  %v6606_v29 = vrot.slane %v13237_v1, 1  ;;  %v6603_v21 = vsel %vm880_vm2, %v6598_v33, %v6602_v7  ;;  %v13239_v30 = vld [vmem:[#allocation51_spill] sm:$0xff] }
 0x4c7   :  { %v7724_v58 = vpop.f32.mrf.mxu1  ;;  %v7955_v24 = vpop.f32.mrf.mxu0  ;;  %v6600_v61 = vrot.slane %v13230_v57, 1 }
 0x4c8   :  { %v6607_v57 = vsel %vm880_vm2, %v6602_v7, %v6606_v29  ;;  %v13244_v7 = vld [vmem:[#allocation54_spill] sm:$0xff] }
 0x4c9   :  { %v7725_v13 = vpop.f32.mrf.mxu1  ;;  %v7956_v36 = vpop.f32.mrf.mxu0  ;;  %6741 = vmatmul.mubr.f32.vlgmr.msra.gmra.mxu1 %v6590_v31  ;;  %v6601_v26 = vsel %vm880_vm2, %v6596_v59, %v6600_v61  ;;  %v6605_v2 = vsel %vm880_vm2, %v6600_v61, %v6604_v16  ;;  %v13240_v31 = vld [vmem:[#allocation52_spill] sm:$0xff] }
 0x4ca   :  { %v7726_v53 = vadd.f32 %v7725_v13, %v7724_v58  ;;  %v12552_v40 = vadd.f32 %v7956_v36, %v7955_v24  ;;  %6745 = vmatprep.mubr.f32.mxu1 %v6597_v45  ;;  %v6612_v58 = vrot.slane %v13239_v30, 1  ;;  %v6609_v24 = vsel %vm880_vm2, %v6604_v16, %v6608_v54  ;;  %v13241_v45 = vld [vmem:[#allocation56_spill] sm:$0xff] }
 0x4cb   :  { %v7727_v34 = vpop.f32.mrf.mxu1  ;;  %v7958_v60 = vpop.f32.mrf.mxu0 }
 0x4cc   :  { %v4811_v38 = vadd.f32 %v7726_v53, %v13231_v63  ;;  %v6610_v53 = vrot.slane %v13240_v31, 1  ;;  %v6616_v34 = vrot.slane %v13241_v45, 1  ;;  %v6613_v60 = vsel %vm880_vm2, %v6608_v54, %v6612_v58 }
 0x4cd   :  { %v7728_v5 = vpop.f32.mrf.mxu1  ;;  %v7959_v50 = vpop.f32.mrf.mxu0  ;;  %6746 = vmatmul.mubr.f32.gmra.mxu1 %v6595_v12  ;;  %v6624_v54 = vrot.slane %v13245_v28, 1 }
 0x4ce   :  { %v12560_v42 = vadd.f32 %v13233_v3, %v4811_v38  ;;  %6749 = vmatprep.mubr.f32.mxu1 %v6601_v26  ;;  %v6611_v33 = vsel %vm880_vm2, %v6606_v29, %v6610_v53  ;;  %v13243_v3 = vld [vmem:[#allocation62_spill] sm:$0xff]  ;;  %v6617_v16 = vsel %vm880_vm2, %v6612_v58, %v6616_v34  ;;  %v13246_v29 = vld [vmem:[#allocation57_spill] sm:$0xff] }
 0x4cf   :  { %v7730_v49 = vpop.f32.mrf.mxu1  ;;  %v6620_v8 = vrot.slane %v13243_v3, 1 }
 0x4d0   :  { %v7961_v51 = vpop.f32.mrf.mxu0 }
 0x4d1   :  { %v7731_v52 = vpop.f32.mrf.mxu1  ;;  %6750 = vmatmul.mubr.f32.gmra.mxu1 %v6599_v56  ;;  %v6618_v56 = vrot.slane %v13244_v7, 1  ;;  %v6625_v58 = vsel %vm880_vm2, %v6620_v8, %v6624_v54 }
 0x4d2   :  { %v7732_v4 = vadd.f32 %v7731_v52, %v7730_v49  ;;  %v7962_v20 = vpop.f32.mrf.mxu0  ;;  %6754 = vmatprep.mubr.f32.mxu1 %v6605_v2  ;;  %v6621_v2 = vsel %vm880_vm2, %v6616_v34, %v6620_v8 }
 0x4d3   :  { %v12568_v48 = vadd.f32 %v7962_v20, %v7961_v51  ;;  %v7842_v22 = vpop.f32.mrf.mxu1 }
 0x4d4   :  { %v4820_v25 = vadd.f32 %v7732_v4, %v12442_v0 }
 0x4d5   :  { %v8073_v62 = vpop.f32.mrf.mxu0  ;;  %v7843_v6 = vpop.f32.mrf.mxu1  ;;  %6755 = vmatmul.mubr.f32.gmra.mxu1 %v6603_v21 }
 0x4d6   :  { %v12574_v59 = vadd.f32 %v13238_v23, %v4820_v25  ;;  %v7844_v41 = vadd.f32 %v7843_v6, %v7842_v22  ;;  %6758 = vmatprep.mubr.f32.mxu1 %v6609_v24  ;;  %v13247_v23 = vld [vmem:[#allocation65_spill] sm:$0xff] }
 0x4d7   :  { %v8074_v13 = vpop.f32.mrf.mxu0  ;;  %v7845_v0 = vpop.f32.mrf.mxu1  ;;  %v6628_v30 = vrot.slane %v13247_v23, 1  ;;  %v6556_v23 = vld [vmem:[#allocation3 + $0x20] sm:$0x3] }
 0x4d8   :  { %v12578_v36 = vadd.f32 %v8074_v13, %v8073_v62  ;;  %v5324_v43 = vadd.f32 %v7844_v41, %v12464_v44  ;;  %v6614_v44 = vrot.slane %v13242_v55, 1  ;;  %v13250_v55 = vld [vmem:[#allocation60_spill] sm:$0xff] }
 0x4d9   :  { %v8076_v32 = vpop.f32.mrf.mxu0  ;;  %v7846_v61 = vpop.f32.mrf.mxu1  ;;  %6759 = vmatmul.mubr.f32.gmra.mxu1 %v6607_v57  ;;  %v6629_v34 = vsel %vm880_vm2, %v6624_v54, %v6628_v30 }
 0x4da   :  { %v12586_v38 = vadd.f32 %v12452_v37, %v5324_v43  ;;  %6763 = vmatprep.mubr.f32.mxu1 %v6613_v60  ;;  %v6615_v4 = vsel %vm880_vm2, %v6610_v53, %v6614_v44  ;;  %v6619_v21 = vsel %vm880_vm2, %v6614_v44, %v6618_v56  ;;  %v13248_v32 = vld [vmem:[#allocation68_spill] sm:$0xff]  ;;  %v13249_v61 = vld [vmem:[#allocation58_spill] sm:$0xff] }
 0x4db   :  { %v8077_v63 = vpop.f32.mrf.mxu0  ;;  %v7848_v5 = vpop.f32.mrf.mxu1  ;;  %v6626_v31 = vrot.slane %v13248_v32, 1  ;;  %v6632_v45 = vrot.slane %v13249_v61, 1 }
 0x4dd   :  { %v8079_v50 = vpop.f32.mrf.mxu0  ;;  %v7849_v12 = vpop.f32.mrf.mxu1  ;;  %6764 = vmatmul.mubr.f32.gmra.mxu1 %v6611_v33  ;;  %v6633_v8 = vsel %vm880_vm2, %v6628_v30, %v6632_v45 }
 0x4de   :  { %v7850_v26 = vadd.f32 %v7849_v12, %v7848_v5  ;;  %6767 = vmatprep.mubr.f32.mxu1 %v6617_v16  ;;  %v13251_v12 = vld [vmem:[#allocation61_spill] sm:$0xff] }
 0x4df   :  { %v8080_v49 = vpop.f32.mrf.mxu0  ;;  %v7851_v37 = vpop.f32.mrf.mxu1  ;;  %v6636_v3 = vrot.slane %v13251_v12, 1 }
 0x4e0   :  { %v12592_v51 = vadd.f32 %v8080_v49, %v8079_v50  ;;  %v5325_v52 = vadd.f32 %v7850_v26, %v12485_v9  ;;  %v6622_v9 = vrot.slane %v13246_v29, 1 }
 0x4e1   :  { %v8082_v46 = vpop.f32.mrf.mxu0  ;;  %v7852_v20 = vpop.f32.mrf.mxu1  ;;  %6768 = vmatmul.mubr.f32.gmra.mxu1 %v6615_v4  ;;  %v6637_v28 = vsel %vm880_vm2, %v6632_v45, %v6636_v3 }
 0x4e2   :  { %v12600_v22 = vadd.f32 %v12472_v10, %v5325_v52  ;;  %6772 = vmatprep.mubr.f32.mxu1 %v6621_v2  ;;  %v6623_v53 = vsel %vm880_vm2, %v6618_v56, %v6622_v9  ;;  %v6627_v44 = vsel %vm880_vm2, %v6622_v9, %v6626_v31  ;;  %v13252_v46 = vld [vmem:[#allocation63_spill] sm:$0xff]  ;;  %v6640_v20 = vrot.slane %v12417_v27, 1 }
 0x4e3   :  { %v8083_v25 = vpop.f32.mrf.mxu0  ;;  %v7854_v62 = vpop.f32.mrf.mxu1  ;;  %v6634_v7 = vrot.slane %v13252_v46, 1 }
 0x4e4   :  { %v6557_v25 = vld [vmem:[#allocation3 + $0x98] sm:$0x3]  ;;  %v6641_v9 = vsel %vm880_vm2, %v6636_v3, %v6640_v20 }
 0x4e5   :  { %v8085_v1 = vpop.f32.mrf.mxu0  ;;  %v7855_v6 = vpop.f32.mrf.mxu1  ;;  %6773 = vmatmul.mubr.f32.gmra.mxu1 %v6619_v21 }
 0x4e6   :  { %v7856_v24 = vadd.f32 %v7855_v6, %v7854_v62  ;;  %6776 = vmatprep.mubr.f32.mxu1 %v6625_v58  ;;  %v6644_v6 = vrot.slane %v6557_v25, 1 }
 0x4e7   :  { %v8086_v41 = vpop.f32.mrf.mxu0  ;;  %v7857_v10 = vpop.f32.mrf.mxu1 }
 0x4e8   :  { %v12606_v13 = vadd.f32 %v8086_v41, %v8085_v1  ;;  %v5326_v0 = vadd.f32 %v7856_v24, %v12508_v35  ;;  %v6630_v35 = vrot.slane %v13250_v55, 1 }
 0x4e9   :  { %v8088_v43 = vpop.f32.mrf.mxu0  ;;  %v7858_v57 = vpop.f32.mrf.mxu1  ;;  %6777 = vmatmul.mubr.f32.gmra.mxu1 %v6623_v53 }
 0x4ea   :  { %v12614_v63 = vadd.f32 %v12493_v17, %v5326_v0  ;;  %6781 = vmatprep.mubr.f32.mxu1 %v6629_v34  ;;  %v6631_v56 = vsel %vm880_vm2, %v6626_v31, %v6630_v35  ;;  %v6635_v29 = vsel %vm880_vm2, %v6630_v35, %v6634_v7  ;;  %v6645_v0 = vsel %vm880_vm2, %v6640_v20, %v6644_v6 }
 0x4eb   :  { %v8089_v60 = vpop.f32.mrf.mxu0  ;;  %v7860_v5 = vpop.f32.mrf.mxu1 }
 0x4ed   :  { %v8091_v50 = vpop.f32.mrf.mxu0  ;;  %v7861_v33 = vpop.f32.mrf.mxu1  ;;  %6782 = vmatmul.mubr.f32.gmra.mxu1 %v6627_v44 }
 0x4ee   :  { %v7862_v16 = vadd.f32 %v7861_v33, %v7860_v5  ;;  %6785 = vmatprep.mubr.f32.mxu1 %v6633_v8 }
 0x4ef   :  { %v8092_v26 = vpop.f32.mrf.mxu0  ;;  %v7863_v17 = vpop.f32.mrf.mxu1 }
 0x4f0   :  { %v12620_v49 = vadd.f32 %v8092_v26, %v8091_v50  ;;  %v5327_v37 = vadd.f32 %v7862_v16, %v12522_v14  ;;  %v6638_v14 = vrot.slane %v12423_v47, 1  ;;  %v6642_v47 = vrot.slane %v6556_v23, 1 }
 0x4f1   :  { %v8094_v52 = vpop.f32.mrf.mxu0  ;;  %v7864_v4 = vpop.f32.mrf.mxu1  ;;  %6786 = vmatmul.mubr.f32.gmra.mxu1 %v6631_v56 }
 0x4f2   :  { %v12628_v2 = vadd.f32 %v12513_v11, %v5327_v37  ;;  %6790 = vmatprep.mubr.f32.mxu1 %v6637_v28  ;;  %v6639_v10 = vsel %vm880_vm2, %v6634_v7, %v6638_v14  ;;  %v6643_v61 = vsel %vm880_vm2, %v6638_v14, %v6642_v47 }
 0x4f3   :  { %v8095_v54 = vpop.f32.mrf.mxu0 }
 0x4f4   :  { %v7866_v62 = vpop.f32.mrf.mxu1 }
 0x4f5   :  { %v8097_v1 = vpop.f32.mrf.mxu0  ;;  %6791 = vmatmul.mubr.f32.gmra.mxu1 %v6635_v29 }
 0x4f6   :  { %v7867_v21 = vpop.f32.mrf.mxu1  ;;  %6794 = vmatprep.mubr.f32.mxu1 %v6641_v9 }
 0x4f7   :  { %v8098_v27 = vpop.f32.mrf.mxu0  ;;  %v7868_v30 = vadd.f32 %v7867_v21, %v7866_v62 }
 0x4f8   :  { %v12633_v58 = vadd.f32 %v8098_v27, %v8097_v1  ;;  %v7869_v11 = vpop.f32.mrf.mxu1 }
 0x4f9   :  { %v8100_v24 = vpop.f32.mrf.mxu0  ;;  %v5328_v41 = vadd.f32 %v7868_v30, %v12536_v39  ;;  %6795 = vmatmul.mubr.f32.gmra.mxu1 %v6639_v10 }
 0x4fa   :  { %v7870_v43 = vpop.f32.mrf.mxu1  ;;  %6799 = vmatprep.mubr.f32.mxu1 %v6645_v0 }
 0x4fb   :  { %v8101_v32 = vpop.f32.mrf.mxu0  ;;  %v12639_v31 = vadd.f32 %v12527_v15, %v5328_v41 }
 0x4fc   :  { %v7872_v53 = vpop.f32.mrf.mxu1 }
 0x4fd   :  { %v8103_v57 = vpop.f32.mrf.mxu0  ;;  %6800 = vmatmul.mubr.f32.gmra.mxu1 %v6643_v61 }
 0x4fe   :  { %v7873_v45 = vpop.f32.mrf.mxu1  ;;  %6803 = vmatprep.mubr.f32.mxu1 %v6644_v6 }
 0x4ff   :  { %v8104_v34 = vpop.f32.mrf.mxu0  ;;  %v7874_v39 = vadd.f32 %v7873_v45, %v7872_v53 }
 0x500   :  { %v12642_v60 = vadd.f32 %v8104_v34, %v8103_v57  ;;  %v7875_v5 = vpop.f32.mrf.mxu1  ;;  %v6869_v34 = vld [vmem:[%s12882_s7 + $0x78] sm:$0xff] }
 0x501   :  { %v8106_v50 = vpop.f32.mrf.mxu0  ;;  %v5329_v55 = vadd.f32 %v7874_v39, %v12546_v19  ;;  %6804 = vmatmul.mubr.f32.gmra.mxu1 %v6642_v47 }
 0x502   :  { %v7876_v35 = vpop.f32.mrf.mxu1  ;;  %v9396_v50 = vmov 0.0  }
 0x503   :  { %v8107_v44 = vpop.f32.mrf.mxu0  ;;  %v12646_v15 = vadd.f32 %v12540_v18, %v5329_v55  ;;  %8783 = vmatprep.subr.mxu0 %v9396_v50  ;;  %8815 = vmatprep.mubr.msk.f32.mxu0 %vm9397_vm9, %v9396_v50 }
 0x504   :  { %v7878_v33 = vpop.f32.mrf.mxu1  ;;  %8784 = vmatpush3.msra.mxu0 %v6869_v34 }
 0x505   :  { %v8109_v12 = vpop.f32.mrf.mxu0  ;;  %8785 = vmatprep.subr.mxu0 %v9396_v50 }
 0x506   :  { %v7879_v3 = vpop.f32.mrf.mxu1 }
 0x507   :  { %v8110_v8 = vpop.f32.mrf.mxu0  ;;  %v7880_v16 = vadd.f32 %v7879_v3, %v7878_v33 }
 0x508   :  { %v12648_v26 = vadd.f32 %v8110_v8, %v8109_v12  ;;  %v7881_v17 = vpop.f32.mrf.mxu1 }
 0x509   :  { %v8112_v37 = vpop.f32.mrf.mxu0  ;;  %v5330_v52 = vadd.f32 %v7880_v16, %v12560_v42  ;;  %v6868_v17 = vld [vmem:[%s12882_s7 + $0x70] sm:$0xff] }
 0x50a   :  { %v7882_v46 = vpop.f32.mrf.mxu1  ;;  %v6867_v37 = vld [vmem:[%s12882_s7 + $0x68] sm:$0xff]  ;;  %8786 = vmatpush3.msra.mxu0 %v6868_v17 }
 0x50b   :  { %v8113_v7 = vpop.f32.mrf.mxu0  ;;  %v12652_v19 = vadd.f32 %v12552_v40, %v5330_v52  ;;  %8787 = vmatprep.subr.mxu0 %v9396_v50 }
 0x50c   :  { %v7884_v56 = vpop.f32.mrf.mxu1  ;;  %8788 = vmatpush3.msra.mxu0 %v6867_v37 }
 0x50d   :  { %8789 = vmatprep.subr.mxu0 %v9396_v50 }
 0x50e   :  { %v8115_v4 = vpop.f32.mrf.mxu0  ;;  %v7885_v18 = vpop.f32.mrf.mxu1 }
 0x50f   :  { %v7886_v20 = vadd.f32 %v7885_v18, %v7884_v56 }
 0x510   :  { %v8116_v28 = vpop.f32.mrf.mxu0 }
 0x511   :  { %v12654_v54 = vadd.f32 %v8116_v28, %v8115_v4  ;;  %v5331_v25 = vadd.f32 %v7886_v20, %v12574_v59  ;;  %v7996_v62 = vpop.f32.mrf.mxu1 }
 0x513   :  { %v8227_v1 = vpop.f32.mrf.mxu0  ;;  %v7997_v14 = vpop.f32.mrf.mxu1  ;;  %v12658_v29 = vadd.f32 %v12568_v48, %v5331_v25 }
 0x514   :  { %v7998_v42 = vadd.f32 %v7997_v14, %v7996_v62  ;;  %v6866_v62 = vld [vmem:[%s12882_s7 + $0x60] sm:$0xff] }
 0x515   :  { %v8228_v9 = vpop.f32.mrf.mxu0  ;;  %v7999_v40 = vpop.f32.mrf.mxu1  ;;  %8790 = vmatpush3.msra.mxu0 %v6866_v62 }
 0x516   :  { %v12660_v21 = vadd.f32 %v8228_v9, %v8227_v1  ;;  %v5833_v27 = vadd.f32 %v7998_v42, %v12586_v38  ;;  %v6865_v1 = vld [vmem:[%s12882_s7 + $0x58] sm:$0xff]  ;;  %8791 = vmatprep.subr.mxu0 %v9396_v50 }
 0x517   :  { %v8230_v6 = vpop.f32.mrf.mxu0  ;;  %v8000_v23 = vpop.f32.mrf.mxu1  ;;  %8792 = vmatpush3.msra.mxu0 %v6865_v1 }
 0x518   :  { %v12664_v11 = vadd.f32 %v12578_v36, %v5833_v27  ;;  %8793 = vmatprep.subr.mxu0 %v9396_v50 }
 0x519   :  { %v8231_v30 = vpop.f32.mrf.mxu0  ;;  %v8002_v59 = vpop.f32.mrf.mxu1 }
 0x51b   :  { %v8233_v24 = vpop.f32.mrf.mxu0  ;;  %v8003_v41 = vpop.f32.mrf.mxu1 }
 0x51c   :  { %v8004_v10 = vadd.f32 %v8003_v41, %v8002_v59  ;;  %v6864_v41 = vld [vmem:[%s12882_s7 + $0x50] sm:$0xff] }
 0x51d   :  { %v8234_v47 = vpop.f32.mrf.mxu0  ;;  %v8005_v0 = vpop.f32.mrf.mxu1  ;;  %8794 = vmatpush3.msra.mxu0 %v6864_v41 }
 0x51e   :  { %v12666_v48 = vadd.f32 %v8234_v47, %v8233_v24  ;;  %v5834_v43 = vadd.f32 %v8004_v10, %v12600_v22  ;;  %v6863_v10 = vld [vmem:[%s12882_s7 + $0x48] sm:$0xff]  ;;  %8795 = vmatprep.subr.mxu0 %v9396_v50 }
 0x51f   :  { %v8236_v32 = vpop.f32.mrf.mxu0  ;;  %v8006_v53 = vpop.f32.mrf.mxu1  ;;  %8796 = vmatpush3.msra.mxu0 %v6863_v10 }
 0x520   :  { %v12670_v38 = vadd.f32 %v12592_v51, %v5834_v43  ;;  %8797 = vmatprep.subr.mxu0 %v9396_v50 }
 0x521   :  { %v8237_v57 = vpop.f32.mrf.mxu0  ;;  %v8008_v61 = vpop.f32.mrf.mxu1 }
 0x523   :  { %v8239_v45 = vpop.f32.mrf.mxu0  ;;  %v8009_v36 = vpop.f32.mrf.mxu1 }
 0x524   :  { %v8010_v39 = vadd.f32 %v8009_v36, %v8008_v61 }
 0x525   :  { %v8240_v5 = vpop.f32.mrf.mxu0  ;;  %v8011_v22 = vpop.f32.mrf.mxu1 }
 0x526   :  { %v12676_v55 = vadd.f32 %v8240_v5, %v8239_v45  ;;  %v5835_v35 = vadd.f32 %v8010_v39, %v12614_v63  ;;  %v6862_v39 = vld [vmem:[%s12882_s7 + $0x40] sm:$0xff]  ;;  %v6861_v5 = vld [vmem:[%s12882_s7 + $0x38] sm:$0xff] }
 0x527   :  { %v8242_v51 = vpop.f32.mrf.mxu0  ;;  %v8012_v44 = vpop.f32.mrf.mxu1  ;;  %8798 = vmatpush3.msra.mxu0 %v6862_v39 }
 0x528   :  { %v12681_v12 = vadd.f32 %v12606_v13, %v5835_v35  ;;  %8799 = vmatprep.subr.mxu0 %v9396_v50 }
 0x529   :  { %v8243_v33 = vpop.f32.mrf.mxu0  ;;  %v8014_v3 = vpop.f32.mrf.mxu1  ;;  %8800 = vmatpush3.msra.mxu0 %v6861_v5 }
 0x52a   :  { %8801 = vmatprep.subr.mxu0 %v9396_v50 }
 0x52b   :  { %v8245_v8 = vpop.f32.mrf.mxu0  ;;  %v8015_v16 = vpop.f32.mrf.mxu1 }
 0x52c   :  { %v8016_v63 = vadd.f32 %v8015_v16, %v8014_v3 }
 0x52d   :  { %v8246_v52 = vpop.f32.mrf.mxu0  ;;  %v8017_v7 = vpop.f32.mrf.mxu1 }
 0x52e   :  { %v12689_v46 = vadd.f32 %v8246_v52, %v8245_v8  ;;  %v5836_v13 = vadd.f32 %v8016_v63, %v12628_v2 }
 0x52f   :  { %v8248_v56 = vpop.f32.mrf.mxu0  ;;  %v8018_v4 = vpop.f32.mrf.mxu1 }
 0x530   :  { %v12695_v20 = vadd.f32 %v12620_v49, %v5836_v13  ;;  %v6859_v13 = vld [vmem:[%s12882_s7 + $0x28] sm:$0xff]  ;;  %v6857_v4 = vld [vmem:[%s12882_s7 + $0x18] sm:$0xff] }
 0x531   :  { %v8249_v18 = vpop.f32.mrf.mxu0  ;;  %v8020_v28 = vpop.f32.mrf.mxu1 }
 0x533   :  { %v8251_v25 = vpop.f32.mrf.mxu0  ;;  %v8021_v2 = vpop.f32.mrf.mxu1 }
 0x534   :  { %v8022_v42 = vadd.f32 %v8021_v2, %v8020_v28  ;;  %v6855_v2 = vld [vmem:[%s12882_s7 + $0x8] sm:$0xff] }
 0x535   :  { %v8252_v14 = vpop.f32.mrf.mxu0  ;;  %v8023_v49 = vpop.f32.mrf.mxu1 }
 0x536   :  { %v12703_v9 = vadd.f32 %v8252_v14, %v8251_v25  ;;  %v5837_v27 = vadd.f32 %v8022_v42, %v12639_v31  ;;  %v6854_v42 = vld [vmem:[%s12882_s7] sm:$0xff] }
 0x537   :  { %v8254_v40 = vpop.f32.mrf.mxu0  ;;  %v8024_v6 = vpop.f32.mrf.mxu1 }
 0x538   :  { %v12709_v30 = vadd.f32 %v12633_v58, %v5837_v27 }
 0x539   :  { %v8255_v23 = vpop.f32.mrf.mxu0  ;;  %v8026_v59 = vpop.f32.mrf.mxu1 }
 0x53b   :  { %v8257_v24 = vpop.f32.mrf.mxu0  ;;  %v8027_v47 = vpop.f32.mrf.mxu1 }
 0x53c   :  { %v8028_v31 = vadd.f32 %v8027_v47, %v8026_v59 }
 0x53d   :  { %v8258_v0 = vpop.f32.mrf.mxu0  ;;  %v8029_v58 = vpop.f32.mrf.mxu1 }
 0x53e   :  { %v12717_v43 = vadd.f32 %v8258_v0, %v8257_v24  ;;  %v5838_v53 = vadd.f32 %v8028_v31, %v12646_v15 }
 0x53f   :  { %v8260_v32 = vpop.f32.mrf.mxu0  ;;  %v8030_v57 = vpop.f32.mrf.mxu1 }
 0x540   :  { %v12723_v45 = vadd.f32 %v12642_v60, %v5838_v53  ;;  %v6860_v60 = vld [vmem:[%s12882_s7 + $0x30] sm:$0xff] }
 0x541   :  { %v8261_v61 = vpop.f32.mrf.mxu0  ;;  %v8032_v36 = vpop.f32.mrf.mxu1  ;;  %8802 = vmatpush3.msra.mxu0 %v6860_v60 }
 0x542   :  { %8803 = vmatprep.subr.mxu0 %v9396_v50 }
 0x543   :  { %v8263_v34 = vpop.f32.mrf.mxu0  ;;  %v8033_v22 = vpop.f32.mrf.mxu1  ;;  %8804 = vmatpush3.msra.mxu0 %v6859_v13 }
 0x544   :  { %v8034_v15 = vadd.f32 %v8033_v22, %v8032_v36  ;;  %8805 = vmatprep.subr.mxu0 %v9396_v50 }
 0x545   :  { %v8264_v35 = vpop.f32.mrf.mxu0  ;;  %v8035_v44 = vpop.f32.mrf.mxu1 }
 0x546   :  { %v12731_v51 = vadd.f32 %v8264_v35, %v8263_v34  ;;  %v5839_v3 = vadd.f32 %v8034_v15, %v12652_v19  ;;  %v6858_v19 = vld [vmem:[%s12882_s7 + $0x20] sm:$0xff] }
 0x547   :  { %v8266_v33 = vpop.f32.mrf.mxu0  ;;  %v8036_v8 = vpop.f32.mrf.mxu1  ;;  %8806 = vmatpush3.msra.mxu0 %v6858_v19 }
 0x548   :  { %v12740_v17 = vadd.f32 %v12648_v26, %v5839_v3  ;;  %8807 = vmatprep.subr.mxu0 %v9396_v50 }
 0x549   :  { %v8267_v16 = vpop.f32.mrf.mxu0  ;;  %v8038_v37 = vpop.f32.mrf.mxu1  ;;  %8808 = vmatpush3.msra.mxu0 %v6857_v4 }
 0x54a   :  { %8809 = vmatprep.subr.mxu0 %v9396_v50 }
 0x54b   :  { %v8039_v63 = vpop.f32.mrf.mxu1 }
 0x54c   :  { %v8040_v52 = vadd.f32 %v8039_v63, %v8038_v37 }
 0x54d   :  { %v8150_v7 = vpop.f32.mrf.mxu1 }
 0x54e   :  { %v5840_v56 = vadd.f32 %v8040_v52, %v12658_v29  ;;  %v6856_v29 = vld [vmem:[%s12882_s7 + $0x10] sm:$0xff] }
 0x54f   :  { %v8151_v26 = vpop.f32.mrf.mxu1  ;;  %8810 = vmatpush3.msra.mxu0 %v6856_v29 }
 0x550   :  { %v8152_v18 = vadd.f32 %v8151_v26, %v8150_v7  ;;  %v12757_v28 = vadd.f32 %v12654_v54, %v5840_v56  ;;  %8811 = vmatprep.subr.mxu0 %v9396_v50 }
 0x551   :  { %v8153_v25 = vpop.f32.mrf.mxu1  ;;  %8812 = vmatpush3.msra.mxu0 %v6855_v2 }
 0x552   :  { %v6342_v62 = vadd.f32 %v8152_v18, %v12664_v11  ;;  %8813 = vmatprep.subr.mxu0 %v9396_v50 }
 0x553   :  { %v8154_v1 = vpop.f32.mrf.mxu1  ;;  %8814 = vmatpush3.msra.mxu0 %v6854_v42 }
 0x554   :  { %v12769_v54 = vadd.f32 %v12660_v21, %v6342_v62  ;;  %8818 = vmatprep.subr.mxu0 %v9396_v50 }
 0x555   :  { %v8156_v14 = vpop.f32.mrf.mxu1 }
 0x557   :  { %v8157_v11 = vpop.f32.mrf.mxu1 }
 0x558   :  { %v8158_v49 = vadd.f32 %v8157_v11, %v8156_v14 }
 0x559   :  { %v8159_v40 = vpop.f32.mrf.mxu1 }
 0x55a   :  { %v6343_v21 = vadd.f32 %v8158_v49, %v12670_v38 }
 0x55b   :  { %v8160_v27 = vpop.f32.mrf.mxu1 }
 0x55c   :  { %v6547_v6 = vadd.f32 %v12666_v48, %v6343_v21 }
 0x55d   :  { %v8162_v23 = vpop.f32.mrf.mxu1 }
 0x55f   :  { %v8163_v59 = vpop.f32.mrf.mxu1 }
 0x560   :  { %v8164_v24 = vadd.f32 %v8163_v59, %v8162_v23 }
 0x561   :  { %v8165_v41 = vpop.f32.mrf.mxu1 }
 0x562   :  { %v6344_v10 = vadd.f32 %v8164_v24, %v12681_v12 }
 0x563   :  { %v8166_v47 = vpop.f32.mrf.mxu1 }
 0x564   :  { %v6548_v0 = vadd.f32 %v12676_v55, %v6344_v10 }
 0x565   :  { %v8168_v31 = vpop.f32.mrf.mxu1 }
 0x567   :  { %v8169_v58 = vpop.f32.mrf.mxu1 }
 0x568   :  { %v8170_v32 = vadd.f32 %v8169_v58, %v8168_v31 }
 0x569   :  { %v8171_v53 = vpop.f32.mrf.mxu1 }
 0x56a   :  { %v6345_v57 = vadd.f32 %v8170_v32, %v12695_v20 }
 0x56b   :  { %v8172_v61 = vpop.f32.mrf.mxu1 }
 0x56c   :  { %v6549_v38 = vadd.f32 %v12689_v46, %v6345_v57 }
 0x56d   :  { %v8174_v36 = vpop.f32.mrf.mxu1 }
 0x56f   :  { %v8175_v48 = vpop.f32.mrf.mxu1 }
 0x570   :  { %v8176_v34 = vadd.f32 %v8175_v48, %v8174_v36 }
 0x571   :  { %v8177_v39 = vpop.f32.mrf.mxu1 }
 0x572   :  { %v6346_v5 = vadd.f32 %v8176_v34, %v12709_v30 }
 0x573   :  { %v8178_v22 = vpop.f32.mrf.mxu1 }
 0x574   :  { %v6550_v12 = vadd.f32 %v12703_v9, %v6346_v5 }
 0x575   :  { %v8180_v35 = vpop.f32.mrf.mxu1 }
 0x577   :  { %v8181_v55 = vpop.f32.mrf.mxu1 }
 0x578   :  { %v8182_v15 = vadd.f32 %v8181_v55, %v8180_v35 }
 0x579   :  { %v8183_v60 = vpop.f32.mrf.mxu1 }
 0x57a   :  { %v6347_v44 = vadd.f32 %v8182_v15, %v12723_v45  ;;  %v8269_v15 = vpop.f32.mrf.mxu0 }
 0x57b   :  { %v8184_v33 = vpop.f32.mrf.mxu1 }
 0x57c   :  { %v6551_v20 = vadd.f32 %v12717_v43, %v6347_v44 }
 0x57d   :  { %v8186_v3 = vpop.f32.mrf.mxu1 }
 0x57f   :  { %v8187_v46 = vpop.f32.mrf.mxu1 }
 0x580   :  { %v8188_v8 = vadd.f32 %v8187_v46, %v8186_v3  ;;  %v8270_v46 = vpop.f32.mrf.mxu0 }
 0x581   :  { %v8189_v16 = vpop.f32.mrf.mxu1 }
 0x582   :  { %v6348_v37 = vadd.f32 %v8188_v8, %v12740_v17 }
 0x583   :  { %v8190_v63 = vpop.f32.mrf.mxu1 }
 0x584   :  { %v6552_v30 = vadd.f32 %v12731_v51, %v6348_v37 }
 0x585   :  { %v8192_v52 = vpop.f32.mrf.mxu1 }
 0x587   :  { %v8193_v9 = vpop.f32.mrf.mxu1 }
 0x588   :  { %v8194_v44 = vadd.f32 %v8193_v9, %v8192_v52  ;;  %v7376_v52 = vld [vmem:[%s12881_s6] ss:$0 sm:$0xff] }
 0x589   :  { %v8304_v7 = vpop.f32.mrf.mxu1 }
 0x58a   :  { %v6349_v16 = vadd.f32 %v8194_v44, %v12757_v28  ;;  %v6962_v28 = vld [vmem:[%s12884_s9 + $0x78] sm:$0xff] }
 0x58b   :  { %v8305_v13 = vpop.f32.mrf.mxu1 }
 0x58c   :  { %v8306_v4 = vadd.f32 %v8305_v13, %v8304_v7  ;;  %v8271_v7 = vadd.f32 %v8270_v46, %v8269_v15 }
 0x58d   :  { %v8307_v19 = vpop.f32.mrf.mxu1 }
 0x58e   :  { %v6809_v62 = vadd.f32 %v8306_v4, %v12769_v54  ;;  %v6553_v19 = vadd.f32 %v8271_v7, %v6349_v16 }
 0x58f   :  { %v8308_v56 = vpop.f32.mrf.mxu1 }
 0x591   :  { %v8310_v26 = vpop.f32.mrf.mxu1 }
 0x593   :  { %v8311_v45 = vpop.f32.mrf.mxu1 }
 0x594   :  { %v8312_v18 = vadd.f32 %v8311_v45, %v8310_v26 }
 0x595   :  { %v8313_v43 = vpop.f32.mrf.mxu1 }
 0x596   :  { %v6810_v25 = vadd.f32 %v8312_v18, %v6547_v6  ;;  %v6961_v18 = vld [vmem:[%s12884_s9 + $0x70] sm:$0xff]  ;;  %v6960_v43 = vld [vmem:[%s12884_s9 + $0x68] sm:$0xff] }
 0x597   :  { %v8314_v29 = vpop.f32.mrf.mxu1 }
 0x598   :  { %v6818_v1 = vrot.slane %v6810_v25, 7  ;;  %v6959_v25 = vld [vmem:[%s12884_s9 + $0x60] sm:$0xff]  ;;  %v6958_v29 = vld [vmem:[%s12884_s9 + $0x58] sm:$0xff] }
 0x599   :  { %v8316_v17 = vpop.f32.mrf.mxu1 }
 0x59a   :  { %v6838_v2 = vsel %vm6120_vm8, %v6809_v62, %v6818_v1  ;;  %v6957_v62 = vld [vmem:[%s12884_s9 + $0x50] sm:$0xff]  ;;  %v6956_v1 = vld [vmem:[%s12884_s9 + $0x48] sm:$0xff] }
 0x59b   :  { %v8317_v51 = vpop.f32.mrf.mxu1 }
 0x59c   :  { %v8318_v14 = vadd.f32 %v8317_v51, %v8316_v17  ;;  %v6955_v17 = vld [vmem:[%s12884_s9 + $0x40] sm:$0xff]  ;;  %v6953_v51 = vld [vmem:[%s12884_s9 + $0x30] sm:$0xff] }
 0x59d   :  { %v8319_v42 = vpop.f32.mrf.mxu1 }
 0x59e   :  { %v6811_v11 = vadd.f32 %v8318_v14, %v6548_v0  ;;  %v6952_v14 = vld [vmem:[%s12884_s9 + $0x28] sm:$0xff]  ;;  %v6951_v42 = vld [vmem:[%s12884_s9 + $0x20] sm:$0xff] }
 0x59f   :  { %v8320_v49 = vpop.f32.mrf.mxu1 }
 0x5a0   :  { %v6821_v40 = vrot.slane %v6811_v11, 6  ;;  %v6950_v11 = vld [vmem:[%s12884_s9 + $0x18] sm:$0xff]  ;;  %v6949_v49 = vld [vmem:[%s12884_s9 + $0x10] sm:$0xff] }
 0x5a1   :  { %v8322_v21 = vpop.f32.mrf.mxu1 }
 0x5a2   :  { %v6839_v27 = vsel %vm5882_vm6, %v6838_v2, %v6821_v40  ;;  %v6954_v2 = vld [vmem:[%s12884_s9 + $0x38] sm:$0xff]  ;;  %v6948_v40 = vld [vmem:[%s12884_s9 + $0x8] sm:$0xff] }
 0x5a3   :  { %v8323_v23 = vpop.f32.mrf.mxu1 }
 0x5a4   :  { %v8324_v59 = vadd.f32 %v8323_v23, %v8322_v21  ;;  %v6947_v21 = vld [vmem:[%s12884_s9] sm:$0xff] }
 0x5a5   :  { %v8325_v24 = vpop.f32.mrf.mxu1 }
 0x5a6   :  { %v6812_v6 = vadd.f32 %v8324_v59, %v6549_v38 }
 0x5a7   :  { %v8326_v41 = vpop.f32.mrf.mxu1 }
 0x5a8   :  { %v6824_v10 = vrot.slane %v6812_v6, 5  ;;  %v7378_v6 = vld [vmem:[%s12885_s10] ss:$0 sm:$0xff] }
 0x5a9   :  { %v8328_v54 = vpop.f32.mrf.mxu1 }
 0x5aa   :  { %v6840_v47 = vsel %vm5611_vm7, %v6839_v27, %v6824_v10  ;;  %v7377_v27 = vld [vmem:[%s12883_s8] ss:$0 sm:$0xff] }
 0x5ab   :  { %v8329_v31 = vpop.f32.mrf.mxu1 }
 0x5ac   :  { %v8330_v58 = vadd.f32 %v8329_v31, %v8328_v54 }
 0x5ad   :  { %v8331_v32 = vpop.f32.mrf.mxu1 }
 0x5ae   :  { %v6813_v53 = vadd.f32 %v8330_v58, %v6550_v12 }
 0x5af   :  { %v8332_v57 = vpop.f32.mrf.mxu1 }
 0x5b0   :  { %v6827_v0 = vrot.slane %v6813_v53, 4 }
 0x5b1   :  { %v8334_v61 = vpop.f32.mrf.mxu1 }
 0x5b2   :  { %v6841_v36 = vsel %vm5373_vm4, %v6840_v47, %v6827_v0 }
 0x5b3   :  { %v8335_v48 = vpop.f32.mrf.mxu1 }
 0x5b4   :  { %v8336_v34 = vadd.f32 %v8335_v48, %v8334_v61 }
 0x5b5   :  { %v8337_v39 = vpop.f32.mrf.mxu1 }
 0x5b6   :  { %v6814_v5 = vadd.f32 %v8336_v34, %v6551_v20 }
 0x5b7   :  { %v8338_v22 = vpop.f32.mrf.mxu1 }
 0x5b8   :  { %v6830_v38 = vrot.slane %v6814_v5, 3 }
 0x5b9   :  { %v8340_v35 = vpop.f32.mrf.mxu1 }
 0x5ba   :  { %v6842_v55 = vsel %vm5102_vm5, %v6841_v36, %v6830_v38 }
 0x5bb   :  { %v8341_v60 = vpop.f32.mrf.mxu1 }
 0x5bc   :  { %v8342_v33 = vadd.f32 %v8341_v60, %v8340_v35 }
 0x5bd   :  { %v8343_v3 = vpop.f32.mrf.mxu1 }
 0x5be   :  { %v6815_v12 = vadd.f32 %v8342_v33, %v6552_v30 }
 0x5bf   :  { %v8344_v8 = vpop.f32.mrf.mxu1 }
 0x5c0   :  { %v6833_v37 = vrot.slane %v6815_v12, 2 }
 0x5c1   :  { %v8346_v63 = vpop.f32.mrf.mxu1 }
 0x5c2   :  { %v6843_v20 = vsel %vm4864_vm3, %v6842_v55, %v6833_v37 }
 0x5c3   :  { %v8347_v13 = vpop.f32.mrf.mxu1 }
 0x5c4   :  { %v8348_v56 = vadd.f32 %v8347_v13, %v8346_v63 }
 0x5c6   :  { %v6816_v26 = vadd.f32 %v8348_v56, %v6553_v19 }
 0x5c8   :  { %v6836_v45 = vrot.slane %v6816_v26, 1 }
 0x5ca   :  { %v6844_v30 = vsel %vm880_vm2, %v6843_v20, %v6836_v45 }
 0x5cb   :  { %v6852_v9 = vadd.f32 %v7376_v52, %v6844_v30 }
 0x5cd   :  { %9212 = vtanh.f32 %v6852_v9 }
 0x5da   :  { %v9213_v4 = vpop.eup %9212 }
 0x5db   :  { %8816 = vmatmul.mubr.f32.vlgmr.msra.gmra.mxu0 %v9213_v4 }
 0x5dc   :  { %8819 = vmatpush3.msra.mxu0 %v6962_v28  ;;  %8850 = vmatprep.mubr.msk.f32.mxu0 %vm9397_vm9, %v9396_v50 }
 0x5dd   :  { %8820 = vmatprep.subr.mxu0 %v9396_v50 }
 0x5de   :  { %8821 = vmatpush3.msra.mxu0 %v6961_v18 }
 0x5df   :  { %8822 = vmatprep.subr.mxu0 %v9396_v50 }
 0x5e0   :  { %8823 = vmatpush3.msra.mxu0 %v6960_v43 }
 0x5e1   :  { %8824 = vmatprep.subr.mxu0 %v9396_v50 }
 0x5e2   :  { %8825 = vmatpush3.msra.mxu0 %v6959_v25 }
 0x5e3   :  { %8826 = vmatprep.subr.mxu0 %v9396_v50 }
 0x5e4   :  { %8827 = vmatpush3.msra.mxu0 %v6958_v29 }
 0x5e5   :  { %8828 = vmatprep.subr.mxu0 %v9396_v50 }
 0x5e6   :  { %8829 = vmatpush3.msra.mxu0 %v6957_v62 }
 0x5e7   :  { %8830 = vmatprep.subr.mxu0 %v9396_v50 }
 0x5e8   :  { %8831 = vmatpush3.msra.mxu0 %v6956_v1 }
 0x5e9   :  { %8832 = vmatprep.subr.mxu0 %v9396_v50 }
 0x5ea   :  { %8833 = vmatpush3.msra.mxu0 %v6955_v17 }
 0x5eb   :  { %8834 = vmatprep.subr.mxu0 %v9396_v50 }
 0x5ec   :  { %8835 = vmatpush3.msra.mxu0 %v6954_v2 }
 0x5ed   :  { %8836 = vmatprep.subr.mxu0 %v9396_v50 }
 0x5ee   :  { %8837 = vmatpush3.msra.mxu0 %v6953_v51 }
 0x5ef   :  { %8838 = vmatprep.subr.mxu0 %v9396_v50 }
 0x5f0   :  { %8839 = vmatpush3.msra.mxu0 %v6952_v14 }
 0x5f1   :  { %8840 = vmatprep.subr.mxu0 %v9396_v50 }
 0x5f2   :  { %8841 = vmatpush3.msra.mxu0 %v6951_v42 }
 0x5f3   :  { %8842 = vmatprep.subr.mxu0 %v9396_v50 }
 0x5f4   :  { %8843 = vmatpush3.msra.mxu0 %v6950_v11 }
 0x5f5   :  { %8844 = vmatprep.subr.mxu0 %v9396_v50 }
 0x5f6   :  { %8845 = vmatpush3.msra.mxu0 %v6949_v49 }
 0x5f7   :  { %8846 = vmatprep.subr.mxu0 %v9396_v50 }
 0x5f8   :  { %8847 = vmatpush3.msra.mxu0 %v6948_v40 }
 0x5f9   :  { %8848 = vmatprep.subr.mxu0 %v9396_v50 }
 0x5fa   :  { %8849 = vmatpush3.msra.mxu0 %v6947_v21 }
 0x69b   :  { %v6943_v23 = vpop.f32.mrf.mxu0 }
 0x69c   :  { %v6944_v59 = vadd.f32 %v7377_v27, %v6943_v23 }
 0x69d   :  { %v8817_v24 = vpop.f32.mrf.mxu0 }
 0x69e   :  { %8851 = vmatmul.mubr.f32.vlgmr.msra.gmra.mxu0 %v6944_v59 }
 0x75e   :  { %v7036_v41 = vpop.f32.mrf.mxu0 }
 0x75f   :  { %v7037_v10 = vadd.f32 %v7378_v6, %v7036_v41 }
 0x760   :  { %v8852_v54 = vpop.f32.mrf.mxu0 }
 0x761   :  { %7040 = vst [vmem:[%s12886_s11] sm:$0xff] %v7037_v10 }
 0x762   :  { %7045 = vsyncpa [#allocation5], 1 }
 0x763   :  { %7046 = vsyncpa [#allocation7], 1 }

</bundles_post_ra>
